<compile_context>
chip_gen: v5e
topology: v5e:2x2
jax: 0.10.0
libtpu: 0.0.40
codegen_flags: <defaults>
</compile_context>

<pallas_src>
import functools

import jax
import jax.numpy as jnp
from jax import lax
from jax.experimental import pallas as pl
from jax.experimental.pallas import tpu as pltpu

NUM_TASKS = 3
NUM_CLASSES = 10                  # classes per head
HEAD_PAD = 128                    # all-heads logits padded to a full 128-lane vreg
VMEM_LIMIT = 32 * 1024 * 1024     # explicit; fits v5e/v6e/v7x scoped VMEM


def _round_up(x, m):
    return (x + m - 1) // m * m


# ----------------------------------------------------------------------------
# Kernel 1: tiled fused dense  y = relu(x @ W + b)   (used for conv1's im2col)
# ----------------------------------------------------------------------------
def _dense_relu_kernel(x_ref, w_ref, b_ref, o_ref):
    acc = jnp.dot(x_ref[...], w_ref[...], preferred_element_type=jnp.float32)
    acc = acc + b_ref[...]                       # (1, N) broadcast, once per tile
    o_ref[...] = jnp.maximum(acc, 0.0).astype(o_ref.dtype)


def dense_relu(x, w, b, *, tile_m=256, out_dtype=jnp.bfloat16):
    """x: (M, K) bf16, w: (K, N) bf16, b: (1, N) f32 -> (M, N) out_dtype."""
    M, K = x.shape
    Kw, N = w.shape
    assert K == Kw, (K, Kw)
    tm = tile_m if (M >= tile_m and M % tile_m == 0) else M
    return pl.pallas_call(
        _dense_relu_kernel,
        out_shape=jax.ShapeDtypeStruct((M, N), out_dtype),
        grid=(M // tm,),
        in_specs=[
            pl.BlockSpec((tm, K), lambda i: (i, 0)),
            pl.BlockSpec((K, N), lambda i: (0, 0)),   # weight stays resident
            pl.BlockSpec((1, N), lambda i: (0, 0)),   # bias stays resident
        ],
        out_specs=pl.BlockSpec((tm, N), lambda i: (i, 0)),
        compiler_params=pltpu.CompilerParams(
            dimension_semantics=("parallel",),
            vmem_limit_bytes=VMEM_LIMIT,
        ),
    )(x, w, b)


# ----------------------------------------------------------------------------
# Kernel 2: 3x3 / stride-2 / pad-1 conv + bias + ReLU, patch taps done IN-KERNEL
# ----------------------------------------------------------------------------
def _conv9_kernel(ee_ref, eo_ref, oe_ref, oo_ref, w_ref, b_ref, o_ref,
                  *, wo_p1, n_rows_pad):
    # tap t = kh*3 + kw  ->  (phase index, dh, dw); phases = (ee, eo, oe, oo)
    taps = ((0, 0, 0), (1, 0, 0), (0, 0, 1),
            (2, 0, 0), (3, 0, 0), (2, 0, 1),
            (0, 1, 0), (1, 1, 0), (0, 1, 1))
    phases = (ee_ref, eo_ref, oe_ref, oo_ref)
    cout = o_ref.shape[-1]
    acc = jnp.zeros((n_rows_pad, cout), jnp.float32)
    for t, (p, dh, dw) in enumerate(taps):
        off = dh * wo_p1 + dw                       # static row offset (free slice)
        x = phases[p][off:off + n_rows_pad, :]      # contiguous slice, in VMEM
        acc = acc + jnp.dot(x, w_ref[t], preferred_element_type=jnp.float32)
    acc = acc + b_ref[...]                          # bias broadcast once per tile
    o_ref[...] = jnp.maximum(acc, 0.0).astype(o_ref.dtype)


def conv3x3_s2_relu(x_nhwc, w9, b, *, out_dtype=jnp.bfloat16):
    """x: (B, H, W, Cin) bf16, w9: (9, Cin, Cout) bf16 (t = kh*3+kw),
    b: (1, Cout) f32.  Returns relu(conv(x)) as (B, H/2, W/2, Cout)."""
    B, H, W, Cin = x_nhwc.shape
    _, _, Cout = w9.shape
    Ho, Wo = H // 2, W // 2
    assert H == 2 * Ho and W == 2 * Wo

    # Even/odd spatial phases of the zero-padded input (XLA glue, ~1x the data,
    # instead of a 9x im2col expansion in HBM).
    xp = jnp.pad(x_nhwc, ((0, 0), (1, 1), (1, 1), (0, 0)))       # (B, 2Ho+2, 2Wo+2, C)
    raw_phases = (xp[:, 0::2, 0::2, :], xp[:, 0::2, 1::2, :],
                  xp[:, 1::2, 0::2, :], xp[:, 1::2, 1::2, :])    # each (B, Ho+1, Wo+1, C)

    P = (Ho + 1) * (Wo + 1)
    n_rows = Ho * (Wo + 1)                   # output rows incl. a dummy col j == Wo
    n_rows_pad = _round_up(n_rows, 8)
    max_off = (Wo + 1) + 1
    P_pad = _round_up(max(P, n_rows_pad + max_off), 8)

    def prep(p):
        p = p.reshape(B, P, Cin)
        return jnp.pad(p, ((0, 0), (0, P_pad - P), (0, 0)))

    phases = tuple(prep(p) for p in raw_phases)

    kernel = functools.partial(_conv9_kernel, wo_p1=Wo + 1, n_rows_pad=n_rows_pad)
    phase_spec = pl.BlockSpec((None, P_pad, Cin), lambda bi: (bi, 0, 0))
    y = pl.pallas_call(
        kernel,
        out_shape=jax.ShapeDtypeStruct((B, n_rows_pad, Cout), out_dtype),
        grid=(B,),
        in_specs=[phase_spec, phase_spec, phase_spec, phase_spec,
                  pl.BlockSpec((9, Cin, Cout), lambda bi: (0, 0, 0)),   # resident
                  pl.BlockSpec((1, Cout), lambda bi: (0, 0))],          # resident
        out_specs=pl.BlockSpec((None, n_rows_pad, Cout), lambda bi: (bi, 0, 0)),
        compiler_params=pltpu.CompilerParams(
            dimension_semantics=("parallel",),
            vmem_limit_bytes=VMEM_LIMIT,
        ),
    )(*phases, w9, b)

    # Drop padded rows and the dummy column -> NHWC output.
    return y[:, :n_rows, :].reshape(B, Ho, Wo + 1, Cout)[:, :, :Wo, :]


# ----------------------------------------------------------------------------
# Kernel 3: fused MLP tail + all heads:  relu(relu(x W1 + b1) W2 + b2) Wh + bh
# ----------------------------------------------------------------------------
def _mlp_head_kernel(x_ref, w1_ref, b1_ref, w2_ref, b2_ref, wh_ref, bh_ref, o_ref):
    h = jnp.dot(x_ref[...], w1_ref[...], preferred_element_type=jnp.float32)
    h = jnp.maximum(h + b1_ref[...], 0.0).astype(x_ref.dtype)
    h = jnp.dot(h, w2_ref[...], preferred_element_type=jnp.float32)
    h = jnp.maximum(h + b2_ref[...], 0.0).astype(x_ref.dtype)
    out = jnp.dot(h, wh_ref[...], preferred_element_type=jnp.float32) + bh_ref[...]
    o_ref[...] = out.astype(o_ref.dtype)


def mlp_heads(x, p, *, tile_m=256):
    """x: (B, 2560) bf16 -> all-head logits (B, HEAD_PAD) f32."""
    B, K = x.shape
    tm = tile_m if (B >= tile_m and B % tile_m == 0) else B
    res2 = lambda i: (0, 0)                         # resident weights / biases
    return pl.pallas_call(
        _mlp_head_kernel,
        out_shape=jax.ShapeDtypeStruct((B, HEAD_PAD), jnp.float32),
        grid=(B // tm,),
        in_specs=[
            pl.BlockSpec((tm, K), lambda i: (i, 0)),
            pl.BlockSpec(p["lin1_w"].shape, res2),
            pl.BlockSpec(p["lin1_b"].shape, res2),
            pl.BlockSpec(p["lin2_w"].shape, res2),
            pl.BlockSpec(p["lin2_b"].shape, res2),
            pl.BlockSpec(p["head_w"].shape, res2),
            pl.BlockSpec(p["head_b"].shape, res2),
        ],
        out_specs=pl.BlockSpec((tm, HEAD_PAD), lambda i: (i, 0)),
        compiler_params=pltpu.CompilerParams(
            dimension_semantics=("parallel",),
            vmem_limit_bytes=VMEM_LIMIT,
        ),
    )(x, p["lin1_w"], p["lin1_b"], p["lin2_w"], p["lin2_b"],
      p["head_w"], p["head_b"])


# ----------------------------------------------------------------------------
# im2col for conv1 only (K = 27, tiny; heavy convs are done in-kernel)
# ----------------------------------------------------------------------------
def _im2col_s2p1k3(x_nhwc):
    B, H, W, C = x_nhwc.shape
    Ho, Wo = (H + 2 - 3) // 2 + 1, (W + 2 - 3) // 2 + 1
    xp = jnp.pad(x_nhwc, ((0, 0), (1, 1), (1, 1), (0, 0)))
    patches = [xp[:, kh:kh + 2 * Ho:2, kw:kw + 2 * Wo:2, :]
               for kh in range(3) for kw in range(3)]
    cols = jnp.concatenate(patches, axis=-1)             # (B, Ho, Wo, 9*C), (kh,kw,cin)
    return cols.reshape(B * Ho * Wo, 9 * C), (Ho, Wo)


# ----------------------------------------------------------------------------
# Parameters (deterministic synthetic init, stored in kernel-friendly layouts)
# ----------------------------------------------------------------------------
def init_params(key):
    ks = jax.random.split(key, 6)

    def he(k, shape, fan_in, dtype=jnp.bfloat16):
        return (jax.random.normal(k, shape, jnp.float32) *
                (2.0 / fan_in) ** 0.5).astype(dtype)

    params = {
        # conv1: rows in (kh, kw, cin) order  == torch_w.permute(2,3,1,0).reshape(27,160)
        "conv1_w": he(ks[0], (27, 160), 27),
        "conv1_b": jnp.zeros((1, 160), jnp.float32),
        # conv2/3: tap-major (9, Cin, Cout), tap t = kh*3+kw (HWIO.reshape(9,Cin,Cout))
        "conv2_w": he(ks[1], (9, 160, 160), 9 * 160),
        "conv2_b": jnp.zeros((1, 160), jnp.float32),
        "conv3_w": he(ks[2], (9, 160, 160), 9 * 160),
        "conv3_b": jnp.zeros((1, 160), jnp.float32),
        "lin1_b": jnp.zeros((1, 320), jnp.float32),
        "lin2_w": he(ks[4], (320, 320), 320),            # == torch W2.T
        "lin2_b": jnp.zeros((1, 320), jnp.float32),
        "head_b": jnp.zeros((1, HEAD_PAD), jnp.float32),
    }

    # linear1: fold torch's NCHW x.view(-1, 2560) row ordering into the weight
    # once at init time (row r in NHWC (h,w,c) order reads torch row c*16+h*4+w).
    w1_nchw = he(ks[3], (16 * 160, 320), 16 * 160)       # rows in torch (c,h,w) order
    h_i, w_i, c_i = jnp.meshgrid(jnp.arange(4), jnp.arange(4), jnp.arange(160),
                                 indexing="ij")
    perm = (c_i * 16 + h_i * 4 + w_i).reshape(-1)
    params["lin1_w"] = w1_nchw[perm]                     # rows now in NHWC flatten order

    # MultiHeadClassifier: all NUM_TASKS heads side by side, padded to 128 lanes.
    head_w = he(ks[5], (NUM_TASKS, 320, NUM_CLASSES), 320)
    w_all = jnp.transpose(head_w, (1, 0, 2)).reshape(320, NUM_TASKS * NUM_CLASSES)
    params["head_w"] = jnp.pad(w_all, ((0, 0), (0, HEAD_PAD - NUM_TASKS * NUM_CLASSES)))
    return params


# ----------------------------------------------------------------------------
# Full forward: MTConvCIFAR.forward(x, task_labels)
# ----------------------------------------------------------------------------
def mt_conv_cifar_forward(params, x_nchw, task_labels):
    B = x_nchw.shape[0]
    x = jnp.transpose(x_nchw, (0, 2, 3, 1)).astype(jnp.bfloat16)    # NCHW -> NHWC

    # conv1: JAX im2col (K=27) + tiled Pallas matmul.
    cols, (Ho, Wo) = _im2col_s2p1k3(x)
    x = dense_relu(cols, params["conv1_w"], params["conv1_b"],
                   tile_m=256).reshape(B, Ho, Wo, 160)              # (B,16,16,160)

    # conv2 / conv3: in-kernel 9-tap convolutions.
    x = conv3x3_s2_relu(x, params["conv2_w"], params["conv2_b"])    # (B, 8, 8,160)
    x = conv3x3_s2_relu(x, params["conv3_w"], params["conv3_b"])    # (B, 4, 4,160)

    # NHWC flatten; the NCHW permutation of torch's view(-1,2560) lives in lin1_w.
    feats = x.reshape(B, 4 * 4 * 160)

    # Fused lin1 -> lin2 -> all heads, then per-sample head selection (JAX gather).
    logits_all = mlp_heads(feats, params)                           # (B, 128) f32
    logits_all = logits_all[:, :NUM_TASKS * NUM_CLASSES].reshape(
        B, NUM_TASKS, NUM_CLASSES)
    out = jnp.take_along_axis(
        logits_all, task_labels.astype(jnp.int32)[:, None, None], axis=1)[:, 0, :]
    return out


# ----------------------------------------------------------------------------
# Pure-XLA f32 reference (same bf16-stored params) for a sanity check
# ----------------------------------------------------------------------------
def _reference_forward(params, x_nchw, task_labels):
    f32 = lambda a: a.astype(jnp.float32)
    x = jnp.transpose(x_nchw, (0, 2, 3, 1)).astype(jnp.bfloat16).astype(jnp.float32)

    def conv(x, w, b, cin):
        w = f32(w).reshape(3, 3, cin, 160)                          # HWIO
        y = lax.conv_general_dilated(x, w, window_strides=(2, 2),
                                     padding=((1, 1), (1, 1)),
                                     dimension_numbers=("NHWC", "HWIO", "NHWC"))
        return jnp.maximum(y + b.reshape(1, 1, 1, -1), 0.0)

    x = conv(x, params["conv1_w"], params["conv1_b"], 3)
    x = conv(x, params["conv2_w"], params["conv2_b"], 160)
    x = conv(x, params["conv3_w"], params["conv3_b"], 160)
    feats = x.reshape(x.shape[0], -1)
    h = jnp.maximum(feats @ f32(params["lin1_w"]) + params["lin1_b"], 0.0)
    h = jnp.maximum(h @ f32(params["lin2_w"]) + params["lin2_b"], 0.0)
    logits = h @ f32(params["head_w"]) + params["head_b"]
    logits = logits[:, :NUM_TASKS * NUM_CLASSES].reshape(-1, NUM_TASKS, NUM_CLASSES)
    return jnp.take_along_axis(
        logits, task_labels.astype(jnp.int32)[:, None, None], axis=1)[:, 0, :]


# ----------------------------------------------------------------------------
if __name__ == "__main__":
    key = jax.random.PRNGKey(0)
    k_param, k_x, k_t = jax.random.split(key, 3)

    params = init_params(k_param)

    B = 2
    x = jax.random.normal(k_x, (B, 3, 32, 32), jnp.float32)         # NCHW like PyTorch
    task_labels = jax.random.randint(k_t, (B,), 0, NUM_TASKS, jnp.int32)

    fwd = jax.jit(mt_conv_cifar_forward)
    out = fwd(params, x, task_labels)
    jax.block_until_ready(out)

    assert out.shape == (B, NUM_CLASSES), out.shape
    assert out.dtype == jnp.float32

    ref = jax.jit(_reference_forward)(params, x, task_labels)
    err = float(jnp.max(jnp.abs(out - ref)) / (jnp.max(jnp.abs(ref)) + 1e-6))
    assert err < 0.1, f"kernel vs XLA reference mismatch: rel_err={err}"

    print("KERNEL_OK")
</pallas_src>

<mosaic_0001>
module attributes {stable_mosaic.version = 11 : i64} {
  func.func @_dense_relu_kernel(%arg0: i32, %arg1: memref<256x27xbf16, #tpu.memory_space<vmem>>, %arg2: memref<27x160xbf16, #tpu.memory_space<vmem>>, %arg3: memref<1x160xf32, #tpu.memory_space<vmem>>, %arg4: memref<256x160xbf16, #tpu.memory_space<vmem>>) attributes {dimension_semantics = [#tpu.dimension_semantics<parallel>], iteration_bounds = array<i64: 2>, scalar_prefetch = 0 : i64, scratch_operands = 0 : i64, tpu.core_type = #tpu.core_type<tc>, window_params = [{transform_indices = @transform_0, window_bounds = array<i64: 256, 27>}, {pipeline_mode = #tpu.pipeline_mode<synchronous>, transform_indices = @transform_1, window_bounds = array<i64: 27, 160>}, {pipeline_mode = #tpu.pipeline_mode<synchronous>, transform_indices = @transform_2, window_bounds = array<i64: 1, 160>}, {transform_indices = @transform_3, window_bounds = array<i64: 256, 160>}]} {
    %c0 = arith.constant 0 : index
    %c0_0 = arith.constant 0 : index
    %0 = vector.load %arg1[%c0, %c0_0] : memref<256x27xbf16, #tpu.memory_space<vmem>>, vector<256x27xbf16>
    %c0_1 = arith.constant 0 : index
    %c0_2 = arith.constant 0 : index
    %1 = vector.load %arg2[%c0_1, %c0_2] : memref<27x160xbf16, #tpu.memory_space<vmem>>, vector<27x160xbf16>
    %cst = arith.constant dense<0.000000e+00> : vector<256x160xf32>
    %2 = tpu.matmul %0, %1, %cst {dimension_numbers = #tpu.dot_dimension_numbers<[1], [0], [0], [1], [0, 0, 1, 1], [], []>} : vector<256x27xbf16>, vector<27x160xbf16>, vector<256x160xf32> -> vector<256x160xf32>
    %c0_3 = arith.constant 0 : index
    %c0_4 = arith.constant 0 : index
    %3 = vector.load %arg3[%c0_3, %c0_4] : memref<1x160xf32, #tpu.memory_space<vmem>>, vector<1x160xf32>
    %4 = vector.broadcast %3 : vector<1x160xf32> to vector<256x160xf32>
    %5 = arith.addf %2, %4 : vector<256x160xf32>
    %cst_5 = arith.constant 0.000000e+00 : f32
    %6 = vector.broadcast %cst_5 : f32 to vector<256x160xf32>
    %7 = arith.maximumf %5, %6 : vector<256x160xf32>
    %8 = arith.truncf %7 : vector<256x160xf32> to vector<256x160xbf16>
    %c0_6 = arith.constant 0 : index
    %c0_7 = arith.constant 0 : index
    %9 = vector.load %arg4[%c0_6, %c0_7] : memref<256x160xbf16, #tpu.memory_space<vmem>>, vector<256x160xbf16>
    tpu.vector_store %arg4[%c0_6, %c0_7], %8 {strides = array<i32>} : memref<256x160xbf16, #tpu.memory_space<vmem>>, vector<256x160xbf16>,
    return
  }
  func.func @transform_0(%arg0: i32) -> (i32, i32) {
    %c0_i32 = arith.constant 0 : i32
    %c0_i32_0 = arith.constant 0 : i32
    return %arg0, %c0_i32 : i32, i32
  }
  func.func @transform_1(%arg0: i32) -> (i32, i32) {
    %c0_i32 = arith.constant 0 : i32
    %c0_i32_0 = arith.constant 0 : i32
    %c0_i32_1 = arith.constant 0 : i32
    return %c0_i32, %c0_i32_0 : i32, i32
  }
  func.func @transform_2(%arg0: i32) -> (i32, i32) {
    %c0_i32 = arith.constant 0 : i32
    %c0_i32_0 = arith.constant 0 : i32
    %c0_i32_1 = arith.constant 0 : i32
    return %c0_i32, %c0_i32_0 : i32, i32
  }
  func.func @transform_3(%arg0: i32) -> (i32, i32) {
    %c0_i32 = arith.constant 0 : i32
    %c0_i32_0 = arith.constant 0 : i32
    return %arg0, %c0_i32 : i32, i32
  }
}

module attributes {stable_mosaic.version = 11 : i64} {
  func.func @_conv9_kernel(%arg0: i32, %arg1: memref<1x88x160xbf16, #tpu.memory_space<vmem>>, %arg2: memref<1x88x160xbf16, #tpu.memory_space<vmem>>, %arg3: memref<1x88x160xbf16, #tpu.memory_space<vmem>>, %arg4: memref<1x88x160xbf16, #tpu.memory_space<vmem>>, %arg5: memref<9x160x160xbf16, #tpu.memory_space<vmem>>, %arg6: memref<1x160xf32, #tpu.memory_space<vmem>>, %arg7: memref<1x72x160xbf16, #tpu.memory_space<vmem>>) attributes {dimension_semantics = [#tpu.dimension_semantics<parallel>], iteration_bounds = array<i64: 2>, scalar_prefetch = 0 : i64, scratch_operands = 0 : i64, tpu.core_type = #tpu.core_type<tc>, window_params = [{transform_indices = @transform_0, window_bounds = array<i64: 1, 88, 160>}, {transform_indices = @transform_1, window_bounds = array<i64: 1, 88, 160>}, {transform_indices = @transform_2, window_bounds = array<i64: 1, 88, 160>}, {transform_indices = @transform_3, window_bounds = array<i64: 1, 88, 160>}, {pipeline_mode = #tpu.pipeline_mode<synchronous>, transform_indices = @transform_4, window_bounds = array<i64: 9, 160, 160>}, {pipeline_mode = #tpu.pipeline_mode<synchronous>, transform_indices = @transform_5, window_bounds = array<i64: 1, 160>}, {transform_indices = @transform_6, window_bounds = array<i64: 1, 72, 160>}]} {
    %cst = arith.constant 0.000000e+00 : f32
    %0 = vector.broadcast %cst : f32 to vector<72x160xf32>
    %c0 = arith.constant 0 : index
    %c0_0 = arith.constant 0 : index
    %c0_1 = arith.constant 0 : index
    %1 = vector.load %arg1[%c0, %c0_0, %c0_1] : memref<1x88x160xbf16, #tpu.memory_space<vmem>>, vector<1x72x160xbf16>
    %2 = vector.shape_cast %1 : vector<1x72x160xbf16> to vector<72x160xbf16>
    %c0_2 = arith.constant 0 : index
    %c0_3 = arith.constant 0 : index
    %c0_4 = arith.constant 0 : index
    %3 = vector.load %arg5[%c0_2, %c0_3, %c0_4] : memref<9x160x160xbf16, #tpu.memory_space<vmem>>, vector<1x160x160xbf16>
    %4 = vector.shape_cast %3 : vector<1x160x160xbf16> to vector<160x160xbf16>
    %cst_5 = arith.constant dense<0.000000e+00> : vector<72x160xf32>
    %5 = tpu.matmul %2, %4, %cst_5 {dimension_numbers = #tpu.dot_dimension_numbers<[1], [0], [0], [1], [0, 0, 1, 1], [], []>} : vector<72x160xbf16>, vector<160x160xbf16>, vector<72x160xf32> -> vector<72x160xf32>
    %6 = arith.addf %0, %5 : vector<72x160xf32>
    %c0_6 = arith.constant 0 : index
    %c0_7 = arith.constant 0 : index
    %c0_8 = arith.constant 0 : index
    %7 = vector.load %arg2[%c0_6, %c0_7, %c0_8] : memref<1x88x160xbf16, #tpu.memory_space<vmem>>, vector<1x72x160xbf16>
    %8 = vector.shape_cast %7 : vector<1x72x160xbf16> to vector<72x160xbf16>
    %c1 = arith.constant 1 : index
    %c0_9 = arith.constant 0 : index
    %c0_10 = arith.constant 0 : index
    %9 = vector.load %arg5[%c1, %c0_9, %c0_10] : memref<9x160x160xbf16, #tpu.memory_space<vmem>>, vector<1x160x160xbf16>
    %10 = vector.shape_cast %9 : vector<1x160x160xbf16> to vector<160x160xbf16>
    %cst_11 = arith.constant dense<0.000000e+00> : vector<72x160xf32>
    %11 = tpu.matmul %8, %10, %cst_11 {dimension_numbers = #tpu.dot_dimension_numbers<[1], [0], [0], [1], [0, 0, 1, 1], [], []>} : vector<72x160xbf16>, vector<160x160xbf16>, vector<72x160xf32> -> vector<72x160xf32>
    %12 = arith.addf %6, %11 : vector<72x160xf32>
    %c0_12 = arith.constant 0 : index
    %c1_13 = arith.constant 1 : index
    %c0_14 = arith.constant 0 : index
    %13 = vector.load %arg1[%c0_12, %c1_13, %c0_14] : memref<1x88x160xbf16, #tpu.memory_space<vmem>>, vector<1x72x160xbf16>
    %14 = vector.shape_cast %13 : vector<1x72x160xbf16> to vector<72x160xbf16>
    %c2 = arith.constant 2 : index
    %c0_15 = arith.constant 0 : index
    %c0_16 = arith.constant 0 : index
    %15 = vector.load %arg5[%c2, %c0_15, %c0_16] : memref<9x160x160xbf16, #tpu.memory_space<vmem>>, vector<1x160x160xbf16>
    %16 = vector.shape_cast %15 : vector<1x160x160xbf16> to vector<160x160xbf16>
    %cst_17 = arith.constant dense<0.000000e+00> : vector<72x160xf32>
    %17 = tpu.matmul %14, %16, %cst_17 {dimension_numbers = #tpu.dot_dimension_numbers<[1], [0], [0], [1], [0, 0, 1, 1], [], []>} : vector<72x160xbf16>, vector<160x160xbf16>, vector<72x160xf32> -> vector<72x160xf32>
    %18 = arith.addf %12, %17 : vector<72x160xf32>
    %c0_18 = arith.constant 0 : index
    %c0_19 = arith.constant 0 : index
    %c0_20 = arith.constant 0 : index
    %19 = vector.load %arg3[%c0_18, %c0_19, %c0_20] : memref<1x88x160xbf16, #tpu.memory_space<vmem>>, vector<1x72x160xbf16>
    %20 = vector.shape_cast %19 : vector<1x72x160xbf16> to vector<72x160xbf16>
    %c3 = arith.constant 3 : index
    %c0_21 = arith.constant 0 : index
    %c0_22 = arith.constant 0 : index
    %21 = vector.load %arg5[%c3, %c0_21, %c0_22] : memref<9x160x160xbf16, #tpu.memory_space<vmem>>, vector<1x160x160xbf16>
    %22 = vector.shape_cast %21 : vector<1x160x160xbf16> to vector<160x160xbf16>
    %cst_23 = arith.constant dense<0.000000e+00> : vector<72x160xf32>
    %23 = tpu.matmul %20, %22, %cst_23 {dimension_numbers = #tpu.dot_dimension_numbers<[1], [0], [0], [1], [0, 0, 1, 1], [], []>} : vector<72x160xbf16>, vector<160x160xbf16>, vector<72x160xf32> -> vector<72x160xf32>
    %24 = arith.addf %18, %23 : vector<72x160xf32>
    %c0_24 = arith.constant 0 : index
    %c0_25 = arith.constant 0 : index
    %c0_26 = arith.constant 0 : index
    %25 = vector.load %arg4[%c0_24, %c0_25, %c0_26] : memref<1x88x160xbf16, #tpu.memory_space<vmem>>, vector<1x72x160xbf16>
    %26 = vector.shape_cast %25 : vector<1x72x160xbf16> to vector<72x160xbf16>
    %c4 = arith.constant 4 : index
    %c0_27 = arith.constant 0 : index
    %c0_28 = arith.constant 0 : index
    %27 = vector.load %arg5[%c4, %c0_27, %c0_28] : memref<9x160x160xbf16, #tpu.memory_space<vmem>>, vector<1x160x160xbf16>
    %28 = vector.shape_cast %27 : vector<1x160x160xbf16> to vector<160x160xbf16>
    %cst_29 = arith.constant dense<0.000000e+00> : vector<72x160xf32>
    %29 = tpu.matmul %26, %28, %cst_29 {dimension_numbers = #tpu.dot_dimension_numbers<[1], [0], [0], [1], [0, 0, 1, 1], [], []>} : vector<72x160xbf16>, vector<160x160xbf16>, vector<72x160xf32> -> vector<72x160xf32>
    %30 = arith.addf %24, %29 : vector<72x160xf32>
    %c0_30 = arith.constant 0 : index
    %c1_31 = arith.constant 1 : index
    %c0_32 = arith.constant 0 : index
    %31 = vector.load %arg3[%c0_30, %c1_31, %c0_32] : memref<1x88x160xbf16, #tpu.memory_space<vmem>>, vector<1x72x160xbf16>
    %32 = vector.shape_cast %31 : vector<1x72x160xbf16> to vector<72x160xbf16>
    %c5 = arith.constant 5 : index
    %c0_33 = arith.constant 0 : index
    %c0_34 = arith.constant 0 : index
    %33 = vector.load %arg5[%c5, %c0_33, %c0_34] : memref<9x160x160xbf16, #tpu.memory_space<vmem>>, vector<1x160x160xbf16>
    %34 = vector.shape_cast %33 : vector<1x160x160xbf16> to vector<160x160xbf16>
    %cst_35 = arith.constant dense<0.000000e+00> : vector<72x160xf32>
    %35 = tpu.matmul %32, %34, %cst_35 {dimension_numbers = #tpu.dot_dimension_numbers<[1], [0], [0], [1], [0, 0, 1, 1], [], []>} : vector<72x160xbf16>, vector<160x160xbf16>, vector<72x160xf32> -> vector<72x160xf32>
    %36 = arith.addf %30, %35 : vector<72x160xf32>
    %c0_36 = arith.constant 0 : index
    %c9 = arith.constant 9 : index
    %c0_37 = arith.constant 0 : index
    %37 = vector.load %arg1[%c0_36, %c9, %c0_37] : memref<1x88x160xbf16, #tpu.memory_space<vmem>>, vector<1x72x160xbf16>
    %38 = vector.shape_cast %37 : vector<1x72x160xbf16> to vector<72x160xbf16>
    %c6 = arith.constant 6 : index
    %c0_38 = arith.constant 0 : index
    %c0_39 = arith.constant 0 : index
    %39 = vector.load %arg5[%c6, %c0_38, %c0_39] : memref<9x160x160xbf16, #tpu.memory_space<vmem>>, vector<1x160x160xbf16>
    %40 = vector.shape_cast %39 : vector<1x160x160xbf16> to vector<160x160xbf16>
    %cst_40 = arith.constant dense<0.000000e+00> : vector<72x160xf32>
    %41 = tpu.matmul %38, %40, %cst_40 {dimension_numbers = #tpu.dot_dimension_numbers<[1], [0], [0], [1], [0, 0, 1, 1], [], []>} : vector<72x160xbf16>, vector<160x160xbf16>, vector<72x160xf32> -> vector<72x160xf32>
    %42 = arith.addf %36, %41 : vector<72x160xf32>
    %c0_41 = arith.constant 0 : index
    %c9_42 = arith.constant 9 : index
    %c0_43 = arith.constant 0 : index
    %43 = vector.load %arg2[%c0_41, %c9_42, %c0_43] : memref<1x88x160xbf16, #tpu.memory_space<vmem>>, vector<1x72x160xbf16>
    %44 = vector.shape_cast %43 : vector<1x72x160xbf16> to vector<72x160xbf16>
    %c7 = arith.constant 7 : index
    %c0_44 = arith.constant 0 : index
    %c0_45 = arith.constant 0 : index
    %45 = vector.load %arg5[%c7, %c0_44, %c0_45] : memref<9x160x160xbf16, #tpu.memory_space<vmem>>, vector<1x160x160xbf16>
    %46 = vector.shape_cast %45 : vector<1x160x160xbf16> to vector<160x160xbf16>
    %cst_46 = arith.constant dense<0.000000e+00> : vector<72x160xf32>
    %47 = tpu.matmul %44, %46, %cst_46 {dimension_numbers = #tpu.dot_dimension_numbers<[1], [0], [0], [1], [0, 0, 1, 1], [], []>} : vector<72x160xbf16>, vector<160x160xbf16>, vector<72x160xf32> -> vector<72x160xf32>
    %48 = arith.addf %42, %47 : vector<72x160xf32>
    %c0_47 = arith.constant 0 : index
    %c10 = arith.constant 10 : index
    %c0_48 = arith.constant 0 : index
    %49 = vector.load %arg1[%c0_47, %c10, %c0_48] : memref<1x88x160xbf16, #tpu.memory_space<vmem>>, vector<1x72x160xbf16>
    %50 = vector.shape_cast %49 : vector<1x72x160xbf16> to vector<72x160xbf16>
    %c8 = arith.constant 8 : index
    %c0_49 = arith.constant 0 : index
    %c0_50 = arith.constant 0 : index
    %51 = vector.load %arg5[%c8, %c0_49, %c0_50] : memref<9x160x160xbf16, #tpu.memory_space<vmem>>, vector<1x160x160xbf16>
    %52 = vector.shape_cast %51 : vector<1x160x160xbf16> to vector<160x160xbf16>
    %cst_51 = arith.constant dense<0.000000e+00> : vector<72x160xf32>
    %53 = tpu.matmul %50, %52, %cst_51 {dimension_numbers = #tpu.dot_dimension_numbers<[1], [0], [0], [1], [0, 0, 1, 1], [], []>} : vector<72x160xbf16>, vector<160x160xbf16>, vector<72x160xf32> -> vector<72x160xf32>
    %54 = arith.addf %48, %53 : vector<72x160xf32>
    %c0_52 = arith.constant 0 : index
    %c0_53 = arith.constant 0 : index
    %55 = vector.load %arg6[%c0_52, %c0_53] : memref<1x160xf32, #tpu.memory_space<vmem>>, vector<1x160xf32>
    %56 = vector.broadcast %55 : vector<1x160xf32> to vector<72x160xf32>
    %57 = arith.addf %54, %56 : vector<72x160xf32>
    %cst_54 = arith.constant 0.000000e+00 : f32
    %58 = vector.broadcast %cst_54 : f32 to vector<72x160xf32>
    %59 = arith.maximumf %57, %58 : vector<72x160xf32>
    %60 = arith.truncf %59 : vector<72x160xf32> to vector<72x160xbf16>
    %c0_55 = arith.constant 0 : index
    %c0_56 = arith.constant 0 : index
    %c0_57 = arith.constant 0 : index
    %61 = vector.load %arg7[%c0_55, %c0_56, %c0_57] : memref<1x72x160xbf16, #tpu.memory_space<vmem>>, vector<1x72x160xbf16>
    %62 = vector.shape_cast %61 : vector<1x72x160xbf16> to vector<72x160xbf16>
    %63 = vector.shape_cast %60 : vector<72x160xbf16> to vector<1x72x160xbf16>
    tpu.vector_store %arg7[%c0_55, %c0_56, %c0_57], %63 {strides = array<i32>} : memref<1x72x160xbf16, #tpu.memory_space<vmem>>, vector<1x72x160xbf16>,
    return
  }
  func.func @transform_0(%arg0: i32) -> (i32, i32, i32) {
    %c0_i32 = arith.constant 0 : i32
    %c0_i32_0 = arith.constant 0 : i32
    %c0_i32_1 = arith.constant 0 : i32
    return %arg0, %c0_i32, %c0_i32_0 : i32, i32, i32
  }
  func.func @transform_1(%arg0: i32) -> (i32, i32, i32) {
    %c0_i32 = arith.constant 0 : i32
    %c0_i32_0 = arith.constant 0 : i32
    %c0_i32_1 = arith.constant 0 : i32
    return %arg0, %c0_i32, %c0_i32_0 : i32, i32, i32
  }
  func.func @transform_2(%arg0: i32) -> (i32, i32, i32) {
    %c0_i32 = arith.constant 0 : i32
    %c0_i32_0 = arith.constant 0 : i32
    %c0_i32_1 = arith.constant 0 : i32
    return %arg0, %c0_i32, %c0_i32_0 : i32, i32, i32
  }
  func.func @transform_3(%arg0: i32) -> (i32, i32, i32) {
    %c0_i32 = arith.constant 0 : i32
    %c0_i32_0 = arith.constant 0 : i32
    %c0_i32_1 = arith.constant 0 : i32
    return %arg0, %c0_i32, %c0_i32_0 : i32, i32, i32
  }
  func.func @transform_4(%arg0: i32) -> (i32, i32, i32) {
    %c0_i32 = arith.constant 0 : i32
    %c0_i32_0 = arith.constant 0 : i32
    %c0_i32_1 = arith.constant 0 : i32
    %c0_i32_2 = arith.constant 0 : i32
    return %c0_i32, %c0_i32_0, %c0_i32_1 : i32, i32, i32
  }
  func.func @transform_5(%arg0: i32) -> (i32, i32) {
    %c0_i32 = arith.constant 0 : i32
    %c0_i32_0 = arith.constant 0 : i32
    %c0_i32_1 = arith.constant 0 : i32
    return %c0_i32, %c0_i32_0 : i32, i32
  }
  func.func @transform_6(%arg0: i32) -> (i32, i32, i32) {
    %c0_i32 = arith.constant 0 : i32
    %c0_i32_0 = arith.constant 0 : i32
    %c0_i32_1 = arith.constant 0 : i32
    return %arg0, %c0_i32, %c0_i32_0 : i32, i32, i32
  }
}

module attributes {stable_mosaic.version = 11 : i64} {
  func.func @_conv9_kernel(%arg0: i32, %arg1: memref<1x32x160xbf16, #tpu.memory_space<vmem>>, %arg2: memref<1x32x160xbf16, #tpu.memory_space<vmem>>, %arg3: memref<1x32x160xbf16, #tpu.memory_space<vmem>>, %arg4: memref<1x32x160xbf16, #tpu.memory_space<vmem>>, %arg5: memref<9x160x160xbf16, #tpu.memory_space<vmem>>, %arg6: memref<1x160xf32, #tpu.memory_space<vmem>>, %arg7: memref<1x24x160xbf16, #tpu.memory_space<vmem>>) attributes {dimension_semantics = [#tpu.dimension_semantics<parallel>], iteration_bounds = array<i64: 2>, scalar_prefetch = 0 : i64, scratch_operands = 0 : i64, tpu.core_type = #tpu.core_type<tc>, window_params = [{transform_indices = @transform_0, window_bounds = array<i64: 1, 32, 160>}, {transform_indices = @transform_1, window_bounds = array<i64: 1, 32, 160>}, {transform_indices = @transform_2, window_bounds = array<i64: 1, 32, 160>}, {transform_indices = @transform_3, window_bounds = array<i64: 1, 32, 160>}, {pipeline_mode = #tpu.pipeline_mode<synchronous>, transform_indices = @transform_4, window_bounds = array<i64: 9, 160, 160>}, {pipeline_mode = #tpu.pipeline_mode<synchronous>, transform_indices = @transform_5, window_bounds = array<i64: 1, 160>}, {transform_indices = @transform_6, window_bounds = array<i64: 1, 24, 160>}]} {
    %cst = arith.constant 0.000000e+00 : f32
    %0 = vector.broadcast %cst : f32 to vector<24x160xf32>
    %c0 = arith.constant 0 : index
    %c0_0 = arith.constant 0 : index
    %c0_1 = arith.constant 0 : index
    %1 = vector.load %arg1[%c0, %c0_0, %c0_1] : memref<1x32x160xbf16, #tpu.memory_space<vmem>>, vector<1x24x160xbf16>
    %2 = vector.shape_cast %1 : vector<1x24x160xbf16> to vector<24x160xbf16>
    %c0_2 = arith.constant 0 : index
    %c0_3 = arith.constant 0 : index
    %c0_4 = arith.constant 0 : index
    %3 = vector.load %arg5[%c0_2, %c0_3, %c0_4] : memref<9x160x160xbf16, #tpu.memory_space<vmem>>, vector<1x160x160xbf16>
    %4 = vector.shape_cast %3 : vector<1x160x160xbf16> to vector<160x160xbf16>
    %cst_5 = arith.constant dense<0.000000e+00> : vector<24x160xf32>
    %5 = tpu.matmul %2, %4, %cst_5 {dimension_numbers = #tpu.dot_dimension_numbers<[1], [0], [0], [1], [0, 0, 1, 1], [], []>} : vector<24x160xbf16>, vector<160x160xbf16>, vector<24x160xf32> -> vector<24x160xf32>
    %6 = arith.addf %0, %5 : vector<24x160xf32>
    %c0_6 = arith.constant 0 : index
    %c0_7 = arith.constant 0 : index
    %c0_8 = arith.constant 0 : index
    %7 = vector.load %arg2[%c0_6, %c0_7, %c0_8] : memref<1x32x160xbf16, #tpu.memory_space<vmem>>, vector<1x24x160xbf16>
    %8 = vector.shape_cast %7 : vector<1x24x160xbf16> to vector<24x160xbf16>
    %c1 = arith.constant 1 : index
    %c0_9 = arith.constant 0 : index
    %c0_10 = arith.constant 0 : index
    %9 = vector.load %arg5[%c1, %c0_9, %c0_10] : memref<9x160x160xbf16, #tpu.memory_space<vmem>>, vector<1x160x160xbf16>
    %10 = vector.shape_cast %9 : vector<1x160x160xbf16> to vector<160x160xbf16>
    %cst_11 = arith.constant dense<0.000000e+00> : vector<24x160xf32>
    %11 = tpu.matmul %8, %10, %cst_11 {dimension_numbers = #tpu.dot_dimension_numbers<[1], [0], [0], [1], [0, 0, 1, 1], [], []>} : vector<24x160xbf16>, vector<160x160xbf16>, vector<24x160xf32> -> vector<24x160xf32>
    %12 = arith.addf %6, %11 : vector<24x160xf32>
    %c0_12 = arith.constant 0 : index
    %c1_13 = arith.constant 1 : index
    %c0_14 = arith.constant 0 : index
    %13 = vector.load %arg1[%c0_12, %c1_13, %c0_14] : memref<1x32x160xbf16, #tpu.memory_space<vmem>>, vector<1x24x160xbf16>
    %14 = vector.shape_cast %13 : vector<1x24x160xbf16> to vector<24x160xbf16>
    %c2 = arith.constant 2 : index
    %c0_15 = arith.constant 0 : index
    %c0_16 = arith.constant 0 : index
    %15 = vector.load %arg5[%c2, %c0_15, %c0_16] : memref<9x160x160xbf16, #tpu.memory_space<vmem>>, vector<1x160x160xbf16>
    %16 = vector.shape_cast %15 : vector<1x160x160xbf16> to vector<160x160xbf16>
    %cst_17 = arith.constant dense<0.000000e+00> : vector<24x160xf32>
    %17 = tpu.matmul %14, %16, %cst_17 {dimension_numbers = #tpu.dot_dimension_numbers<[1], [0], [0], [1], [0, 0, 1, 1], [], []>} : vector<24x160xbf16>, vector<160x160xbf16>, vector<24x160xf32> -> vector<24x160xf32>
    %18 = arith.addf %12, %17 : vector<24x160xf32>
    %c0_18 = arith.constant 0 : index
    %c0_19 = arith.constant 0 : index
    %c0_20 = arith.constant 0 : index
    %19 = vector.load %arg3[%c0_18, %c0_19, %c0_20] : memref<1x32x160xbf16, #tpu.memory_space<vmem>>, vector<1x24x160xbf16>
    %20 = vector.shape_cast %19 : vector<1x24x160xbf16> to vector<24x160xbf16>
    %c3 = arith.constant 3 : index
    %c0_21 = arith.constant 0 : index
    %c0_22 = arith.constant 0 : index
    %21 = vector.load %arg5[%c3, %c0_21, %c0_22] : memref<9x160x160xbf16, #tpu.memory_space<vmem>>, vector<1x160x160xbf16>
    %22 = vector.shape_cast %21 : vector<1x160x160xbf16> to vector<160x160xbf16>
    %cst_23 = arith.constant dense<0.000000e+00> : vector<24x160xf32>
    %23 = tpu.matmul %20, %22, %cst_23 {dimension_numbers = #tpu.dot_dimension_numbers<[1], [0], [0], [1], [0, 0, 1, 1], [], []>} : vector<24x160xbf16>, vector<160x160xbf16>, vector<24x160xf32> -> vector<24x160xf32>
    %24 = arith.addf %18, %23 : vector<24x160xf32>
    %c0_24 = arith.constant 0 : index
    %c0_25 = arith.constant 0 : index
    %c0_26 = arith.constant 0 : index
    %25 = vector.load %arg4[%c0_24, %c0_25, %c0_26] : memref<1x32x160xbf16, #tpu.memory_space<vmem>>, vector<1x24x160xbf16>
    %26 = vector.shape_cast %25 : vector<1x24x160xbf16> to vector<24x160xbf16>
    %c4 = arith.constant 4 : index
    %c0_27 = arith.constant 0 : index
    %c0_28 = arith.constant 0 : index
    %27 = vector.load %arg5[%c4, %c0_27, %c0_28] : memref<9x160x160xbf16, #tpu.memory_space<vmem>>, vector<1x160x160xbf16>
    %28 = vector.shape_cast %27 : vector<1x160x160xbf16> to vector<160x160xbf16>
    %cst_29 = arith.constant dense<0.000000e+00> : vector<24x160xf32>
    %29 = tpu.matmul %26, %28, %cst_29 {dimension_numbers = #tpu.dot_dimension_numbers<[1], [0], [0], [1], [0, 0, 1, 1], [], []>} : vector<24x160xbf16>, vector<160x160xbf16>, vector<24x160xf32> -> vector<24x160xf32>
    %30 = arith.addf %24, %29 : vector<24x160xf32>
    %c0_30 = arith.constant 0 : index
    %c1_31 = arith.constant 1 : index
    %c0_32 = arith.constant 0 : index
    %31 = vector.load %arg3[%c0_30, %c1_31, %c0_32] : memref<1x32x160xbf16, #tpu.memory_space<vmem>>, vector<1x24x160xbf16>
    %32 = vector.shape_cast %31 : vector<1x24x160xbf16> to vector<24x160xbf16>
    %c5 = arith.constant 5 : index
    %c0_33 = arith.constant 0 : index
    %c0_34 = arith.constant 0 : index
    %33 = vector.load %arg5[%c5, %c0_33, %c0_34] : memref<9x160x160xbf16, #tpu.memory_space<vmem>>, vector<1x160x160xbf16>
    %34 = vector.shape_cast %33 : vector<1x160x160xbf16> to vector<160x160xbf16>
    %cst_35 = arith.constant dense<0.000000e+00> : vector<24x160xf32>
    %35 = tpu.matmul %32, %34, %cst_35 {dimension_numbers = #tpu.dot_dimension_numbers<[1], [0], [0], [1], [0, 0, 1, 1], [], []>} : vector<24x160xbf16>, vector<160x160xbf16>, vector<24x160xf32> -> vector<24x160xf32>
    %36 = arith.addf %30, %35 : vector<24x160xf32>
    %c0_36 = arith.constant 0 : index
    %c5_37 = arith.constant 5 : index
    %c0_38 = arith.constant 0 : index
    %37 = vector.load %arg1[%c0_36, %c5_37, %c0_38] : memref<1x32x160xbf16, #tpu.memory_space<vmem>>, vector<1x24x160xbf16>
    %38 = vector.shape_cast %37 : vector<1x24x160xbf16> to vector<24x160xbf16>
    %c6 = arith.constant 6 : index
    %c0_39 = arith.constant 0 : index
    %c0_40 = arith.constant 0 : index
    %39 = vector.load %arg5[%c6, %c0_39, %c0_40] : memref<9x160x160xbf16, #tpu.memory_space<vmem>>, vector<1x160x160xbf16>
    %40 = vector.shape_cast %39 : vector<1x160x160xbf16> to vector<160x160xbf16>
    %cst_41 = arith.constant dense<0.000000e+00> : vector<24x160xf32>
    %41 = tpu.matmul %38, %40, %cst_41 {dimension_numbers = #tpu.dot_dimension_numbers<[1], [0], [0], [1], [0, 0, 1, 1], [], []>} : vector<24x160xbf16>, vector<160x160xbf16>, vector<24x160xf32> -> vector<24x160xf32>
    %42 = arith.addf %36, %41 : vector<24x160xf32>
    %c0_42 = arith.constant 0 : index
    %c5_43 = arith.constant 5 : index
    %c0_44 = arith.constant 0 : index
    %43 = vector.load %arg2[%c0_42, %c5_43, %c0_44] : memref<1x32x160xbf16, #tpu.memory_space<vmem>>, vector<1x24x160xbf16>
    %44 = vector.shape_cast %43 : vector<1x24x160xbf16> to vector<24x160xbf16>
    %c7 = arith.constant 7 : index
    %c0_45 = arith.constant 0 : index
    %c0_46 = arith.constant 0 : index
    %45 = vector.load %arg5[%c7, %c0_45, %c0_46] : memref<9x160x160xbf16, #tpu.memory_space<vmem>>, vector<1x160x160xbf16>
    %46 = vector.shape_cast %45 : vector<1x160x160xbf16> to vector<160x160xbf16>
    %cst_47 = arith.constant dense<0.000000e+00> : vector<24x160xf32>
    %47 = tpu.matmul %44, %46, %cst_47 {dimension_numbers = #tpu.dot_dimension_numbers<[1], [0], [0], [1], [0, 0, 1, 1], [], []>} : vector<24x160xbf16>, vector<160x160xbf16>, vector<24x160xf32> -> vector<24x160xf32>
    %48 = arith.addf %42, %47 : vector<24x160xf32>
    %c0_48 = arith.constant 0 : index
    %c6_49 = arith.constant 6 : index
    %c0_50 = arith.constant 0 : index
    %49 = vector.load %arg1[%c0_48, %c6_49, %c0_50] : memref<1x32x160xbf16, #tpu.memory_space<vmem>>, vector<1x24x160xbf16>
    %50 = vector.shape_cast %49 : vector<1x24x160xbf16> to vector<24x160xbf16>
    %c8 = arith.constant 8 : index
    %c0_51 = arith.constant 0 : index
    %c0_52 = arith.constant 0 : index
    %51 = vector.load %arg5[%c8, %c0_51, %c0_52] : memref<9x160x160xbf16, #tpu.memory_space<vmem>>, vector<1x160x160xbf16>
    %52 = vector.shape_cast %51 : vector<1x160x160xbf16> to vector<160x160xbf16>
    %cst_53 = arith.constant dense<0.000000e+00> : vector<24x160xf32>
    %53 = tpu.matmul %50, %52, %cst_53 {dimension_numbers = #tpu.dot_dimension_numbers<[1], [0], [0], [1], [0, 0, 1, 1], [], []>} : vector<24x160xbf16>, vector<160x160xbf16>, vector<24x160xf32> -> vector<24x160xf32>
    %54 = arith.addf %48, %53 : vector<24x160xf32>
    %c0_54 = arith.constant 0 : index
    %c0_55 = arith.constant 0 : index
    %55 = vector.load %arg6[%c0_54, %c0_55] : memref<1x160xf32, #tpu.memory_space<vmem>>, vector<1x160xf32>
    %56 = vector.broadcast %55 : vector<1x160xf32> to vector<24x160xf32>
    %57 = arith.addf %54, %56 : vector<24x160xf32>
    %cst_56 = arith.constant 0.000000e+00 : f32
    %58 = vector.broadcast %cst_56 : f32 to vector<24x160xf32>
    %59 = arith.maximumf %57, %58 : vector<24x160xf32>
    %60 = arith.truncf %59 : vector<24x160xf32> to vector<24x160xbf16>
    %c0_57 = arith.constant 0 : index
    %c0_58 = arith.constant 0 : index
    %c0_59 = arith.constant 0 : index
    %61 = vector.load %arg7[%c0_57, %c0_58, %c0_59] : memref<1x24x160xbf16, #tpu.memory_space<vmem>>, vector<1x24x160xbf16>
    %62 = vector.shape_cast %61 : vector<1x24x160xbf16> to vector<24x160xbf16>
    %63 = vector.shape_cast %60 : vector<24x160xbf16> to vector<1x24x160xbf16>
    tpu.vector_store %arg7[%c0_57, %c0_58, %c0_59], %63 {strides = array<i32>} : memref<1x24x160xbf16, #tpu.memory_space<vmem>>, vector<1x24x160xbf16>,
    return
  }
  func.func @transform_0(%arg0: i32) -> (i32, i32, i32) {
    %c0_i32 = arith.constant 0 : i32
    %c0_i32_0 = arith.constant 0 : i32
    %c0_i32_1 = arith.constant 0 : i32
    return %arg0, %c0_i32, %c0_i32_0 : i32, i32, i32
  }
  func.func @transform_1(%arg0: i32) -> (i32, i32, i32) {
    %c0_i32 = arith.constant 0 : i32
    %c0_i32_0 = arith.constant 0 : i32
    %c0_i32_1 = arith.constant 0 : i32
    return %arg0, %c0_i32, %c0_i32_0 : i32, i32, i32
  }
  func.func @transform_2(%arg0: i32) -> (i32, i32, i32) {
    %c0_i32 = arith.constant 0 : i32
    %c0_i32_0 = arith.constant 0 : i32
    %c0_i32_1 = arith.constant 0 : i32
    return %arg0, %c0_i32, %c0_i32_0 : i32, i32, i32
  }
  func.func @transform_3(%arg0: i32) -> (i32, i32, i32) {
    %c0_i32 = arith.constant 0 : i32
    %c0_i32_0 = arith.constant 0 : i32
    %c0_i32_1 = arith.constant 0 : i32
    return %arg0, %c0_i32, %c0_i32_0 : i32, i32, i32
  }
  func.func @transform_4(%arg0: i32) -> (i32, i32, i32) {
    %c0_i32 = arith.constant 0 : i32
    %c0_i32_0 = arith.constant 0 : i32
    %c0_i32_1 = arith.constant 0 : i32
    %c0_i32_2 = arith.constant 0 : i32
    return %c0_i32, %c0_i32_0, %c0_i32_1 : i32, i32, i32
  }
  func.func @transform_5(%arg0: i32) -> (i32, i32) {
    %c0_i32 = arith.constant 0 : i32
    %c0_i32_0 = arith.constant 0 : i32
    %c0_i32_1 = arith.constant 0 : i32
    return %c0_i32, %c0_i32_0 : i32, i32
  }
  func.func @transform_6(%arg0: i32) -> (i32, i32, i32) {
    %c0_i32 = arith.constant 0 : i32
    %c0_i32_0 = arith.constant 0 : i32
    %c0_i32_1 = arith.constant 0 : i32
    return %arg0, %c0_i32, %c0_i32_0 : i32, i32, i32
  }
}

module attributes {stable_mosaic.version = 11 : i64} {
  func.func @_mlp_head_kernel(%arg0: i32, %arg1: memref<2x2560xbf16, #tpu.memory_space<vmem>>, %arg2: memref<2560x320xbf16, #tpu.memory_space<vmem>>, %arg3: memref<1x320xf32, #tpu.memory_space<vmem>>, %arg4: memref<320x320xbf16, #tpu.memory_space<vmem>>, %arg5: memref<1x320xf32, #tpu.memory_space<vmem>>, %arg6: memref<320x128xbf16, #tpu.memory_space<vmem>>, %arg7: memref<1x128xf32, #tpu.memory_space<vmem>>, %arg8: memref<2x128xf32, #tpu.memory_space<vmem>>) attributes {dimension_semantics = [#tpu.dimension_semantics<parallel>], iteration_bounds = array<i64: 1>, scalar_prefetch = 0 : i64, scratch_operands = 0 : i64, tpu.core_type = #tpu.core_type<tc>, window_params = [{transform_indices = @transform_0, window_bounds = array<i64: 2, 2560>}, {pipeline_mode = #tpu.pipeline_mode<synchronous>, transform_indices = @transform_1, window_bounds = array<i64: 2560, 320>}, {pipeline_mode = #tpu.pipeline_mode<synchronous>, transform_indices = @transform_2, window_bounds = array<i64: 1, 320>}, {pipeline_mode = #tpu.pipeline_mode<synchronous>, transform_indices = @transform_3, window_bounds = array<i64: 320, 320>}, {pipeline_mode = #tpu.pipeline_mode<synchronous>, transform_indices = @transform_4, window_bounds = array<i64: 1, 320>}, {pipeline_mode = #tpu.pipeline_mode<synchronous>, transform_indices = @transform_5, window_bounds = array<i64: 320, 128>}, {pipeline_mode = #tpu.pipeline_mode<synchronous>, transform_indices = @transform_6, window_bounds = array<i64: 1, 128>}, {transform_indices = @transform_7, window_bounds = array<i64: 2, 128>}]} {
    %c0 = arith.constant 0 : index
    %c0_0 = arith.constant 0 : index
    %0 = vector.load %arg1[%c0, %c0_0] : memref<2x2560xbf16, #tpu.memory_space<vmem>>, vector<2x2560xbf16>
    %c0_1 = arith.constant 0 : index
    %c0_2 = arith.constant 0 : index
    %1 = vector.load %arg2[%c0_1, %c0_2] : memref<2560x320xbf16, #tpu.memory_space<vmem>>, vector<2560x320xbf16>
    %cst = arith.constant dense<0.000000e+00> : vector<2x320xf32>
    %2 = tpu.matmul %0, %1, %cst {dimension_numbers = #tpu.dot_dimension_numbers<[1], [0], [0], [1], [0, 0, 1, 1], [], []>} : vector<2x2560xbf16>, vector<2560x320xbf16>, vector<2x320xf32> -> vector<2x320xf32>
    %c0_3 = arith.constant 0 : index
    %c0_4 = arith.constant 0 : index
    %3 = vector.load %arg3[%c0_3, %c0_4] : memref<1x320xf32, #tpu.memory_space<vmem>>, vector<1x320xf32>
    %4 = vector.broadcast %3 : vector<1x320xf32> to vector<2x320xf32>
    %5 = arith.addf %2, %4 : vector<2x320xf32>
    %cst_5 = arith.constant 0.000000e+00 : f32
    %6 = vector.broadcast %cst_5 : f32 to vector<2x320xf32>
    %7 = arith.maximumf %5, %6 : vector<2x320xf32>
    %8 = arith.truncf %7 : vector<2x320xf32> to vector<2x320xbf16>
    %c0_6 = arith.constant 0 : index
    %c0_7 = arith.constant 0 : index
    %9 = vector.load %arg4[%c0_6, %c0_7] : memref<320x320xbf16, #tpu.memory_space<vmem>>, vector<320x320xbf16>
    %cst_8 = arith.constant dense<0.000000e+00> : vector<2x320xf32>
    %10 = tpu.matmul %8, %9, %cst_8 {dimension_numbers = #tpu.dot_dimension_numbers<[1], [0], [0], [1], [0, 0, 1, 1], [], []>} : vector<2x320xbf16>, vector<320x320xbf16>, vector<2x320xf32> -> vector<2x320xf32>
    %c0_9 = arith.constant 0 : index
    %c0_10 = arith.constant 0 : index
    %11 = vector.load %arg5[%c0_9, %c0_10] : memref<1x320xf32, #tpu.memory_space<vmem>>, vector<1x320xf32>
    %12 = vector.broadcast %11 : vector<1x320xf32> to vector<2x320xf32>
    %13 = arith.addf %10, %12 : vector<2x320xf32>
    %cst_11 = arith.constant 0.000000e+00 : f32
    %14 = vector.broadcast %cst_11 : f32 to vector<2x320xf32>
    %15 = arith.maximumf %13, %14 : vector<2x320xf32>
    %16 = arith.truncf %15 : vector<2x320xf32> to vector<2x320xbf16>
    %c0_12 = arith.constant 0 : index
    %c0_13 = arith.constant 0 : index
    %17 = vector.load %arg6[%c0_12, %c0_13] : memref<320x128xbf16, #tpu.memory_space<vmem>>, vector<320x128xbf16>
    %cst_14 = arith.constant dense<0.000000e+00> : vector<2x128xf32>
    %18 = tpu.matmul %16, %17, %cst_14 {dimension_numbers = #tpu.dot_dimension_numbers<[1], [0], [0], [1], [0, 0, 1, 1], [], []>} : vector<2x320xbf16>, vector<320x128xbf16>, vector<2x128xf32> -> vector<2x128xf32>
    %c0_15 = arith.constant 0 : index
    %c0_16 = arith.constant 0 : index
    %19 = vector.load %arg7[%c0_15, %c0_16] : memref<1x128xf32, #tpu.memory_space<vmem>>, vector<1x128xf32>
    %20 = vector.broadcast %19 : vector<1x128xf32> to vector<2x128xf32>
    %21 = arith.addf %18, %20 : vector<2x128xf32>
    %c0_17 = arith.constant 0 : index
    %c0_18 = arith.constant 0 : index
    %22 = vector.load %arg8[%c0_17, %c0_18] : memref<2x128xf32, #tpu.memory_space<vmem>>, vector<2x128xf32>
    tpu.vector_store %arg8[%c0_17, %c0_18], %21 {strides = array<i32>} : memref<2x128xf32, #tpu.memory_space<vmem>>, vector<2x128xf32>,
    return
  }
  func.func @transform_0(%arg0: i32) -> (i32, i32) {
    %c0_i32 = arith.constant 0 : i32
    %c0_i32_0 = arith.constant 0 : i32
    return %arg0, %c0_i32 : i32, i32
  }
  func.func @transform_1(%arg0: i32) -> (i32, i32) {
    %c0_i32 = arith.constant 0 : i32
    %c0_i32_0 = arith.constant 0 : i32
    %c0_i32_1 = arith.constant 0 : i32
    return %c0_i32, %c0_i32_0 : i32, i32
  }
  func.func @transform_2(%arg0: i32) -> (i32, i32) {
    %c0_i32 = arith.constant 0 : i32
    %c0_i32_0 = arith.constant 0 : i32
    %c0_i32_1 = arith.constant 0 : i32
    return %c0_i32, %c0_i32_0 : i32, i32
  }
  func.func @transform_3(%arg0: i32) -> (i32, i32) {
    %c0_i32 = arith.constant 0 : i32
    %c0_i32_0 = arith.constant 0 : i32
    %c0_i32_1 = arith.constant 0 : i32
    return %c0_i32, %c0_i32_0 : i32, i32
  }
  func.func @transform_4(%arg0: i32) -> (i32, i32) {
    %c0_i32 = arith.constant 0 : i32
    %c0_i32_0 = arith.constant 0 : i32
    %c0_i32_1 = arith.constant 0 : i32
    return %c0_i32, %c0_i32_0 : i32, i32
  }
  func.func @transform_5(%arg0: i32) -> (i32, i32) {
    %c0_i32 = arith.constant 0 : i32
    %c0_i32_0 = arith.constant 0 : i32
    %c0_i32_1 = arith.constant 0 : i32
    return %c0_i32, %c0_i32_0 : i32, i32
  }
  func.func @transform_6(%arg0: i32) -> (i32, i32) {
    %c0_i32 = arith.constant 0 : i32
    %c0_i32_0 = arith.constant 0 : i32
    %c0_i32_1 = arith.constant 0 : i32
    return %c0_i32, %c0_i32_0 : i32, i32
  }
  func.func @transform_7(%arg0: i32) -> (i32, i32) {
    %c0_i32 = arith.constant 0 : i32
    %c0_i32_0 = arith.constant 0 : i32
    return %arg0, %c0_i32 : i32, i32
  }
}

</mosaic_0001>

<bundles_post_ra>
// kernel: mt_conv_cifar_forward.4
= control target key start
LH: loop header
LB: loop body
LE: loop exit
PB: predicated region body
PF: predicated region fallthrough
CT: control target
= control target key end

     0   :  { %8 = vsyncpa [#allocation3], 0  ;;  %s1352_s0 = inlined_call_operand.vmem [shape: bf16[512,27], index: 0, kind: input, shape index: {}]   ;;  %s1353_s1 = inlined_call_operand.hbm [shape: bf16[27,160], index: 1, kind: input, shape index: {}]   ;;  %s1354_s2 = inlined_call_operand.hbm [shape: f32[1,160], index: 2, kind: input, shape index: {}]   ;;  %s1355_s3 = inlined_call_operand.vmem [shape: bf16[512,160], index: 3, kind: output, shape index: {}]  }
   0x1   :  { %9 = vsyncpa [#allocation5], 0  ;;  %s1083_s12 = smov 0  }
   0x2 LB: > { %s125_s15 = sshll.u32 %s1353_s1, 4  ;;  %s797_s16 = sadd.s32 4294967295, %s1056_s12   ;;  %s1056_s12 = sphi %s1083_s12, %s15_s12   ;;  %s126_s15 = int_to_ptr.hbm [resolvable:$true] %s125_s15 }
   0x3   : > { %p799_p0 = scmp.ge.s32.totalorder %s1056_s12, 1  ;;  %p114_p1 = scmp.lt.s32.totalorder %s1056_s12, 3 }
   0x4   : > { %p1094_p2 = scmp.eq.s32.totalorder %s797_s16, 0  ;;  %s1058_s19 = smov [#allocation2]  }
   0x5   : > { %p1098_p3 = pnand %p799_p0, %p114_p1  ;;  %s127_s20 = sshll.u32 %s1058_s19, 4  ;;  %s128_s20 = int_to_ptr.vmem [resolvable:$true] %s127_s20 }
   0x6   : > { %s140_s23 = sshll.u32 %s1354_s2, 4  ;;  %s1059_s24 = smov [#allocation4]   ;;  %s141_s23 = int_to_ptr.hbm [resolvable:$true] %s140_s23 }
   0x7   : > { %p958_p4 = pneg %p1098_p3  ;;  %s142_s25 = sshll.u32 %s1059_s24, 4  ;;  %s143_s25 = int_to_ptr.vmem [resolvable:$true] %s142_s25 }
   0x8   : > { %s1060_s26 = smov 128   ;;  %s1061_s27 = smov 8  }
   0x9   : > { %p959_p5 = pnand %p1094_p2, %p958_p4  ;;  %164 = sbr.rel (%p1098_p3) target bundleno = 290 (0x122), region = 32 }
   0xb   : > { %961 = dma.hbm_to_vmem [thread:$0]  (!%p959_p5), %s126_s15, 512, %s128_s20, [#allocation3], %s1060_s26, %s1060_s26, %s1061_s27  }
   0xc   : > { %964 = dma.hbm_to_vmem [thread:$0]  (!%p959_p5), %s141_s23, 32, %s143_s25, [#allocation5]  }
   0xe   : > { %1047 = dma.done.wait (%p1094_p2), [#allocation3], 512  }
   0xf   : > { %1049 = vsyncadd (%p1094_p2), [#allocation3], 4294966784 }
  0x10   : > { %1051 = dma.done.wait (%p1094_p2), [#allocation5], 32  }
  0x11   : > { %1053 = vsyncadd (%p1094_p2), [#allocation5], 4294967264  ;;  %vm398_vm0 = vcmask 1044480   ;;  %s806_s28 = sshll.u32 %s797_s16, 5  ;;  %vm399_vm1 = vcmask 1045504   ;;  %v1062_v0 = vmov 65535  }
  0x12   : > { %p196_p6 = scmp.lt.s32.totalorder %s806_s28, 63  ;;  %v400_v1 = vsel %vm398_vm0, 4294967295, %v1062_v0  ;;  %v885_v3 = vld [vmem:[#allocation2 + $0x10] sm:$0xf]  ;;  %v945_v4 = vld [vmem:[#allocation2 + $0x14] sm:$0x30] }
  0x13   : > { %v401_v2 = vsel %vm399_vm1, %v400_v1, 0  ;;  %v944_v5 = vld [vmem:[#allocation2 + $0x14] sm:$0xf]  ;;  %v886_v6 = vor.u32 %v945_v4, %v885_v3  ;;  %v887_v7 = vld [vmem:[#allocation2 + $0x18] sm:$0x30]  ;;  %vm349_vm2 = vcmask 220160  }
  0x14   : > { %s1361_s28 = smov (!%p196_p6, %s806_s28), 63  ;;  %v890_v8 = vor.u32 %v944_v5, %v887_v7  ;;  %v877_v9 = vld [vmem:[#allocation2] sm:$0xf]  ;;  %v943_v10 = vld [vmem:[#allocation2 + $0x4] sm:$0xf0]  ;;  %vm682_vm3 = vcmask 1043456  }
  0x15   : > { %s807_s29 = sshll.u32 %s1361_s28, 2  ;;  %v403_v11 = vand.u32 %v886_v6, %v401_v2  ;;  %v942_v12 = vld [vmem:[#allocation2 + $0x4] sm:$0xf]  ;;  %v879_v13 = vld [vmem:[#allocation2 + $0x8] sm:$0xf0]  ;;  %v878_v15 = vor.u32 %v943_v10, %v877_v9  ;;  %s925_s6 = sshll.u32 %s1361_s28, 3 }
  0x16   : > { %v406_v14 = vand.u32 %v890_v8, %v401_v2  ;;  %s1125_s5 = scalar_lea.vmem %s1352_s0, %s807_s29  ;;  %v882_v16 = vor.u32 %v942_v12, %v879_v13  ;;  %v245_v33 = vld [vmem:[#allocation4] sm:$0x3]  ;;  %vm683_vm4 = vcmask 261124   ;;  %s1185_s9 = scalar_lea.vmem %s1355_s3, %s925_s6 }
  0x17   : > { %414 = vmatpush.bf16.msra.mxu0 %v403_v11  ;;  %946 = vmatpush.bf16.msra.mxu2 %v403_v11  ;;  %v926_v17 = vld [vmem:[%s1125_s5] sm:$0xff]  ;;  %v927_v19 = vld [vmem:[%s1125_s5 + $0x8] sm:$0xff]  ;;  %v928_v21 = vld [vmem:[%s1125_s5 + $0x10] sm:$0xff]  ;;  %v1175_v34 = vperm.slane %v245_v33, 0  ;;  %v1177_v35 = vperm.slane %v245_v33, 1 }
  0x18   : > { %503 = vmatpush.bf16.msra.mxu1 %v406_v14  ;;  %948 = vmatpush.bf16.msra.mxu3 %v406_v14  ;;  %v934_v18 = vld [vmem:[%s1125_s5 + $0x40] sm:$0xff]  ;;  %v935_v20 = vld [vmem:[%s1125_s5 + $0x48] sm:$0xff]  ;;  %v936_v22 = vld [vmem:[%s1125_s5 + $0x50] sm:$0xff] }
  0x19   : > { %v929_v23 = vld [vmem:[%s1125_s5 + $0x18] sm:$0xff]  ;;  %v930_v25 = vld [vmem:[%s1125_s5 + $0x20] sm:$0xff]  ;;  %v931_v27 = vld [vmem:[%s1125_s5 + $0x28] sm:$0xff] }
  0x1a   : > { %v937_v24 = vld [vmem:[%s1125_s5 + $0x58] sm:$0xff]  ;;  %v938_v26 = vld [vmem:[%s1125_s5 + $0x60] sm:$0xff]  ;;  %v939_v28 = vld [vmem:[%s1125_s5 + $0x68] sm:$0xff] }
  0x1b   : > { %415 = vmatpush.bf16.msra.mxu0 %v878_v15  ;;  %947 = vmatpush.bf16.msra.mxu2 %v878_v15  ;;  %v932_v29 = vld [vmem:[%s1125_s5 + $0x30] sm:$0xff]  ;;  %v933_v31 = vld [vmem:[%s1125_s5 + $0x38] sm:$0xff]  ;;  %vm1187_vm5 = vmor %vm683_vm4, %vm682_vm3 }
  0x1c   : > { %504 = vmatpush.bf16.msra.mxu1 %v882_v16  ;;  %949 = vmatpush.bf16.msra.mxu3 %v882_v16  ;;  %v940_v30 = vld [vmem:[%s1125_s5 + $0x70] sm:$0xff]  ;;  %v941_v32 = vld [vmem:[%s1125_s5 + $0x78] sm:$0xff] }
  0x1e   : > { %891 = vmatmul.msk.bf16.vlgmr.msra.gmra.mxu0 %vm349_vm2, %v926_v17  ;;  %899 = vmatmul.msk.bf16.vlgmr.msra.gmra.mxu2 %vm349_vm2, %v934_v18 }
  0x1f   : > { %907 = vmatmul.msk.bf16.vlgmr.msra.gmra.mxu1 %vm349_vm2, %v926_v17  ;;  %915 = vmatmul.msk.bf16.vlgmr.msra.gmra.mxu3 %vm349_vm2, %v934_v18 }
  0x2e   : > { %892 = vmatmul.msk.bf16.gmra.mxu0 %vm349_vm2, %v927_v19  ;;  %900 = vmatmul.msk.bf16.gmra.mxu2 %vm349_vm2, %v935_v20 }
  0x2f   : > { %908 = vmatmul.msk.bf16.gmra.mxu1 %vm349_vm2, %v927_v19  ;;  %916 = vmatmul.msk.bf16.gmra.mxu3 %vm349_vm2, %v935_v20 }
  0x3e   : > { %893 = vmatmul.msk.bf16.gmra.mxu0 %vm349_vm2, %v928_v21  ;;  %901 = vmatmul.msk.bf16.gmra.mxu2 %vm349_vm2, %v936_v22 }
  0x3f   : > { %909 = vmatmul.msk.bf16.gmra.mxu1 %vm349_vm2, %v928_v21  ;;  %917 = vmatmul.msk.bf16.gmra.mxu3 %vm349_vm2, %v936_v22 }
  0x4e   : > { %894 = vmatmul.msk.bf16.gmra.mxu0 %vm349_vm2, %v929_v23  ;;  %902 = vmatmul.msk.bf16.gmra.mxu2 %vm349_vm2, %v937_v24 }
  0x4f   : > { %910 = vmatmul.msk.bf16.gmra.mxu1 %vm349_vm2, %v929_v23  ;;  %918 = vmatmul.msk.bf16.gmra.mxu3 %vm349_vm2, %v937_v24 }
  0x5e   : > { %895 = vmatmul.msk.bf16.gmra.mxu0 %vm349_vm2, %v930_v25  ;;  %903 = vmatmul.msk.bf16.gmra.mxu2 %vm349_vm2, %v938_v26 }
  0x5f   : > { %911 = vmatmul.msk.bf16.gmra.mxu1 %vm349_vm2, %v930_v25  ;;  %919 = vmatmul.msk.bf16.gmra.mxu3 %vm349_vm2, %v938_v26 }
  0x6e   : > { %896 = vmatmul.msk.bf16.gmra.mxu0 %vm349_vm2, %v931_v27  ;;  %904 = vmatmul.msk.bf16.gmra.mxu2 %vm349_vm2, %v939_v28 }
  0x6f   : > { %912 = vmatmul.msk.bf16.gmra.mxu1 %vm349_vm2, %v931_v27  ;;  %920 = vmatmul.msk.bf16.gmra.mxu3 %vm349_vm2, %v939_v28 }
  0x7e   : > { %897 = vmatmul.msk.bf16.gmra.mxu0 %vm349_vm2, %v932_v29  ;;  %905 = vmatmul.msk.bf16.gmra.mxu2 %vm349_vm2, %v940_v30 }
  0x7f   : > { %913 = vmatmul.msk.bf16.gmra.mxu1 %vm349_vm2, %v932_v29  ;;  %921 = vmatmul.msk.bf16.gmra.mxu3 %vm349_vm2, %v940_v30 }
  0x8e   : > { %898 = vmatmul.msk.bf16.gmra.mxu0 %vm349_vm2, %v933_v31  ;;  %906 = vmatmul.msk.bf16.gmra.mxu2 %vm349_vm2, %v941_v32 }
  0x8f   : > { %914 = vmatmul.msk.bf16.gmra.mxu1 %vm349_vm2, %v933_v31  ;;  %922 = vmatmul.msk.bf16.gmra.mxu3 %vm349_vm2, %v941_v32 }
  0x9b   : > { %v417_v36 = vpop.f32.mrf.mxu0 }
  0x9c   : > { %v418_v37 = vadd.f32 %v417_v36, %v1175_v34  ;;  %v506_v38 = vpop.f32.mrf.mxu1 }
  0x9d   : > { %v507_v39 = vadd.f32 %v506_v38, %v1177_v35 }
  0x9e   : > { %v586_v40 = vmax.f32 %v418_v37, 0.0 }
  0x9f   : > { %v587_v41 = vmax.f32 %v507_v39, 0.0 }
  0xa1   : > { %v650_v43 = vpack.c.bf16 %v587_v41, %v586_v40  ;;  %v457_v44 = vpop.f32.mrf.mxu2 }
  0xa2   : > { %v458_v45 = vadd.f32 %v457_v44, %v1175_v34  ;;  %v546_v46 = vpop.f32.mrf.mxu3 }
  0xa3   : > { %685 = vst.msk [vmem:[%s1185_s9] sm:$0xff] %vm1187_vm5, %v650_v43  ;;  %v547_v47 = vadd.f32 %v546_v46, %v1177_v35  ;;  %v419_v48 = vpop.f32.mrf.mxu0 }
  0xa4   : > { %v618_v49 = vmax.f32 %v458_v45, 0.0  ;;  %v420_v50 = vadd.f32 %v419_v48, %v1175_v34  ;;  %v508_v51 = vpop.f32.mrf.mxu1 }
  0xa5   : > { %v619_v52 = vmax.f32 %v547_v47, 0.0  ;;  %v509_v53 = vadd.f32 %v508_v51, %v1177_v35 }
  0xa6   : > { %v588_v54 = vmax.f32 %v420_v50, 0.0 }
  0xa7   : > { %v666_v55 = vpack.c.bf16 %v619_v52, %v618_v49  ;;  %v589_v56 = vmax.f32 %v509_v53, 0.0 }
  0xa9   : > { %701 = vst.msk [vmem:[%s1185_s9 + $0x80] sm:$0xff] %vm1187_vm5, %v666_v55  ;;  %v651_v57 = vpack.c.bf16 %v589_v56, %v588_v54  ;;  %v459_v58 = vpop.f32.mrf.mxu2 }
  0xaa   : > { %v460_v59 = vadd.f32 %v459_v58, %v1175_v34  ;;  %v548_v60 = vpop.f32.mrf.mxu3 }
  0xab   : > { %686 = vst.msk [vmem:[%s1185_s9 + $0x8] sm:$0xff] %vm1187_vm5, %v651_v57  ;;  %v549_v61 = vadd.f32 %v548_v60, %v1177_v35  ;;  %v422_v62 = vpop.f32.mrf.mxu0 }
  0xac   : > { %v620_v63 = vmax.f32 %v460_v59, 0.0  ;;  %v423_v0 = vadd.f32 %v422_v62, %v1175_v34  ;;  %v511_v1 = vpop.f32.mrf.mxu1 }
  0xad   : > { %v621_v2 = vmax.f32 %v549_v61, 0.0  ;;  %v512_v3 = vadd.f32 %v511_v1, %v1177_v35 }
  0xae   : > { %v590_v4 = vmax.f32 %v423_v0, 0.0 }
  0xaf   : > { %v667_v5 = vpack.c.bf16 %v621_v2, %v620_v63  ;;  %v591_v6 = vmax.f32 %v512_v3, 0.0 }
  0xb1   : > { %702 = vst.msk [vmem:[%s1185_s9 + $0x88] sm:$0xff] %vm1187_vm5, %v667_v5  ;;  %v652_v7 = vpack.c.bf16 %v591_v6, %v590_v4  ;;  %v462_v8 = vpop.f32.mrf.mxu2 }
  0xb2   : > { %v463_v9 = vadd.f32 %v462_v8, %v1175_v34  ;;  %v551_v10 = vpop.f32.mrf.mxu3 }
  0xb3   : > { %687 = vst.msk [vmem:[%s1185_s9 + $0x10] sm:$0xff] %vm1187_vm5, %v652_v7  ;;  %v552_v11 = vadd.f32 %v551_v10, %v1177_v35  ;;  %v424_v12 = vpop.f32.mrf.mxu0 }
  0xb4   : > { %v622_v13 = vmax.f32 %v463_v9, 0.0  ;;  %v425_v14 = vadd.f32 %v424_v12, %v1175_v34  ;;  %v513_v15 = vpop.f32.mrf.mxu1 }
  0xb5   : > { %v623_v16 = vmax.f32 %v552_v11, 0.0  ;;  %v514_v17 = vadd.f32 %v513_v15, %v1177_v35 }
  0xb6   : > { %v592_v18 = vmax.f32 %v425_v14, 0.0 }
  0xb7   : > { %v668_v19 = vpack.c.bf16 %v623_v16, %v622_v13  ;;  %v593_v20 = vmax.f32 %v514_v17, 0.0 }
  0xb9   : > { %703 = vst.msk [vmem:[%s1185_s9 + $0x90] sm:$0xff] %vm1187_vm5, %v668_v19  ;;  %v653_v21 = vpack.c.bf16 %v593_v20, %v592_v18  ;;  %v464_v22 = vpop.f32.mrf.mxu2 }
  0xba   : > { %v465_v23 = vadd.f32 %v464_v22, %v1175_v34  ;;  %v553_v24 = vpop.f32.mrf.mxu3 }
  0xbb   : > { %688 = vst.msk [vmem:[%s1185_s9 + $0x18] sm:$0xff] %vm1187_vm5, %v653_v21  ;;  %v554_v25 = vadd.f32 %v553_v24, %v1177_v35  ;;  %v427_v26 = vpop.f32.mrf.mxu0 }
  0xbc   : > { %v624_v27 = vmax.f32 %v465_v23, 0.0  ;;  %v428_v28 = vadd.f32 %v427_v26, %v1175_v34  ;;  %v516_v29 = vpop.f32.mrf.mxu1 }
  0xbd   : > { %v625_v30 = vmax.f32 %v554_v25, 0.0  ;;  %v517_v31 = vadd.f32 %v516_v29, %v1177_v35 }
  0xbe   : > { %v594_v32 = vmax.f32 %v428_v28, 0.0 }
  0xbf   : > { %v669_v33 = vpack.c.bf16 %v625_v30, %v624_v27  ;;  %v595_v36 = vmax.f32 %v517_v31, 0.0 }
  0xc1   : > { %704 = vst.msk [vmem:[%s1185_s9 + $0x98] sm:$0xff] %vm1187_vm5, %v669_v33  ;;  %v654_v37 = vpack.c.bf16 %v595_v36, %v594_v32  ;;  %v467_v38 = vpop.f32.mrf.mxu2 }
  0xc2   : > { %v468_v39 = vadd.f32 %v467_v38, %v1175_v34  ;;  %v556_v40 = vpop.f32.mrf.mxu3 }
  0xc3   : > { %689 = vst.msk [vmem:[%s1185_s9 + $0x20] sm:$0xff] %vm1187_vm5, %v654_v37  ;;  %v557_v41 = vadd.f32 %v556_v40, %v1177_v35  ;;  %v429_v43 = vpop.f32.mrf.mxu0 }
  0xc4   : > { %v626_v44 = vmax.f32 %v468_v39, 0.0  ;;  %v430_v45 = vadd.f32 %v429_v43, %v1175_v34  ;;  %v518_v46 = vpop.f32.mrf.mxu1 }
  0xc5   : > { %v627_v47 = vmax.f32 %v557_v41, 0.0  ;;  %v519_v48 = vadd.f32 %v518_v46, %v1177_v35 }
  0xc6   : > { %v596_v49 = vmax.f32 %v430_v45, 0.0 }
  0xc7   : > { %v670_v50 = vpack.c.bf16 %v627_v47, %v626_v44  ;;  %v597_v51 = vmax.f32 %v519_v48, 0.0 }
  0xc9   : > { %705 = vst.msk [vmem:[%s1185_s9 + $0xa0] sm:$0xff] %vm1187_vm5, %v670_v50  ;;  %v655_v52 = vpack.c.bf16 %v597_v51, %v596_v49  ;;  %v469_v53 = vpop.f32.mrf.mxu2 }
  0xca   : > { %v470_v54 = vadd.f32 %v469_v53, %v1175_v34  ;;  %v558_v55 = vpop.f32.mrf.mxu3 }
  0xcb   : > { %690 = vst.msk [vmem:[%s1185_s9 + $0x28] sm:$0xff] %vm1187_vm5, %v655_v52  ;;  %v559_v56 = vadd.f32 %v558_v55, %v1177_v35  ;;  %v432_v57 = vpop.f32.mrf.mxu0 }
  0xcc   : > { %v628_v58 = vmax.f32 %v470_v54, 0.0  ;;  %v433_v59 = vadd.f32 %v432_v57, %v1175_v34  ;;  %v521_v60 = vpop.f32.mrf.mxu1 }
  0xcd   : > { %v629_v61 = vmax.f32 %v559_v56, 0.0  ;;  %v522_v62 = vadd.f32 %v521_v60, %v1177_v35 }
  0xce   : > { %v598_v63 = vmax.f32 %v433_v59, 0.0 }
  0xcf   : > { %v671_v0 = vpack.c.bf16 %v629_v61, %v628_v58  ;;  %v599_v1 = vmax.f32 %v522_v62, 0.0 }
  0xd1   : > { %706 = vst.msk [vmem:[%s1185_s9 + $0xa8] sm:$0xff] %vm1187_vm5, %v671_v0  ;;  %v656_v2 = vpack.c.bf16 %v599_v1, %v598_v63  ;;  %v472_v3 = vpop.f32.mrf.mxu2 }
  0xd2   : > { %v473_v4 = vadd.f32 %v472_v3, %v1175_v34  ;;  %v561_v5 = vpop.f32.mrf.mxu3 }
  0xd3   : > { %691 = vst.msk [vmem:[%s1185_s9 + $0x30] sm:$0xff] %vm1187_vm5, %v656_v2  ;;  %v562_v6 = vadd.f32 %v561_v5, %v1177_v35  ;;  %v434_v7 = vpop.f32.mrf.mxu0 }
  0xd4   : > { %v630_v8 = vmax.f32 %v473_v4, 0.0  ;;  %v435_v9 = vadd.f32 %v434_v7, %v1175_v34  ;;  %v523_v10 = vpop.f32.mrf.mxu1 }
  0xd5   : > { %v631_v11 = vmax.f32 %v562_v6, 0.0  ;;  %v524_v12 = vadd.f32 %v523_v10, %v1177_v35 }
  0xd6   : > { %v600_v13 = vmax.f32 %v435_v9, 0.0 }
  0xd7   : > { %v672_v14 = vpack.c.bf16 %v631_v11, %v630_v8  ;;  %v601_v15 = vmax.f32 %v524_v12, 0.0 }
  0xd9   : > { %707 = vst.msk [vmem:[%s1185_s9 + $0xb0] sm:$0xff] %vm1187_vm5, %v672_v14  ;;  %v657_v16 = vpack.c.bf16 %v601_v15, %v600_v13  ;;  %v474_v17 = vpop.f32.mrf.mxu2 }
  0xda   : > { %v475_v18 = vadd.f32 %v474_v17, %v1175_v34  ;;  %v563_v19 = vpop.f32.mrf.mxu3 }
  0xdb   : > { %692 = vst.msk [vmem:[%s1185_s9 + $0x38] sm:$0xff] %vm1187_vm5, %v657_v16  ;;  %v564_v20 = vadd.f32 %v563_v19, %v1177_v35  ;;  %v437_v21 = vpop.f32.mrf.mxu0 }
  0xdc   : > { %v632_v22 = vmax.f32 %v475_v18, 0.0  ;;  %v438_v23 = vadd.f32 %v437_v21, %v1175_v34  ;;  %v526_v24 = vpop.f32.mrf.mxu1 }
  0xdd   : > { %v633_v25 = vmax.f32 %v564_v20, 0.0  ;;  %v527_v26 = vadd.f32 %v526_v24, %v1177_v35 }
  0xde   : > { %v602_v27 = vmax.f32 %v438_v23, 0.0 }
  0xdf   : > { %v673_v28 = vpack.c.bf16 %v633_v25, %v632_v22  ;;  %v603_v29 = vmax.f32 %v527_v26, 0.0 }
  0xe1   : > { %708 = vst.msk [vmem:[%s1185_s9 + $0xb8] sm:$0xff] %vm1187_vm5, %v673_v28  ;;  %v658_v30 = vpack.c.bf16 %v603_v29, %v602_v27  ;;  %v477_v31 = vpop.f32.mrf.mxu2 }
  0xe2   : > { %v478_v32 = vadd.f32 %v477_v31, %v1175_v34  ;;  %v566_v33 = vpop.f32.mrf.mxu3 }
  0xe3   : > { %693 = vst.msk [vmem:[%s1185_s9 + $0x40] sm:$0xff] %vm1187_vm5, %v658_v30  ;;  %v567_v36 = vadd.f32 %v566_v33, %v1177_v35  ;;  %v439_v37 = vpop.f32.mrf.mxu0 }
  0xe4   : > { %v634_v38 = vmax.f32 %v478_v32, 0.0  ;;  %v440_v39 = vadd.f32 %v439_v37, %v1175_v34  ;;  %v528_v40 = vpop.f32.mrf.mxu1 }
  0xe5   : > { %v635_v41 = vmax.f32 %v567_v36, 0.0  ;;  %v529_v43 = vadd.f32 %v528_v40, %v1177_v35 }
  0xe6   : > { %v604_v44 = vmax.f32 %v440_v39, 0.0 }
  0xe7   : > { %v674_v45 = vpack.c.bf16 %v635_v41, %v634_v38  ;;  %v605_v46 = vmax.f32 %v529_v43, 0.0 }
  0xe9   : > { %709 = vst.msk [vmem:[%s1185_s9 + $0xc0] sm:$0xff] %vm1187_vm5, %v674_v45  ;;  %v659_v47 = vpack.c.bf16 %v605_v46, %v604_v44  ;;  %v479_v48 = vpop.f32.mrf.mxu2 }
  0xea   : > { %v480_v49 = vadd.f32 %v479_v48, %v1175_v34  ;;  %v568_v50 = vpop.f32.mrf.mxu3 }
  0xeb   : > { %694 = vst.msk [vmem:[%s1185_s9 + $0x48] sm:$0xff] %vm1187_vm5, %v659_v47  ;;  %v569_v51 = vadd.f32 %v568_v50, %v1177_v35  ;;  %v442_v52 = vpop.f32.mrf.mxu0 }
  0xec   : > { %v636_v53 = vmax.f32 %v480_v49, 0.0  ;;  %v443_v54 = vadd.f32 %v442_v52, %v1175_v34  ;;  %v531_v55 = vpop.f32.mrf.mxu1 }
  0xed   : > { %v637_v56 = vmax.f32 %v569_v51, 0.0  ;;  %v532_v57 = vadd.f32 %v531_v55, %v1177_v35 }
  0xee   : > { %v606_v58 = vmax.f32 %v443_v54, 0.0 }
  0xef   : > { %v675_v59 = vpack.c.bf16 %v637_v56, %v636_v53  ;;  %v607_v60 = vmax.f32 %v532_v57, 0.0 }
  0xf1   : > { %710 = vst.msk [vmem:[%s1185_s9 + $0xc8] sm:$0xff] %vm1187_vm5, %v675_v59  ;;  %v660_v61 = vpack.c.bf16 %v607_v60, %v606_v58  ;;  %v482_v62 = vpop.f32.mrf.mxu2 }
  0xf2   : > { %v483_v63 = vadd.f32 %v482_v62, %v1175_v34  ;;  %v571_v0 = vpop.f32.mrf.mxu3 }
  0xf3   : > { %695 = vst.msk [vmem:[%s1185_s9 + $0x50] sm:$0xff] %vm1187_vm5, %v660_v61  ;;  %v572_v1 = vadd.f32 %v571_v0, %v1177_v35  ;;  %v444_v2 = vpop.f32.mrf.mxu0 }
  0xf4   : > { %v638_v3 = vmax.f32 %v483_v63, 0.0  ;;  %v445_v4 = vadd.f32 %v444_v2, %v1175_v34  ;;  %v533_v5 = vpop.f32.mrf.mxu1 }
  0xf5   : > { %v639_v6 = vmax.f32 %v572_v1, 0.0  ;;  %v534_v7 = vadd.f32 %v533_v5, %v1177_v35 }
  0xf6   : > { %v608_v8 = vmax.f32 %v445_v4, 0.0 }
  0xf7   : > { %v676_v9 = vpack.c.bf16 %v639_v6, %v638_v3  ;;  %v609_v10 = vmax.f32 %v534_v7, 0.0 }
  0xf9   : > { %711 = vst.msk [vmem:[%s1185_s9 + $0xd0] sm:$0xff] %vm1187_vm5, %v676_v9  ;;  %v661_v11 = vpack.c.bf16 %v609_v10, %v608_v8  ;;  %v484_v12 = vpop.f32.mrf.mxu2 }
  0xfa   : > { %v485_v13 = vadd.f32 %v484_v12, %v1175_v34  ;;  %v573_v14 = vpop.f32.mrf.mxu3 }
  0xfb   : > { %696 = vst.msk [vmem:[%s1185_s9 + $0x58] sm:$0xff] %vm1187_vm5, %v661_v11  ;;  %v574_v15 = vadd.f32 %v573_v14, %v1177_v35  ;;  %v447_v16 = vpop.f32.mrf.mxu0 }
  0xfc   : > { %v640_v17 = vmax.f32 %v485_v13, 0.0  ;;  %v448_v18 = vadd.f32 %v447_v16, %v1175_v34  ;;  %v536_v19 = vpop.f32.mrf.mxu1 }
  0xfd   : > { %v641_v20 = vmax.f32 %v574_v15, 0.0  ;;  %v537_v21 = vadd.f32 %v536_v19, %v1177_v35 }
  0xfe   : > { %v610_v22 = vmax.f32 %v448_v18, 0.0 }
  0xff   : > { %v677_v23 = vpack.c.bf16 %v641_v20, %v640_v17  ;;  %v611_v24 = vmax.f32 %v537_v21, 0.0 }
 0x101   : > { %712 = vst.msk [vmem:[%s1185_s9 + $0xd8] sm:$0xff] %vm1187_vm5, %v677_v23  ;;  %v662_v25 = vpack.c.bf16 %v611_v24, %v610_v22  ;;  %v487_v26 = vpop.f32.mrf.mxu2 }
 0x102   : > { %v488_v27 = vadd.f32 %v487_v26, %v1175_v34  ;;  %v576_v28 = vpop.f32.mrf.mxu3 }
 0x103   : > { %697 = vst.msk [vmem:[%s1185_s9 + $0x60] sm:$0xff] %vm1187_vm5, %v662_v25  ;;  %v577_v29 = vadd.f32 %v576_v28, %v1177_v35  ;;  %v449_v30 = vpop.f32.mrf.mxu0 }
 0x104   : > { %v642_v31 = vmax.f32 %v488_v27, 0.0  ;;  %v450_v32 = vadd.f32 %v449_v30, %v1175_v34  ;;  %v538_v33 = vpop.f32.mrf.mxu1 }
 0x105   : > { %v643_v36 = vmax.f32 %v577_v29, 0.0  ;;  %v539_v37 = vadd.f32 %v538_v33, %v1177_v35 }
 0x106   : > { %v612_v38 = vmax.f32 %v450_v32, 0.0 }
 0x107   : > { %v678_v39 = vpack.c.bf16 %v643_v36, %v642_v31  ;;  %v613_v40 = vmax.f32 %v539_v37, 0.0 }
 0x109   : > { %713 = vst.msk [vmem:[%s1185_s9 + $0xe0] sm:$0xff] %vm1187_vm5, %v678_v39  ;;  %v663_v41 = vpack.c.bf16 %v613_v40, %v612_v38  ;;  %v489_v43 = vpop.f32.mrf.mxu2 }
 0x10a   : > { %v490_v44 = vadd.f32 %v489_v43, %v1175_v34  ;;  %v578_v45 = vpop.f32.mrf.mxu3 }
 0x10b   : > { %698 = vst.msk [vmem:[%s1185_s9 + $0x68] sm:$0xff] %vm1187_vm5, %v663_v41  ;;  %v579_v46 = vadd.f32 %v578_v45, %v1177_v35  ;;  %v452_v47 = vpop.f32.mrf.mxu0 }
 0x10c   : > { %v644_v48 = vmax.f32 %v490_v44, 0.0  ;;  %v453_v49 = vadd.f32 %v452_v47, %v1175_v34  ;;  %v541_v50 = vpop.f32.mrf.mxu1 }
 0x10d   : > { %v645_v51 = vmax.f32 %v579_v46, 0.0  ;;  %v542_v52 = vadd.f32 %v541_v50, %v1177_v35 }
 0x10e   : > { %v614_v53 = vmax.f32 %v453_v49, 0.0 }
 0x10f   : > { %v679_v54 = vpack.c.bf16 %v645_v51, %v644_v48  ;;  %v615_v55 = vmax.f32 %v542_v52, 0.0 }
 0x111   : > { %714 = vst.msk [vmem:[%s1185_s9 + $0xe8] sm:$0xff] %vm1187_vm5, %v679_v54  ;;  %v664_v56 = vpack.c.bf16 %v615_v55, %v614_v53  ;;  %v492_v57 = vpop.f32.mrf.mxu2 }
 0x112   : > { %v493_v58 = vadd.f32 %v492_v57, %v1175_v34  ;;  %v581_v59 = vpop.f32.mrf.mxu3 }
 0x113   : > { %699 = vst.msk [vmem:[%s1185_s9 + $0x70] sm:$0xff] %vm1187_vm5, %v664_v56  ;;  %v582_v60 = vadd.f32 %v581_v59, %v1177_v35  ;;  %v454_v61 = vpop.f32.mrf.mxu0 }
 0x114   : > { %v646_v62 = vmax.f32 %v493_v58, 0.0  ;;  %v455_v63 = vadd.f32 %v454_v61, %v1175_v34  ;;  %v543_v0 = vpop.f32.mrf.mxu1 }
 0x115   : > { %v647_v1 = vmax.f32 %v582_v60, 0.0  ;;  %v544_v2 = vadd.f32 %v543_v0, %v1177_v35 }
 0x116   : > { %v616_v3 = vmax.f32 %v455_v63, 0.0 }
 0x117   : > { %v680_v4 = vpack.c.bf16 %v647_v1, %v646_v62  ;;  %v617_v5 = vmax.f32 %v544_v2, 0.0 }
 0x119   : > { %715 = vst.msk [vmem:[%s1185_s9 + $0xf0] sm:$0xff] %vm1187_vm5, %v680_v4  ;;  %v665_v6 = vpack.c.bf16 %v617_v5, %v616_v3  ;;  %v494_v7 = vpop.f32.mrf.mxu2 }
 0x11a   : > { %v495_v8 = vadd.f32 %v494_v7, %v1175_v34  ;;  %v583_v9 = vpop.f32.mrf.mxu3 }
 0x11b   : > { %700 = vst.msk [vmem:[%s1185_s9 + $0x78] sm:$0xff] %vm1187_vm5, %v665_v6  ;;  %v584_v10 = vadd.f32 %v583_v9, %v1177_v35 }
 0x11c   : > { %v648_v11 = vmax.f32 %v495_v8, 0.0 }
 0x11d   : > { %v649_v12 = vmax.f32 %v584_v10, 0.0 }
 0x11f   : > { %v681_v13 = vpack.c.bf16 %v649_v12, %v648_v11 }
 0x121   : > { %716 = vst.msk [vmem:[%s1185_s9 + $0xf8] sm:$0xff] %vm1187_vm5, %v681_v13 }
 0x122 PF: > { %s15_s12 = sadd.s32 1, %s1056_s12  }
 0x123   : > { %p12_p7 = scmp.ge.s32.totalorder %s15_s12, 4  }
 0x125   :  { %14 = sbr.rel (!%p12_p7) target bundleno = 2 (0x2), region = 71 }
 0x12a   :  { %741 = vsyncpa [#allocation3], 1 }
 0x12b   :  { %743 = vsyncpa [#allocation3 + $0x1], 1 }
 0x12c   :  { %744 = vsyncpa [#allocation5], 1 }

// kernel: mt_conv_cifar_forward.5
= control target key start
LH: loop header
LB: loop body
LE: loop exit
PB: predicated region body
PF: predicated region fallthrough
CT: control target
= control target key end

     0   :  { %s5337_s21 = smov 0   ;;  %s7577_s0 = inlined_call_operand.vmem [shape: bf16[2,88,160], index: 0, kind: input, shape index: {}]   ;;  %s7578_s1 = inlined_call_operand.vmem [shape: bf16[2,88,160], index: 1, kind: input, shape index: {}]   ;;  %s7579_s2 = inlined_call_operand.vmem [shape: bf16[2,88,160], index: 2, kind: input, shape index: {}]   ;;  %s7580_s3 = inlined_call_operand.vmem [shape: bf16[2,88,160], index: 3, kind: input, shape index: {}]   ;;  %s7581_s4 = inlined_call_operand.vmem [shape: bf16[9,160,160], index: 4, kind: input, shape index: {}]   ;;  %s7582_s5 = inlined_call_operand.vmem [shape: f32[1,160], index: 5, kind: input, shape index: {}]   ;;  %s7583_s6 = inlined_call_operand.vmem [shape: bf16[2,72,160], index: 6, kind: output, shape index: {}]  }
   0x1 LB: > { %s3772_s22 = sadd.s32 4294967295, %s5300_s21   ;;  %p3776_p0 = scmp.ge.s32.totalorder %s5300_s21, 1  ;;  %s5300_s21 = sphi %s5337_s21, %s16_s21  }
   0x2   : > { %p242_p1 = scmp.lt.s32.totalorder %s5300_s21, 3 }
   0x4   : > { %p243_p2 = pnand %p3776_p0, %p242_p1 }
   0x5   : > { %p287_p3 = scmp.lt.s32.totalorder (!%p243_p2), %s3772_s22, 1 }
   0x6   : > { %246 = sbr.rel (%p243_p2) target bundleno = 893 (0x37d), region = 44 }
   0xb   : > { %v3892_v0 = vld [vmem:[%s7581_s4 + $0x110] sm:$0xf]  ;;  %v5085_v1 = vld [vmem:[%s7581_s4 + $0x114] sm:$0xf0]  ;;  %v5084_v5 = vld [vmem:[%s7581_s4 + $0x114] sm:$0xf] }
   0xc   : > { %v3908_v2 = vld [vmem:[%s7581_s4 + $0x130] sm:$0xf]  ;;  %v3893_v3 = vor.u32 %v5085_v1, %v3892_v0  ;;  %v5089_v4 = vld [vmem:[%s7581_s4 + $0x134] sm:$0xf0]  ;;  %v3894_v6 = vld [vmem:[%s7581_s4 + $0x118] sm:$0xf0] }
   0xd   : > { %v3909_v7 = vor.u32 %v5089_v4, %v3908_v2  ;;  %v3897_v8 = vor.u32 %v5084_v5, %v3894_v6  ;;  %v5088_v9 = vld [vmem:[%s7581_s4 + $0x134] sm:$0xf]  ;;  %v3910_v10 = vld [vmem:[%s7581_s4 + $0x138] sm:$0xf0]  ;;  %v3884_v11 = vld [vmem:[%s7581_s4 + $0x100] sm:$0xf] }
   0xe   : > { %530 = vmatpush.bf16.msra.mxu0 %v3893_v3  ;;  %v3913_v12 = vor.u32 %v5088_v9, %v3910_v10  ;;  %v5083_v13 = vld [vmem:[%s7581_s4 + $0x104] sm:$0xf0]  ;;  %v3900_v14 = vld [vmem:[%s7581_s4 + $0x120] sm:$0xf]  ;;  %v5082_v18 = vld [vmem:[%s7581_s4 + $0x104] sm:$0xf] }
   0xf   : > { %v5087_v15 = vld [vmem:[%s7581_s4 + $0x124] sm:$0xf0]  ;;  %569 = vmatpush.bf16.msra.mxu1 %v3909_v7  ;;  %596 = vmatpush.bf16.msra.mxu2 %v3897_v8  ;;  %v3885_v16 = vor.u32 %v5083_v13, %v3884_v11  ;;  %v3886_v19 = vld [vmem:[%s7581_s4 + $0x108] sm:$0xf0]  ;;  %v5086_v20 = vld [vmem:[%s7581_s4 + $0x124] sm:$0xf] }
  0x10   : > { %v3901_v17 = vor.u32 %v5087_v15, %v3900_v14  ;;  %635 = vmatpush.bf16.msra.mxu3 %v3913_v12  ;;  %v3889_v21 = vor.u32 %v5082_v18, %v3886_v19  ;;  %v3902_v22 = vld [vmem:[%s7581_s4 + $0x128] sm:$0xf0]  ;;  %v3876_v23 = vld [vmem:[%s7581_s4 + $0xf0] sm:$0xf]  ;;  %v5081_v25 = vld [vmem:[%s7581_s4 + $0xf4] sm:$0xf0] }
  0x11   : > { %v3905_v24 = vor.u32 %v5086_v20, %v3902_v22  ;;  %v5080_v26 = vld [vmem:[%s7581_s4 + $0xf4] sm:$0xf]  ;;  %v3878_v27 = vld [vmem:[%s7581_s4 + $0xf8] sm:$0xf0]  ;;  %s7587_s22 = smov (!%p287_p3, %s3772_s22), 1  ;;  %v3877_v28 = vor.u32 %v5081_v25, %v3876_v23  ;;  %vm514_vm0 = vcmask 261120  }
  0x12   : > { %531 = vmatpush.bf16.msra.mxu0 %v3885_v16  ;;  %v3881_v29 = vor.u32 %v5080_v26, %v3878_v27  ;;  %v3868_v30 = vld [vmem:[%s7581_s4 + $0xe0] sm:$0xf]  ;;  %v5079_v31 = vld [vmem:[%s7581_s4 + $0xe4] sm:$0xf0]  ;;  %s5418_s23 = smul.u32 88, %s7587_s22  ;;  %vm3329_vm2 = vcmask 1046528  }
  0x13   : > { %570 = vmatpush.bf16.msra.mxu1 %v3901_v17  ;;  %597 = vmatpush.bf16.msra.mxu2 %v3889_v21  ;;  %v5078_v32 = vld [vmem:[%s7581_s4 + $0xe4] sm:$0xf]  ;;  %v3870_v33 = vld [vmem:[%s7581_s4 + $0xe8] sm:$0xf0]  ;;  %v3869_v36 = vor.u32 %v5079_v31, %v3868_v30  ;;  %v3860_v38 = vld [vmem:[%s7581_s4 + $0xd0] sm:$0xf] }
  0x14   : > { %636 = vmatpush.bf16.msra.mxu3 %v3905_v24  ;;  %s5430_s30 = scalar_lea.vmem %s7578_s1, %s5418_s23  ;;  %v3873_v37 = vor.u32 %v5078_v32, %v3870_v33  ;;  %v5077_v40 = vld [vmem:[%s7581_s4 + $0xd4] sm:$0xf0]  ;;  %v5076_v41 = vld [vmem:[%s7581_s4 + $0xd4] sm:$0xf]  ;;  %v3862_v42 = vld [vmem:[%s7581_s4 + $0xd8] sm:$0xf0]  ;;  %s5640_s7 = scalar_lea.vmem %s7577_s0, %s5418_s23 }
  0x15   : > { %v5062_v34 = vld [vmem:[%s5430_s30 + $0x4] sm:$0xf]  ;;  %v3806_v35 = vld [vmem:[%s5430_s30 + $0x8] sm:$0xf0]  ;;  %v3852_v43 = vld [vmem:[%s7581_s4 + $0xc0] sm:$0xf]  ;;  %v3861_v44 = vor.u32 %v5077_v40, %v3860_v38  ;;  %v3865_v45 = vor.u32 %v5076_v41, %v3862_v42  ;;  %s6084_s12 = scalar_lea.vmem %s7579_s2, %s5418_s23  ;;  %s6295_s26 = scalar_lea.vmem %s7580_s3, %s5418_s23 }
  0x16   : > { %532 = vmatpush.bf16.msra.mxu0 %v3877_v28  ;;  %v3809_v39 = vor.u32 %v5062_v34, %v3806_v35  ;;  %v5075_v46 = vld [vmem:[%s7581_s4 + $0xc4] sm:$0xf0]  ;;  %v4030_v47 = vld [vmem:[%s7581_s4 + $0x90] sm:$0xf]  ;;  %v5061_v48 = vld [vmem:[%s7581_s4 + $0x94] sm:$0xf0] }
  0x17   : > { %598 = vmatpush.bf16.msra.mxu2 %v3881_v29  ;;  %v5074_v49 = vld [vmem:[%s7581_s4 + $0xc4] sm:$0xf]  ;;  %v3854_v50 = vld [vmem:[%s7581_s4 + $0xc8] sm:$0xf0]  ;;  %v4031_v51 = vor.u32 %v5061_v48, %v4030_v47  ;;  %v4014_v52 = vld [vmem:[%s7581_s4 + $0x70] sm:$0xf]  ;;  %v3853_v55 = vor.u32 %v5075_v46, %v3852_v43 }
  0x18   : > { %3914 = vmatmul.msk.bf16.vlgmr.msra.gmra.mxu1 %vm514_vm0, %v3809_v39  ;;  %3919 = vmatmul.msk.bf16.vlgmr.msra.gmra.mxu3 %vm514_vm0, %v3809_v39  ;;  %v5057_v53 = vld [vmem:[%s7581_s4 + $0x74] sm:$0xf0]  ;;  %v3857_v56 = vor.u32 %v5074_v49, %v3854_v50  ;;  %v3844_v57 = vld [vmem:[%s7581_s4 + $0xb0] sm:$0xf]  ;;  %v4006_v58 = vld [vmem:[%s7581_s4 + $0x60] sm:$0xf] }
  0x19   : > { %858 = vmatpush.bf16.msrb.mxu3 %v4031_v51  ;;  %v4015_v54 = vor.u32 %v5057_v53, %v4014_v52  ;;  %v5055_v59 = vld [vmem:[%s7581_s4 + $0x64] sm:$0xf0]  ;;  %v5073_v60 = vld [vmem:[%s7581_s4 + $0xb4] sm:$0xf0]  ;;  %v5072_v61 = vld [vmem:[%s7581_s4 + $0xb4] sm:$0xf] }
  0x1a   : > { %533 = vmatpush.bf16.msra.mxu0 %v3869_v36  ;;  %v3846_v62 = vld [vmem:[%s7581_s4 + $0xb8] sm:$0xf0]  ;;  %v4007_v63 = vor.u32 %v5055_v59, %v4006_v58  ;;  %v5064_v0 = vld [vmem:[%s5430_s30 + $0x14] sm:$0xf]  ;;  %v3845_v2 = vor.u32 %v5073_v60, %v3844_v57  ;;  %v3836_v4 = vld [vmem:[%s7581_s4 + $0xa0] sm:$0xf] }
  0x1b   : > { %599 = vmatpush.bf16.msra.mxu2 %v3873_v37  ;;  %819 = vmatpush.bf16.msrb.mxu1 %v4015_v54  ;;  %v3814_v1 = vld [vmem:[%s5430_s30 + $0x18] sm:$0xf0]  ;;  %v3849_v3 = vor.u32 %v5072_v61, %v3846_v62  ;;  %v5071_v5 = vld [vmem:[%s7581_s4 + $0xa4] sm:$0xf0]  ;;  %v5070_v6 = vld [vmem:[%s7581_s4 + $0xa4] sm:$0xf] }
  0x1c   : > { %v3838_v7 = vld [vmem:[%s7581_s4 + $0xa8] sm:$0xf0]  ;;  %v5060_v8 = vld [vmem:[%s7581_s4 + $0x94] sm:$0xf]  ;;  %v4032_v9 = vld [vmem:[%s7581_s4 + $0x98] sm:$0xf0]  ;;  %v3817_v12 = vor.u32 %v5064_v0, %v3814_v1  ;;  %v3837_v13 = vor.u32 %v5071_v5, %v3836_v4 }
  0x1d   : > { %v5056_v10 = vld [vmem:[%s7581_s4 + $0x74] sm:$0xf]  ;;  %v4016_v11 = vld [vmem:[%s7581_s4 + $0x78] sm:$0xf0]  ;;  %v3841_v14 = vor.u32 %v5070_v6, %v3838_v7  ;;  %v3804_v15 = vld [vmem:[%s5430_s30] sm:$0xf]  ;;  %v4035_v17 = vor.u32 %v5060_v8, %v4032_v9 }
  0x1e   : > { %534 = vmatpush.bf16.msra.mxu0 %v3861_v44  ;;  %v5063_v16 = vld [vmem:[%s5430_s30 + $0x4] sm:$0xf0]  ;;  %v4019_v18 = vor.u32 %v5056_v10, %v4016_v11  ;;  %v5054_v19 = vld [vmem:[%s7581_s4 + $0x64] sm:$0xf]  ;;  %v4008_v20 = vld [vmem:[%s7581_s4 + $0x68] sm:$0xf0] }
  0x1f   : > { %600 = vmatpush.bf16.msra.mxu2 %v3865_v45  ;;  %820 = vmatpush.bf16.msrb.mxu1 %v4007_v63  ;;  %v3805_v21 = vor.u32 %v5063_v16, %v3804_v15  ;;  %v3998_v22 = vld [vmem:[%s7581_s4 + $0x50] sm:$0xf]  ;;  %v5053_v23 = vld [vmem:[%s7581_s4 + $0x54] sm:$0xf0]  ;;  %v4011_v25 = vor.u32 %v5054_v19, %v4008_v20  ;;  %v5052_v26 = vld [vmem:[%s7581_s4 + $0x54] sm:$0xf] }
  0x20   : > { %v3999_v24 = vor.u32 %v5053_v23, %v3998_v22  ;;  %v4000_v27 = vld [vmem:[%s7581_s4 + $0x58] sm:$0xf0]  ;;  %v3990_v28 = vld [vmem:[%s7581_s4 + $0x40] sm:$0xf]  ;;  %v5051_v29 = vld [vmem:[%s7581_s4 + $0x44] sm:$0xf0] }
  0x21   : > { %v3991_v30 = vor.u32 %v5051_v29, %v3990_v28  ;;  %v4003_v31 = vor.u32 %v5052_v26, %v4000_v27  ;;  %v5050_v32 = vld [vmem:[%s7581_s4 + $0x44] sm:$0xf]  ;;  %v3992_v33 = vld [vmem:[%s7581_s4 + $0x48] sm:$0xf0]  ;;  %v3812_v38 = vld [vmem:[%s5430_s30 + $0x10] sm:$0xf] }
  0x22   : > { %535 = vmatpush.bf16.msra.mxu0 %v3853_v55  ;;  %v5066_v34 = vld [vmem:[%s5430_s30 + $0x24] sm:$0xf]  ;;  %v3822_v35 = vld [vmem:[%s5430_s30 + $0x28] sm:$0xf0]  ;;  %v3995_v36 = vor.u32 %v5050_v32, %v3992_v33  ;;  %v5065_v39 = vld [vmem:[%s5430_s30 + $0x14] sm:$0xf0] }
  0x23   : > { %601 = vmatpush.bf16.msra.mxu2 %v3857_v56  ;;  %821 = vmatpush.bf16.msrb.mxu1 %v3999_v24  ;;  %v3825_v37 = vor.u32 %v5066_v34, %v3822_v35  ;;  %v3982_v40 = vld [vmem:[%s7581_s4 + $0x30] sm:$0xf]  ;;  %v5049_v41 = vld [vmem:[%s7581_s4 + $0x34] sm:$0xf0]  ;;  %v3813_v43 = vor.u32 %v5065_v39, %v3812_v38  ;;  %v4022_v44 = vld [vmem:[%s7581_s4 + $0x80] sm:$0xf] }
  0x24   : > { %v3983_v42 = vor.u32 %v5049_v41, %v3982_v40  ;;  %v5059_v45 = vld [vmem:[%s7581_s4 + $0x84] sm:$0xf0]  ;;  %v5058_v46 = vld [vmem:[%s7581_s4 + $0x84] sm:$0xf]  ;;  %v4024_v48 = vld [vmem:[%s7581_s4 + $0x88] sm:$0xf0] }
  0x25   : > { %v4023_v47 = vor.u32 %v5059_v45, %v4022_v44  ;;  %v3974_v49 = vld [vmem:[%s7581_s4 + $0x20] sm:$0xf]  ;;  %v5047_v50 = vld [vmem:[%s7581_s4 + $0x24] sm:$0xf0]  ;;  %v4027_v51 = vor.u32 %v5058_v46, %v4024_v48  ;;  %v5048_v53 = vld [vmem:[%s7581_s4 + $0x34] sm:$0xf] }
  0x26   : > { %536 = vmatpush.bf16.msra.mxu0 %v3845_v2  ;;  %v3975_v52 = vor.u32 %v5047_v50, %v3974_v49  ;;  %v3984_v54 = vld [vmem:[%s7581_s4 + $0x38] sm:$0xf0]  ;;  %v3966_v56 = vld [vmem:[%s7581_s4 + $0x10] sm:$0xf]  ;;  %v5045_v57 = vld [vmem:[%s7581_s4 + $0x14] sm:$0xf0] }
  0x27   : > { %602 = vmatpush.bf16.msra.mxu2 %v3849_v3  ;;  %822 = vmatpush.bf16.msrb.mxu1 %v3991_v30  ;;  %v3987_v55 = vor.u32 %v5048_v53, %v3984_v54  ;;  %v3967_v58 = vor.u32 %v5045_v57, %v3966_v56  ;;  %v3958_v59 = vld [vmem:[%s7581_s4] sm:$0xf]  ;;  %v5043_v60 = vld [vmem:[%s7581_s4 + $0x4] sm:$0xf0]  ;;  %v5068_v61 = vld [vmem:[%s5430_s30 + $0x34] sm:$0xf] }
  0x28   : > { %3915 = vmatmul.msk.bf16.gmra.mxu1 %vm514_vm0, %v3817_v12  ;;  %3920 = vmatmul.msk.bf16.gmra.mxu3 %vm514_vm0, %v3817_v12  ;;  %v3830_v62 = vld [vmem:[%s5430_s30 + $0x38] sm:$0xf0]  ;;  %v3959_v63 = vor.u32 %v5043_v60, %v3958_v59  ;;  %v3820_v1 = vld [vmem:[%s5430_s30 + $0x20] sm:$0xf]  ;;  %v5067_v2 = vld [vmem:[%s5430_s30 + $0x24] sm:$0xf0] }
  0x29   : > { %859 = vmatpush.bf16.msrb.mxu3 %v4023_v47  ;;  %v3833_v0 = vor.u32 %v5068_v61, %v3830_v62  ;;  %v3821_v3 = vor.u32 %v5067_v2, %v3820_v1  ;;  %v5046_v4 = vld [vmem:[%s7581_s4 + $0x24] sm:$0xf]  ;;  %v3976_v5 = vld [vmem:[%s7581_s4 + $0x28] sm:$0xf0]  ;;  %v5044_v7 = vld [vmem:[%s7581_s4 + $0x14] sm:$0xf] }
  0x2a   : > { %537 = vmatpush.bf16.msra.mxu0 %v3837_v13  ;;  %v3979_v6 = vor.u32 %v5046_v4, %v3976_v5  ;;  %v3968_v8 = vld [vmem:[%s7581_s4 + $0x18] sm:$0xf0]  ;;  %v350_v9 = vld [vmem:[%s5430_s30 + $0x40] sm:$0xff]  ;;  %v3828_v13 = vld [vmem:[%s5430_s30 + $0x30] sm:$0xf]  ;;  %s5285_s13 = smul.u32 72, %s7587_s22 }
  0x2b   : > { %603 = vmatpush.bf16.msra.mxu2 %v3841_v14  ;;  %823 = vmatpush.bf16.msrb.mxu1 %v3983_v42  ;;  %v3971_v10 = vor.u32 %v5044_v7, %v3968_v8  ;;  %v398_v11 = vunpack.c.h.b16 %v350_v9  ;;  %v5069_v14 = vld [vmem:[%s5430_s30 + $0x34] sm:$0xf0]  ;;  %v5042_v16 = vld [vmem:[%s7581_s4 + $0x4] sm:$0xf]  ;;  %v4180_v19 = vld [vmem:[%s7581_s4 + $0x1d0] sm:$0xf] }
  0x2c   : > { %v3829_v15 = vor.u32 %v5069_v14, %v3828_v13  ;;  %v5119_v20 = vld [vmem:[%s7581_s4 + $0x1d4] sm:$0xf0]  ;;  %v4182_v23 = vld [vmem:[%s7581_s4 + $0x1d8] sm:$0xf0]  ;;  %v4164_v24 = vld [vmem:[%s7581_s4 + $0x1b0] sm:$0xf]  ;;  %s7510_s14 = scalar_lea.vmem %s7583_s6, %s5285_s13 }
  0x2d   : > { %538 = vmatmul.bf16.vlgmr.msra.gmra.mxu0 %v3805_v21  ;;  %v408_v12 = vpack.c.b16 %v398_v11, %v398_v11  ;;  %v4181_v22 = vor.u32 %v5119_v20, %v4180_v19  ;;  %v5114_v28 = vld [vmem:[%s7581_s4 + $0x1b4] sm:$0xf]  ;;  %v4166_v29 = vld [vmem:[%s7581_s4 + $0x1b8] sm:$0xf0]  ;;  %v5035_v32 = vld [vmem:[%s5640_s7 + $0x4] sm:$0xf0] }
  0x2e   : > { %885 = vmatpush.bf16.msrb.mxu0 %v4019_v18  ;;  %604 = vmatmul.bf16.vlgmr.msra.gmra.mxu2 %v3805_v21  ;;  %v5118_v21 = vld [vmem:[%s7581_s4 + $0x1d4] sm:$0xf]  ;;  %v4169_v30 = vor.u32 %v5114_v28, %v4166_v29  ;;  %v5034_v33 = vld [vmem:[%s5640_s7 + $0x4] sm:$0xf]  ;;  %v3928_v34 = vld [vmem:[%s5640_s7 + $0x8] sm:$0xf0] }
  0x2f   : > { %924 = vmatpush.bf16.msrb.mxu2 %v4035_v17  ;;  %824 = vmatpush.bf16.msrb.mxu1 %v3975_v52  ;;  %v3960_v17 = vld [vmem:[%s7581_s4 + $0x8] sm:$0xf0]  ;;  %v4185_v26 = vor.u32 %v5118_v21, %v4182_v23  ;;  %v4156_v39 = vld [vmem:[%s7581_s4 + $0x1a0] sm:$0xf]  ;;  %v5113_v40 = vld [vmem:[%s7581_s4 + $0x1a4] sm:$0xf0] }
  0x30   : > { %v3963_v18 = vor.u32 %v5042_v16, %v3960_v17  ;;  %1260 = vmatpush.bf16.msra.mxu3 %v4181_v22  ;;  %v5112_v41 = vld [vmem:[%s7581_s4 + $0x1a4] sm:$0xf]  ;;  %v4157_v42 = vor.u32 %v5113_v40, %v4156_v39  ;;  %v3934_v45 = vld [vmem:[%s5640_s7 + $0x10] sm:$0xf]  ;;  %v5037_v46 = vld [vmem:[%s5640_s7 + $0x14] sm:$0xf0] }
  0x31   : > { %v5036_v47 = vld [vmem:[%s5640_s7 + $0x14] sm:$0xf]  ;;  %v3936_v48 = vld [vmem:[%s5640_s7 + $0x18] sm:$0xf0]  ;;  %v3935_v49 = vor.u32 %v5037_v46, %v3934_v45  ;;  %v5111_v52 = vld [vmem:[%s7581_s4 + $0x194] sm:$0xf0] }
  0x32   : > { %886 = vmatpush.bf16.msrb.mxu0 %v4011_v25  ;;  %v5115_v25 = vld [vmem:[%s7581_s4 + $0x1b4] sm:$0xf0]  ;;  %v3939_v50 = vor.u32 %v5036_v47, %v3936_v48  ;;  %v5110_v53 = vld [vmem:[%s7581_s4 + $0x194] sm:$0xf]  ;;  %v3942_v57 = vld [vmem:[%s5640_s7 + $0x20] sm:$0xf] }
  0x33   : > { %925 = vmatpush.bf16.msrb.mxu2 %v4027_v51  ;;  %825 = vmatpush.bf16.msrb.mxu1 %v3967_v58  ;;  %v4165_v27 = vor.u32 %v5115_v25, %v4164_v24  ;;  %v4148_v51 = vld [vmem:[%s7581_s4 + $0x190] sm:$0xf]  ;;  %v5039_v58 = vld [vmem:[%s5640_s7 + $0x24] sm:$0xf0]  ;;  %v5038_v59 = vld [vmem:[%s5640_s7 + $0x24] sm:$0xf] }
  0x34   : > { %v4149_v54 = vor.u32 %v5111_v52, %v4148_v51  ;;  %v3944_v60 = vld [vmem:[%s5640_s7 + $0x28] sm:$0xf0]  ;;  %v4140_v61 = vld [vmem:[%s7581_s4 + $0x180] sm:$0xf]  ;;  %v5109_v62 = vld [vmem:[%s7581_s4 + $0x184] sm:$0xf0] }
  0x35   : > { %v3947_v1 = vor.u32 %v5038_v59, %v3944_v60  ;;  %v4141_v2 = vor.u32 %v5109_v62, %v4140_v61  ;;  %v4172_v5 = vld [vmem:[%s7581_s4 + $0x1c0] sm:$0xf]  ;;  %v5116_v7 = vld [vmem:[%s7581_s4 + $0x1c4] sm:$0xf]  ;;  %v4132_v11 = vld [vmem:[%s7581_s4 + $0x170] sm:$0xf] }
  0x36   : > { %887 = vmatpush.bf16.msrb.mxu0 %v4003_v31  ;;  %v3926_v31 = vld [vmem:[%s5640_s7] sm:$0xf]  ;;  %v5106_v14 = vld [vmem:[%s7581_s4 + $0x174] sm:$0xf]  ;;  %v3950_v17 = vld [vmem:[%s5640_s7 + $0x30] sm:$0xf] }
  0x37   : > { %826 = vmatpush.bf16.msrb.mxu1 %v3959_v63  ;;  %1326 = vmatpush.bf16.msra.mxu2 %v4185_v26  ;;  %v3927_v35 = vor.u32 %v5035_v32, %v3926_v31  ;;  %v5108_v63 = vld [vmem:[%s7581_s4 + $0x184] sm:$0xf]  ;;  %v5105_v19 = vld [vmem:[%s7581_s4 + $0x164] sm:$0xf0]  ;;  %v5041_v20 = vld [vmem:[%s5640_s7 + $0x34] sm:$0xf0] }
  0x38   : > { %3916 = vmatmul.msk.bf16.gmra.mxu1 %vm514_vm0, %v3825_v37  ;;  %3921 = vmatmul.msk.bf16.gmra.mxu3 %vm514_vm0, %v3825_v37  ;;  %v397_v37 = vunpack.c.l.b16 %v350_v9  ;;  %v4174_v9 = vld [vmem:[%s7581_s4 + $0x1c8] sm:$0xf0]  ;;  %v5040_v21 = vld [vmem:[%s5640_s7 + $0x34] sm:$0xf]  ;;  %v3952_v22 = vld [vmem:[%s5640_s7 + $0x38] sm:$0xf0]  ;;  %v3951_v24 = vor.u32 %v5041_v20, %v3950_v17 }
  0x39   : > { %v3955_v25 = vor.u32 %v5040_v21, %v3952_v22  ;;  %v4116_v26 = vld [vmem:[%s7581_s4 + $0x150] sm:$0xf]  ;;  %v4126_v31 = vld [vmem:[%s7581_s4 + $0x168] sm:$0xf0]  ;;  %v4108_v32 = vld [vmem:[%s7581_s4 + $0x140] sm:$0xf] }
  0x3a   : > { %888 = vmatpush.bf16.msrb.mxu0 %v3995_v36  ;;  %v3931_v36 = vor.u32 %v5034_v33, %v3928_v34  ;;  %v407_v38 = vpack.c.b16 %v397_v37, %v397_v37  ;;  %v5101_v34 = vld [vmem:[%s7581_s4 + $0x144] sm:$0xf0]  ;;  %v5102_v39 = vld [vmem:[%s7581_s4 + $0x154] sm:$0xf]  ;;  %v4118_v40 = vld [vmem:[%s7581_s4 + $0x158] sm:$0xf0] }
  0x3b   : > { %1221 = vmatpush.bf16.msra.mxu1 %v4165_v27  ;;  %v5103_v27 = vld [vmem:[%s7581_s4 + $0x154] sm:$0xf0]  ;;  %v4070_v45 = vld [vmem:[%s5640_s7 + $0x8] sm:$0xf0]  ;;  %v4068_v46 = vld [vmem:[%s5640_s7] sm:$0xf] }
  0x3c   : > { %v4117_v29 = vor.u32 %v5103_v27, %v4116_v26  ;;  %v5091_v47 = vld [vmem:[%s5640_s7 + $0x4] sm:$0xf0]  ;;  %v5092_v52 = vld [vmem:[%s5640_s7 + $0x14] sm:$0xf]  ;;  %vm1022_vm1 = vsmask.f32 7424 }
  0x3d   : > { %543 = vmatmul.bf16.gmra.mxu0 %v3813_v43  ;;  %v5094_v26 = vld [vmem:[%s5640_s7 + $0x24] sm:$0xf]  ;;  %v4086_v27 = vld [vmem:[%s5640_s7 + $0x28] sm:$0xf0]  ;;  %vm3669_vm3 = vcmask 1043456   ;;  %vm3670_vm4 = vcmask 261124  }
  0x3e   : > { %609 = vmatmul.bf16.gmra.mxu2 %v3813_v43  ;;  %889 = vmatpush.bf16.msrb.mxu0 %v3987_v55  ;;  %v4158_v43 = vld [vmem:[%s7581_s4 + $0x1a8] sm:$0xf0]  ;;  %v4150_v55 = vld [vmem:[%s7581_s4 + $0x198] sm:$0xf0]  ;;  %vm7512_vm5 = vmor %vm3670_vm4, %vm3669_vm3 }
  0x3f   : > { %v4161_v44 = vor.u32 %v5112_v41, %v4158_v43  ;;  %1222 = vmatpush.bf16.msra.mxu1 %v4157_v42  ;;  %v4153_v56 = vor.u32 %v5110_v53, %v4150_v55  ;;  %v4121_v41 = vor.u32 %v5102_v39, %v4118_v40  ;;  %v4069_v53 = vor.u32 %v5091_v47, %v4068_v46  ;;  %v4078_v55 = vld [vmem:[%s5640_s7 + $0x18] sm:$0xf0] }
  0x40   : > { %v5790_v59 = vor.u32 %v5092_v52, %v4078_v55  ;;  %v4300_v55 = vld [vmem:[%s7581_s4 + $0x248] sm:$0xf0] }
  0x41   : > { %v1026_v61 = vshll.u32 %v4069_v53, 16 }
  0x42   : > { %890 = vmatpush.bf16.msrb.mxu0 %v3979_v6  ;;  %v5117_v6 = vld [vmem:[%s7581_s4 + $0x1c4] sm:$0xf0]  ;;  %v1055_v46 = vshrl.u32 %v5790_v59, 16 }
  0x43   : > { %1223 = vmatpush.bf16.msra.mxu1 %v4149_v54  ;;  %v4173_v8 = vor.u32 %v5117_v6, %v4172_v5  ;;  %v1043_v6 = vshll.u32 %v5790_v59, 16 }
  0x45   : > { %1261 = vmatpush.bf16.msra.mxu3 %v4173_v8  ;;  %v1028_v8 = vrot.slane %v1026_v61, 1  ;;  %v1045_v21 = vrot.slane %v1043_v6, 1  ;;  %v5096_v6 = vld [vmem:[%s5640_s7 + $0x34] sm:$0xf] }
  0x46   : > { %891 = vmatpush.bf16.msrb.mxu0 %v3971_v10  ;;  %v4177_v10 = vor.u32 %v5116_v7, %v4174_v9  ;;  %v1024_v7 = vshrl.u32 %v4069_v53, 16  ;;  %v4298_v53 = vld [vmem:[%s7581_s4 + $0x240] sm:$0xf] }
  0x47   : > { %1224 = vmatpush.bf16.msra.mxu1 %v4141_v2 }
  0x48   : > { %3917 = vmatmul.msk.bf16.gmra.mxu1 %vm514_vm0, %v3833_v0  ;;  %3922 = vmatmul.msk.bf16.gmra.mxu3 %vm514_vm0, %v3833_v0  ;;  %v3943_v0 = vor.u32 %v5039_v58, %v3942_v57  ;;  %v5093_v57 = vld [vmem:[%s5640_s7 + $0x14] sm:$0xf0]  ;;  %v1029_v22 = vor.u32 %v1028_v8, %v1024_v7  ;;  %v4094_v7 = vld [vmem:[%s5640_s7 + $0x38] sm:$0xf0]  ;;  %v4092_v8 = vld [vmem:[%s5640_s7 + $0x30] sm:$0xf] }
  0x49   : > { %1327 = vmatpush.bf16.msra.mxu2 %v4177_v10 }
  0x4a   : > { %892 = vmatpush.bf16.msrb.mxu0 %v3963_v18  ;;  %v4124_v18 = vld [vmem:[%s7581_s4 + $0x160] sm:$0xf] }
  0x4b   : > { %v4125_v23 = vor.u32 %v5105_v19, %v4124_v18 }
  0x4d   : > { %548 = vmatmul.bf16.gmra.mxu0 %v3821_v3 }
  0x4e   : > { %614 = vmatmul.bf16.gmra.mxu2 %v3821_v3  ;;  %1287 = vmatpush.bf16.msra.mxu0 %v4169_v30  ;;  %v4142_v3 = vld [vmem:[%s7581_s4 + $0x188] sm:$0xf0]  ;;  %v5104_v30 = vld [vmem:[%s7581_s4 + $0x164] sm:$0xf] }
  0x4f   : > { %v4145_v4 = vor.u32 %v5108_v63, %v4142_v3  ;;  %v4129_v33 = vor.u32 %v5104_v30, %v4126_v31 }
  0x52   : > { %1288 = vmatpush.bf16.msra.mxu0 %v4161_v44  ;;  %v5090_v44 = vld [vmem:[%s5640_s7 + $0x4] sm:$0xf] }
  0x56   : > { %1289 = vmatpush.bf16.msra.mxu0 %v4153_v56  ;;  %v4076_v56 = vld [vmem:[%s5640_s7 + $0x10] sm:$0xf] }
  0x57   : > { %v5792_v60 = vor.u32 %v5093_v57, %v4076_v56 }
  0x58   : > { %3918 = vmatmul.msk.bf16.gmra.mxu1 %vm514_vm0, %v408_v12  ;;  %3923 = vmatmul.msk.bf16.gmra.mxu3 %vm514_vm0, %v408_v12  ;;  %v5107_v12 = vld [vmem:[%s7581_s4 + $0x174] sm:$0xf0] }
  0x59   : > { %v4133_v13 = vor.u32 %v5107_v12, %v4132_v11  ;;  %v1031_v9 = vshll.u32 %v5792_v60, 16  ;;  %v4322_v11 = vld [vmem:[%s7581_s4 + $0x270] sm:$0xf]  ;;  %v5147_v12 = vld [vmem:[%s7581_s4 + $0x274] sm:$0xf0] }
  0x5a   : > { %1290 = vmatpush.bf16.msra.mxu0 %v4145_v4 }
  0x5b   : > { %1225 = vmatpush.bf16.msra.mxu1 %v4133_v13  ;;  %v5146_v13 = vld [vmem:[%s7581_s4 + $0x274] sm:$0xf] }
  0x5d   : > { %553 = vmatmul.bf16.gmra.mxu0 %v3829_v15 }
  0x5e   : > { %619 = vmatmul.bf16.gmra.mxu2 %v3829_v15  ;;  %v4134_v15 = vld [vmem:[%s7581_s4 + $0x178] sm:$0xf0] }
  0x5f   : > { %v4137_v16 = vor.u32 %v5106_v14, %v4134_v15  ;;  %1226 = vmatpush.bf16.msra.mxu1 %v4125_v23  ;;  %v4323_v14 = vor.u32 %v5147_v12, %v4322_v11  ;;  %v4324_v15 = vld [vmem:[%s7581_s4 + $0x278] sm:$0xf0]  ;;  %v1033_v23 = vrot.slane %v1031_v9, 1  ;;  %v5097_v9 = vld [vmem:[%s5640_s7 + $0x34] sm:$0xf0] }
  0x60   : > { %v4327_v17 = vor.u32 %v5146_v13, %v4324_v15  ;;  %v5139_v13 = vld [vmem:[%s7581_s4 + $0x234] sm:$0xf0] }
  0x61   : > { %1291 = vmatpush.bf16.msra.mxu0 %v4137_v16 }
  0x63   : > { %1227 = vmatpush.bf16.msra.mxu1 %v4117_v29  ;;  %v5095_v29 = vld [vmem:[%s5640_s7 + $0x24] sm:$0xf0] }
  0x65   : > { %1292 = vmatpush.bf16.msra.mxu0 %v4129_v33  ;;  %v4306_v33 = vld [vmem:[%s7581_s4 + $0x250] sm:$0xf] }
  0x68   : > { %827 = vmatmul.bf16.vlgmr.msrb.gmra.mxu1 %v3927_v35  ;;  %4036 = vmatmul.msk.bf16.vlgmr.msrb.gmra.mxu3 %vm514_vm0, %v3931_v36 }
  0x69   : > { %1293 = vmatpush.bf16.msra.mxu0 %v4121_v41  ;;  %1597 = vmatpush.bf16.msrb.mxu3 %v4323_v14  ;;  %v5855_v41 = vor.u32 %v5094_v26, %v4086_v27  ;;  %v5138_v14 = vld [vmem:[%s7581_s4 + $0x234] sm:$0xf] }
  0x6b   : > { %v1059_v47 = vshll.u32 %v5855_v41, 16  ;;  %v1071_v26 = vshrl.u32 %v5855_v41, 16  ;;  %v5137_v41 = vld [vmem:[%s7581_s4 + $0x224] sm:$0xf0] }
  0x6d   : > { %558 = vmatmul.bf16.gmra.mxu0 %v407_v38  ;;  %v1061_v61 = vrot.slane %v1059_v47, 1  ;;  %v5098_v47 = vld [vmem:[%s5640_s7 + $0x44] sm:$0xf] }
  0x6e   : > { %624 = vmatmul.bf16.gmra.mxu2 %v407_v38  ;;  %v321_v38 = vld [vmem:[%s5640_s7 + $0x40] sm:$0xff] }
  0x6f   : > { %v687_v42 = vunpack.c.l.b16 %v321_v38  ;;  %v688_v43 = vunpack.c.h.b16 %v321_v38 }
  0x71   : > { %v5779_v51 = vpack.c.b16 %v688_v43, %v688_v43 }
  0x78   : > { %832 = vmatmul.bf16.gmra.mxu1 %v3935_v49  ;;  %4037 = vmatmul.msk.bf16.gmra.mxu3 %vm514_vm0, %v3939_v50 }
  0x7d   : > { %893 = vmatmul.bf16.vlgmr.msrb.gmra.mxu0 %v3927_v35  ;;  %v4109_v35 = vor.u32 %v5101_v34, %v4108_v32  ;;  %v5835_v32 = vsel %vm1022_vm1, %v1029_v22, %v1033_v23  ;;  %v5143_v34 = vld [vmem:[%s7581_s4 + $0x254] sm:$0xf0] }
  0x7e   : > { %4041 = vmatmul.msk.bf16.vlgmr.msrb.gmra.mxu2 %vm514_vm0, %v3931_v36 }
  0x7f   : > { %1228 = vmatpush.bf16.msra.mxu1 %v4109_v35  ;;  %1663 = vmatpush.bf16.msrb.mxu2 %v4327_v17  ;;  %v5142_v35 = vld [vmem:[%s7581_s4 + $0x254] sm:$0xf]  ;;  %v5915_v17 = vor.u32 %v5097_v9, %v4092_v8 }
  0x88   : > { %837 = vmatmul.bf16.gmra.mxu1 %v3943_v0  ;;  %4038 = vmatmul.msk.bf16.gmra.mxu3 %vm514_vm0, %v3947_v1 }
  0x8d   : > { %898 = vmatmul.bf16.gmra.mxu0 %v3935_v49  ;;  %v4073_v49 = vor.u32 %v5090_v44, %v4070_v45 }
  0x8e   : > { %4042 = vmatmul.msk.bf16.gmra.mxu2 %vm514_vm0, %v3939_v50  ;;  %v5777_v50 = vpack.c.b16 %v687_v42, %v687_v42 }
  0x8f   : > { %v1038_v58 = vshll.u32 %v4073_v49, 16  ;;  %v1036_v3 = vshrl.u32 %v4073_v49, 16 }
  0x91   : > { %v1040_v4 = vrot.slane %v1038_v58, 1 }
  0x93   : > { %v1041_v20 = vor.u32 %v1040_v4, %v1036_v3 }
  0x95   : > { %v572_v28 = vpop.f32.mrf.mxu1  ;;  %v5832_v31 = vsel %vm1022_vm1, %v1041_v20, %v1045_v21  ;;  %v4292_v20 = vld [vmem:[%s7581_s4 + $0x238] sm:$0xf0] }
  0x96   : > { %v4295_v22 = vor.u32 %v5138_v14, %v4292_v20  ;;  %v1079_v14 = vshrl.u32 %v5915_v17, 16 }
  0x98   : > { %842 = vmatmul.bf16.gmra.mxu1 %v3951_v24  ;;  %4039 = vmatmul.msk.bf16.gmra.mxu3 %vm514_vm0, %v3955_v25 }
  0x9b   : > { %v638_v36 = vpop.f32.mrf.mxu3 }
  0x9d   : > { %903 = vmatmul.bf16.gmra.mxu0 %v3943_v0  ;;  %v574_v37 = vpop.f32.mrf.mxu1  ;;  %v5100_v0 = vld [vmem:[%s7581_s4 + $0x144] sm:$0xf] }
  0x9e   : > { %4043 = vmatmul.msk.bf16.gmra.mxu2 %vm514_vm0, %v3947_v1  ;;  %v4110_v1 = vld [vmem:[%s7581_s4 + $0x148] sm:$0xf0] }
  0x9f   : > { %v4113_v5 = vor.u32 %v5100_v0, %v4110_v1 }
  0xa1   : > { %1294 = vmatpush.bf16.msra.mxu0 %v4113_v5 }
  0xa3   : > { %v5775_v48 = vpop.f32.mrf.mxu3 }
  0xa5   : > { %v5782_v54 = vpop.f32.mrf.mxu1 }
  0xa8   : > { %847 = vmatmul.bf16.gmra.mxu1 %v5777_v50  ;;  %4040 = vmatmul.msk.bf16.gmra.mxu3 %vm514_vm0, %v5779_v51 }
  0xaa   : > { %v539_v62 = vpop.f32.mrf.mxu0 }
  0xab   : > { %v5794_v63 = vadd.f32 %v572_v28, %v539_v62  ;;  %v5802_v2 = vpop.f32.mrf.mxu3  ;;  %v4084_v28 = vld [vmem:[%s5640_s7 + $0x20] sm:$0xf] }
  0xac   : > { %v5857_v42 = vor.u32 %v5095_v29, %v4084_v28  ;;  %v1067_v29 = vshll.u32 %v5915_v17, 16  ;;  %v4266_v17 = vld [vmem:[%s7581_s4 + $0x200] sm:$0xf] }
  0xad   : > { %908 = vmatmul.bf16.gmra.mxu0 %v3951_v24  ;;  %v5807_v10 = vpop.f32.mrf.mxu1 }
  0xae   : > { %4044 = vmatmul.msk.bf16.gmra.mxu2 %vm514_vm0, %v3955_v25  ;;  %v1051_v49 = vshll.u32 %v5857_v42, 16  ;;  %v1063_v28 = vshrl.u32 %v5857_v42, 16  ;;  %v5136_v42 = vld [vmem:[%s7581_s4 + $0x224] sm:$0xf] }
  0xb0   : > { %v1053_v0 = vrot.slane %v1051_v49, 1  ;;  %v4284_v49 = vld [vmem:[%s7581_s4 + $0x228] sm:$0xf0] }
  0xb1   : > { %v605_v16 = vpop.f32.mrf.mxu2 }
  0xb2   : > { %v5821_v18 = vadd.f32 %v638_v36, %v605_v16  ;;  %v541_v19 = vpop.f32.mrf.mxu0  ;;  %v4307_v36 = vor.u32 %v5143_v34, %v4306_v33  ;;  %v5913_v16 = vor.u32 %v5096_v6, %v4094_v7 }
  0xb3   : > { %v5823_v24 = vadd.f32 %v574_v37, %v541_v19  ;;  %v645_v25 = vpop.f32.mrf.mxu3  ;;  %v4308_v37 = vld [vmem:[%s7581_s4 + $0x258] sm:$0xf0] }
  0xb4   : > { %v4311_v39 = vor.u32 %v5142_v35, %v4308_v37  ;;  %1558 = vmatpush.bf16.msrb.mxu1 %v4307_v36  ;;  %v1075_v27 = vshll.u32 %v5913_v16, 16  ;;  %v1065_v35 = vor.u32 %v1063_v28, %v1053_v0  ;;  %v1069_v36 = vrot.slane %v1067_v29, 1 }
  0xb5   : > { %v5829_v30 = vpop.f32.mrf.mxu1  ;;  %v1087_v9 = vshrl.u32 %v5913_v16, 16  ;;  %v4276_v16 = vld [vmem:[%s7581_s4 + $0x218] sm:$0xf0] }
  0xb6   : > { %1624 = vmatpush.bf16.msrb.mxu0 %v4311_v39  ;;  %v4282_v39 = vld [vmem:[%s7581_s4 + $0x220] sm:$0xf] }
  0xb8   : > { %4186 = vmatmul.msk.bf16.vlgmr.msra.gmra.mxu3 %vm514_vm0, %v5832_v31  ;;  %1229 = vmatmul.bf16.vlgmr.msra.gmra.mxu1 %v5835_v32 }
  0xb9   : > { %v607_v38 = vpop.f32.mrf.mxu2 }
  0xba   : > { %v5852_v40 = vadd.f32 %v5775_v48, %v607_v38  ;;  %v544_v43 = vpop.f32.mrf.mxu0  ;;  %v1047_v48 = vshrl.u32 %v5792_v60, 16  ;;  %v1057_v60 = vor.u32 %v1055_v46, %v1045_v21  ;;  %v5955_v46 = vsel %vm1022_vm1, %v1065_v35, %v1069_v36 }
  0xbb   : > { %v5860_v44 = vadd.f32 %v5782_v54, %v544_v43  ;;  %v648_v45 = vpop.f32.mrf.mxu3 }
  0xbc   : > { %v1049_v62 = vor.u32 %v1047_v48, %v1033_v23  ;;  %v5890_v5 = vsel %vm1022_vm1, %v1057_v60, %v1061_v61  ;;  %v4283_v48 = vor.u32 %v5137_v41, %v4282_v39  ;;  %v5131_v39 = vld [vmem:[%s7581_s4 + $0x1f4] sm:$0xf0] }
  0xbd   : > { %913 = vmatmul.bf16.gmra.mxu0 %v5777_v50  ;;  %v584_v52 = vpop.f32.mrf.mxu1  ;;  %v5141_v50 = vld [vmem:[%s7581_s4 + $0x244] sm:$0xf0] }
  0xbe   : > { %4045 = vmatmul.msk.bf16.gmra.mxu2 %vm514_vm0, %v5779_v51  ;;  %v5140_v51 = vld [vmem:[%s7581_s4 + $0x244] sm:$0xf]  ;;  %v4299_v54 = vor.u32 %v5141_v50, %v4298_v53  ;;  %v4100_v53 = vld [vmem:[%s5640_s7 + $0x40] sm:$0xf]  ;;  %v5099_v50 = vld [vmem:[%s5640_s7 + $0x44] sm:$0x10] }
  0xbf   : > { %v4303_v57 = vor.u32 %v5140_v51, %v4300_v55  ;;  %v4287_v51 = vor.u32 %v5136_v42, %v4284_v49 }
  0xc0   : > { %1559 = vmatpush.bf16.msrb.mxu1 %v4299_v54 }
  0xc1   : > { %v610_v56 = vpop.f32.mrf.mxu2  ;;  %1625 = vmatpush.bf16.msrb.mxu0 %v4303_v57  ;;  %v5145_v57 = vld [vmem:[%s7581_s4 + $0x264] sm:$0xf0] }
  0xc2   : > { %v5882_v58 = vadd.f32 %v5802_v2, %v610_v56  ;;  %v546_v59 = vpop.f32.mrf.mxu0  ;;  %v5893_v2 = vsel %vm1022_vm1, %v1049_v62, %v1053_v0  ;;  %v4314_v56 = vld [vmem:[%s7581_s4 + $0x260] sm:$0xf]  ;;  %v5980_v62 = vor.u32 %v5099_v50, %v4100_v53  ;;  %v4268_v53 = vld [vmem:[%s7581_s4 + $0x208] sm:$0xf0] }
  0xc3   : > { %v5885_v1 = vadd.f32 %v5807_v10, %v546_v59  ;;  %v650_v3 = vpop.f32.mrf.mxu3  ;;  %v4290_v10 = vld [vmem:[%s7581_s4 + $0x230] sm:$0xf]  ;;  %v5144_v59 = vld [vmem:[%s7581_s4 + $0x264] sm:$0xf]  ;;  %v4315_v0 = vor.u32 %v5145_v57, %v4314_v56 }
  0xc4   : > { %v4291_v19 = vor.u32 %v5139_v13, %v4290_v10 }
  0xc5   : > { %v5887_v4 = vpop.f32.mrf.mxu1  ;;  %1626 = vmatpush.bf16.msrb.mxu0 %v4295_v22  ;;  %1598 = vmatpush.bf16.msrb.mxu3 %v4315_v0 }
  0xc6   : > { %1560 = vmatpush.bf16.msrb.mxu1 %v4291_v19 }
  0xc8   : > { %4187 = vmatmul.msk.bf16.gmra.mxu3 %vm514_vm0, %v5890_v5  ;;  %1234 = vmatmul.bf16.gmra.mxu1 %v5893_v2 }
  0xc9   : > { %v612_v11 = vpop.f32.mrf.mxu2  ;;  %1627 = vmatpush.bf16.msrb.mxu0 %v4287_v51 }
  0xca   : > { %v5901_v12 = vadd.f32 %v645_v25, %v612_v11  ;;  %v549_v15 = vpop.f32.mrf.mxu0  ;;  %1561 = vmatpush.bf16.msrb.mxu1 %v4283_v48  ;;  %v4274_v11 = vld [vmem:[%s7581_s4 + $0x210] sm:$0xf] }
  0xcb   : > { %v5921_v21 = vadd.f32 %v5829_v30, %v549_v15  ;;  %v5923_v23 = vpop.f32.mrf.mxu3 }
  0xcd   : > { %1295 = vmatmul.bf16.vlgmr.msra.gmra.mxu0 %v5835_v32  ;;  %v5928_v25 = vpop.f32.mrf.mxu1  ;;  %v1073_v32 = vor.u32 %v1071_v26, %v1061_v61 }
  0xce   : > { %4191 = vmatmul.msk.bf16.vlgmr.msra.gmra.mxu2 %vm514_vm0, %v5832_v31  ;;  %v1077_v31 = vrot.slane %v1075_v27, 1  ;;  %v5133_v27 = vld [vmem:[%s7581_s4 + $0x204] sm:$0xf0] }
  0xd0   : > { %v1089_v26 = vor.u32 %v1087_v9, %v1077_v31 }
  0xd1   : > { %v615_v30 = vpop.f32.mrf.mxu2 }
  0xd2   : > { %v5934_v33 = vadd.f32 %v648_v45, %v615_v30  ;;  %v551_v34 = vpop.f32.mrf.mxu0  ;;  %v5952_v45 = vsel %vm1022_vm1, %v1073_v32, %v1077_v31  ;;  %v1081_v30 = vor.u32 %v1079_v14, %v1069_v36  ;;  %v4267_v32 = vor.u32 %v5133_v27, %v4266_v17  ;;  %v4258_v31 = vld [vmem:[%s7581_s4 + $0x1f0] sm:$0xf]  ;;  %v5175_v27 = vld [vmem:[%s7581_s4 + $0x314] sm:$0xf0] }
  0xd3   : > { %v5936_v37 = vadd.f32 %v584_v52, %v551_v34  ;;  %v5938_v38 = vpop.f32.mrf.mxu3  ;;  %v4102_v52 = vld [vmem:[%s5640_s7 + $0x48] sm:$0x10]  ;;  %v4464_v17 = vld [vmem:[%s7581_s4 + $0x310] sm:$0xf] }
  0xd4   : > { %v5978_v61 = vor.u32 %v5098_v47, %v4102_v52  ;;  %v4259_v47 = vor.u32 %v5131_v39, %v4258_v31  ;;  %v5132_v52 = vld [vmem:[%s7581_s4 + $0x204] sm:$0xf]  ;;  %v4220_v39 = vld [vmem:[%s6084_s12 + $0x8] sm:$0xf0] }
  0xd5   : > { %v5949_v43 = vpop.f32.mrf.mxu1  ;;  %v4271_v51 = vor.u32 %v5132_v52, %v4268_v53 }
  0xd6   : > { %v1091_v13 = vshll.u32 %v5978_v61, 16 }
  0xd8   : > { %4188 = vmatmul.msk.bf16.gmra.mxu3 %vm514_vm0, %v5952_v45  ;;  %1239 = vmatmul.bf16.gmra.mxu1 %v5955_v46  ;;  %v1093_v29 = vrot.slane %v1091_v13, 1 }
  0xd9   : > { %v617_v54 = vpop.f32.mrf.mxu2 }
  0xda   : > { %v5966_v55 = vadd.f32 %v650_v3, %v617_v54  ;;  %v554_v60 = vpop.f32.mrf.mxu0  ;;  %v4316_v3 = vld [vmem:[%s7581_s4 + $0x268] sm:$0xf0]  ;;  %v1094_v42 = vsel %vm1022_vm1, %v1089_v26, %v1093_v29 }
  0xdb   : > { %v5986_v6 = vadd.f32 %v5887_v4, %v554_v60  ;;  %v4319_v7 = vor.u32 %v5144_v59, %v4316_v3  ;;  %v5988_v8 = vpop.f32.mrf.mxu3  ;;  %v5135_v4 = vld [vmem:[%s7581_s4 + $0x214] sm:$0xf0]  ;;  %v5130_v3 = vld [vmem:[%s7581_s4 + $0x1f4] sm:$0xf] }
  0xdc   : > { %v4275_v15 = vor.u32 %v5135_v4, %v4274_v11 }
  0xdd   : > { %1300 = vmatmul.bf16.gmra.mxu0 %v5893_v2  ;;  %v594_v10 = vpop.f32.mrf.mxu1  ;;  %v1083_v2 = vshll.u32 %v5980_v62, 16  ;;  %1664 = vmatpush.bf16.msrb.mxu2 %v4319_v7 }
  0xde   : > { %4192 = vmatmul.msk.bf16.gmra.mxu2 %vm514_vm0, %v5890_v5  ;;  %v5134_v5 = vld [vmem:[%s7581_s4 + $0x214] sm:$0xf]  ;;  %1562 = vmatpush.bf16.msrb.mxu1 %v4275_v15 }
  0xdf   : > { %v4279_v20 = vor.u32 %v5134_v5, %v4276_v16  ;;  %v1085_v34 = vrot.slane %v1083_v2, 1  ;;  %v4252_v16 = vld [vmem:[%s7581_s4 + $0x1e8] sm:$0xf0] }
  0xe1   : > { %v620_v19 = vpop.f32.mrf.mxu2  ;;  %1628 = vmatpush.bf16.msrb.mxu0 %v4279_v20  ;;  %v1086_v36 = vsel %vm1022_vm1, %v1081_v30, %v1085_v34  ;;  %v4465_v30 = vor.u32 %v5175_v27, %v4464_v17 }
  0xe2   : > { %v6010_v22 = vadd.f32 %v5923_v23, %v620_v19  ;;  %v556_v28 = vpop.f32.mrf.mxu0  ;;  %1563 = vmatpush.bf16.msrb.mxu1 %v4267_v32 }
  0xe3   : > { %v6019_v35 = vadd.f32 %v5928_v25, %v556_v28  ;;  %v660_v23 = vpop.f32.mrf.mxu3  ;;  %v5174_v28 = vld [vmem:[%s7581_s4 + $0x314] sm:$0xf]  ;;  %1934 = vmatpush.bf16.msra.mxu3 %v4465_v30  ;;  %v4432_v30 = vld [vmem:[%s7581_s4 + $0x2d0] sm:$0xf] }
  0xe5   : > { %v828_v41 = vpop.f32.mrf.mxu1  ;;  %1629 = vmatpush.bf16.msrb.mxu0 %v4271_v51  ;;  %v5171_v51 = vld [vmem:[%s7581_s4 + $0x2f4] sm:$0xf0] }
  0xe6   : > { %v829_v48 = vadd.f32 %v828_v41, %v5794_v63  ;;  %1564 = vmatpush.bf16.msrb.mxu1 %v4259_v47  ;;  %v4250_v63 = vld [vmem:[%s7581_s4 + $0x1e0] sm:$0xf] }
  0xe7   : > { %v4218_v41 = vld [vmem:[%s6084_s12] sm:$0xf] }
  0xe8   : > { %4189 = vmatmul.msk.bf16.gmra.mxu3 %vm514_vm0, %v1094_v42  ;;  %1244 = vmatmul.bf16.gmra.mxu1 %v1086_v36 }
  0xe9   : > { %v622_v25 = vpop.f32.mrf.mxu2 }
  0xea   : > { %v6032_v49 = vadd.f32 %v5938_v38, %v622_v25  ;;  %v559_v50 = vpop.f32.mrf.mxu0  ;;  %v5129_v38 = vld [vmem:[%s7581_s4 + $0x1e4] sm:$0xf0] }
  0xeb   : > { %v6047_v54 = vadd.f32 %v5949_v43, %v559_v50  ;;  %v4251_v56 = vor.u32 %v5129_v38, %v4250_v63  ;;  %v861_v57 = vpop.f32.mrf.mxu3  ;;  %v4260_v43 = vld [vmem:[%s7581_s4 + $0x1f8] sm:$0xf0]  ;;  %v4448_v50 = vld [vmem:[%s7581_s4 + $0x2f0] sm:$0xf] }
  0xec   : > { %v6049_v59 = vadd.f32 %v861_v57, %v829_v48  ;;  %v4263_v9 = vor.u32 %v5130_v3, %v4260_v43  ;;  %v4450_v57 = vld [vmem:[%s7581_s4 + $0x2f8] sm:$0xf0] }
  0xed   : > { %1305 = vmatmul.bf16.gmra.mxu0 %v5955_v46  ;;  %v830_v60 = vpop.f32.mrf.mxu1  ;;  %1565 = vmatpush.bf16.msrb.mxu1 %v4251_v56  ;;  %v1098_v46 = vshrl.u32 %v5978_v61, 16  ;;  %v4449_v56 = vor.u32 %v5171_v51, %v4448_v50  ;;  %v5124_v50 = vld [vmem:[%s6084_s12 + $0x24] sm:$0xf] }
  0xee   : > { %4193 = vmatmul.msk.bf16.gmra.mxu2 %vm514_vm0, %v5952_v45  ;;  %v831_v0 = vadd.f32 %v830_v60, %v5823_v24  ;;  %v1095_v45 = vshrl.u32 %v5980_v62, 16  ;;  %1630 = vmatpush.bf16.msrb.mxu0 %v4263_v9  ;;  %v5128_v62 = vld [vmem:[%s7581_s4 + $0x1e4] sm:$0xf]  ;;  %v4440_v9 = vld [vmem:[%s7581_s4 + $0x2e0] sm:$0xf] }
  0xef   : > { %v1100_v13 = vor.u32 %v1098_v46, %v1093_v29  ;;  %v4255_v20 = vor.u32 %v5128_v62, %v4252_v16  ;;  %v5169_v46 = vld [vmem:[%s7581_s4 + $0x2e4] sm:$0xf0]  ;;  %v4226_v62 = vld [vmem:[%s6084_s12 + $0x10] sm:$0xf]  ;;  %v5123_v16 = vld [vmem:[%s6084_s12 + $0x14] sm:$0xf0] }
  0xf0   : > { %v1097_v14 = vor.u32 %v1095_v45, %v1085_v34  ;;  %v4466_v34 = vld [vmem:[%s7581_s4 + $0x318] sm:$0xf0]  ;;  %v4227_v17 = vor.u32 %v5123_v16, %v4226_v62 }
  0xf1   : > { %v625_v7 = vpop.f32.mrf.mxu2  ;;  %v4469_v23 = vor.u32 %v5174_v28, %v4466_v34  ;;  %1895 = vmatpush.bf16.msra.mxu1 %v4449_v56  ;;  %v5166_v34 = vld [vmem:[%s7581_s4 + $0x2d4] sm:$0xf] }
  0xf2   : > { %v6062_v11 = vadd.f32 %v5988_v8, %v625_v7  ;;  %v561_v4 = vpop.f32.mrf.mxu0  ;;  %1631 = vmatpush.bf16.msrb.mxu0 %v4255_v20 }
  0xf3   : > { %v863_v24 = vpop.f32.mrf.mxu3  ;;  %2000 = vmatpush.bf16.msra.mxu2 %v4469_v23  ;;  %v4441_v4 = vor.u32 %v5169_v46, %v4440_v9  ;;  %v4434_v23 = vld [vmem:[%s7581_s4 + $0x2d8] sm:$0xf0] }
  0xf4   : > { %v6066_v10 = vadd.f32 %v863_v24, %v831_v0  ;;  %v4442_v24 = vld [vmem:[%s7581_s4 + $0x2e8] sm:$0xf0] }
  0xf5   : > { %v833_v2 = vpop.f32.mrf.mxu1  ;;  %1896 = vmatpush.bf16.msra.mxu1 %v4441_v4  ;;  %v4456_v4 = vld [vmem:[%s7581_s4 + $0x300] sm:$0xf] }
  0xf6   : > { %v834_v15 = vadd.f32 %v833_v2, %v5860_v44 }
  0xf8   : > { %4190 = vmatmul.msk.bf16.gmra.mxu3 %vm514_vm0, %v1100_v13  ;;  %1249 = vmatmul.bf16.gmra.mxu1 %v1097_v14 }
  0xf9   : > { %v627_v5 = vpop.f32.mrf.mxu2 }
  0xfa   : > { %v894_v8 = vpop.f32.mrf.mxu0  ;;  %v5122_v5 = vld [vmem:[%s6084_s12 + $0x14] sm:$0xf] }
  0xfb   : > { %v895_v61 = vadd.f32 %v894_v8, %v5821_v18  ;;  %v866_v19 = vpop.f32.mrf.mxu3 }
  0xfc   : > { %v6077_v26 = vadd.f32 %v866_v19, %v834_v15 }
  0xfd   : > { %1310 = vmatmul.bf16.gmra.mxu0 %v1086_v36  ;;  %v835_v44 = vpop.f32.mrf.mxu1 }
  0xfe   : > { %4194 = vmatmul.msk.bf16.gmra.mxu2 %vm514_vm0, %v1094_v42  ;;  %v836_v18 = vadd.f32 %v835_v44, %v5885_v1  ;;  %v5120_v1 = vld [vmem:[%s6084_s12 + $0x4] sm:$0xf]  ;;  %v5121_v42 = vld [vmem:[%s6084_s12 + $0x4] sm:$0xf0] }
  0xff   : > { %v4223_v25 = vor.u32 %v5120_v1, %v4220_v39  ;;  %v4219_v52 = vor.u32 %v5121_v42, %v4218_v41  ;;  %v4437_v39 = vor.u32 %v5166_v34, %v4434_v23  ;;  %v4408_v34 = vld [vmem:[%s7581_s4 + $0x2a0] sm:$0xf]  ;;  %v4244_v23 = vld [vmem:[%s6084_s12 + $0x38] sm:$0xf0] }
 0x101   : > { %v927_v29 = vpop.f32.mrf.mxu2 }
 0x102   : > { %v6099_v32 = vadd.f32 %v927_v29, %v895_v61  ;;  %v896_v31 = vpop.f32.mrf.mxu0  ;;  %v4228_v61 = vld [vmem:[%s6084_s12 + $0x18] sm:$0xf0] }
 0x103   : > { %v897_v36 = vadd.f32 %v896_v31, %v5852_v40  ;;  %v868_v47 = vpop.f32.mrf.mxu3  ;;  %v5170_v40 = vld [vmem:[%s7581_s4 + $0x2f4] sm:$0xf] }
 0x104   : > { %v6106_v48 = vadd.f32 %v868_v47, %v836_v18  ;;  %v4453_v60 = vor.u32 %v5170_v40, %v4450_v57  ;;  %v4231_v18 = vor.u32 %v5122_v5, %v4228_v61  ;;  %v4236_v40 = vld [vmem:[%s6084_s12 + $0x28] sm:$0xf0] }
 0x105   : > { %v838_v53 = vpop.f32.mrf.mxu1  ;;  %v4458_v5 = vld [vmem:[%s7581_s4 + $0x308] sm:$0xf0] }
 0x106   : > { %v839_v63 = vadd.f32 %v838_v53, %v5921_v21  ;;  %1961 = vmatpush.bf16.msra.mxu0 %v4453_v60 }
 0x108   : > { %4328 = vmatmul.msk.bf16.vlgmr.msrb.gmra.mxu3 %vm514_vm0, %v4223_v25  ;;  %1566 = vmatmul.bf16.vlgmr.msrb.gmra.mxu1 %v4219_v52 }
 0x109   : > { %v929_v38 = vpop.f32.mrf.mxu2 }
 0x10a   : > { %v6122_v21 = vadd.f32 %v929_v38, %v897_v36  ;;  %v899_v0 = vpop.f32.mrf.mxu0  ;;  %v5125_v38 = vld [vmem:[%s6084_s12 + $0x24] sm:$0xf0] }
 0x10b   : > { %v900_v3 = vadd.f32 %v899_v0, %v5882_v58  ;;  %v871_v43 = vpop.f32.mrf.mxu3  ;;  %v5168_v58 = vld [vmem:[%s7581_s4 + $0x2e4] sm:$0xf] }
 0x10c   : > { %v6125_v7 = vadd.f32 %v871_v43, %v839_v63  ;;  %v5165_v43 = vld [vmem:[%s7581_s4 + $0x2c4] sm:$0xf0] }
 0x10d   : > { %1315 = vmatmul.bf16.gmra.mxu0 %v1097_v14  ;;  %v840_v45 = vpop.f32.mrf.mxu1  ;;  %v4445_v14 = vor.u32 %v5168_v58, %v4442_v24  ;;  %v4426_v58 = vld [vmem:[%s7581_s4 + $0x2c8] sm:$0xf0]  ;;  %v5173_v24 = vld [vmem:[%s7581_s4 + $0x304] sm:$0xf0] }
 0x10e   : > { %4195 = vmatmul.msk.bf16.gmra.mxu2 %vm514_vm0, %v1100_v13  ;;  %v841_v13 = vadd.f32 %v840_v45, %v5936_v37 }
 0x10f   : > { %1962 = vmatpush.bf16.msra.mxu0 %v4445_v14 }
 0x111   : > { %v932_v2 = vpop.f32.mrf.mxu2 }
 0x112   : > { %v6141_v15 = vadd.f32 %v932_v2, %v900_v3  ;;  %v901_v8 = vpop.f32.mrf.mxu0  ;;  %v4424_v3 = vld [vmem:[%s7581_s4 + $0x2c0] sm:$0xf]  ;;  %v4457_v2 = vor.u32 %v5173_v24, %v4456_v4 }
 0x113   : > { %v902_v19 = vadd.f32 %v901_v8, %v5901_v12  ;;  %v873_v20 = vpop.f32.mrf.mxu3  ;;  %v5167_v12 = vld [vmem:[%s7581_s4 + $0x2d4] sm:$0xf0]  ;;  %1963 = vmatpush.bf16.msra.mxu0 %v4437_v39  ;;  %v4425_v46 = vor.u32 %v5165_v43, %v4424_v3  ;;  %v1379_v24 = vld [vmem:[%s6084_s12 + $0x40] sm:$0xff] }
 0x114   : > { %v6148_v44 = vadd.f32 %v873_v20, %v841_v13  ;;  %v4433_v1 = vor.u32 %v5167_v12, %v4432_v30  ;;  %v5172_v13 = vld [vmem:[%s7581_s4 + $0x304] sm:$0xf]  ;;  %1935 = vmatpush.bf16.msra.mxu3 %v4457_v2  ;;  %v5126_v12 = vld [vmem:[%s6084_s12 + $0x34] sm:$0xf]  ;;  %v5127_v39 = vld [vmem:[%s6084_s12 + $0x34] sm:$0xf0] }
 0x115   : > { %v843_v27 = vpop.f32.mrf.mxu1  ;;  %v4461_v61 = vor.u32 %v5172_v13, %v4458_v5 }
 0x116   : > { %v844_v37 = vadd.f32 %v843_v27, %v5986_v6  ;;  %1897 = vmatpush.bf16.msra.mxu1 %v4433_v1 }
 0x117   : > { %2001 = vmatpush.bf16.msra.mxu2 %v4461_v61 }
 0x118   : > { %4329 = vmatmul.msk.bf16.gmra.mxu3 %vm514_vm0, %v4231_v18  ;;  %1571 = vmatmul.bf16.gmra.mxu1 %v4227_v17 }
 0x119   : > { %v934_v28 = vpop.f32.mrf.mxu2 }
 0x11a   : > { %v6152_v29 = vadd.f32 %v934_v28, %v902_v19  ;;  %v904_v6 = vpop.f32.mrf.mxu0  ;;  %1898 = vmatpush.bf16.msra.mxu1 %v4425_v46  ;;  %v4416_v19 = vld [vmem:[%s7581_s4 + $0x2b0] sm:$0xf] }
 0x11b   : > { %v905_v31 = vadd.f32 %v904_v6, %v5934_v33  ;;  %v876_v41 = vpop.f32.mrf.mxu3  ;;  %v4234_v33 = vld [vmem:[%s6084_s12 + $0x20] sm:$0xf]  ;;  %v5161_v6 = vld [vmem:[%s7581_s4 + $0x2a4] sm:$0xf0] }
 0x11c   : > { %v6167_v42 = vadd.f32 %v876_v41, %v844_v37  ;;  %v4409_v41 = vor.u32 %v5161_v6, %v4408_v34 }
 0x11d   : > { %1632 = vmatmul.bf16.vlgmr.msrb.gmra.mxu0 %v4219_v52  ;;  %v845_v36 = vpop.f32.mrf.mxu1  ;;  %v6180_v52 = vor.u32 %v5124_v50, %v4236_v40  ;;  %v5159_v40 = vld [vmem:[%s7581_s4 + $0x294] sm:$0xf0] }
 0x11e   : > { %4333 = vmatmul.msk.bf16.vlgmr.msrb.gmra.mxu2 %vm514_vm0, %v4223_v25  ;;  %v846_v47 = vadd.f32 %v845_v36, %v6019_v35  ;;  %v6182_v25 = vor.u32 %v5125_v38, %v4234_v33 }
 0x121   : > { %v937_v53 = vpop.f32.mrf.mxu2 }
 0x122   : > { %v6171_v63 = vadd.f32 %v937_v53, %v905_v31  ;;  %v906_v51 = vpop.f32.mrf.mxu0  ;;  %v4242_v31 = vld [vmem:[%s6084_s12 + $0x30] sm:$0xf]  ;;  %v4247_v53 = vor.u32 %v5126_v12, %v4244_v23 }
 0x123   : > { %v907_v56 = vadd.f32 %v906_v51, %v5966_v55  ;;  %v878_v57 = vpop.f32.mrf.mxu3  ;;  %v5164_v55 = vld [vmem:[%s7581_s4 + $0x2c4] sm:$0xf]  ;;  %v4243_v50 = vor.u32 %v5127_v39, %v4242_v31  ;;  %v4400_v51 = vld [vmem:[%s7581_s4 + $0x290] sm:$0xf]  ;;  %v5205_v31 = vld [vmem:[%s7581_s4 + $0x3b4] sm:$0xf0] }
 0x124   : > { %v6178_v60 = vadd.f32 %v878_v57, %v846_v47  ;;  %v4429_v45 = vor.u32 %v5164_v55, %v4426_v58  ;;  %v4401_v38 = vor.u32 %v5159_v40, %v4400_v51  ;;  %v5157_v55 = vld [vmem:[%s7581_s4 + $0x284] sm:$0xf0]  ;;  %v4614_v23 = vld [vmem:[%s7581_s4 + $0x3b0] sm:$0xf]  ;;  %v5204_v39 = vld [vmem:[%s7581_s4 + $0x3b4] sm:$0xf] }
 0x125   : > { %v848_v0 = vpop.f32.mrf.mxu1  ;;  %v4362_v40 = vld [vmem:[%s6295_s26 + $0x8] sm:$0xf0] }
 0x126   : > { %v849_v35 = vadd.f32 %v848_v0, %v6047_v54  ;;  %1964 = vmatpush.bf16.msra.mxu0 %v4429_v45  ;;  %v4410_v0 = vld [vmem:[%s7581_s4 + $0x2a8] sm:$0xf0] }
 0x128   : > { %4330 = vmatmul.msk.bf16.gmra.mxu3 %vm514_vm0, %v6180_v52  ;;  %1576 = vmatmul.bf16.gmra.mxu1 %v6182_v25 }
 0x129   : > { %v939_v9 = vpop.f32.mrf.mxu2 }
 0x12a   : > { %v6199_v54 = vadd.f32 %v939_v9, %v907_v56  ;;  %v909_v14 = vpop.f32.mrf.mxu0 }
 0x12b   : > { %v910_v8 = vadd.f32 %v909_v14, %v6010_v22  ;;  %v881_v62 = vpop.f32.mrf.mxu3  ;;  %v5163_v22 = vld [vmem:[%s7581_s4 + $0x2b4] sm:$0xf0]  ;;  %v5158_v14 = vld [vmem:[%s7581_s4 + $0x294] sm:$0xf] }
 0x12c   : > { %v6215_v16 = vadd.f32 %v881_v62, %v849_v35  ;;  %v4417_v27 = vor.u32 %v5163_v22, %v4416_v19  ;;  %v4392_v35 = vld [vmem:[%s7581_s4 + $0x280] sm:$0xf] }
 0x12d   : > { %1637 = vmatmul.bf16.gmra.mxu0 %v4227_v17  ;;  %v850_v20 = vpop.f32.mrf.mxu1  ;;  %v5162_v17 = vld [vmem:[%s7581_s4 + $0x2b4] sm:$0xf]  ;;  %v4393_v46 = vor.u32 %v5157_v55, %v4392_v35 }
 0x12e   : > { %4334 = vmatmul.msk.bf16.gmra.mxu2 %vm514_vm0, %v4231_v18  ;;  %v4418_v18 = vld [vmem:[%s7581_s4 + $0x2b8] sm:$0xf0]  ;;  %1899 = vmatpush.bf16.msra.mxu1 %v4417_v27 }
 0x12f   : > { %v4421_v28 = vor.u32 %v5162_v17, %v4418_v18 }
 0x131   : > { %v942_v37 = vpop.f32.mrf.mxu2  ;;  %1965 = vmatpush.bf16.msra.mxu0 %v4421_v28  ;;  %v4394_v28 = vld [vmem:[%s7581_s4 + $0x288] sm:$0xf0] }
 0x132   : > { %v6230_v30 = vadd.f32 %v942_v37, %v910_v8  ;;  %v911_v1 = vpop.f32.mrf.mxu0  ;;  %1900 = vmatpush.bf16.msra.mxu1 %v4409_v41  ;;  %v1427_v8 = vunpack.c.h.b16 %v1379_v24  ;;  %v5156_v37 = vld [vmem:[%s7581_s4 + $0x284] sm:$0xf] }
 0x133   : > { %v912_v36 = vadd.f32 %v911_v1, %v6032_v49  ;;  %v883_v47 = vpop.f32.mrf.mxu3  ;;  %v5160_v49 = vld [vmem:[%s7581_s4 + $0x2a4] sm:$0xf]  ;;  %v4397_v34 = vor.u32 %v5156_v37, %v4394_v28  ;;  %v4370_v37 = vld [vmem:[%s6295_s26 + $0x18] sm:$0xf0]  ;;  %v4368_v28 = vld [vmem:[%s6295_s26 + $0x10] sm:$0xf] }
 0x134   : > { %v4413_v43 = vor.u32 %v5160_v49, %v4410_v0  ;;  %v4616_v47 = vld [vmem:[%s7581_s4 + $0x3b8] sm:$0xf0] }
 0x135   : > { %v1230_v33 = vpop.f32.mrf.mxu1 }
 0x136   : > { %1901 = vmatpush.bf16.msra.mxu1 %v4401_v38  ;;  %1966 = vmatpush.bf16.msra.mxu0 %v4413_v43  ;;  %v5149_v38 = vld [vmem:[%s6295_s26 + $0x4] sm:$0xf0] }
 0x138   : > { %4331 = vmatmul.msk.bf16.gmra.mxu3 %vm514_vm0, %v4247_v53  ;;  %1581 = vmatmul.bf16.gmra.mxu1 %v4243_v50 }
 0x139   : > { %v944_v56 = vpop.f32.mrf.mxu2 }
 0x13a   : > { %v6250_v57 = vadd.f32 %v944_v56, %v912_v36  ;;  %v914_v3 = vpop.f32.mrf.mxu0  ;;  %1902 = vmatpush.bf16.msra.mxu1 %v4393_v46  ;;  %v4615_v36 = vor.u32 %v5205_v31, %v4614_v23  ;;  %v5201_v46 = vld [vmem:[%s7581_s4 + $0x394] sm:$0xf0] }
 0x13b   : > { %v915_v9 = vadd.f32 %v914_v3, %v6062_v11  ;;  %v1263_v58 = vpop.f32.mrf.mxu3  ;;  %v4402_v11 = vld [vmem:[%s7581_s4 + $0x298] sm:$0xf0] }
 0x13c   : > { %v1264_v45 = vadd.f32 %v1263_v58, %v1230_v33  ;;  %v4405_v5 = vor.u32 %v5158_v14, %v4402_v11  ;;  %v4360_v33 = vld [vmem:[%s6295_s26] sm:$0xf]  ;;  %2353 = vmatpush.bf16.msrb.mxu3 %v4615_v36 }
 0x13d   : > { %1642 = vmatmul.bf16.gmra.mxu0 %v6182_v25  ;;  %v1232_v4 = vpop.f32.mrf.mxu1  ;;  %v4361_v3 = vor.u32 %v5149_v38, %v4360_v33 }
 0x13e   : > { %4335 = vmatmul.msk.bf16.gmra.mxu2 %vm514_vm0, %v6180_v52  ;;  %v6270_v13 = vadd.f32 %v1264_v45, %v6049_v59  ;;  %v1426_v52 = vunpack.c.l.b16 %v1379_v24  ;;  %1967 = vmatpush.bf16.msra.mxu0 %v4405_v5  ;;  %v1437_v59 = vpack.c.b16 %v1427_v8, %v1427_v8 }
 0x140   : > { %v1436_v22 = vpack.c.b16 %v1426_v52, %v1426_v52 }
 0x141   : > { %v947_v2 = vpop.f32.mrf.mxu2 }
 0x142   : > { %v6278_v25 = vadd.f32 %v947_v2, %v915_v9  ;;  %v916_v61 = vpop.f32.mrf.mxu0  ;;  %1968 = vmatpush.bf16.msra.mxu0 %v4397_v34  ;;  %v4598_v9 = vld [vmem:[%s7581_s4 + $0x390] sm:$0xf] }
 0x143   : > { %v1265_v62 = vpop.f32.mrf.mxu3  ;;  %v4599_v45 = vor.u32 %v5201_v46, %v4598_v9  ;;  %v4590_v61 = vld [vmem:[%s7581_s4 + $0x380] sm:$0xf] }
 0x144   : > { %v1266_v19 = vadd.f32 %v1265_v62, %v1232_v4  ;;  %v4600_v4 = vld [vmem:[%s7581_s4 + $0x398] sm:$0xf0]  ;;  %v5198_v62 = vld [vmem:[%s7581_s4 + $0x384] sm:$0xf] }
 0x145   : > { %v1235_v20 = vpop.f32.mrf.mxu1  ;;  %2314 = vmatpush.bf16.msrb.mxu1 %v4599_v45  ;;  %v4378_v45 = vld [vmem:[%s6295_s26 + $0x28] sm:$0xf0] }
 0x146   : > { %v6281_v27 = vadd.f32 %v1266_v19, %v6066_v10 }
 0x148   : > { %4332 = vmatmul.msk.bf16.gmra.mxu3 %vm514_vm0, %v1437_v59  ;;  %1586 = vmatmul.bf16.gmra.mxu1 %v1436_v22 }
 0x149   : > { %v949_v17 = vpop.f32.mrf.mxu2 }
 0x14a   : > { %v1296_v18 = vpop.f32.mrf.mxu0 }
 0x14b   : > { %v1268_v12 = vpop.f32.mrf.mxu3 }
 0x14c   : > { %v1269_v6 = vadd.f32 %v1268_v12, %v1235_v20  ;;  %v5150_v20 = vld [vmem:[%s6295_s26 + $0x14] sm:$0xf]  ;;  %v5151_v12 = vld [vmem:[%s6295_s26 + $0x14] sm:$0xf0] }
 0x14d   : > { %1647 = vmatmul.bf16.gmra.mxu0 %v4243_v50  ;;  %v1237_v10 = vpop.f32.mrf.mxu1  ;;  %v4619_v50 = vor.u32 %v5204_v39, %v4616_v47  ;;  %v4373_v23 = vor.u32 %v5150_v20, %v4370_v37  ;;  %v4369_v31 = vor.u32 %v5151_v12, %v4368_v28 }
 0x14e   : > { %4336 = vmatmul.msk.bf16.gmra.mxu2 %vm514_vm0, %v4247_v53  ;;  %v6298_v1 = vadd.f32 %v1269_v6, %v6077_v26  ;;  %v5148_v53 = vld [vmem:[%s6295_s26 + $0x4] sm:$0xf] }
 0x14f   : > { %2419 = vmatpush.bf16.msrb.mxu2 %v4619_v50  ;;  %v4365_v35 = vor.u32 %v5148_v53, %v4362_v40  ;;  %v5196_v53 = vld [vmem:[%s7581_s4 + $0x374] sm:$0xf] }
 0x151   : > { %v1329_v41 = vpop.f32.mrf.mxu2 }
 0x152   : > { %v1330_v26 = vadd.f32 %v1329_v41, %v1296_v18  ;;  %v1298_v51 = vpop.f32.mrf.mxu0 }
 0x153   : > { %v1270_v49 = vpop.f32.mrf.mxu3 }
 0x154   : > { %v6317_v56 = vadd.f32 %v1330_v26, %v6099_v32  ;;  %v1271_v0 = vadd.f32 %v1270_v49, %v1237_v10  ;;  %v5200_v32 = vld [vmem:[%s7581_s4 + $0x394] sm:$0xf]  ;;  %v4582_v26 = vld [vmem:[%s7581_s4 + $0x370] sm:$0xf] }
 0x155   : > { %v1240_v43 = vpop.f32.mrf.mxu1  ;;  %v4603_v24 = vor.u32 %v5200_v32, %v4600_v4  ;;  %v5152_v32 = vld [vmem:[%s6295_s26 + $0x24] sm:$0xf]  ;;  %v5153_v4 = vld [vmem:[%s6295_s26 + $0x24] sm:$0xf0] }
 0x156   : > { %v6320_v55 = vadd.f32 %v1271_v0, %v6106_v48 }
 0x157   : > { %2380 = vmatpush.bf16.msrb.mxu0 %v4603_v24 }
 0x158   : > { %4470 = vmatmul.msk.bf16.vlgmr.msra.gmra.mxu3 %vm514_vm0, %v4365_v35  ;;  %1903 = vmatmul.bf16.vlgmr.msra.gmra.mxu1 %v4361_v3 }
 0x159   : > { %v1331_v58 = vpop.f32.mrf.mxu2 }
 0x15a   : > { %v1332_v48 = vadd.f32 %v1331_v58, %v1298_v51  ;;  %v1301_v14 = vpop.f32.mrf.mxu0  ;;  %v4584_v51 = vld [vmem:[%s7581_s4 + $0x378] sm:$0xf0] }
 0x15b   : > { %v1273_v2 = vpop.f32.mrf.mxu3  ;;  %v4587_v33 = vor.u32 %v5196_v53, %v4584_v51 }
 0x15c   : > { %v6336_v11 = vadd.f32 %v1332_v48, %v6122_v21  ;;  %v1274_v5 = vadd.f32 %v1273_v2, %v1240_v43  ;;  %v5199_v21 = vld [vmem:[%s7581_s4 + $0x384] sm:$0xf0] }
 0x15d   : > { %1652 = vmatmul.bf16.gmra.mxu0 %v1436_v22  ;;  %v1242_v8 = vpop.f32.mrf.mxu1  ;;  %v4591_v22 = vor.u32 %v5199_v21, %v4590_v61 }
 0x15e   : > { %4337 = vmatmul.msk.bf16.gmra.mxu2 %vm514_vm0, %v1437_v59  ;;  %v6340_v52 = vadd.f32 %v1274_v5, %v6125_v7  ;;  %v4592_v59 = vld [vmem:[%s7581_s4 + $0x388] sm:$0xf0]  ;;  %v4574_v5 = vld [vmem:[%s7581_s4 + $0x360] sm:$0xf] }
 0x15f   : > { %v4595_v17 = vor.u32 %v5198_v62, %v4592_v59  ;;  %2315 = vmatpush.bf16.msrb.mxu1 %v4591_v22  ;;  %v4576_v62 = vld [vmem:[%s7581_s4 + $0x368] sm:$0xf0]  ;;  %v4606_v22 = vld [vmem:[%s7581_s4 + $0x3a0] sm:$0xf]  ;;  %v5203_v59 = vld [vmem:[%s7581_s4 + $0x3a4] sm:$0xf0] }
 0x161   : > { %v1334_v19 = vpop.f32.mrf.mxu2  ;;  %2381 = vmatpush.bf16.msrb.mxu0 %v4595_v17  ;;  %v4607_v17 = vor.u32 %v5203_v59, %v4606_v22 }
 0x162   : > { %v1335_v7 = vadd.f32 %v1334_v19, %v1301_v14  ;;  %v1303_v18 = vpop.f32.mrf.mxu0 }
 0x163   : > { %v1275_v6 = vpop.f32.mrf.mxu3  ;;  %2354 = vmatpush.bf16.msrb.mxu3 %v4607_v17  ;;  %v4552_v17 = vld [vmem:[%s7581_s4 + $0x338] sm:$0xf0] }
 0x164   : > { %v6359_v34 = vadd.f32 %v1335_v7, %v6141_v15  ;;  %v1276_v10 = vadd.f32 %v1275_v6, %v1242_v8  ;;  %v5197_v15 = vld [vmem:[%s7581_s4 + $0x374] sm:$0xf0]  ;;  %v5195_v8 = vld [vmem:[%s7581_s4 + $0x364] sm:$0xf0]  ;;  %v5202_v7 = vld [vmem:[%s7581_s4 + $0x3a4] sm:$0xf] }
 0x165   : > { %v1245_v39 = vpop.f32.mrf.mxu1  ;;  %v4583_v50 = vor.u32 %v5197_v15, %v4582_v26  ;;  %2382 = vmatpush.bf16.msrb.mxu0 %v4587_v33  ;;  %v4575_v21 = vor.u32 %v5195_v8, %v4574_v5  ;;  %v4386_v33 = vld [vmem:[%s6295_s26 + $0x38] sm:$0xf0]  ;;  %v4560_v5 = vld [vmem:[%s7581_s4 + $0x348] sm:$0xf0]  ;;  %v4542_v8 = vld [vmem:[%s7581_s4 + $0x320] sm:$0xf] }
 0x166   : > { %v6362_v41 = vadd.f32 %v1276_v10, %v6148_v44  ;;  %v4566_v10 = vld [vmem:[%s7581_s4 + $0x350] sm:$0xf] }
 0x167   : > { %2316 = vmatpush.bf16.msrb.mxu1 %v4583_v50  ;;  %v4558_v50 = vld [vmem:[%s7581_s4 + $0x340] sm:$0xf] }
 0x168   : > { %4471 = vmatmul.msk.bf16.gmra.mxu3 %vm514_vm0, %v4373_v23  ;;  %1908 = vmatmul.bf16.gmra.mxu1 %v4369_v31 }
 0x169   : > { %v1336_v36 = vpop.f32.mrf.mxu2 }
 0x16a   : > { %v1337_v47 = vadd.f32 %v1336_v36, %v1303_v18  ;;  %v1306_v44 = vpop.f32.mrf.mxu0  ;;  %v4608_v18 = vld [vmem:[%s7581_s4 + $0x3a8] sm:$0xf0] }
 0x16b   : > { %v1278_v38 = vpop.f32.mrf.mxu3  ;;  %2317 = vmatpush.bf16.msrb.mxu1 %v4575_v21  ;;  %v4611_v28 = vor.u32 %v5202_v7, %v4608_v18  ;;  %v5187_v21 = vld [vmem:[%s7581_s4 + $0x324] sm:$0xf0]  ;;  %v1716_v7 = vld [vmem:[%s6295_s26 + $0x40] sm:$0xff] }
 0x16c   : > { %v6378_v40 = vadd.f32 %v1337_v47, %v6152_v29  ;;  %v1279_v49 = vadd.f32 %v1278_v38, %v1245_v39  ;;  %v4376_v29 = vld [vmem:[%s6295_s26 + $0x20] sm:$0xf]  ;;  %v5193_v39 = vld [vmem:[%s7581_s4 + $0x354] sm:$0xf0]  ;;  %v4384_v38 = vld [vmem:[%s6295_s26 + $0x30] sm:$0xf] }
 0x16d   : > { %1969 = vmatmul.bf16.vlgmr.msra.gmra.mxu0 %v4361_v3  ;;  %v1247_v0 = vpop.f32.mrf.mxu1  ;;  %v6391_v3 = vor.u32 %v5152_v32, %v4378_v45  ;;  %2420 = vmatpush.bf16.msrb.mxu2 %v4611_v28  ;;  %v4567_v36 = vor.u32 %v5193_v39, %v4566_v10  ;;  %v4550_v45 = vld [vmem:[%s7581_s4 + $0x330] sm:$0xf]  ;;  %v5176_v10 = vld [vmem:[%s6084_s12 + $0x4] sm:$0xf] }
 0x16e   : > { %4475 = vmatmul.msk.bf16.vlgmr.msra.gmra.mxu2 %vm514_vm0, %v4365_v35  ;;  %v6382_v43 = vadd.f32 %v1279_v49, %v6167_v42  ;;  %v6393_v35 = vor.u32 %v5153_v4, %v4376_v29  ;;  %v5155_v49 = vld [vmem:[%s6295_s26 + $0x34] sm:$0xf0] }
 0x16f   : > { %2318 = vmatpush.bf16.msrb.mxu1 %v4567_v36  ;;  %v5189_v29 = vld [vmem:[%s7581_s4 + $0x334] sm:$0xf0]  ;;  %v5177_v36 = vld [vmem:[%s6084_s12 + $0x4] sm:$0xf0] }
 0x171   : > { %v1339_v9 = vpop.f32.mrf.mxu2 }
 0x172   : > { %v1340_v46 = vadd.f32 %v1339_v9, %v1306_v44  ;;  %v1308_v58 = vpop.f32.mrf.mxu0  ;;  %v5154_v44 = vld [vmem:[%s6295_s26 + $0x34] sm:$0xf] }
 0x173   : > { %v1280_v24 = vpop.f32.mrf.mxu3  ;;  %v6457_v32 = vor.u32 %v5154_v44, %v4386_v33  ;;  %v4512_v33 = vld [vmem:[%s6084_s12 + $0x18] sm:$0xf0] }
 0x174   : > { %v6389_v48 = vadd.f32 %v1340_v46, %v6171_v63  ;;  %v1281_v14 = vadd.f32 %v1280_v24, %v1247_v0  ;;  %v5194_v63 = vld [vmem:[%s7581_s4 + $0x364] sm:$0xf]  ;;  %v4551_v24 = vor.u32 %v5189_v29, %v4550_v45 }
 0x175   : > { %v1250_v2 = vpop.f32.mrf.mxu1  ;;  %v4579_v19 = vor.u32 %v5194_v63, %v4576_v62 }
 0x176   : > { %v6396_v42 = vadd.f32 %v1281_v14, %v6178_v60 }
 0x177   : > { %2383 = vmatpush.bf16.msrb.mxu0 %v4579_v19 }
 0x178   : > { %4472 = vmatmul.msk.bf16.gmra.mxu3 %vm514_vm0, %v6391_v3  ;;  %1913 = vmatmul.bf16.gmra.mxu1 %v6393_v35 }
 0x179   : > { %v1341_v61 = vpop.f32.mrf.mxu2 }
 0x17a   : > { %v1342_v60 = vadd.f32 %v1341_v61, %v1308_v58  ;;  %v1311_v20 = vpop.f32.mrf.mxu0  ;;  %v6459_v58 = vor.u32 %v5155_v49, %v4384_v38  ;;  %v4510_v38 = vld [vmem:[%s6084_s12 + $0x10] sm:$0xf]  ;;  %v5179_v49 = vld [vmem:[%s6084_s12 + $0x14] sm:$0xf0] }
 0x17b   : > { %v1283_v12 = vpop.f32.mrf.mxu3  ;;  %v6521_v29 = vor.u32 %v5179_v49, %v4510_v38  ;;  %v5229_v38 = vld [vmem:[%s7581_s4 + $0x434] sm:$0xf0]  ;;  %v5228_v49 = vld [vmem:[%s7581_s4 + $0x434] sm:$0xf] }
 0x17c   : > { %v6426_v37 = vadd.f32 %v1342_v60, %v6199_v54  ;;  %v1284_v6 = vadd.f32 %v1283_v12, %v1250_v2  ;;  %v5190_v2 = vld [vmem:[%s7581_s4 + $0x344] sm:$0xf]  ;;  %v4543_v60 = vor.u32 %v5187_v21, %v4542_v8  ;;  %v1763_v12 = vunpack.c.l.b16 %v1716_v7 }
 0x17d   : > { %1974 = vmatmul.bf16.gmra.mxu0 %v4369_v31  ;;  %v1252_v54 = vpop.f32.mrf.mxu1  ;;  %v4568_v31 = vld [vmem:[%s7581_s4 + $0x358] sm:$0xf0]  ;;  %v4563_v61 = vor.u32 %v5190_v2, %v4560_v5 }
 0x17e   : > { %4476 = vmatmul.msk.bf16.gmra.mxu2 %vm514_vm0, %v4373_v23  ;;  %v6436_v47 = vadd.f32 %v1284_v6, %v6215_v16  ;;  %v5192_v23 = vld [vmem:[%s7581_s4 + $0x354] sm:$0xf]  ;;  %v5191_v16 = vld [vmem:[%s7581_s4 + $0x344] sm:$0xf0]  ;;  %v4502_v54 = vld [vmem:[%s6084_s12] sm:$0xf] }
 0x17f   : > { %v4571_v15 = vor.u32 %v5192_v23, %v4568_v31  ;;  %v4559_v0 = vor.u32 %v5191_v16, %v4558_v50  ;;  %v5178_v50 = vld [vmem:[%s6084_s12 + $0x14] sm:$0xf]  ;;  %v4503_v16 = vor.u32 %v5177_v36, %v4502_v54  ;;  %v5180_v36 = vld [vmem:[%s6084_s12 + $0x24] sm:$0xf] }
 0x180   : > { %v6519_v45 = vor.u32 %v5178_v50, %v4512_v33  ;;  %v4518_v50 = vld [vmem:[%s6084_s12 + $0x20] sm:$0xf] }
 0x181   : > { %v1344_v26 = vpop.f32.mrf.mxu2  ;;  %2384 = vmatpush.bf16.msrb.mxu0 %v4571_v15  ;;  %2319 = vmatpush.bf16.msrb.mxu1 %v4559_v0  ;;  %v6507_v15 = vpack.c.b16 %v1763_v12, %v1763_v12  ;;  %v2117_v21 = vshrl.u32 %v4503_v16, 16 }
 0x182   : > { %v1345_v53 = vadd.f32 %v1344_v26, %v1311_v20  ;;  %v1313_v51 = vpop.f32.mrf.mxu0 }
 0x183   : > { %v1285_v46 = vpop.f32.mrf.mxu3 }
 0x184   : > { %v6455_v9 = vadd.f32 %v1345_v53, %v6230_v30 }
 0x185   : > { %v1567_v4 = vpop.f32.mrf.mxu1  ;;  %2320 = vmatpush.bf16.msrb.mxu1 %v4551_v24  ;;  %2385 = vmatpush.bf16.msrb.mxu0 %v4563_v61  ;;  %v4544_v24 = vld [vmem:[%s7581_s4 + $0x328] sm:$0xf0]  ;;  %v2136_v61 = vshll.u32 %v6519_v45, 16 }
 0x188   : > { %4473 = vmatmul.msk.bf16.gmra.mxu3 %vm514_vm0, %v6457_v32  ;;  %1918 = vmatmul.bf16.gmra.mxu1 %v6459_v58 }
 0x189   : > { %v1346_v14 = vpop.f32.mrf.mxu2  ;;  %2321 = vmatpush.bf16.msrb.mxu1 %v4543_v60 }
 0x18a   : > { %v1347_v30 = vadd.f32 %v1346_v14, %v1313_v51  ;;  %v1316_v63 = vpop.f32.mrf.mxu0 }
 0x18b   : > { %v1600_v19 = vpop.f32.mrf.mxu3 }
 0x18c   : > { %v6483_v62 = vadd.f32 %v1347_v30, %v6250_v57  ;;  %v1601_v22 = vadd.f32 %v1600_v19, %v1567_v4  ;;  %v5188_v57 = vld [vmem:[%s7581_s4 + $0x334] sm:$0xf]  ;;  %v2119_v4 = vshll.u32 %v4503_v16, 16  ;;  %v2124_v19 = vshll.u32 %v6521_v29, 16  ;;  %v5181_v16 = vld [vmem:[%s6084_s12 + $0x24] sm:$0xf0] }
 0x18d   : > { %1979 = vmatmul.bf16.gmra.mxu0 %v6393_v35  ;;  %v1569_v59 = vpop.f32.mrf.mxu1  ;;  %v4555_v18 = vor.u32 %v5188_v57, %v4552_v17 }
 0x18e   : > { %4477 = vmatmul.msk.bf16.gmra.mxu2 %vm514_vm0, %v6391_v3  ;;  %v6490_v20 = vadd.f32 %v1601_v22, %v6270_v13  ;;  %v1764_v3 = vunpack.c.h.b16 %v1716_v7  ;;  %v4504_v13 = vld [vmem:[%s6084_s12 + $0x8] sm:$0xf0]  ;;  %v2121_v60 = vrot.slane %v2119_v4, 1 }
 0x18f   : > { %2386 = vmatpush.bf16.msrb.mxu0 %v4555_v18  ;;  %v4507_v53 = vor.u32 %v5176_v10, %v4504_v13 }
 0x190   : > { %v6505_v26 = vpack.c.b16 %v1764_v3, %v1764_v3  ;;  %v2138_v3 = vrot.slane %v2136_v61, 1  ;;  %v2122_v12 = vor.u32 %v2121_v60, %v2117_v21  ;;  %v2140_v21 = vshrl.u32 %v6521_v29, 16  ;;  %v4734_v29 = vld [vmem:[%s7581_s4 + $0x428] sm:$0xf0] }
 0x191   : > { %v1349_v35 = vpop.f32.mrf.mxu2  ;;  %v2131_v0 = vshll.u32 %v4507_v53, 16  ;;  %v2129_v5 = vshrl.u32 %v4507_v53, 16 }
 0x192   : > { %v1350_v28 = vadd.f32 %v1349_v35, %v1316_v63  ;;  %v1318_v6 = vpop.f32.mrf.mxu0 }
 0x193   : > { %v1602_v23 = vpop.f32.mrf.mxu3  ;;  %v2133_v8 = vrot.slane %v2131_v0, 1  ;;  %v2126_v6 = vrot.slane %v2124_v19, 1  ;;  %v4732_v19 = vld [vmem:[%s7581_s4 + $0x420] sm:$0xf] }
 0x194   : > { %v6501_v39 = vadd.f32 %v1350_v28, %v6278_v25  ;;  %v1603_v31 = vadd.f32 %v1602_v23, %v1569_v59  ;;  %v5232_v59 = vld [vmem:[%s7581_s4 + $0x454] sm:$0xf] }
 0x195   : > { %v1572_v44 = vpop.f32.mrf.mxu1  ;;  %v2134_v28 = vor.u32 %v2133_v8, %v2129_v5  ;;  %v6557_v53 = vsel %vm1022_vm1, %v2122_v12, %v2126_v6 }
 0x196   : > { %v6511_v51 = vadd.f32 %v1603_v31, %v6281_v27  ;;  %v5186_v27 = vld [vmem:[%s7581_s4 + $0x324] sm:$0xf] }
 0x197   : > { %v4547_v30 = vor.u32 %v5186_v27, %v4544_v24  ;;  %v6554_v23 = vsel %vm1022_vm1, %v2134_v28, %v2138_v3 }
 0x198   : > { %4474 = vmatmul.msk.bf16.gmra.mxu3 %vm514_vm0, %v6505_v26  ;;  %1923 = vmatmul.bf16.gmra.mxu1 %v6507_v15 }
 0x199   : > { %v1351_v25 = vpop.f32.mrf.mxu2  ;;  %2387 = vmatpush.bf16.msrb.mxu0 %v4547_v30 }
 0x19a   : > { %v1633_v46 = vpop.f32.mrf.mxu0 }
 0x19b   : > { %v1605_v14 = vpop.f32.mrf.mxu3 }
 0x19c   : > { %v1606_v2 = vadd.f32 %v1605_v14, %v1572_v44  ;;  %v4520_v44 = vld [vmem:[%s6084_s12 + $0x28] sm:$0xf0]  ;;  %v6582_v14 = vor.u32 %v5181_v16, %v4518_v50  ;;  %v4724_v16 = vld [vmem:[%s7581_s4 + $0x410] sm:$0xf] }
 0x19d   : > { %1984 = vmatmul.bf16.gmra.mxu0 %v6459_v58  ;;  %v1574_v63 = vpop.f32.mrf.mxu1  ;;  %v4756_v58 = vld [vmem:[%s7581_s4 + $0x450] sm:$0xf]  ;;  %v6580_v24 = vor.u32 %v5180_v36, %v4520_v44  ;;  %v5182_v36 = vld [vmem:[%s6084_s12 + $0x34] sm:$0xf]  ;;  %v5183_v44 = vld [vmem:[%s6084_s12 + $0x34] sm:$0xf0] }
 0x19e   : > { %4478 = vmatmul.msk.bf16.gmra.mxu2 %vm514_vm0, %v6457_v32  ;;  %v6535_v22 = vadd.f32 %v1606_v2, %v6298_v1  ;;  %v5233_v32 = vld [vmem:[%s7581_s4 + $0x454] sm:$0xf0]  ;;  %v4758_v1 = vld [vmem:[%s7581_s4 + $0x458] sm:$0xf0]  ;;  %v2144_v60 = vshll.u32 %v6582_v14, 16 }
 0x19f   : > { %v4757_v57 = vor.u32 %v5233_v32, %v4756_v58  ;;  %v4761_v35 = vor.u32 %v5232_v59, %v4758_v1  ;;  %v2152_v61 = vshll.u32 %v6580_v24, 16  ;;  %v2142_v1 = vor.u32 %v2140_v21, %v2126_v6  ;;  %v4528_v6 = vld [vmem:[%s6084_s12 + $0x38] sm:$0xf0] }
 0x1a1   : > { %v1666_v7 = vpop.f32.mrf.mxu2  ;;  %2772 = vmatpush.bf16.msra.mxu3 %v4757_v57  ;;  %2838 = vmatpush.bf16.msra.mxu2 %v4761_v35  ;;  %v2154_v57 = vrot.slane %v2152_v61, 1  ;;  %v2156_v61 = vshrl.u32 %v6582_v14, 16 }
 0x1a2   : > { %v1667_v17 = vadd.f32 %v1666_v7, %v1633_v46  ;;  %v1635_v18 = vpop.f32.mrf.mxu0  ;;  %v4742_v46 = vld [vmem:[%s7581_s4 + $0x438] sm:$0xf0] }
 0x1a3   : > { %v1607_v13 = vpop.f32.mrf.mxu3  ;;  %v4745_v4 = vor.u32 %v5228_v49, %v4742_v46  ;;  %v6637_v49 = vor.u32 %v5182_v36, %v4528_v6  ;;  %v4726_v46 = vld [vmem:[%s7581_s4 + $0x418] sm:$0xf0]  ;;  %v4718_v36 = vld [vmem:[%s7581_s4 + $0x408] sm:$0xf0] }
 0x1a4   : > { %v6550_v10 = vadd.f32 %v1667_v17, %v6317_v56  ;;  %v1608_v54 = vadd.f32 %v1607_v13, %v1574_v63  ;;  %v4740_v56 = vld [vmem:[%s7581_s4 + $0x430] sm:$0xf]  ;;  %v2148_v63 = vshrl.u32 %v6519_v45, 16  ;;  %v2146_v17 = vrot.slane %v2144_v60, 1 }
 0x1a5   : > { %v1577_v31 = vpop.f32.mrf.mxu1  ;;  %v4741_v0 = vor.u32 %v5229_v38, %v4740_v56  ;;  %2799 = vmatpush.bf16.msra.mxu0 %v4745_v4  ;;  %v5225_v56 = vld [vmem:[%s7581_s4 + $0x414] sm:$0xf0] }
 0x1a6   : > { %v6563_v33 = vadd.f32 %v1608_v54, %v6320_v55  ;;  %v2150_v7 = vor.u32 %v2148_v63, %v2138_v3  ;;  %v6616_v54 = vsel %vm1022_vm1, %v2142_v1, %v2146_v17  ;;  %v2168_v63 = vshll.u32 %v6637_v49, 16  ;;  %v5185_v1 = vld [vmem:[%s6084_s12 + $0x44] sm:$0x10] }
 0x1a7   : > { %2733 = vmatpush.bf16.msra.mxu1 %v4741_v0  ;;  %v4725_v0 = vor.u32 %v5225_v56, %v4724_v16 }
 0x1a8   : > { %4620 = vmatmul.msk.bf16.vlgmr.msrb.gmra.mxu3 %vm514_vm0, %v6554_v23  ;;  %2322 = vmatmul.bf16.vlgmr.msrb.gmra.mxu1 %v6557_v53  ;;  %v6613_v12 = vsel %vm1022_vm1, %v2150_v7, %v2154_v57  ;;  %v4534_v7 = vld [vmem:[%s6084_s12 + $0x40] sm:$0xf] }
 0x1a9   : > { %v1668_v25 = vpop.f32.mrf.mxu2  ;;  %v6699_v56 = vor.u32 %v5185_v1, %v4534_v7 }
 0x1aa   : > { %v1669_v55 = vadd.f32 %v1668_v25, %v1635_v18  ;;  %v1638_v27 = vpop.f32.mrf.mxu0 }
 0x1ab   : > { %v1610_v2 = vpop.f32.mrf.mxu3 }
 0x1ac   : > { %v6585_v30 = vadd.f32 %v1669_v55, %v6336_v11  ;;  %v1611_v5 = vadd.f32 %v1610_v2, %v1577_v31  ;;  %v4526_v31 = vld [vmem:[%s6084_s12 + $0x30] sm:$0xf] }
 0x1ad   : > { %1989 = vmatmul.bf16.gmra.mxu0 %v6507_v15  ;;  %v1579_v8 = vpop.f32.mrf.mxu1  ;;  %v5226_v15 = vld [vmem:[%s7581_s4 + $0x424] sm:$0xf]  ;;  %v6639_v25 = vor.u32 %v5183_v44, %v4526_v31  ;;  %v4748_v31 = vld [vmem:[%s7581_s4 + $0x440] sm:$0xf]  ;;  %v5231_v44 = vld [vmem:[%s7581_s4 + $0x444] sm:$0xf0] }
 0x1ae   : > { %4479 = vmatmul.msk.bf16.gmra.mxu2 %vm514_vm0, %v6505_v26  ;;  %v6595_v11 = vadd.f32 %v1611_v5, %v6340_v52  ;;  %v5227_v26 = vld [vmem:[%s7581_s4 + $0x424] sm:$0xf0]  ;;  %v4737_v32 = vor.u32 %v5226_v15, %v4734_v29  ;;  %v5184_v29 = vld [vmem:[%s6084_s12 + $0x44] sm:$0xf] }
 0x1af   : > { %v4733_v58 = vor.u32 %v5227_v26, %v4732_v19  ;;  %v2170_v26 = vrot.slane %v2168_v63, 1 }
 0x1b0   : > { %2800 = vmatpush.bf16.msra.mxu0 %v4737_v32 }
 0x1b1   : > { %v1671_v45 = vpop.f32.mrf.mxu2  ;;  %2734 = vmatpush.bf16.msra.mxu1 %v4733_v58 }
 0x1b2   : > { %v1672_v52 = vadd.f32 %v1671_v45, %v1638_v27  ;;  %v1640_v59 = vpop.f32.mrf.mxu0 }
 0x1b3   : > { %v1612_v18 = vpop.f32.mrf.mxu3 }
 0x1b4   : > { %v6610_v35 = vadd.f32 %v1672_v52, %v6359_v34  ;;  %v1613_v28 = vadd.f32 %v1612_v18, %v1579_v8  ;;  %v2164_v8 = vshrl.u32 %v6580_v24, 16  ;;  %v2158_v24 = vor.u32 %v2156_v61, %v2146_v17  ;;  %v5223_v17 = vld [vmem:[%s7581_s4 + $0x404] sm:$0xf0]  ;;  %v5222_v18 = vld [vmem:[%s7581_s4 + $0x404] sm:$0xf] }
 0x1b5   : > { %v1582_v13 = vpop.f32.mrf.mxu1  ;;  %2735 = vmatpush.bf16.msra.mxu1 %v4725_v0  ;;  %v4721_v6 = vor.u32 %v5222_v18, %v4718_v36  ;;  %v2172_v61 = vshrl.u32 %v6639_v25, 16  ;;  %v5218_v36 = vld [vmem:[%s7581_s4 + $0x3e4] sm:$0xf] }
 0x1b6   : > { %v6620_v3 = vadd.f32 %v1613_v28, %v6362_v41  ;;  %v5224_v41 = vld [vmem:[%s7581_s4 + $0x414] sm:$0xf]  ;;  %v2166_v19 = vor.u32 %v2164_v8, %v2154_v57 }
 0x1b7   : > { %v4729_v4 = vor.u32 %v5224_v41, %v4726_v46  ;;  %v4749_v41 = vor.u32 %v5231_v44, %v4748_v31 }
 0x1b8   : > { %4621 = vmatmul.msk.bf16.gmra.mxu3 %vm514_vm0, %v6613_v12  ;;  %2327 = vmatmul.bf16.gmra.mxu1 %v6616_v54  ;;  %v6662_v52 = vsel %vm1022_vm1, %v2166_v19, %v2170_v26 }
 0x1b9   : > { %v1673_v50 = vpop.f32.mrf.mxu2  ;;  %2801 = vmatpush.bf16.msra.mxu0 %v4729_v4  ;;  %2773 = vmatpush.bf16.msra.mxu3 %v4749_v41 }
 0x1ba   : > { %v1674_v34 = vadd.f32 %v1673_v50, %v1640_v59  ;;  %v1643_v38 = vpop.f32.mrf.mxu0  ;;  %v4536_v59 = vld [vmem:[%s6084_s12 + $0x48] sm:$0x10]  ;;  %v5230_v50 = vld [vmem:[%s7581_s4 + $0x444] sm:$0xf] }
 0x1bb   : > { %v1615_v27 = vpop.f32.mrf.mxu3  ;;  %v6697_v16 = vor.u32 %v5184_v29, %v4536_v59 }
 0x1bc   : > { %v6645_v55 = vadd.f32 %v1674_v34, %v6378_v40  ;;  %v1616_v2 = vadd.f32 %v1615_v27, %v1582_v13  ;;  %v2160_v40 = vshll.u32 %v6639_v25, 16 }
 0x1bd   : > { %2388 = vmatmul.bf16.vlgmr.msrb.gmra.mxu0 %v6557_v53  ;;  %v1584_v5 = vpop.f32.mrf.mxu1  ;;  %v2184_v63 = vshll.u32 %v6697_v16, 16 }
 0x1be   : > { %4625 = vmatmul.msk.bf16.vlgmr.msrb.gmra.mxu2 %vm514_vm0, %v6554_v23  ;;  %v6655_v21 = vadd.f32 %v1616_v2, %v6382_v43  ;;  %v2162_v15 = vrot.slane %v2160_v40, 1  ;;  %2802 = vmatpush.bf16.msra.mxu0 %v4721_v6  ;;  %v2180_v2 = vshrl.u32 %v6637_v49, 16  ;;  %v5220_v49 = vld [vmem:[%s7581_s4 + $0x3f4] sm:$0xf]  ;;  %v4684_v6 = vld [vmem:[%s7581_s4 + $0x3c0] sm:$0xf] }
 0x1c0   : > { %v6665_v32 = vsel %vm1022_vm1, %v2158_v24, %v2162_v15  ;;  %v2182_v25 = vor.u32 %v2180_v2, %v2170_v26  ;;  %v4700_v24 = vld [vmem:[%s7581_s4 + $0x3e0] sm:$0xf]  ;;  %v2174_v29 = vor.u32 %v2172_v61, %v2162_v15  ;;  %v4692_v26 = vld [vmem:[%s7581_s4 + $0x3d0] sm:$0xf]  ;;  %v2188_v61 = vshrl.u32 %v6699_v56, 16 }
 0x1c1   : > { %v1676_v53 = vpop.f32.mrf.mxu2  ;;  %v6773_v2 = vld [vmem:[%s5640_s7 + $0x10] sm:$0xff] }
 0x1c2   : > { %v1677_v60 = vadd.f32 %v1676_v53, %v1643_v38  ;;  %v1645_v23 = vpop.f32.mrf.mxu0  ;;  %v4750_v38 = vld [vmem:[%s7581_s4 + $0x448] sm:$0xf0]  ;;  %v4710_v53 = vld [vmem:[%s7581_s4 + $0x3f8] sm:$0xf0] }
 0x1c3   : > { %v1617_v14 = vpop.f32.mrf.mxu3  ;;  %v4753_v46 = vor.u32 %v5230_v50, %v4750_v38  ;;  %v5215_v50 = vld [vmem:[%s7581_s4 + $0x3c4] sm:$0xf0] }
 0x1c4   : > { %v6658_v45 = vadd.f32 %v1677_v60, %v6389_v48  ;;  %v1618_v58 = vadd.f32 %v1617_v14, %v1584_v5  ;;  %v4716_v48 = vld [vmem:[%s7581_s4 + $0x400] sm:$0xf]  ;;  %v4708_v5 = vld [vmem:[%s7581_s4 + $0x3f0] sm:$0xf]  ;;  %v4685_v41 = vor.u32 %v5215_v50, %v4684_v6 }
 0x1c5   : > { %v1587_v43 = vpop.f32.mrf.mxu1  ;;  %v4717_v13 = vor.u32 %v5223_v17, %v4716_v48  ;;  %2839 = vmatpush.bf16.msra.mxu2 %v4753_v46  ;;  %v5217_v48 = vld [vmem:[%s7581_s4 + $0x3d4] sm:$0xf0] }
 0x1c6   : > { %v6671_v57 = vadd.f32 %v1618_v58, %v6396_v42  ;;  %v2186_v58 = vrot.slane %v2184_v63, 1 }
 0x1c7   : > { %2736 = vmatpush.bf16.msra.mxu1 %v4717_v13 }
 0x1c8   : > { %4622 = vmatmul.msk.bf16.gmra.mxu3 %vm514_vm0, %v6662_v52  ;;  %2332 = vmatmul.bf16.gmra.mxu1 %v6665_v32  ;;  %v6745_v17 = vsel %vm1022_vm1, %v2182_v25, %v2186_v58 }
 0x1c9   : > { %v1678_v28 = vpop.f32.mrf.mxu2 }
 0x1ca   : > { %v1679_v42 = vadd.f32 %v1678_v28, %v1645_v23  ;;  %v1648_v34 = vpop.f32.mrf.mxu0  ;;  %v4713_v23 = vor.u32 %v5220_v49, %v4710_v53  ;;  %v4693_v28 = vor.u32 %v5217_v48, %v4692_v26  ;;  %v2507_v53 = vunpack.c.l.b16 %v6773_v2 }
 0x1cb   : > { %v1620_v4 = vpop.f32.mrf.mxu3 }
 0x1cc   : > { %v6705_v0 = vadd.f32 %v1679_v42, %v6426_v37  ;;  %v1621_v27 = vadd.f32 %v1620_v4, %v1587_v43  ;;  %v5221_v37 = vld [vmem:[%s7581_s4 + $0x3f4] sm:$0xf0]  ;;  %2803 = vmatpush.bf16.msra.mxu0 %v4713_v23  ;;  %v4702_v42 = vld [vmem:[%s7581_s4 + $0x3e8] sm:$0xf0] }
 0x1cd   : > { %2393 = vmatmul.bf16.gmra.mxu0 %v6616_v54  ;;  %v1589_v8 = vpop.f32.mrf.mxu1  ;;  %v2176_v54 = vshll.u32 %v6699_v56, 16  ;;  %v4709_v40 = vor.u32 %v5221_v37, %v4708_v5  ;;  %v4705_v44 = vor.u32 %v5218_v36, %v4702_v42  ;;  %v4694_v37 = vld [vmem:[%s7581_s4 + $0x3d8] sm:$0xf0] }
 0x1ce   : > { %4626 = vmatmul.msk.bf16.gmra.mxu2 %vm514_vm0, %v6613_v12  ;;  %v6721_v12 = vadd.f32 %v1621_v27, %v6436_v47  ;;  %v5219_v47 = vld [vmem:[%s7581_s4 + $0x3e4] sm:$0xf0]  ;;  %v2191_v8 = vshrl.u32 %v6697_v16, 16 }
 0x1cf   : > { %2737 = vmatpush.bf16.msra.mxu1 %v4709_v40  ;;  %v2178_v43 = vrot.slane %v2176_v54, 1  ;;  %v4701_v59 = vor.u32 %v5219_v47, %v4700_v24  ;;  %v2464_v27 = vld [vmem:[%s5640_s7 + $0x8] sm:$0xff]  ;;  %v5206_v47 = vld [vmem:[%s5640_s7 + $0x1c] sm:$0xf] }
 0x1d0   : > { %2804 = vmatpush.bf16.msra.mxu0 %v4705_v44  ;;  %v2506_v54 = vunpack.c.h.b16 %v2464_v27  ;;  %v2505_v49 = vunpack.c.l.b16 %v2464_v27  ;;  %v5262_v27 = vld [vmem:[%s7581_s4 + $0x4f4] sm:$0xf] }
 0x1d1   : > { %v1681_v60 = vpop.f32.mrf.mxu2  ;;  %v6748_v18 = vsel %vm1022_vm1, %v2174_v29, %v2178_v43  ;;  %v6793_v25 = vor.u32 %v2188_v61, %v2178_v43 }
 0x1d2   : > { %v1682_v19 = vadd.f32 %v1681_v60, %v1648_v34  ;;  %v1650_v14 = vpop.f32.mrf.mxu0 }
 0x1d3   : > { %v1622_v1 = vpop.f32.mrf.mxu3  ;;  %2738 = vmatpush.bf16.msra.mxu1 %v4701_v59  ;;  %v4654_v59 = vld [vmem:[%s5640_s7 + $0x20] sm:$0xf0] }
 0x1d4   : > { %v6736_v7 = vadd.f32 %v1682_v19, %v6455_v9  ;;  %v6791_v19 = vor.u32 %v2191_v8, %v2186_v58  ;;  %v5207_v1 = vld [vmem:[%s5640_s7 + $0x1c] sm:$0xf0]  ;;  %v6809_v48 = vor.u32 %v5206_v47, %v4654_v59  ;;  %v4662_v59 = vld [vmem:[%s5640_s7 + $0x30] sm:$0xf0] }
 0x1d5   : > { %v1904_v15 = vpop.f32.mrf.mxu1 }
 0x1d6   : > { %v2555_v50 = vshll.u32 %v6809_v48, 16 }
 0x1d7   : > { %2739 = vmatpush.bf16.msra.mxu1 %v4693_v28 }
 0x1d8   : > { %4623 = vmatmul.msk.bf16.gmra.mxu3 %vm514_vm0, %v6745_v17  ;;  %2337 = vmatmul.bf16.gmra.mxu1 %v6748_v18  ;;  %v2557_v61 = vrot.slane %v2555_v50, 1 }
 0x1d9   : > { %v1683_v9 = vpop.f32.mrf.mxu2 }
 0x1da   : > { %v1684_v13 = vadd.f32 %v1683_v9, %v1650_v14  ;;  %v1653_v31 = vpop.f32.mrf.mxu0  ;;  %v2525_v14 = vpack.c.b16 %v2507_v53, %v2505_v49  ;;  %v4686_v9 = vld [vmem:[%s7581_s4 + $0x3c8] sm:$0xf0] }
 0x1db   : > { %v1937_v38 = vpop.f32.mrf.mxu3  ;;  %2740 = vmatpush.bf16.msra.mxu1 %v4685_v41 }
 0x1dc   : > { %v6766_v34 = vadd.f32 %v1684_v13, %v6483_v62  ;;  %v1938_v46 = vadd.f32 %v1937_v38, %v1904_v15  ;;  %v5216_v62 = vld [vmem:[%s7581_s4 + $0x3d4] sm:$0xf]  ;;  %v2538_v28 = vshll.u32 %v2525_v14, 16  ;;  %v2536_v41 = vshrl.u32 %v2525_v14, 16 }
 0x1dd   : > { %2398 = vmatmul.bf16.gmra.mxu0 %v6665_v32  ;;  %v1906_v4 = vpop.f32.mrf.mxu1 }
 0x1de   : > { %4627 = vmatmul.msk.bf16.gmra.mxu2 %vm514_vm0, %v6662_v52  ;;  %v6776_v5 = vadd.f32 %v1938_v46, %v6490_v20  ;;  %v4697_v52 = vor.u32 %v5216_v62, %v4694_v37  ;;  %v2508_v20 = vunpack.c.h.b16 %v6773_v2  ;;  %v2540_v38 = vrot.slane %v2538_v28, 1 }
 0x1e0   : > { %2805 = vmatpush.bf16.msra.mxu0 %v4697_v52  ;;  %v2526_v56 = vpack.c.b16 %v2508_v20, %v2506_v54  ;;  %v2541_v54 = vor.u32 %v2540_v38, %v2536_v41  ;;  %v2567_v38 = vshrl.u32 %v6809_v48, 16 }
 0x1e1   : > { %v1686_v32 = vpop.f32.mrf.mxu2 }
 0x1e2   : > { %v1687_v63 = vadd.f32 %v1686_v32, %v1653_v31  ;;  %v1655_v40 = vpop.f32.mrf.mxu0  ;;  %v2550_v58 = vshll.u32 %v2526_v56, 16  ;;  %v2548_v6 = vshrl.u32 %v2526_v56, 16  ;;  %v5208_v56 = vld [vmem:[%s5640_s7 + $0x2c] sm:$0xf] }
 0x1e3   : > { %v1939_v16 = vpop.f32.mrf.mxu3 }
 0x1e4   : > { %v6789_v60 = vadd.f32 %v1687_v63, %v6501_v39  ;;  %v1940_v23 = vadd.f32 %v1939_v16, %v1906_v4  ;;  %v4652_v39 = vld [vmem:[%s5640_s7 + $0x18] sm:$0xf]  ;;  %v2552_v31 = vrot.slane %v2550_v58, 1 }
 0x1e5   : > { %v1909_v24 = vpop.f32.mrf.mxu1  ;;  %v6811_v15 = vor.u32 %v5207_v1, %v4652_v39  ;;  %v4660_v39 = vld [vmem:[%s5640_s7 + $0x28] sm:$0xf]  ;;  %v5209_v1 = vld [vmem:[%s5640_s7 + $0x2c] sm:$0xf0]  ;;  %v5259_v58 = vld [vmem:[%s7581_s4 + $0x4d4] sm:$0xf0] }
 0x1e6   : > { %v6801_v29 = vadd.f32 %v1940_v23, %v6511_v51  ;;  %v5214_v51 = vld [vmem:[%s7581_s4 + $0x3c4] sm:$0xf]  ;;  %v2553_v63 = vor.u32 %v2552_v31, %v2548_v6  ;;  %v6872_v6 = vor.u32 %v5209_v1, %v4660_v39 }
 0x1e7   : > { %v4689_v36 = vor.u32 %v5214_v51, %v4686_v9  ;;  %v2543_v46 = vshll.u32 %v6811_v15, 16  ;;  %v4892_v9 = vld [vmem:[%s7581_s4 + $0x4d8] sm:$0xf0] }
 0x1e8   : > { %4624 = vmatmul.msk.bf16.gmra.mxu3 %vm514_vm0, %v6791_v19  ;;  %2342 = vmatmul.bf16.gmra.mxu1 %v6793_v25 }
 0x1e9   : > { %v1688_v26 = vpop.f32.mrf.mxu2  ;;  %2806 = vmatpush.bf16.msra.mxu0 %v4689_v36  ;;  %v2545_v40 = vrot.slane %v2543_v46, 1 }
 0x1ea   : > { %v1970_v43 = vpop.f32.mrf.mxu0 }
 0x1eb   : > { %v1942_v13 = vpop.f32.mrf.mxu3  ;;  %v6847_v14 = vsel %vm1022_vm1, %v2541_v54, %v2545_v40 }
 0x1ec   : > { %v1943_v42 = vadd.f32 %v1942_v13, %v1909_v24  ;;  %v6844_v24 = vsel %vm1022_vm1, %v2553_v63, %v2557_v61 }
 0x1ed   : > { %2403 = vmatmul.bf16.gmra.mxu0 %v6748_v18  ;;  %v1911_v44 = vpop.f32.mrf.mxu1  ;;  %v4906_v18 = vld [vmem:[%s7581_s4 + $0x4f0] sm:$0xf] }
 0x1ee   : > { %4628 = vmatmul.msk.bf16.gmra.mxu2 %vm514_vm0, %v6745_v17  ;;  %v6825_v4 = vadd.f32 %v1943_v42, %v6535_v22  ;;  %v5263_v17 = vld [vmem:[%s7581_s4 + $0x4f4] sm:$0xf0]  ;;  %v4908_v22 = vld [vmem:[%s7581_s4 + $0x4f8] sm:$0xf0]  ;;  %v6870_v42 = vor.u32 %v5208_v56, %v4662_v59 }
 0x1ef   : > { %v4907_v37 = vor.u32 %v5263_v17, %v4906_v18  ;;  %v4911_v8 = vor.u32 %v5262_v27, %v4908_v22  ;;  %v2559_v18 = vshrl.u32 %v6811_v15, 16  ;;  %v2563_v17 = vshll.u32 %v6872_v6, 16  ;;  %v4882_v27 = vld [vmem:[%s7581_s4 + $0x4c0] sm:$0xf]  ;;  %v4884_v22 = vld [vmem:[%s7581_s4 + $0x4c8] sm:$0xf0] }
 0x1f0   : > { %v2571_v46 = vshll.u32 %v6870_v42, 16 }
 0x1f1   : > { %v2003_v62 = vpop.f32.mrf.mxu2  ;;  %3191 = vmatpush.bf16.msrb.mxu3 %v4907_v37  ;;  %3257 = vmatpush.bf16.msrb.mxu2 %v4911_v8  ;;  %v2561_v54 = vor.u32 %v2559_v18, %v2545_v40  ;;  %v4670_v40 = vld [vmem:[%s5640_s7 + $0x40] sm:$0xf0] }
 0x1f2   : > { %v2004_v32 = vadd.f32 %v2003_v62, %v1970_v43  ;;  %v1972_v52 = vpop.f32.mrf.mxu0  ;;  %v5258_v43 = vld [vmem:[%s7581_s4 + $0x4d4] sm:$0xf]  ;;  %v2573_v63 = vrot.slane %v2571_v46, 1 }
 0x1f3   : > { %v1944_v16 = vpop.f32.mrf.mxu3  ;;  %v4895_v13 = vor.u32 %v5258_v43, %v4892_v9  ;;  %v5211_v43 = vld [vmem:[%s5640_s7 + $0x3c] sm:$0xf0]  ;;  %v5255_v9 = vld [vmem:[%s7581_s4 + $0x4b4] sm:$0xf0] }
 0x1f4   : > { %v6840_v49 = vadd.f32 %v2004_v32, %v6550_v10  ;;  %v1945_v23 = vadd.f32 %v1944_v16, %v1911_v44  ;;  %v4890_v10 = vld [vmem:[%s7581_s4 + $0x4d0] sm:$0xf]  ;;  %v2565_v16 = vrot.slane %v2563_v17, 1 }
 0x1f5   : > { %v1914_v47 = vpop.f32.mrf.mxu1  ;;  %v4891_v51 = vor.u32 %v5259_v58, %v4890_v10  ;;  %3218 = vmatpush.bf16.msrb.mxu0 %v4895_v13  ;;  %v5210_v10 = vld [vmem:[%s5640_s7 + $0x3c] sm:$0xf]  ;;  %v4668_v58 = vld [vmem:[%s5640_s7 + $0x38] sm:$0xf] }
 0x1f6   : > { %v6853_v26 = vadd.f32 %v1945_v23, %v6563_v33  ;;  %v6906_v1 = vsel %vm1022_vm1, %v2561_v54, %v2565_v16  ;;  %v6927_v13 = vor.u32 %v5210_v10, %v4670_v40  ;;  %v4678_v40 = vld [vmem:[%s5640_s7 + $0x50] sm:$0x10] }
 0x1f7   : > { %3152 = vmatpush.bf16.msrb.mxu1 %v4891_v51  ;;  %v4874_v51 = vld [vmem:[%s7581_s4 + $0x4b0] sm:$0xf] }
 0x1f8   : > { %4762 = vmatmul.msk.bf16.vlgmr.msra.gmra.mxu3 %vm514_vm0, %v6844_v24  ;;  %2741 = vmatmul.bf16.vlgmr.msra.gmra.mxu1 %v6847_v14 }
 0x1f9   : > { %v2005_v28 = vpop.f32.mrf.mxu2 }
 0x1fa   : > { %v2006_v33 = vadd.f32 %v2005_v28, %v1972_v52  ;;  %v1975_v36 = vpop.f32.mrf.mxu0  ;;  %v2569_v52 = vor.u32 %v2567_v38, %v2557_v61 }
 0x1fb   : > { %v1947_v44 = vpop.f32.mrf.mxu3 }
 0x1fc   : > { %v6875_v31 = vadd.f32 %v2006_v33, %v6585_v30  ;;  %v1948_v50 = vadd.f32 %v1947_v44, %v1914_v47  ;;  %v6903_v59 = vsel %vm1022_vm1, %v2569_v52, %v2573_v63  ;;  %v4875_v44 = vor.u32 %v5255_v9, %v4874_v51  ;;  %v4868_v9 = vld [vmem:[%s7581_s4 + $0x4a8] sm:$0xf0] }
 0x1fd   : > { %2408 = vmatmul.bf16.gmra.mxu0 %v6793_v25  ;;  %v1916_v41 = vpop.f32.mrf.mxu1  ;;  %v5256_v25 = vld [vmem:[%s7581_s4 + $0x4c4] sm:$0xf] }
 0x1fe   : > { %4629 = vmatmul.msk.bf16.gmra.mxu2 %vm514_vm0, %v6791_v19  ;;  %v6885_v30 = vadd.f32 %v1948_v50, %v6595_v11  ;;  %v5257_v19 = vld [vmem:[%s7581_s4 + $0x4c4] sm:$0xf0]  ;;  %v4887_v32 = vor.u32 %v5256_v25, %v4884_v22  ;;  %v4876_v50 = vld [vmem:[%s7581_s4 + $0x4b8] sm:$0xf0]  ;;  %v2575_v25 = vshrl.u32 %v6872_v6, 16 }
 0x1ff   : > { %v4883_v37 = vor.u32 %v5257_v19, %v4882_v27  ;;  %v2583_v27 = vshrl.u32 %v6870_v42, 16  ;;  %v2587_v19 = vshll.u32 %v6927_v13, 16 }
 0x200   : > { %3219 = vmatpush.bf16.msrb.mxu0 %v4887_v32  ;;  %v2577_v32 = vor.u32 %v2575_v25, %v2565_v16  ;;  %v5253_v16 = vld [vmem:[%s7581_s4 + $0x4a4] sm:$0xf0] }
 0x201   : > { %v2008_v62 = vpop.f32.mrf.mxu2  ;;  %3153 = vmatpush.bf16.msrb.mxu1 %v4883_v37  ;;  %v2585_v22 = vor.u32 %v2583_v27, %v2573_v63  ;;  %v4900_v27 = vld [vmem:[%s7581_s4 + $0x4e8] sm:$0xf0] }
 0x202   : > { %v2009_v11 = vadd.f32 %v2008_v62, %v1975_v36  ;;  %v1977_v8 = vpop.f32.mrf.mxu0  ;;  %v6929_v36 = vor.u32 %v5211_v43, %v4668_v58  ;;  %v4676_v58 = vld [vmem:[%s5640_s7 + $0x48] sm:$0xf]  ;;  %v5213_v43 = vld [vmem:[%s5640_s7 + $0x4c] sm:$0x10] }
 0x203   : > { %v1949_v56 = vpop.f32.mrf.mxu3 }
 0x204   : > { %v6900_v23 = vadd.f32 %v2009_v11, %v6610_v35  ;;  %v1950_v47 = vadd.f32 %v1949_v56, %v1916_v41  ;;  %v2589_v11 = vrot.slane %v2587_v19, 1 }
 0x205   : > { %v1919_v39 = vpop.f32.mrf.mxu1  ;;  %3154 = vmatpush.bf16.msrb.mxu1 %v4875_v44  ;;  %v5261_v44 = vld [vmem:[%s7581_s4 + $0x4e4] sm:$0xf0] }
 0x206   : > { %v6910_v61 = vadd.f32 %v1950_v47, %v6620_v3  ;;  %v5254_v3 = vld [vmem:[%s7581_s4 + $0x4b4] sm:$0xf]  ;;  %v5212_v47 = vld [vmem:[%s5640_s7 + $0x4c] sm:$0xf] }
 0x207   : > { %v4879_v38 = vor.u32 %v5254_v3, %v4876_v50  ;;  %v5260_v50 = vld [vmem:[%s7581_s4 + $0x4e4] sm:$0xf] }
 0x208   : > { %4763 = vmatmul.msk.bf16.gmra.mxu3 %vm514_vm0, %v6903_v59  ;;  %2746 = vmatmul.bf16.gmra.mxu1 %v6906_v1  ;;  %v4903_v25 = vor.u32 %v5260_v50, %v4900_v27 }
 0x209   : > { %v2010_v28 = vpop.f32.mrf.mxu2  ;;  %3220 = vmatpush.bf16.msrb.mxu0 %v4879_v38 }
 0x20a   : > { %v2011_v35 = vadd.f32 %v2010_v28, %v1977_v8  ;;  %v1980_v33 = vpop.f32.mrf.mxu0  ;;  %v5252_v28 = vld [vmem:[%s7581_s4 + $0x4a4] sm:$0xf]  ;;  %3258 = vmatpush.bf16.msrb.mxu2 %v4903_v25 }
 0x20b   : > { %v1952_v46 = vpop.f32.mrf.mxu3  ;;  %v4871_v3 = vor.u32 %v5252_v28, %v4868_v9  ;;  %v5248_v25 = vld [vmem:[%s7581_s4 + $0x484] sm:$0xf] }
 0x20c   : > { %v6935_v41 = vadd.f32 %v2011_v35, %v6645_v55  ;;  %v1953_v18 = vadd.f32 %v1952_v46, %v1919_v39  ;;  %v2579_v55 = vshll.u32 %v6929_v36, 16  ;;  %v6952_v39 = vsel %vm1022_vm1, %v2585_v22, %v2589_v11 }
 0x20d   : > { %2807 = vmatmul.bf16.vlgmr.msra.gmra.mxu0 %v6847_v14  ;;  %v1921_v17 = vpop.f32.mrf.mxu1  ;;  %v6987_v46 = vor.u32 %v5212_v47, %v4678_v40  ;;  %v5250_v47 = vld [vmem:[%s7581_s4 + $0x494] sm:$0xf] }
 0x20e   : > { %4767 = vmatmul.msk.bf16.vlgmr.msra.gmra.mxu2 %vm514_vm0, %v6844_v24  ;;  %v6945_v62 = vadd.f32 %v1953_v18, %v6655_v21  ;;  %v2581_v8 = vrot.slane %v2579_v55, 1  ;;  %v6989_v18 = vor.u32 %v5213_v43, %v4676_v58  ;;  %3221 = vmatpush.bf16.msrb.mxu0 %v4871_v3 }
 0x210   : > { %v6955_v10 = vsel %vm1022_vm1, %v2577_v32, %v2581_v8  ;;  %v2603_v32 = vshll.u32 %v6987_v46, 16 }
 0x211   : > { %v2013_v14 = vpop.f32.mrf.mxu2 }
 0x212   : > { %v2014_v37 = vadd.f32 %v2013_v14, %v1980_v33  ;;  %v1982_v24 = vpop.f32.mrf.mxu0  ;;  %v4898_v33 = vld [vmem:[%s7581_s4 + $0x4e0] sm:$0xf] }
 0x213   : > { %v1954_v54 = vpop.f32.mrf.mxu3 }
 0x214   : > { %v6948_v52 = vadd.f32 %v2014_v37, %v6658_v45  ;;  %v1955_v56 = vadd.f32 %v1954_v54, %v1921_v17  ;;  %v4866_v45 = vld [vmem:[%s7581_s4 + $0x4a0] sm:$0xf]  ;;  %v4899_v17 = vor.u32 %v5261_v44, %v4898_v33  ;;  %v2599_v37 = vshrl.u32 %v6927_v13, 16  ;;  %v5247_v44 = vld [vmem:[%s7581_s4 + $0x474] sm:$0xf0] }
 0x215   : > { %v1924_v21 = vpop.f32.mrf.mxu1  ;;  %v4867_v51 = vor.u32 %v5253_v16, %v4866_v45  ;;  %v2591_v54 = vshrl.u32 %v6929_v36, 16  ;;  %v4850_v16 = vld [vmem:[%s7581_s4 + $0x480] sm:$0xf] }
 0x216   : > { %v6961_v63 = vadd.f32 %v1955_v56, %v6671_v57  ;;  %3192 = vmatpush.bf16.msrb.mxu3 %v4899_v17  ;;  %v2601_v45 = vor.u32 %v2599_v37, %v2589_v11  ;;  %v4842_v11 = vld [vmem:[%s7581_s4 + $0x470] sm:$0xf] }
 0x217   : > { %3155 = vmatpush.bf16.msrb.mxu1 %v4867_v51  ;;  %v2593_v51 = vor.u32 %v2591_v54, %v2581_v8  ;;  %v4843_v17 = vor.u32 %v5247_v44, %v4842_v11 }
 0x218   : > { %4764 = vmatmul.msk.bf16.gmra.mxu3 %vm514_vm0, %v6952_v39  ;;  %2751 = vmatmul.bf16.gmra.mxu1 %v6955_v10 }
 0x219   : > { %v2015_v35 = vpop.f32.mrf.mxu2 }
 0x21a   : > { %v2016_v57 = vadd.f32 %v2015_v35, %v1982_v24  ;;  %v1985_v38 = vpop.f32.mrf.mxu0  ;;  %v4858_v24 = vld [vmem:[%s7581_s4 + $0x490] sm:$0xf]  ;;  %v2605_v35 = vrot.slane %v2603_v32, 1 }
 0x21b   : > { %v1957_v55 = vpop.f32.mrf.mxu3 }
 0x21c   : > { %v6995_v19 = vadd.f32 %v2016_v57, %v6705_v0  ;;  %v1958_v14 = vadd.f32 %v1957_v55, %v1924_v21  ;;  %v5251_v0 = vld [vmem:[%s7581_s4 + $0x494] sm:$0xf0]  ;;  %v4860_v21 = vld [vmem:[%s7581_s4 + $0x498] sm:$0xf0]  ;;  %v7035_v50 = vsel %vm1022_vm1, %v2601_v45, %v2605_v35  ;;  %v4852_v55 = vld [vmem:[%s7581_s4 + $0x488] sm:$0xf0] }
 0x21d   : > { %2812 = vmatmul.bf16.gmra.mxu0 %v6906_v1  ;;  %v1926_v22 = vpop.f32.mrf.mxu1  ;;  %v2595_v1 = vshll.u32 %v6989_v18, 16  ;;  %v4859_v56 = vor.u32 %v5251_v0, %v4858_v24  ;;  %v4863_v58 = vor.u32 %v5250_v47, %v4860_v21  ;;  %v4855_v24 = vor.u32 %v5248_v25, %v4852_v55  ;;  %v5245_v0 = vld [vmem:[%s7581_s4 + $0x464] sm:$0xf0]  ;;  %v4844_v21 = vld [vmem:[%s7581_s4 + $0x478] sm:$0xf0] }
 0x21e   : > { %4768 = vmatmul.msk.bf16.gmra.mxu2 %vm514_vm0, %v6903_v59  ;;  %v7011_v59 = vadd.f32 %v1958_v14, %v6721_v12  ;;  %v5249_v12 = vld [vmem:[%s7581_s4 + $0x484] sm:$0xf0]  ;;  %v4834_v14 = vld [vmem:[%s7581_s4 + $0x460] sm:$0xf]  ;;  %v4804_v55 = vld [vmem:[%s5430_s30 + $0x20] sm:$0xf0] }
 0x21f   : > { %3156 = vmatpush.bf16.msrb.mxu1 %v4859_v56  ;;  %v2597_v9 = vrot.slane %v2595_v1, 1  ;;  %3222 = vmatpush.bf16.msrb.mxu0 %v4863_v58  ;;  %v4851_v57 = vor.u32 %v5249_v12, %v4850_v16  ;;  %v4835_v32 = vor.u32 %v5245_v0, %v4834_v14  ;;  %v4796_v16 = vld [vmem:[%s5430_s30 + $0x10] sm:$0xf0]  ;;  %v4802_v14 = vld [vmem:[%s5430_s30 + $0x18] sm:$0xf] }
 0x221   : > { %v2018_v40 = vpop.f32.mrf.mxu2 }
 0x222   : > { %v2019_v43 = vadd.f32 %v2018_v40, %v1985_v38  ;;  %v1987_v28 = vpop.f32.mrf.mxu0  ;;  %v2598_v38 = vsel %vm1022_vm1, %v2593_v51, %v2597_v9  ;;  %v5235_v51 = vld [vmem:[%s5430_s30 + $0xc] sm:$0xf0] }
 0x223   : > { %v1959_v33 = vpop.f32.mrf.mxu3  ;;  %3157 = vmatpush.bf16.msrb.mxu1 %v4851_v57  ;;  %3223 = vmatpush.bf16.msrb.mxu0 %v4855_v24 }
 0x224   : > { %v7026_v3 = vadd.f32 %v2019_v43, %v6736_v7  ;;  %v2607_v43 = vshrl.u32 %v6989_v18, 16 }
 0x225   : > { %v2323_v8 = vpop.f32.mrf.mxu1 }
 0x226   : > { %v7078_v44 = vor.u32 %v2607_v43, %v2597_v9 }
 0x227   : > { %3158 = vmatpush.bf16.msrb.mxu1 %v4843_v17 }
 0x228   : > { %4765 = vmatmul.msk.bf16.gmra.mxu3 %vm514_vm0, %v7035_v50  ;;  %2756 = vmatmul.bf16.gmra.mxu1 %v2598_v38 }
 0x229   : > { %v2020_v27 = vpop.f32.mrf.mxu2 }
 0x22a   : > { %v2021_v7 = vadd.f32 %v2020_v27, %v1987_v28  ;;  %v1990_v37 = vpop.f32.mrf.mxu0  ;;  %v4794_v28 = vld [vmem:[%s5430_s30 + $0x8] sm:$0xf]  ;;  %v5236_v27 = vld [vmem:[%s5430_s30 + $0x1c] sm:$0xf] }
 0x22b   : > { %v2356_v54 = vpop.f32.mrf.mxu3  ;;  %3159 = vmatpush.bf16.msrb.mxu1 %v4835_v32  ;;  %v7090_v9 = vor.u32 %v5236_v27, %v4804_v55 }
 0x22c   : > { %v7053_v22 = vadd.f32 %v2021_v7, %v6766_v34  ;;  %v2357_v1 = vadd.f32 %v2356_v54, %v2323_v8  ;;  %v5246_v34 = vld [vmem:[%s7581_s4 + $0x474] sm:$0xf]  ;;  %v4795_v7 = vor.u32 %v5235_v51, %v4794_v28  ;;  %v4836_v54 = vld [vmem:[%s7581_s4 + $0x468] sm:$0xf0] }
 0x22d   : > { %2817 = vmatmul.bf16.gmra.mxu0 %v6955_v10  ;;  %v2325_v56 = vpop.f32.mrf.mxu1  ;;  %v4847_v10 = vor.u32 %v5246_v34, %v4844_v21 }
 0x22e   : > { %4769 = vmatmul.msk.bf16.gmra.mxu2 %vm514_vm0, %v6952_v39  ;;  %v7059_v47 = vadd.f32 %v2357_v1, %v6776_v5  ;;  %v2610_v39 = vshrl.u32 %v6987_v46, 16  ;;  %v5234_v5 = vld [vmem:[%s5430_s30 + $0xc] sm:$0xf]  ;;  %v2957_v32 = vshll.u32 %v4795_v7, 16 }
 0x22f   : > { %3224 = vmatpush.bf16.msrb.mxu0 %v4847_v10  ;;  %v4799_v8 = vor.u32 %v5234_v5, %v4796_v16  ;;  %v5282_v16 = vld [vmem:[%s7581_s4 + $0x594] sm:$0xf] }
 0x230   : > { %v7076_v11 = vor.u32 %v2610_v39, %v2605_v35  ;;  %v2955_v39 = vshrl.u32 %v4795_v7, 16  ;;  %v2959_v43 = vrot.slane %v2957_v32, 1 }
 0x231   : > { %v2023_v40 = vpop.f32.mrf.mxu2  ;;  %v2969_v35 = vshll.u32 %v4799_v8, 16  ;;  %v2967_v21 = vshrl.u32 %v4799_v8, 16 }
 0x232   : > { %v2024_v58 = vadd.f32 %v2023_v40, %v1990_v37  ;;  %v1992_v45 = vpop.f32.mrf.mxu0  ;;  %v5237_v37 = vld [vmem:[%s5430_s30 + $0x1c] sm:$0xf0]  ;;  %v2960_v7 = vor.u32 %v2959_v43, %v2955_v39  ;;  %v5002_v39 = vld [vmem:[%s7581_s4 + $0x578] sm:$0xf0] }
 0x233   : > { %v2358_v57 = vpop.f32.mrf.mxu3  ;;  %v7092_v0 = vor.u32 %v5237_v37, %v4802_v14  ;;  %v2971_v40 = vrot.slane %v2969_v35, 1  ;;  %v5238_v35 = vld [vmem:[%s5430_s30 + $0x2c] sm:$0xf] }
 0x234   : > { %v7072_v12 = vadd.f32 %v2024_v58, %v6789_v60  ;;  %v2359_v33 = vadd.f32 %v2358_v57, %v2325_v56  ;;  %v2974_v58 = vshll.u32 %v7090_v9, 16 }
 0x235   : > { %v2328_v17 = vpop.f32.mrf.mxu1  ;;  %v2962_v45 = vshll.u32 %v7092_v0, 16 }
 0x236   : > { %v7082_v25 = vadd.f32 %v2359_v33, %v6801_v29  ;;  %v5244_v29 = vld [vmem:[%s7581_s4 + $0x464] sm:$0xf]  ;;  %v2976_v27 = vrot.slane %v2974_v58, 1 }
 0x237   : > { %v4839_v56 = vor.u32 %v5244_v29, %v4836_v54  ;;  %v2964_v55 = vrot.slane %v2962_v45, 1  ;;  %v4812_v54 = vld [vmem:[%s5430_s30 + $0x30] sm:$0xf0] }
 0x238   : > { %4766 = vmatmul.msk.bf16.gmra.mxu3 %vm514_vm0, %v7076_v11  ;;  %2761 = vmatmul.bf16.gmra.mxu1 %v7078_v44 }
 0x239   : > { %v2025_v60 = vpop.f32.mrf.mxu2  ;;  %3225 = vmatpush.bf16.msrb.mxu0 %v4839_v56  ;;  %v7127_v29 = vsel %vm1022_vm1, %v2960_v7, %v2964_v55  ;;  %v5239_v56 = vld [vmem:[%s5430_s30 + $0x2c] sm:$0xf0]  ;;  %v4992_v7 = vld [vmem:[%s7581_s4 + $0x560] sm:$0xf] }
 0x23a   : > { %v2389_v24 = vpop.f32.mrf.mxu0 }
 0x23b   : > { %v2361_v1 = vpop.f32.mrf.mxu3 }
 0x23c   : > { %v2362_v34 = vadd.f32 %v2361_v1, %v2328_v17  ;;  %v2972_v17 = vor.u32 %v2971_v40, %v2967_v21  ;;  %v4810_v1 = vld [vmem:[%s5430_s30 + $0x28] sm:$0xf]  ;;  %v5279_v21 = vld [vmem:[%s7581_s4 + $0x574] sm:$0xf0]  ;;  %v5278_v40 = vld [vmem:[%s7581_s4 + $0x574] sm:$0xf] }
 0x23d   : > { %2822 = vmatmul.bf16.gmra.mxu0 %v2598_v38  ;;  %v2330_v10 = vpop.f32.mrf.mxu1  ;;  %v5016_v38 = vld [vmem:[%s7581_s4 + $0x590] sm:$0xf]  ;;  %v5005_v43 = vor.u32 %v5278_v40, %v5002_v39 }
 0x23e   : > { %4770 = vmatmul.msk.bf16.gmra.mxu2 %vm514_vm0, %v7035_v50  ;;  %v7105_v5 = vadd.f32 %v2362_v34, %v6825_v4  ;;  %v5283_v50 = vld [vmem:[%s7581_s4 + $0x594] sm:$0xf0]  ;;  %v5018_v4 = vld [vmem:[%s7581_s4 + $0x598] sm:$0xf0]  ;;  %v7124_v32 = vsel %vm1022_vm1, %v2972_v17, %v2976_v27 }
 0x23f   : > { %v5017_v51 = vor.u32 %v5283_v50, %v5016_v38  ;;  %v5021_v33 = vor.u32 %v5282_v16, %v5018_v4  ;;  %v7150_v38 = vor.u32 %v5238_v35, %v4812_v54  ;;  %v7152_v50 = vor.u32 %v5239_v56, %v4810_v1  ;;  %3534 = vmatpush.bf16.msra.mxu0 %v5005_v43  ;;  %v4818_v43 = vld [vmem:[%s5430_s30 + $0x38] sm:$0xf] }
 0x241   : > { %v2422_v28 = vpop.f32.mrf.mxu2  ;;  %3507 = vmatpush.bf16.msra.mxu3 %v5017_v51  ;;  %3573 = vmatpush.bf16.msra.mxu2 %v5021_v33  ;;  %v2990_v33 = vshll.u32 %v7150_v38, 16  ;;  %v2982_v17 = vshll.u32 %v7152_v50, 16 }
 0x242   : > { %v2423_v57 = vadd.f32 %v2422_v28, %v2389_v24  ;;  %v2391_v8 = vpop.f32.mrf.mxu0 }
 0x243   : > { %v2363_v37 = vpop.f32.mrf.mxu3  ;;  %v2992_v54 = vrot.slane %v2990_v33, 1  ;;  %v2984_v56 = vrot.slane %v2982_v17, 1 }
 0x244   : > { %v7120_v14 = vadd.f32 %v2423_v57, %v6840_v49  ;;  %v2364_v60 = vadd.f32 %v2363_v37, %v2330_v10  ;;  %v5000_v49 = vld [vmem:[%s7581_s4 + $0x570] sm:$0xf]  ;;  %v2986_v57 = vshrl.u32 %v7090_v9, 16 }
 0x245   : > { %v2333_v24 = vpop.f32.mrf.mxu1  ;;  %v5001_v58 = vor.u32 %v5279_v21, %v5000_v49 }
 0x246   : > { %v7133_v34 = vadd.f32 %v2364_v60, %v6853_v26 }
 0x247   : > { %3468 = vmatpush.bf16.msra.mxu1 %v5001_v58 }
 0x248   : > { %4912 = vmatmul.msk.bf16.vlgmr.msrb.gmra.mxu3 %vm514_vm0, %v7124_v32  ;;  %3160 = vmatmul.bf16.vlgmr.msrb.gmra.mxu1 %v7127_v29 }
 0x249   : > { %v2424_v10 = vpop.f32.mrf.mxu2 }
 0x24a   : > { %v2425_v26 = vadd.f32 %v2424_v10, %v2391_v8  ;;  %v2394_v45 = vpop.f32.mrf.mxu0  ;;  %v2978_v8 = vshrl.u32 %v7092_v0, 16  ;;  %v4994_v0 = vld [vmem:[%s7581_s4 + $0x568] sm:$0xf0] }
 0x24b   : > { %v2366_v28 = vpop.f32.mrf.mxu3 }
 0x24c   : > { %v7155_v16 = vadd.f32 %v2425_v26, %v6875_v31  ;;  %v2367_v51 = vadd.f32 %v2366_v28, %v2333_v24  ;;  %v2988_v24 = vor.u32 %v2986_v57, %v2976_v27  ;;  %v2980_v1 = vor.u32 %v2978_v8, %v2964_v55  ;;  %v5240_v26 = vld [vmem:[%s5430_s30 + $0x3c] sm:$0xf]  ;;  %v4820_v55 = vld [vmem:[%s5430_s30 + $0x40] sm:$0xf0] }
 0x24d   : > { %2827 = vmatmul.bf16.gmra.mxu0 %v7078_v44  ;;  %v2335_v4 = vpop.f32.mrf.mxu1  ;;  %v5276_v44 = vld [vmem:[%s7581_s4 + $0x564] sm:$0xf]  ;;  %v7207_v33 = vor.u32 %v5240_v26, %v4820_v55 }
 0x24e   : > { %4771 = vmatmul.msk.bf16.gmra.mxu2 %vm514_vm0, %v7076_v11  ;;  %v7165_v31 = vadd.f32 %v2367_v51, %v6885_v30  ;;  %v5277_v11 = vld [vmem:[%s7581_s4 + $0x564] sm:$0xf0]  ;;  %v4997_v60 = vor.u32 %v5276_v44, %v4994_v0  ;;  %v7183_v10 = vsel %vm1022_vm1, %v2988_v24, %v2992_v54  ;;  %v7186_v39 = vsel %vm1022_vm1, %v2980_v1, %v2984_v56  ;;  %v4984_v51 = vld [vmem:[%s7581_s4 + $0x550] sm:$0xf] }
 0x24f   : > { %v4993_v37 = vor.u32 %v5277_v11, %v4992_v7  ;;  %v4986_v7 = vld [vmem:[%s7581_s4 + $0x558] sm:$0xf0] }
 0x250   : > { %3535 = vmatpush.bf16.msra.mxu0 %v4997_v60  ;;  %v3006_v60 = vshll.u32 %v7207_v33, 16 }
 0x251   : > { %v2427_v9 = vpop.f32.mrf.mxu2  ;;  %3469 = vmatpush.bf16.msra.mxu1 %v4993_v37 }
 0x252   : > { %v2428_v30 = vadd.f32 %v2427_v9, %v2394_v45  ;;  %v2396_v35 = vpop.f32.mrf.mxu0  ;;  %v5241_v45 = vld [vmem:[%s5430_s30 + $0x3c] sm:$0xf0] }
 0x253   : > { %v2368_v21 = vpop.f32.mrf.mxu3  ;;  %v7209_v8 = vor.u32 %v5241_v45, %v4818_v43  ;;  %v5242_v43 = vld [vmem:[%s5430_s30 + $0x4c] sm:$0xf] }
 0x254   : > { %v7180_v49 = vadd.f32 %v2428_v30, %v6900_v23  ;;  %v2369_v40 = vadd.f32 %v2368_v21, %v2335_v4  ;;  %v5275_v4 = vld [vmem:[%s7581_s4 + $0x554] sm:$0xf0]  ;;  %v3002_v30 = vshrl.u32 %v7150_v38, 16 }
 0x255   : > { %v2338_v58 = vpop.f32.mrf.mxu1  ;;  %v4985_v17 = vor.u32 %v5275_v4, %v4984_v51  ;;  %v4826_v51 = vld [vmem:[%s5430_s30 + $0x48] sm:$0xf]  ;;  %v5243_v4 = vld [vmem:[%s5430_s30 + $0x4c] sm:$0x10] }
 0x256   : > { %v7190_v27 = vadd.f32 %v2369_v40, %v6910_v61  ;;  %v5274_v61 = vld [vmem:[%s7581_s4 + $0x554] sm:$0xf]  ;;  %v3004_v21 = vor.u32 %v3002_v30, %v2992_v54  ;;  %v3008_v40 = vrot.slane %v3006_v60, 1 }
 0x257   : > { %v4989_v44 = vor.u32 %v5274_v61, %v4986_v7  ;;  %3470 = vmatpush.bf16.msra.mxu1 %v4985_v17  ;;  %v5272_v61 = vld [vmem:[%s7581_s4 + $0x544] sm:$0xf]  ;;  %v4978_v7 = vld [vmem:[%s7581_s4 + $0x548] sm:$0xf0] }
 0x258   : > { %4913 = vmatmul.msk.bf16.gmra.mxu3 %vm514_vm0, %v7183_v10  ;;  %3165 = vmatmul.bf16.gmra.mxu1 %v7186_v39  ;;  %v7232_v45 = vsel %vm1022_vm1, %v3004_v21, %v3008_v40 }
 0x259   : > { %v2429_v28 = vpop.f32.mrf.mxu2  ;;  %3536 = vmatpush.bf16.msra.mxu0 %v4989_v44  ;;  %v4981_v44 = vor.u32 %v5272_v61, %v4978_v7 }
 0x25a   : > { %v2430_v23 = vadd.f32 %v2429_v28, %v2396_v35  ;;  %v2399_v57 = vpop.f32.mrf.mxu0  ;;  %v2994_v35 = vshrl.u32 %v7152_v50, 16 }
 0x25b   : > { %v2371_v9 = vpop.f32.mrf.mxu3 }
 0x25c   : > { %v7215_v11 = vadd.f32 %v2430_v23, %v6935_v41  ;;  %v2372_v37 = vadd.f32 %v2371_v9, %v2338_v58  ;;  %v2998_v41 = vshll.u32 %v7209_v8, 16  ;;  %v2996_v38 = vor.u32 %v2994_v35, %v2984_v56  ;;  %v4828_v23 = vld [vmem:[%s5430_s30 + $0x50] sm:$0x10]  ;;  %v5273_v56 = vld [vmem:[%s7581_s4 + $0x544] sm:$0xf0] }
 0x25d   : > { %3226 = vmatmul.bf16.vlgmr.msrb.gmra.mxu0 %v7127_v29  ;;  %v2340_v0 = vpop.f32.mrf.mxu1  ;;  %v5008_v9 = vld [vmem:[%s7581_s4 + $0x580] sm:$0xf]  ;;  %v7267_v60 = vor.u32 %v5242_v43, %v4828_v23  ;;  %v7269_v35 = vor.u32 %v5243_v4, %v4826_v51  ;;  %v4970_v4 = vld [vmem:[%s7581_s4 + $0x538] sm:$0xf0] }
 0x25e   : > { %4917 = vmatmul.msk.bf16.vlgmr.msrb.gmra.mxu2 %vm514_vm0, %v7124_v32  ;;  %v7225_v24 = vadd.f32 %v2372_v37, %v6945_v62  ;;  %v3000_v58 = vrot.slane %v2998_v41, 1  ;;  %v5281_v37 = vld [vmem:[%s7581_s4 + $0x584] sm:$0xf0]  ;;  %3537 = vmatpush.bf16.msra.mxu0 %v4981_v44 }
 0x25f   : > { %v5009_v41 = vor.u32 %v5281_v37, %v5008_v9  ;;  %v3022_v23 = vshll.u32 %v7267_v60, 16 }
 0x260   : > { %v7235_v28 = vsel %vm1022_vm1, %v2996_v38, %v3000_v58 }
 0x261   : > { %v2432_v29 = vpop.f32.mrf.mxu2  ;;  %3508 = vmatpush.bf16.msra.mxu3 %v5009_v41  ;;  %v3024_v7 = vrot.slane %v3022_v23, 1  ;;  %v5265_v23 = vld [vmem:[%s7581_s4 + $0x504] sm:$0xf0] }
 0x262   : > { %v2433_v1 = vadd.f32 %v2432_v29, %v2399_v57  ;;  %v2401_v32 = vpop.f32.mrf.mxu0  ;;  %v5010_v29 = vld [vmem:[%s7581_s4 + $0x588] sm:$0xf0] }
 0x263   : > { %v2373_v50 = vpop.f32.mrf.mxu3 }
 0x264   : > { %v7228_v26 = vadd.f32 %v2433_v1, %v6948_v52  ;;  %v2374_v55 = vadd.f32 %v2373_v50, %v2340_v0  ;;  %v4976_v52 = vld [vmem:[%s7581_s4 + $0x540] sm:$0xf]  ;;  %v5280_v0 = vld [vmem:[%s7581_s4 + $0x584] sm:$0xf]  ;;  %v3018_v50 = vshrl.u32 %v7207_v33, 16 }
 0x265   : > { %v2343_v62 = vpop.f32.mrf.mxu1  ;;  %v4977_v17 = vor.u32 %v5273_v56, %v4976_v52  ;;  %v5270_v33 = vld [vmem:[%s7581_s4 + $0x534] sm:$0xf] }
 0x266   : > { %v7241_v54 = vadd.f32 %v2374_v55, %v6961_v63  ;;  %v4968_v55 = vld [vmem:[%s7581_s4 + $0x530] sm:$0xf]  ;;  %v4973_v56 = vor.u32 %v5270_v33, %v4970_v4 }
 0x267   : > { %3471 = vmatpush.bf16.msra.mxu1 %v4977_v17 }
 0x268   : > { %4914 = vmatmul.msk.bf16.gmra.mxu3 %vm514_vm0, %v7232_v45  ;;  %3170 = vmatmul.bf16.gmra.mxu1 %v7235_v28 }
 0x269   : > { %v2434_v57 = vpop.f32.mrf.mxu2  ;;  %3538 = vmatpush.bf16.msra.mxu0 %v4973_v56  ;;  %v5266_v56 = vld [vmem:[%s7581_s4 + $0x514] sm:$0xf] }
 0x26a   : > { %v2435_v63 = vadd.f32 %v2434_v57, %v2401_v32  ;;  %v2404_v30 = vpop.f32.mrf.mxu0  ;;  %v5013_v32 = vor.u32 %v5280_v0, %v5010_v29  ;;  %v4960_v57 = vld [vmem:[%s7581_s4 + $0x520] sm:$0xf] }
 0x26b   : > { %v2376_v21 = vpop.f32.mrf.mxu3 }
 0x26c   : > { %v7275_v1 = vadd.f32 %v2435_v63, %v6995_v19  ;;  %v2377_v38 = vadd.f32 %v2376_v21, %v2343_v62  ;;  %v5271_v19 = vld [vmem:[%s7581_s4 + $0x534] sm:$0xf0]  ;;  %v3010_v62 = vshrl.u32 %v7209_v8, 16  ;;  %3574 = vmatpush.bf16.msra.mxu2 %v5013_v32  ;;  %v3020_v8 = vor.u32 %v3018_v50, %v3008_v40  ;;  %v4952_v40 = vld [vmem:[%s7581_s4 + $0x510] sm:$0xf] }
 0x26d   : > { %3231 = vmatmul.bf16.gmra.mxu0 %v7186_v39  ;;  %v2345_v43 = vpop.f32.mrf.mxu1  ;;  %v3014_v39 = vshll.u32 %v7269_v35, 16  ;;  %v4969_v51 = vor.u32 %v5271_v19, %v4968_v55  ;;  %v4962_v50 = vld [vmem:[%s7581_s4 + $0x528] sm:$0xf0]  ;;  %v4944_v55 = vld [vmem:[%s7581_s4 + $0x500] sm:$0xf] }
 0x26e   : > { %4918 = vmatmul.msk.bf16.gmra.mxu2 %vm514_vm0, %v7183_v10  ;;  %v7291_v10 = vadd.f32 %v2377_v38, %v7011_v59  ;;  %v5269_v59 = vld [vmem:[%s7581_s4 + $0x524] sm:$0xf0]  ;;  %v3012_v63 = vor.u32 %v3010_v62, %v3000_v58  ;;  %v3025_v41 = vsel %vm1022_vm1, %v3020_v8, %v3024_v7  ;;  %v5268_v38 = vld [vmem:[%s7581_s4 + $0x524] sm:$0xf] }
 0x26f   : > { %3472 = vmatpush.bf16.msra.mxu1 %v4969_v51  ;;  %v3016_v44 = vrot.slane %v3014_v39, 1  ;;  %v4961_v9 = vor.u32 %v5269_v59, %v4960_v57  ;;  %v4965_v43 = vor.u32 %v5268_v38, %v4962_v50  ;;  %v4945_v39 = vor.u32 %v5265_v23, %v4944_v55 }
 0x270   : > { %v3029_v57 = vshrl.u32 %v7267_v60, 16 }
 0x271   : > { %v2437_v52 = vpop.f32.mrf.mxu2  ;;  %v3017_v58 = vsel %vm1022_vm1, %v3012_v63, %v3016_v44  ;;  %3539 = vmatpush.bf16.msra.mxu0 %v4965_v43 }
 0x272   : > { %v2438_v61 = vadd.f32 %v2437_v52, %v2404_v30  ;;  %v2406_v17 = vpop.f32.mrf.mxu0  ;;  %v5267_v30 = vld [vmem:[%s7581_s4 + $0x514] sm:$0xf0] }
 0x273   : > { %v2378_v0 = vpop.f32.mrf.mxu3  ;;  %3473 = vmatpush.bf16.msra.mxu1 %v4961_v9  ;;  %v4953_v32 = vor.u32 %v5267_v30, %v4952_v40  ;;  %v3031_v9 = vor.u32 %v3029_v57, %v3024_v7  ;;  %v4946_v7 = vld [vmem:[%s7581_s4 + $0x508] sm:$0xf0] }
 0x274   : > { %v7306_v37 = vadd.f32 %v2438_v61, %v7026_v3 }
 0x275   : > { %v2742_v29 = vpop.f32.mrf.mxu1 }
 0x277   : > { %3474 = vmatpush.bf16.msra.mxu1 %v4953_v32 }
 0x278   : > { %4915 = vmatmul.msk.bf16.gmra.mxu3 %vm514_vm0, %v3025_v41  ;;  %3175 = vmatmul.bf16.gmra.mxu1 %v3017_v58 }
 0x279   : > { %v2439_v21 = vpop.f32.mrf.mxu2 }
 0x27a   : > { %v2440_v3 = vadd.f32 %v2439_v21, %v2406_v17  ;;  %v2409_v19 = vpop.f32.mrf.mxu0 }
 0x27b   : > { %v2775_v51 = vpop.f32.mrf.mxu3  ;;  %3475 = vmatpush.bf16.msra.mxu1 %v4945_v39 }
 0x27c   : > { %v7330_v62 = vadd.f32 %v2440_v3, %v7053_v22  ;;  %v2776_v33 = vadd.f32 %v2775_v51, %v2742_v29  ;;  %v4954_v22 = vld [vmem:[%s7581_s4 + $0x518] sm:$0xf0]  ;;  %v3302_v29 = vld [vmem:[%s5640_s7 + $0x8] sm:$0xee] }
 0x27d   : > { %3236 = vmatmul.bf16.gmra.mxu0 %v7235_v28  ;;  %v2744_v4 = vpop.f32.mrf.mxu1  ;;  %v4957_v8 = vor.u32 %v5266_v56, %v4954_v22  ;;  %v3325_v21 = vunpack.c.l.b16 %v3302_v29 }
 0x27e   : > { %4919 = vmatmul.msk.bf16.gmra.mxu2 %vm514_vm0, %v7232_v45  ;;  %v7336_v52 = vadd.f32 %v2776_v33, %v7059_v47  ;;  %v3026_v45 = vshrl.u32 %v7269_v35, 16  ;;  %v3326_v35 = vunpack.c.h.b16 %v3302_v29  ;;  %v3334_v33 = vrot.slane %v6809_v48, 1 }
 0x27f   : > { %3540 = vmatpush.bf16.msra.mxu0 %v4957_v8  ;;  %v3327_v55 = vpack.c.b16 %v2507_v53, %v3325_v21 }
 0x280   : > { %v3028_v0 = vor.u32 %v3026_v45, %v3016_v44  ;;  %v3328_v50 = vpack.c.b16 %v2508_v20, %v3326_v35 }
 0x281   : > { %v2442_v61 = vpop.f32.mrf.mxu2 }
 0x282   : > { %v2443_v28 = vadd.f32 %v2442_v61, %v2409_v19  ;;  %v2411_v59 = vpop.f32.mrf.mxu0  ;;  %v3333_v51 = vrot.slane %v3328_v50, 1  ;;  %v3340_v50 = vrot.slane %v6929_v36, 1 }
 0x283   : > { %v2777_v17 = vpop.f32.mrf.mxu3 }
 0x284   : > { %v7347_v47 = vadd.f32 %v2443_v28, %v7072_v12  ;;  %v2778_v63 = vadd.f32 %v2777_v17, %v2744_v4  ;;  %v5264_v12 = vld [vmem:[%s7581_s4 + $0x504] sm:$0xf]  ;;  %v3335_v53 = vsel %vm3329_vm2, %v3333_v51, %v3334_v33 }
 0x285   : > { %v2747_v40 = vpop.f32.mrf.mxu1  ;;  %v4949_v3 = vor.u32 %v5264_v12, %v4946_v7 }
 0x286   : > { %v7350_v30 = vadd.f32 %v2778_v63, %v7082_v25  ;;  %v3338_v63 = vrot.slane %v6870_v42, 1 }
 0x287   : > { %3541 = vmatpush.bf16.msra.mxu0 %v4949_v3 }
 0x288   : > { %4916 = vmatmul.msk.bf16.gmra.mxu3 %vm514_vm0, %v3031_v9  ;;  %3180 = vmatmul.bf16.gmra.mxu1 %v3028_v0 }
 0x289   : > { %v2444_v32 = vpop.f32.mrf.mxu2 }
 0x28a   : > { %v2808_v60 = vpop.f32.mrf.mxu0 }
 0x28b   : > { %v2780_v44 = vpop.f32.mrf.mxu3 }
 0x28c   : > { %v2781_v25 = vadd.f32 %v2780_v44, %v2747_v40  ;;  %v3336_v40 = vrot.slane %v6872_v6, 1 }
 0x28d   : > { %3241 = vmatmul.bf16.gmra.mxu0 %v3017_v58  ;;  %v2749_v38 = vpop.f32.mrf.mxu1  ;;  %v3330_v58 = vrot.slane %v3327_v55, 1 }
 0x28e   : > { %4920 = vmatmul.msk.bf16.gmra.mxu2 %vm514_vm0, %v3025_v41  ;;  %v7366_v19 = vadd.f32 %v2781_v25, %v7105_v5  ;;  %v3331_v41 = vrot.slane %v6811_v15, 1  ;;  %v3341_v51 = vsel %vm3329_vm2, %v3336_v40, %v3340_v50 }
 0x290   : > { %v3332_v5 = vsel %vm3329_vm2, %v3330_v58, %v3331_v41 }
 0x291   : > { %v2841_v43 = vpop.f32.mrf.mxu2 }
 0x292   : > { %v2842_v23 = vadd.f32 %v2841_v43, %v2808_v60  ;;  %v2810_v39 = vpop.f32.mrf.mxu0 }
 0x293   : > { %v2782_v20 = vpop.f32.mrf.mxu3 }
 0x294   : > { %v7371_v4 = vadd.f32 %v2842_v23, %v7120_v14  ;;  %v2783_v2 = vadd.f32 %v2782_v20, %v2749_v38  ;;  %v3342_v38 = vrot.slane %v6927_v13, 1 }
 0x295   : > { %v2752_v56 = vpop.f32.mrf.mxu1 }
 0x296   : > { %v7376_v22 = vadd.f32 %v2783_v2, %v7133_v34  ;;  %v3343_v23 = vsel %vm3329_vm2, %v3338_v63, %v3342_v38 }
 0x298   : > { %5022 = vmatmul.msk.bf16.vlgmr.msra.gmra.mxu3 %vm514_vm0, %v3335_v53  ;;  %3476 = vmatmul.bf16.vlgmr.msra.gmra.mxu1 %v3332_v5 }
 0x299   : > { %v2843_v61 = vpop.f32.mrf.mxu2 }
 0x29a   : > { %v2844_v48 = vadd.f32 %v2843_v61, %v2810_v39  ;;  %v2813_v15 = vpop.f32.mrf.mxu0  ;;  %v3344_v61 = vrot.slane %v6989_v18, 1 }
 0x29b   : > { %v2785_v8 = vpop.f32.mrf.mxu3 }
 0x29c   : > { %v7380_v14 = vadd.f32 %v2844_v48, %v7155_v16  ;;  %v2786_v28 = vadd.f32 %v2785_v8, %v2752_v56 }
 0x29d   : > { %3246 = vmatmul.bf16.gmra.mxu0 %v3028_v0  ;;  %v2754_v57 = vpop.f32.mrf.mxu1  ;;  %v3339_v0 = vsel %vm3329_vm2, %v3334_v33, %v3338_v63 }
 0x29e   : > { %4921 = vmatmul.msk.bf16.gmra.mxu2 %vm514_vm0, %v3031_v9  ;;  %v7384_v45 = vadd.f32 %v2786_v28, %v7165_v31  ;;  %v3337_v9 = vsel %vm3329_vm2, %v3331_v41, %v3336_v40  ;;  %v3345_v28 = vsel %vm3329_vm2, %v3340_v50, %v3344_v61 }
 0x2a1   : > { %v2846_v34 = vpop.f32.mrf.mxu2 }
 0x2a2   : > { %v2847_v59 = vadd.f32 %v2846_v34, %v2813_v15  ;;  %v2815_v17 = vpop.f32.mrf.mxu0 }
 0x2a3   : > { %v2787_v16 = vpop.f32.mrf.mxu3 }
 0x2a4   : > { %v7389_v29 = vadd.f32 %v2847_v59, %v7180_v49  ;;  %v2788_v32 = vadd.f32 %v2787_v16, %v2754_v57 }
 0x2a5   : > { %v2757_v60 = vpop.f32.mrf.mxu1 }
 0x2a6   : > { %v7394_v31 = vadd.f32 %v2788_v32, %v7190_v27 }
 0x2a8   : > { %5023 = vmatmul.msk.bf16.gmra.mxu3 %vm514_vm0, %v3339_v0  ;;  %3481 = vmatmul.bf16.gmra.mxu1 %v3337_v9 }
 0x2a9   : > { %v2848_v35 = vpop.f32.mrf.mxu2 }
 0x2aa   : > { %v2849_v21 = vadd.f32 %v2848_v35, %v2815_v17  ;;  %v2818_v42 = vpop.f32.mrf.mxu0 }
 0x2ab   : > { %v2790_v49 = vpop.f32.mrf.mxu3 }
 0x2ac   : > { %v7398_v6 = vadd.f32 %v2849_v21, %v7215_v11  ;;  %v2791_v12 = vadd.f32 %v2790_v49, %v2757_v60 }
 0x2ad   : > { %3542 = vmatmul.bf16.vlgmr.msra.gmra.mxu0 %v3332_v5  ;;  %v2759_v7 = vpop.f32.mrf.mxu1  ;;  %v3346_v5 = vrot.slane %v6987_v46, 1 }
 0x2ae   : > { %5027 = vmatmul.msk.bf16.vlgmr.msra.gmra.mxu2 %vm514_vm0, %v3335_v53  ;;  %v7402_v44 = vadd.f32 %v2791_v12, %v7225_v24 }
 0x2af   : > { %v3347_v15 = vsel %vm3329_vm2, %v3342_v38, %v3346_v5 }
 0x2b1   : > { %v2851_v27 = vpop.f32.mrf.mxu2 }
 0x2b2   : > { %v2852_v3 = vadd.f32 %v2851_v27, %v2818_v42  ;;  %v2820_v25 = vpop.f32.mrf.mxu0 }
 0x2b3   : > { %v2792_v11 = vpop.f32.mrf.mxu3 }
 0x2b4   : > { %v7407_v55 = vadd.f32 %v2852_v3, %v7228_v26  ;;  %v2793_v43 = vadd.f32 %v2792_v11, %v2759_v7 }
 0x2b5   : > { %v2762_v39 = vpop.f32.mrf.mxu1 }
 0x2b6   : > { %v7412_v24 = vadd.f32 %v2793_v43, %v7241_v54 }
 0x2b8   : > { %5024 = vmatmul.msk.bf16.gmra.mxu3 %vm514_vm0, %v3343_v23  ;;  %3486 = vmatmul.bf16.gmra.mxu1 %v3341_v51 }
 0x2b9   : > { %v2853_v33 = vpop.f32.mrf.mxu2 }
 0x2ba   : > { %v2854_v58 = vadd.f32 %v2853_v33, %v2820_v25  ;;  %v2823_v13 = vpop.f32.mrf.mxu0 }
 0x2bb   : > { %v2795_v26 = vpop.f32.mrf.mxu3 }
 0x2bc   : > { %v7416_v36 = vadd.f32 %v2854_v58, %v7275_v1  ;;  %v2796_v41 = vadd.f32 %v2795_v26, %v2762_v39 }
 0x2bd   : > { %3547 = vmatmul.bf16.gmra.mxu0 %v3337_v9  ;;  %v2764_v20 = vpop.f32.mrf.mxu1 }
 0x2be   : > { %5028 = vmatmul.msk.bf16.gmra.mxu2 %vm514_vm0, %v3339_v0  ;;  %v7420_v2 = vadd.f32 %v2796_v41, %v7291_v10 }
 0x2c1   : > { %v2856_v54 = vpop.f32.mrf.mxu2 }
 0x2c2   : > { %v2857_v53 = vadd.f32 %v2856_v54, %v2823_v13  ;;  %v2825_v56 = vpop.f32.mrf.mxu0 }
 0x2c3   : > { %v2797_v1 = vpop.f32.mrf.mxu3 }
 0x2c4   : > { %v7425_v48 = vadd.f32 %v2857_v53, %v7306_v37 }
 0x2c5   : > { %v3161_v8 = vpop.f32.mrf.mxu1 }
 0x2c8   : > { %5025 = vmatmul.msk.bf16.gmra.mxu3 %vm514_vm0, %v3347_v15  ;;  %3491 = vmatmul.bf16.gmra.mxu1 %v3345_v28 }
 0x2c9   : > { %v2858_v57 = vpop.f32.mrf.mxu2 }
 0x2ca   : > { %v2859_v10 = vadd.f32 %v2858_v57, %v2825_v56  ;;  %v2828_v34 = vpop.f32.mrf.mxu0 }
 0x2cb   : > { %v3194_v46 = vpop.f32.mrf.mxu3 }
 0x2cc   : > { %v7431_v59 = vadd.f32 %v2859_v10, %v7330_v62  ;;  %v3195_v18 = vadd.f32 %v3194_v46, %v3161_v8 }
 0x2cd   : > { %3552 = vmatmul.bf16.gmra.mxu0 %v3341_v51  ;;  %v3163_v37 = vpop.f32.mrf.mxu1 }
 0x2ce   : > { %5029 = vmatmul.msk.bf16.gmra.mxu2 %vm514_vm0, %v3343_v23  ;;  %v7435_v17 = vadd.f32 %v3195_v18, %v7336_v52 }
 0x2d1   : > { %v2861_v63 = vpop.f32.mrf.mxu2 }
 0x2d2   : > { %v2862_v40 = vadd.f32 %v2861_v63, %v2828_v34  ;;  %v2830_v16 = vpop.f32.mrf.mxu0 }
 0x2d3   : > { %v3196_v0 = vpop.f32.mrf.mxu3 }
 0x2d4   : > { %v7438_v32 = vadd.f32 %v2862_v40, %v7347_v47  ;;  %v3197_v60 = vadd.f32 %v3196_v0, %v3163_v37 }
 0x2d5   : > { %v3166_v9 = vpop.f32.mrf.mxu1 }
 0x2d6   : > { %v7441_v62 = vadd.f32 %v3197_v60, %v7350_v30 }
 0x2d8   : > { %5026 = vmatmul.msk.bf16.gmra.mxu3 %vm514_vm0, %v3346_v5  ;;  %3496 = vmatmul.bf16.gmra.mxu1 %v3344_v61 }
 0x2d9   : > { %v2863_v35 = vpop.f32.mrf.mxu2 }
 0x2da   : > { %v3227_v21 = vpop.f32.mrf.mxu0 }
 0x2db   : > { %v3199_v42 = vpop.f32.mrf.mxu3 }
 0x2dc   : > { %v3200_v52 = vadd.f32 %v3199_v42, %v3166_v9 }
 0x2dd   : > { %3557 = vmatmul.bf16.gmra.mxu0 %v3345_v28  ;;  %v3168_v49 = vpop.f32.mrf.mxu1 }
 0x2de   : > { %5030 = vmatmul.msk.bf16.gmra.mxu2 %vm514_vm0, %v3347_v15  ;;  %v7446_v47 = vadd.f32 %v3200_v52, %v7366_v19 }
 0x2e1   : > { %v3260_v12 = vpop.f32.mrf.mxu2 }
 0x2e2   : > { %v3261_v7 = vadd.f32 %v3260_v12, %v3227_v21  ;;  %v3229_v27 = vpop.f32.mrf.mxu0 }
 0x2e3   : > { %v3201_v3 = vpop.f32.mrf.mxu3 }
 0x2e4   : > { %v7449_v30 = vadd.f32 %v3261_v7, %v7371_v4  ;;  %v3202_v25 = vadd.f32 %v3201_v3, %v3168_v49 }
 0x2e5   : > { %v3171_v38 = vpop.f32.mrf.mxu1 }
 0x2e6   : > { %v7452_v50 = vadd.f32 %v3202_v25, %v7376_v22 }
 0x2e9   : > { %v3262_v11 = vpop.f32.mrf.mxu2 }
 0x2ea   : > { %v3263_v43 = vadd.f32 %v3262_v11, %v3229_v27  ;;  %v3232_v23 = vpop.f32.mrf.mxu0 }
 0x2eb   : > { %v3204_v19 = vpop.f32.mrf.mxu3 }
 0x2ec   : > { %v7455_v39 = vadd.f32 %v3263_v43, %v7380_v14  ;;  %v3205_v51 = vadd.f32 %v3204_v19, %v3171_v38 }
 0x2ed   : > { %3562 = vmatmul.bf16.gmra.mxu0 %v3344_v61  ;;  %v3173_v33 = vpop.f32.mrf.mxu1 }
 0x2ee   : > { %5031 = vmatmul.msk.bf16.gmra.mxu2 %vm514_vm0, %v3346_v5  ;;  %v7459_v4 = vadd.f32 %v3205_v51, %v7384_v45  ;;  %v3618_v51 = vld [vmem:[%s7582_s5] sm:$0x3] }
 0x2f1   : > { %v3265_v58 = vpop.f32.mrf.mxu2 }
 0x2f2   : > { %v3266_v13 = vadd.f32 %v3265_v58, %v3232_v23  ;;  %v3234_v26 = vpop.f32.mrf.mxu0 }
 0x2f3   : > { %v3206_v41 = vpop.f32.mrf.mxu3 }
 0x2f4   : > { %v7462_v22 = vadd.f32 %v3266_v13, %v7389_v29  ;;  %v3207_v20 = vadd.f32 %v3206_v41, %v3173_v33  ;;  %v7498_v13 = vperm.slane %v3618_v51, 0 }
 0x2f5   : > { %v3176_v54 = vpop.f32.mrf.mxu1 }
 0x2f6   : > { %v7465_v14 = vadd.f32 %v3207_v20, %v7394_v31 }
 0x2f9   : > { %v3267_v53 = vpop.f32.mrf.mxu2 }
 0x2fa   : > { %v3268_v56 = vadd.f32 %v3267_v53, %v3234_v26  ;;  %v3237_v61 = vpop.f32.mrf.mxu0 }
 0x2fb   : > { %v3209_v45 = vpop.f32.mrf.mxu3 }
 0x2fc   : > { %v7468_v5 = vadd.f32 %v3268_v56, %v7398_v6  ;;  %v3210_v1 = vadd.f32 %v3209_v45, %v3176_v54 }
 0x2fd   : > { %v3178_v15 = vpop.f32.mrf.mxu1 }
 0x2fe   : > { %v7471_v8 = vadd.f32 %v3210_v1, %v7402_v44 }
 0x301   : > { %v3270_v29 = vpop.f32.mrf.mxu2 }
 0x302   : > { %v3271_v28 = vadd.f32 %v3270_v29, %v3237_v61  ;;  %v3239_v57 = vpop.f32.mrf.mxu0 }
 0x303   : > { %v3211_v31 = vpop.f32.mrf.mxu3 }
 0x304   : > { %v7474_v10 = vadd.f32 %v3271_v28, %v7407_v55  ;;  %v3212_v34 = vadd.f32 %v3211_v31, %v3178_v15 }
 0x305   : > { %v3181_v46 = vpop.f32.mrf.mxu1 }
 0x306   : > { %v7477_v18 = vadd.f32 %v3212_v34, %v7412_v24 }
 0x309   : > { %v3272_v6 = vpop.f32.mrf.mxu2 }
 0x30a   : > { %v3273_v37 = vadd.f32 %v3272_v6, %v3239_v57  ;;  %v3242_v63 = vpop.f32.mrf.mxu0 }
 0x30b   : > { %v3214_v44 = vpop.f32.mrf.mxu3 }
 0x30c   : > { %v7480_v40 = vadd.f32 %v3273_v37, %v7416_v36  ;;  %v3215_v16 = vadd.f32 %v3214_v44, %v3181_v46 }
 0x30d   : > { %v3183_v0 = vpop.f32.mrf.mxu1 }
 0x30e   : > { %v7483_v60 = vadd.f32 %v3215_v16, %v7420_v2 }
 0x311   : > { %v3275_v55 = vpop.f32.mrf.mxu2 }
 0x312   : > { %v3276_v9 = vadd.f32 %v3275_v55, %v3242_v63  ;;  %v3244_v35 = vpop.f32.mrf.mxu0 }
 0x313   : > { %v3216_v24 = vpop.f32.mrf.mxu3 }
 0x314   : > { %v7486_v21 = vadd.f32 %v3276_v9, %v7425_v48 }
 0x315   : > { %v3477_v42 = vpop.f32.mrf.mxu1 }
 0x319   : > { %v3277_v52 = vpop.f32.mrf.mxu2 }
 0x31a   : > { %v3278_v49 = vadd.f32 %v3277_v52, %v3244_v35  ;;  %v3247_v12 = vpop.f32.mrf.mxu0 }
 0x31b   : > { %v3510_v7 = vpop.f32.mrf.mxu3 }
 0x31c   : > { %v7489_v36 = vadd.f32 %v3278_v49, %v7431_v59  ;;  %v3511_v19 = vadd.f32 %v3510_v7, %v3477_v42 }
 0x31d   : > { %v3479_v27 = vpop.f32.mrf.mxu1 }
 0x31e   : > { %v3600_v58 = vadd.f32 %v3511_v19, %v7435_v17 }
 0x320   : > { %v3624_v54 = vadd.f32 %v7498_v13, %v3600_v58 }
 0x321   : > { %v3280_v3 = vpop.f32.mrf.mxu2 }
 0x322   : > { %v3281_v25 = vadd.f32 %v3280_v3, %v3247_v12  ;;  %v3249_v2 = vpop.f32.mrf.mxu0  ;;  %v3642_v17 = vmax.f32 %v3624_v54, 0.0 }
 0x323   : > { %v3512_v11 = vpop.f32.mrf.mxu3 }
 0x324   : > { %v7492_v38 = vadd.f32 %v3281_v25, %v7438_v32  ;;  %v7500_v32 = vperm.slane %v3618_v51, 1  ;;  %v3513_v53 = vadd.f32 %v3512_v11, %v3479_v27 }
 0x325   : > { %v3482_v43 = vpop.f32.mrf.mxu1 }
 0x326   : > { %v3602_v15 = vadd.f32 %v3513_v53, %v7441_v62 }
 0x328   : > { %v3626_v46 = vadd.f32 %v7498_v13, %v3602_v15 }
 0x329   : > { %v3282_v48 = vpop.f32.mrf.mxu2 }
 0x32a   : > { %v3543_v23 = vpop.f32.mrf.mxu0  ;;  %v3644_v16 = vmax.f32 %v3626_v46, 0.0 }
 0x32b   : > { %v3515_v59 = vpop.f32.mrf.mxu3 }
 0x32c   : > { %v3516_v6 = vadd.f32 %v3515_v59, %v3482_v43 }
 0x32d   : > { %v3484_v33 = vpop.f32.mrf.mxu1 }
 0x32e   : > { %v3604_v0 = vadd.f32 %v3516_v6, %v7446_v47 }
 0x330   : > { %v3628_v52 = vadd.f32 %v7498_v13, %v3604_v0 }
 0x331   : > { %v3576_v26 = vpop.f32.mrf.mxu2 }
 0x332   : > { %v3577_v41 = vadd.f32 %v3576_v26, %v3543_v23  ;;  %v3545_v20 = vpop.f32.mrf.mxu0  ;;  %v3646_v3 = vmax.f32 %v3628_v52, 0.0 }
 0x333   : > { %v3517_v61 = vpop.f32.mrf.mxu3 }
 0x334   : > { %v3601_v56 = vadd.f32 %v3577_v41, %v7449_v30  ;;  %v3518_v49 = vadd.f32 %v3517_v61, %v3484_v33 }
 0x335   : > { %v3487_v1 = vpop.f32.mrf.mxu1 }
 0x336   : > { %v3625_v45 = vadd.f32 %v7500_v32, %v3601_v56  ;;  %v3606_v47 = vadd.f32 %v3518_v49, %v7452_v50 }
 0x338   : > { %v3643_v29 = vmax.f32 %v3625_v45, 0.0  ;;  %v3630_v23 = vadd.f32 %v7498_v13, %v3606_v47 }
 0x339   : > { %v3578_v30 = vpop.f32.mrf.mxu2 }
 0x33a   : > { %v3660_v57 = vpack.c.bf16 %v3643_v29, %v3642_v17  ;;  %v3579_v31 = vadd.f32 %v3578_v30, %v3545_v20  ;;  %v3548_v34 = vpop.f32.mrf.mxu0  ;;  %v3648_v58 = vmax.f32 %v3630_v23, 0.0 }
 0x33b   : > { %v3520_v37 = vpop.f32.mrf.mxu3 }
 0x33c   : > { %3672 = vst.msk [vmem:[%s7510_s14] sm:$0xff] %vm7512_vm5, %v3660_v57  ;;  %v3603_v62 = vadd.f32 %v3579_v31, %v7455_v39  ;;  %v3521_v19 = vadd.f32 %v3520_v37, %v3487_v1 }
 0x33d   : > { %v3489_v44 = vpop.f32.mrf.mxu1 }
 0x33e   : > { %v3627_v63 = vadd.f32 %v7500_v32, %v3603_v62  ;;  %v3608_v50 = vadd.f32 %v3521_v19, %v7459_v4 }
 0x340   : > { %v3645_v55 = vmax.f32 %v3627_v63, 0.0  ;;  %v3632_v56 = vadd.f32 %v7498_v13, %v3608_v50 }
 0x341   : > { %v3581_v9 = vpop.f32.mrf.mxu2 }
 0x342   : > { %v3661_v35 = vpack.c.bf16 %v3645_v55, %v3644_v16  ;;  %v3582_v24 = vadd.f32 %v3581_v9, %v3548_v34  ;;  %v3550_v42 = vpop.f32.mrf.mxu0  ;;  %v3650_v15 = vmax.f32 %v3632_v56, 0.0 }
 0x343   : > { %v3522_v12 = vpop.f32.mrf.mxu3 }
 0x344   : > { %3673 = vst.msk [vmem:[%s7510_s14 + $0x8] sm:$0xff] %vm7512_vm5, %v3661_v35  ;;  %v3605_v39 = vadd.f32 %v3582_v24, %v7462_v22  ;;  %v3523_v61 = vadd.f32 %v3522_v12, %v3489_v44 }
 0x345   : > { %v3492_v27 = vpop.f32.mrf.mxu1 }
 0x346   : > { %v3629_v7 = vadd.f32 %v7500_v32, %v3605_v39  ;;  %v3610_v4 = vadd.f32 %v3523_v61, %v7465_v14 }
 0x348   : > { %v3647_v25 = vmax.f32 %v3629_v7, 0.0  ;;  %v3634_v46 = vadd.f32 %v7498_v13, %v3610_v4 }
 0x349   : > { %v3583_v2 = vpop.f32.mrf.mxu2 }
 0x34a   : > { %v3662_v11 = vpack.c.bf16 %v3647_v25, %v3646_v3  ;;  %v3584_v43 = vadd.f32 %v3583_v2, %v3550_v42  ;;  %v3553_v48 = vpop.f32.mrf.mxu0  ;;  %v3652_v14 = vmax.f32 %v3634_v46, 0.0 }
 0x34b   : > { %v3525_v51 = vpop.f32.mrf.mxu3 }
 0x34c   : > { %3674 = vst.msk [vmem:[%s7510_s14 + $0x10] sm:$0xff] %vm7512_vm5, %v3662_v11  ;;  %v3607_v22 = vadd.f32 %v3584_v43, %v7468_v5  ;;  %v3526_v6 = vadd.f32 %v3525_v51, %v3492_v27 }
 0x34d   : > { %v3494_v33 = vpop.f32.mrf.mxu1 }
 0x34e   : > { %v3631_v59 = vadd.f32 %v7500_v32, %v3607_v22  ;;  %v3612_v16 = vadd.f32 %v3526_v6, %v7471_v8 }
 0x350   : > { %v3649_v26 = vmax.f32 %v3631_v59, 0.0 }
 0x351   : > { %v3586_v41 = vpop.f32.mrf.mxu2 }
 0x352   : > { %v3663_v20 = vpack.c.bf16 %v3649_v26, %v3648_v58  ;;  %v3587_v54 = vadd.f32 %v3586_v41, %v3553_v48  ;;  %v3555_v53 = vpop.f32.mrf.mxu0 }
 0x353   : > { %v3527_v45 = vpop.f32.mrf.mxu3 }
 0x354   : > { %3675 = vst.msk [vmem:[%s7510_s14 + $0x18] sm:$0xff] %vm7512_vm5, %v3663_v20  ;;  %v3609_v5 = vadd.f32 %v3587_v54, %v7474_v10  ;;  %v3528_v49 = vadd.f32 %v3527_v45, %v3494_v33 }
 0x355   : > { %v3497_v17 = vpop.f32.mrf.mxu1 }
 0x356   : > { %v3633_v1 = vadd.f32 %v7500_v32, %v3609_v5  ;;  %v3614_v7 = vadd.f32 %v3528_v49, %v7477_v18 }
 0x358   : > { %v3651_v29 = vmax.f32 %v3633_v1, 0.0  ;;  %v3638_v11 = vadd.f32 %v7498_v13, %v3614_v7 }
 0x359   : > { %v3588_v30 = vpop.f32.mrf.mxu2 }
 0x35a   : > { %v3664_v57 = vpack.c.bf16 %v3651_v29, %v3650_v15  ;;  %v3589_v31 = vadd.f32 %v3588_v30, %v3555_v53  ;;  %v3558_v34 = vpop.f32.mrf.mxu0  ;;  %v3656_v48 = vmax.f32 %v3638_v11, 0.0 }
 0x35b   : > { %v3530_v62 = vpop.f32.mrf.mxu3 }
 0x35c   : > { %3676 = vst.msk [vmem:[%s7510_s14 + $0x20] sm:$0xff] %vm7512_vm5, %v3664_v57  ;;  %v3611_v10 = vadd.f32 %v3589_v31, %v7480_v40  ;;  %v3531_v37 = vadd.f32 %v3530_v62, %v3497_v17  ;;  %v3636_v40 = vadd.f32 %v7498_v13, %v3612_v16 }
 0x35d   : > { %v3499_v44 = vpop.f32.mrf.mxu1 }
 0x35e   : > { %v3635_v63 = vadd.f32 %v7500_v32, %v3611_v10  ;;  %v3616_v0 = vadd.f32 %v3531_v37, %v7483_v60  ;;  %v3654_v60 = vmax.f32 %v3636_v40, 0.0 }
 0x360   : > { %v3653_v55 = vmax.f32 %v3635_v63, 0.0  ;;  %v3640_v35 = vadd.f32 %v7498_v13, %v3616_v0 }
 0x361   : > { %v3591_v9 = vpop.f32.mrf.mxu2 }
 0x362   : > { %v3665_v24 = vpack.c.bf16 %v3653_v55, %v3652_v14  ;;  %v3592_v42 = vadd.f32 %v3591_v9, %v3558_v34  ;;  %v3560_v52 = vpop.f32.mrf.mxu0  ;;  %v3658_v33 = vmax.f32 %v3640_v35, 0.0 }
 0x363   : > { %v3532_v12 = vpop.f32.mrf.mxu3 }
 0x364   : > { %3677 = vst.msk [vmem:[%s7510_s14 + $0x28] sm:$0xff] %vm7512_vm5, %v3665_v24  ;;  %v3613_v39 = vadd.f32 %v3592_v42, %v7486_v21 }
 0x366   : > { %v3637_v8 = vadd.f32 %v7500_v32, %v3613_v39 }
 0x368   : > { %v3655_v27 = vmax.f32 %v3637_v8, 0.0 }
 0x369   : > { %v3593_v3 = vpop.f32.mrf.mxu2 }
 0x36a   : > { %v3666_v47 = vpack.c.bf16 %v3655_v27, %v3654_v60  ;;  %v3594_v25 = vadd.f32 %v3593_v3, %v3560_v52  ;;  %v3563_v2 = vpop.f32.mrf.mxu0 }
 0x36c   : > { %3678 = vst.msk [vmem:[%s7510_s14 + $0x30] sm:$0xff] %vm7512_vm5, %v3666_v47  ;;  %v3615_v21 = vadd.f32 %v3594_v25, %v7489_v36 }
 0x36e   : > { %v3639_v43 = vadd.f32 %v7500_v32, %v3615_v21 }
 0x370   : > { %v3657_v23 = vmax.f32 %v3639_v43, 0.0 }
 0x371   : > { %v3596_v19 = vpop.f32.mrf.mxu2 }
 0x372   : > { %v3667_v18 = vpack.c.bf16 %v3657_v23, %v3656_v48  ;;  %v3597_v22 = vadd.f32 %v3596_v19, %v3563_v2  ;;  %v3565_v51 = vpop.f32.mrf.mxu0 }
 0x374   : > { %3679 = vst.msk [vmem:[%s7510_s14 + $0x38] sm:$0xff] %vm7512_vm5, %v3667_v18  ;;  %v3617_v59 = vadd.f32 %v3597_v22, %v7492_v38 }
 0x376   : > { %v3641_v13 = vadd.f32 %v7500_v32, %v3617_v59 }
 0x378   : > { %v3659_v58 = vmax.f32 %v3641_v13, 0.0 }
 0x379   : > { %v3598_v50 = vpop.f32.mrf.mxu2 }
 0x37a   : > { %v3668_v26 = vpack.c.bf16 %v3659_v58, %v3658_v33 }
 0x37c   : > { %3680 = vst.msk [vmem:[%s7510_s14 + $0x40] sm:$0xff] %vm7512_vm5, %v3668_v26 }
 0x37d PF: > { %s16_s21 = sadd.s32 1, %s5300_s21  }
 0x37e   : > { %p13_p4 = scmp.ge.s32.totalorder %s16_s21, 4  }
 0x380   :  { %15 = sbr.rel (!%p13_p4) target bundleno = 1 (0x1), region = 91 }

// kernel: mt_conv_cifar_forward.6
= control target key start
LH: loop header
LB: loop body
LE: loop exit
PB: predicated region body
PF: predicated region fallthrough
CT: control target
= control target key end

     0   :  { %s3819_s21 = smov 0   ;;  %s5298_s0 = inlined_call_operand.vmem [shape: bf16[2,32,160], index: 0, kind: input, shape index: {}]   ;;  %s5299_s1 = inlined_call_operand.vmem [shape: bf16[2,32,160], index: 1, kind: input, shape index: {}]   ;;  %s5300_s2 = inlined_call_operand.vmem [shape: bf16[2,32,160], index: 2, kind: input, shape index: {}]   ;;  %s5301_s3 = inlined_call_operand.vmem [shape: bf16[2,32,160], index: 3, kind: input, shape index: {}]   ;;  %s5302_s4 = inlined_call_operand.vmem [shape: bf16[9,160,160], index: 4, kind: input, shape index: {}]   ;;  %s5303_s5 = inlined_call_operand.vmem [shape: f32[1,160], index: 5, kind: input, shape index: {}]   ;;  %s5304_s6 = inlined_call_operand.vmem [shape: bf16[2,24,160], index: 6, kind: output, shape index: {}]  }
   0x1 LB: > { %s2561_s22 = sadd.s32 4294967295, %s3782_s21   ;;  %p2565_p0 = scmp.ge.s32.totalorder %s3782_s21, 1  ;;  %s3782_s21 = sphi %s3819_s21, %s16_s21  }
   0x2   : > { %p242_p1 = scmp.lt.s32.totalorder %s3782_s21, 3 }
   0x4   : > { %p243_p2 = pnand %p2565_p0, %p242_p1 }
   0x5   : > { %p287_p3 = scmp.lt.s32.totalorder (!%p243_p2), %s2561_s22, 1 }
   0x6   : > { %246 = sbr.rel (%p243_p2) target bundleno = 462 (0x1ce), region = 44 }
   0xb   : > { %v2661_v0 = vld [vmem:[%s5302_s4 + $0x110] sm:$0xf]  ;;  %v3600_v1 = vld [vmem:[%s5302_s4 + $0x114] sm:$0xf0]  ;;  %v3599_v5 = vld [vmem:[%s5302_s4 + $0x114] sm:$0xf] }
   0xc   : > { %v2677_v2 = vld [vmem:[%s5302_s4 + $0x130] sm:$0xf]  ;;  %v2662_v3 = vor.u32 %v3600_v1, %v2661_v0  ;;  %v3604_v4 = vld [vmem:[%s5302_s4 + $0x134] sm:$0xf0]  ;;  %v2663_v6 = vld [vmem:[%s5302_s4 + $0x118] sm:$0xf0] }
   0xd   : > { %v2678_v7 = vor.u32 %v3604_v4, %v2677_v2  ;;  %v2666_v8 = vor.u32 %v3599_v5, %v2663_v6  ;;  %v3603_v9 = vld [vmem:[%s5302_s4 + $0x134] sm:$0xf]  ;;  %v2679_v10 = vld [vmem:[%s5302_s4 + $0x138] sm:$0xf0]  ;;  %v2653_v11 = vld [vmem:[%s5302_s4 + $0x100] sm:$0xf] }
   0xe   : > { %482 = vmatpush.bf16.msra.mxu0 %v2662_v3  ;;  %v2682_v12 = vor.u32 %v3603_v9, %v2679_v10  ;;  %v3598_v13 = vld [vmem:[%s5302_s4 + $0x104] sm:$0xf0]  ;;  %v2669_v14 = vld [vmem:[%s5302_s4 + $0x120] sm:$0xf]  ;;  %v3597_v18 = vld [vmem:[%s5302_s4 + $0x104] sm:$0xf] }
   0xf   : > { %v3602_v15 = vld [vmem:[%s5302_s4 + $0x124] sm:$0xf0]  ;;  %506 = vmatpush.bf16.msra.mxu1 %v2678_v7  ;;  %518 = vmatpush.bf16.msra.mxu2 %v2666_v8  ;;  %v2654_v16 = vor.u32 %v3598_v13, %v2653_v11  ;;  %v2655_v19 = vld [vmem:[%s5302_s4 + $0x108] sm:$0xf0]  ;;  %v3601_v20 = vld [vmem:[%s5302_s4 + $0x124] sm:$0xf] }
  0x10   : > { %v2670_v17 = vor.u32 %v3602_v15, %v2669_v14  ;;  %542 = vmatpush.bf16.msra.mxu3 %v2682_v12  ;;  %v2658_v21 = vor.u32 %v3597_v18, %v2655_v19  ;;  %v2671_v22 = vld [vmem:[%s5302_s4 + $0x128] sm:$0xf0]  ;;  %v2769_v23 = vld [vmem:[%s5302_s4 + $0x90] sm:$0xf]  ;;  %v3582_v25 = vld [vmem:[%s5302_s4 + $0x94] sm:$0xf0] }
  0x11   : > { %v2674_v24 = vor.u32 %v3601_v20, %v2671_v22  ;;  %v2645_v26 = vld [vmem:[%s5302_s4 + $0xf0] sm:$0xf]  ;;  %v3596_v27 = vld [vmem:[%s5302_s4 + $0xf4] sm:$0xf0]  ;;  %s5308_s22 = smov (!%p287_p3, %s2561_s22), 1  ;;  %v2770_v28 = vor.u32 %v3582_v25, %v2769_v23  ;;  %vm475_vm0 = vcmask 261120  }
  0x12   : > { %483 = vmatpush.bf16.msra.mxu0 %v2654_v16  ;;  %v2646_v29 = vor.u32 %v3596_v27, %v2645_v26  ;;  %v3595_v30 = vld [vmem:[%s5302_s4 + $0xf4] sm:$0xf]  ;;  %v2647_v31 = vld [vmem:[%s5302_s4 + $0xf8] sm:$0xf0]  ;;  %v2753_v33 = vld [vmem:[%s5302_s4 + $0x70] sm:$0xf] }
  0x13   : > { %507 = vmatpush.bf16.msra.mxu1 %v2670_v17  ;;  %519 = vmatpush.bf16.msra.mxu2 %v2658_v21  ;;  %v2650_v32 = vor.u32 %v3595_v30, %v2647_v31  ;;  %v3578_v34 = vld [vmem:[%s5302_s4 + $0x74] sm:$0xf0]  ;;  %v2637_v35 = vld [vmem:[%s5302_s4 + $0xe0] sm:$0xf]  ;;  %s3909_s29 = sshll.u32 %s5308_s22, 5  ;;  %vm2250_vm3 = vcmask 1044480  }
  0x14   : > { %543 = vmatpush.bf16.msra.mxu3 %v2674_v24  ;;  %v2754_v36 = vor.u32 %v3578_v34, %v2753_v33  ;;  %v3594_v37 = vld [vmem:[%s5302_s4 + $0xe4] sm:$0xf0]  ;;  %v3593_v38 = vld [vmem:[%s5302_s4 + $0xe4] sm:$0xf]  ;;  %s3921_s12 = scalar_lea.vmem %s5299_s1, %s3909_s29  ;;  %v2639_v39 = vld [vmem:[%s5302_s4 + $0xe8] sm:$0xf0]  ;;  %s4074_s27 = scalar_lea.vmem %s5298_s0, %s3909_s29 }
  0x15   : > { %v2745_v40 = vld [vmem:[%s5302_s4 + $0x60] sm:$0xf]  ;;  %v3576_v41 = vld [vmem:[%s5302_s4 + $0x64] sm:$0xf0]  ;;  %v3583_v42 = vld [vmem:[%s3921_s12 + $0x4] sm:$0xf]  ;;  %v2638_v44 = vor.u32 %v3594_v37, %v2637_v35  ;;  %v2642_v47 = vor.u32 %v3593_v38, %v2639_v39  ;;  %s4423_s17 = scalar_lea.vmem %s5300_s2, %s3909_s29  ;;  %s4572_s13 = scalar_lea.vmem %s5301_s3, %s3909_s29 }
  0x16   : > { %v2599_v43 = vld [vmem:[%s3921_s12 + $0x8] sm:$0xf0]  ;;  %484 = vmatpush.bf16.msra.mxu0 %v2646_v29  ;;  %v2746_v45 = vor.u32 %v3576_v41, %v2745_v40  ;;  %v2629_v48 = vld [vmem:[%s5302_s4 + $0xd0] sm:$0xf]  ;;  %v3592_v49 = vld [vmem:[%s5302_s4 + $0xd4] sm:$0xf0] }
  0x17   : > { %675 = vmatpush.bf16.msrb.mxu1 %v2754_v36  ;;  %v2602_v46 = vor.u32 %v3583_v42, %v2599_v43  ;;  %520 = vmatpush.bf16.msra.mxu2 %v2650_v32  ;;  %v3591_v50 = vld [vmem:[%s5302_s4 + $0xd4] sm:$0xf]  ;;  %v2631_v51 = vld [vmem:[%s5302_s4 + $0xd8] sm:$0xf0]  ;;  %v2737_v52 = vld [vmem:[%s5302_s4 + $0x50] sm:$0xf]  ;;  %v2630_v54 = vor.u32 %v3592_v49, %v2629_v48 }
  0x18   : > { %699 = vmatpush.bf16.msrb.mxu3 %v2770_v28  ;;  %v3574_v53 = vld [vmem:[%s5302_s4 + $0x54] sm:$0xf0]  ;;  %v2621_v56 = vld [vmem:[%s5302_s4 + $0xc0] sm:$0xf]  ;;  %v3590_v57 = vld [vmem:[%s5302_s4 + $0xc4] sm:$0xf0]  ;;  %v2634_v59 = vor.u32 %v3591_v50, %v2631_v51 }
  0x19   : > { %2683 = vmatmul.msk.bf16.vlgmr.msra.gmra.mxu1 %vm475_vm0, %v2602_v46  ;;  %2685 = vmatmul.msk.bf16.vlgmr.msra.gmra.mxu3 %vm475_vm0, %v2602_v46  ;;  %v2738_v55 = vor.u32 %v3574_v53, %v2737_v52  ;;  %v2729_v58 = vld [vmem:[%s5302_s4 + $0x40] sm:$0xf]  ;;  %v3572_v60 = vld [vmem:[%s5302_s4 + $0x44] sm:$0xf0]  ;;  %v3589_v63 = vld [vmem:[%s5302_s4 + $0xc4] sm:$0xf]  ;;  %v2622_v2 = vor.u32 %v3590_v57, %v2621_v56 }
  0x1a   : > { %485 = vmatpush.bf16.msra.mxu0 %v2638_v44  ;;  %v2761_v61 = vld [vmem:[%s5302_s4 + $0x80] sm:$0xf]  ;;  %v3580_v62 = vld [vmem:[%s5302_s4 + $0x84] sm:$0xf0]  ;;  %v2623_v0 = vld [vmem:[%s5302_s4 + $0xc8] sm:$0xf0]  ;;  %v2730_v3 = vor.u32 %v3572_v60, %v2729_v58 }
  0x1b   : > { %676 = vmatpush.bf16.msrb.mxu1 %v2746_v45  ;;  %521 = vmatpush.bf16.msra.mxu2 %v2642_v47  ;;  %v2762_v1 = vor.u32 %v3580_v62, %v2761_v61  ;;  %v3979_v4 = vld [vmem:[%s3921_s12 + $0x10] sm:$0xff]  ;;  %v2626_v6 = vor.u32 %v3589_v63, %v2623_v0  ;;  %v3588_v7 = vld [vmem:[%s5302_s4 + $0xb4] sm:$0xf0]  ;;  %v2615_v11 = vld [vmem:[%s5302_s4 + $0xb8] sm:$0xf0]  ;;  %s3767_s30 = smul.u32 24, %s5308_s22 }
  0x1c   : > { %v2613_v5 = vld [vmem:[%s5302_s4 + $0xb0] sm:$0xf]  ;;  %v3570_v9 = vld [vmem:[%s5302_s4 + $0x34] sm:$0xf0]  ;;  %v3587_v10 = vld [vmem:[%s5302_s4 + $0xb4] sm:$0xf]  ;;  %v368_v12 = vunpack.c.h.b16 %v3979_v4 }
  0x1d   : > { %700 = vmatpush.bf16.msrb.mxu3 %v2762_v1  ;;  %v2721_v8 = vld [vmem:[%s5302_s4 + $0x30] sm:$0xf]  ;;  %v2605_v13 = vld [vmem:[%s5302_s4 + $0xa0] sm:$0xf]  ;;  %v2614_v14 = vor.u32 %v3588_v7, %v2613_v5  ;;  %v3586_v16 = vld [vmem:[%s5302_s4 + $0xa4] sm:$0xf0]  ;;  %v2618_v19 = vor.u32 %v3587_v10, %v2615_v11  ;;  %s5278_s9 = scalar_lea.vmem %s5304_s6, %s3767_s30 }
  0x1e   : > { %486 = vmatpush.bf16.msra.mxu0 %v2630_v54  ;;  %v2722_v15 = vor.u32 %v3570_v9, %v2721_v8  ;;  %v3585_v17 = vld [vmem:[%s5302_s4 + $0xa4] sm:$0xf]  ;;  %v2607_v18 = vld [vmem:[%s5302_s4 + $0xa8] sm:$0xf0]  ;;  %v2713_v20 = vld [vmem:[%s5302_s4 + $0x20] sm:$0xf]  ;;  %v372_v26 = vpack.c.b16 %v368_v12, %v368_v12  ;;  %v2606_v28 = vor.u32 %v3586_v16, %v2605_v13 }
  0x1f   : > { %677 = vmatpush.bf16.msrb.mxu1 %v2738_v55  ;;  %522 = vmatpush.bf16.msra.mxu2 %v2634_v59  ;;  %v3568_v21 = vld [vmem:[%s5302_s4 + $0x24] sm:$0xf0]  ;;  %v3577_v22 = vld [vmem:[%s5302_s4 + $0x74] sm:$0xf]  ;;  %v2755_v23 = vld [vmem:[%s5302_s4 + $0x78] sm:$0xf0]  ;;  %v2610_v32 = vor.u32 %v3585_v17, %v2607_v18 }
  0x20   : > { %v3581_v24 = vld [vmem:[%s5302_s4 + $0x94] sm:$0xf]  ;;  %v2771_v25 = vld [vmem:[%s5302_s4 + $0x98] sm:$0xf0]  ;;  %v2714_v29 = vor.u32 %v3568_v21, %v2713_v20  ;;  %v2597_v30 = vld [vmem:[%s3921_s12] sm:$0xf]  ;;  %v2758_v35 = vor.u32 %v3577_v22, %v2755_v23 }
  0x21   : > { %v2774_v27 = vor.u32 %v3581_v24, %v2771_v25  ;;  %v3584_v31 = vld [vmem:[%s3921_s12 + $0x4] sm:$0xf0]  ;;  %v2705_v33 = vld [vmem:[%s5302_s4 + $0x10] sm:$0xf]  ;;  %v3566_v34 = vld [vmem:[%s5302_s4 + $0x14] sm:$0xf0] }
  0x22   : > { %487 = vmatpush.bf16.msra.mxu0 %v2622_v2  ;;  %v3575_v36 = vld [vmem:[%s5302_s4 + $0x64] sm:$0xf]  ;;  %v2747_v37 = vld [vmem:[%s5302_s4 + $0x68] sm:$0xf0]  ;;  %v2598_v38 = vor.u32 %v3584_v31, %v2597_v30  ;;  %v2706_v39 = vor.u32 %v3566_v34, %v2705_v33  ;;  %v2697_v40 = vld [vmem:[%s5302_s4] sm:$0xf] }
  0x23   : > { %678 = vmatpush.bf16.msrb.mxu1 %v2730_v3  ;;  %523 = vmatpush.bf16.msra.mxu2 %v2626_v6  ;;  %v3579_v41 = vld [vmem:[%s5302_s4 + $0x84] sm:$0xf]  ;;  %v3564_v42 = vld [vmem:[%s5302_s4 + $0x4] sm:$0xf0]  ;;  %v2750_v43 = vor.u32 %v3575_v36, %v2747_v37  ;;  %v3573_v44 = vld [vmem:[%s5302_s4 + $0x54] sm:$0xf]  ;;  %v367_v6 = vunpack.c.l.b16 %v3979_v4 }
  0x24   : > { %3757 = vmatpush.bf16.msra.mxu3 %v2774_v27  ;;  %v2763_v45 = vld [vmem:[%s5302_s4 + $0x88] sm:$0xf0]  ;;  %v2739_v46 = vld [vmem:[%s5302_s4 + $0x58] sm:$0xf0]  ;;  %v2857_v47 = vld [vmem:[%s5302_s4 + $0x1b0] sm:$0xf]  ;;  %v2698_v50 = vor.u32 %v3564_v42, %v2697_v40 }
  0x25   : > { %v3620_v48 = vld [vmem:[%s5302_s4 + $0x1b4] sm:$0xf0]  ;;  %v2766_v49 = vor.u32 %v3579_v41, %v2763_v45  ;;  %v2742_v51 = vor.u32 %v3573_v44, %v2739_v46  ;;  %v3571_v53 = vld [vmem:[%s5302_s4 + $0x44] sm:$0xf]  ;;  %v2731_v54 = vld [vmem:[%s5302_s4 + $0x48] sm:$0xf0] }
  0x26   : > { %488 = vmatpush.bf16.msra.mxu0 %v2614_v14  ;;  %v2858_v52 = vor.u32 %v3620_v48, %v2857_v47  ;;  %v2849_v55 = vld [vmem:[%s5302_s4 + $0x1a0] sm:$0xf]  ;;  %v3618_v56 = vld [vmem:[%s5302_s4 + $0x1a4] sm:$0xf0]  ;;  %v3561_v59 = vld [vmem:[%s4074_s27 + $0x4] sm:$0xf]  ;;  %v2734_v61 = vor.u32 %v3571_v53, %v2731_v54  ;;  %v371_v14 = vpack.c.b16 %v367_v6, %v367_v6 }
  0x27   : > { %679 = vmatpush.bf16.msrb.mxu1 %v2722_v15  ;;  %524 = vmatpush.bf16.msra.mxu2 %v2618_v19  ;;  %v2689_v57 = vld [vmem:[%s4074_s27] sm:$0xf]  ;;  %v3562_v58 = vld [vmem:[%s4074_s27 + $0x4] sm:$0xf0]  ;;  %v2691_v60 = vld [vmem:[%s4074_s27 + $0x8] sm:$0xf0]  ;;  %v2850_v62 = vor.u32 %v3618_v56, %v2849_v55 }
  0x28   : > { %3758 = vmatpush.bf16.msra.mxu3 %v2766_v49  ;;  %v3569_v63 = vld [vmem:[%s5302_s4 + $0x34] sm:$0xf]  ;;  %v2723_v0 = vld [vmem:[%s5302_s4 + $0x38] sm:$0xf0]  ;;  %v2841_v1 = vld [vmem:[%s5302_s4 + $0x190] sm:$0xf]  ;;  %v4104_v3 = vor.u32 %v3562_v58, %v2689_v57  ;;  %v4106_v5 = vor.u32 %v3561_v59, %v2691_v60 }
  0x29   : > { %2684 = vmatmul.msk.bf16.gmra.mxu1 %vm475_vm0, %v372_v26  ;;  %2686 = vmatmul.msk.bf16.gmra.mxu3 %vm475_vm0, %v372_v26  ;;  %v3616_v2 = vld [vmem:[%s5302_s4 + $0x194] sm:$0xf0]  ;;  %v2726_v7 = vor.u32 %v3569_v63, %v2723_v0  ;;  %v3567_v9 = vld [vmem:[%s5302_s4 + $0x24] sm:$0xf]  ;;  %v2715_v10 = vld [vmem:[%s5302_s4 + $0x28] sm:$0xf0] }
  0x2a   : > { %489 = vmatpush.bf16.msra.mxu0 %v2606_v28  ;;  %v2842_v8 = vor.u32 %v3616_v2, %v2841_v1  ;;  %v3623_v11 = vld [vmem:[%s5302_s4 + $0x1d4] sm:$0xf]  ;;  %v2833_v4 = vld [vmem:[%s5302_s4 + $0x180] sm:$0xf]  ;;  %v3614_v12 = vld [vmem:[%s5302_s4 + $0x184] sm:$0xf0]  ;;  %v2718_v18 = vor.u32 %v3567_v9, %v2715_v10 }
  0x2b   : > { %680 = vmatpush.bf16.msrb.mxu1 %v2714_v29  ;;  %525 = vmatpush.bf16.msra.mxu2 %v2610_v32  ;;  %v2875_v13 = vld [vmem:[%s5302_s4 + $0x1d8] sm:$0xf0]  ;;  %v2873_v15 = vld [vmem:[%s5302_s4 + $0x1d0] sm:$0xf]  ;;  %v3624_v17 = vld [vmem:[%s5302_s4 + $0x1d4] sm:$0xf0]  ;;  %v2834_v19 = vor.u32 %v3614_v12, %v2833_v4 }
  0x2c   : > { %v2878_v16 = vor.u32 %v3623_v11, %v2875_v13  ;;  %v3565_v20 = vld [vmem:[%s5302_s4 + $0x14] sm:$0xf]  ;;  %v2707_v21 = vld [vmem:[%s5302_s4 + $0x18] sm:$0xf0]  ;;  %v2825_v22 = vld [vmem:[%s5302_s4 + $0x170] sm:$0xf]  ;;  %v2874_v23 = vor.u32 %v3624_v17, %v2873_v15 }
  0x2d   : > { %490 = vmatmul.bf16.vlgmr.msra.gmra.mxu0 %v2598_v38  ;;  %v3612_v24 = vld [vmem:[%s5302_s4 + $0x174] sm:$0xf0]  ;;  %v3621_v25 = vld [vmem:[%s5302_s4 + $0x1c4] sm:$0xf]  ;;  %v2867_v26 = vld [vmem:[%s5302_s4 + $0x1c8] sm:$0xf0]  ;;  %v2710_v32 = vor.u32 %v3565_v20, %v2707_v21 }
  0x2e   : > { %711 = vmatpush.bf16.msrb.mxu0 %v2758_v35  ;;  %526 = vmatmul.bf16.vlgmr.msra.gmra.mxu2 %v2598_v38  ;;  %v2865_v28 = vld [vmem:[%s5302_s4 + $0x1c0] sm:$0xf]  ;;  %v3622_v29 = vld [vmem:[%s5302_s4 + $0x1c4] sm:$0xf0]  ;;  %v315_v30 = vld [vmem:[%s4074_s27 + $0x10] sm:$0xff]  ;;  %v2826_v33 = vor.u32 %v3612_v24, %v2825_v22  ;;  %vm2464_vm4 = vcmask 1043456  }
  0x2f   : > { %735 = vmatpush.bf16.msrb.mxu2 %v2774_v27  ;;  %681 = vmatpush.bf16.msrb.mxu1 %v2706_v39  ;;  %v2870_v27 = vor.u32 %v3621_v25, %v2867_v26  ;;  %v2866_v31 = vor.u32 %v3622_v29, %v2865_v28  ;;  %v3563_v34 = vld [vmem:[%s5302_s4 + $0x4] sm:$0xf]  ;;  %v748_v36 = vld [vmem:[%s4074_s27 + $0x8] sm:$0xff]  ;;  %v2817_v38 = vld [vmem:[%s5302_s4 + $0x160] sm:$0xf]  ;;  %v4175_v40 = vunpack.c.l.b16 %v315_v30  ;;  %v4177_v41 = vunpack.c.h.b16 %v315_v30 }
  0x30   : > { %v747_v35 = vld [vmem:[%s4074_s27] sm:$0xff]  ;;  %v2699_v37 = vld [vmem:[%s5302_s4 + $0x8] sm:$0xf0]  ;;  %v3610_v39 = vld [vmem:[%s5302_s4 + $0x164] sm:$0xf0]  ;;  %v4185_v45 = vunpack.c.l.b16 %v748_v36  ;;  %vm2465_vm5 = vcmask 261124  }
  0x31   : > { %v3619_v42 = vld [vmem:[%s5302_s4 + $0x1b4] sm:$0xf]  ;;  %v776_v44 = vunpack.c.l.b16 %v747_v35  ;;  %v2702_v46 = vor.u32 %v3563_v34, %v2699_v37  ;;  %v2818_v47 = vor.u32 %v3610_v39, %v2817_v38  ;;  %v750_v48 = vld [vmem:[%s4074_s27 + $0x18] sm:$0x11]  ;;  %v4200_v53 = vpack.c.b16 %v4177_v41, %v4177_v41  ;;  %v3617_v54 = vld [vmem:[%s5302_s4 + $0x1a4] sm:$0xf] }
  0x32   : > { %712 = vmatpush.bf16.msrb.mxu0 %v2750_v43  ;;  %v2859_v43 = vld [vmem:[%s5302_s4 + $0x1b8] sm:$0xf0]  ;;  %v2851_v55 = vld [vmem:[%s5302_s4 + $0x1a8] sm:$0xf0]  ;;  %v782_v56 = vunpack.c.l.b16 %v750_v48  ;;  %v2801_v59 = vld [vmem:[%s5302_s4 + $0x140] sm:$0xf]  ;;  %v777_v60 = vunpack.c.h.b16 %v747_v35  ;;  %v783_v4 = vunpack.c.h.b16 %v750_v48 }
  0x33   : > { %736 = vmatpush.bf16.msrb.mxu2 %v2766_v49  ;;  %682 = vmatpush.bf16.msrb.mxu1 %v2698_v50  ;;  %v2809_v49 = vld [vmem:[%s5302_s4 + $0x150] sm:$0xf]  ;;  %v3608_v50 = vld [vmem:[%s5302_s4 + $0x154] sm:$0xf0]  ;;  %v784_v57 = vpack.c.b16 %v4185_v45, %v776_v44  ;;  %v2854_v63 = vor.u32 %v3617_v54, %v2851_v55  ;;  %v3615_v0 = vld [vmem:[%s5302_s4 + $0x194] sm:$0xf] }
  0x34   : > { %v2810_v58 = vor.u32 %v3608_v50, %v2809_v49  ;;  %v2843_v1 = vld [vmem:[%s5302_s4 + $0x198] sm:$0xf0]  ;;  %v2969_v2 = vld [vmem:[%s5302_s4 + $0x250] sm:$0xf]  ;;  %v3642_v6 = vld [vmem:[%s5302_s4 + $0x254] sm:$0xf0] }
  0x35   : > { %v792_v9 = vshll.u32 %v784_v57, 16  ;;  %v2987_v10 = vld [vmem:[%s5302_s4 + $0x278] sm:$0xf0]  ;;  %v2970_v15 = vor.u32 %v3642_v6, %v2969_v2  ;;  %v2835_v17 = vld [vmem:[%s5302_s4 + $0x188] sm:$0xf0]  ;;  %v790_v20 = vshrl.u32 %v784_v57, 16  ;;  %vm5280_vm6 = vmor %vm2465_vm5, %vm2464_vm4 }
  0x36   : > { %713 = vmatpush.bf16.msrb.mxu0 %v2742_v51  ;;  %v2862_v51 = vor.u32 %v3619_v42, %v2859_v43  ;;  %v3611_v26 = vld [vmem:[%s5302_s4 + $0x174] sm:$0xf]  ;;  %v3638_v28 = vld [vmem:[%s5302_s4 + $0x234] sm:$0xf0]  ;;  %vm788_vm1 = vsmask.f32 7424 }
  0x37   : > { %927 = vmatpush.bf16.msra.mxu1 %v2858_v52  ;;  %987 = vmatpush.bf16.msra.mxu2 %v2878_v16  ;;  %v4196_v52 = vpack.c.b16 %v4175_v40, %v4175_v40  ;;  %v3613_v16 = vld [vmem:[%s5302_s4 + $0x184] sm:$0xf]  ;;  %v794_v21 = vrot.slane %v792_v9, 1  ;;  %v2985_v34 = vld [vmem:[%s5302_s4 + $0x270] sm:$0xf] }
  0x38   : > { %v2838_v24 = vor.u32 %v3613_v16, %v2835_v17  ;;  %v3646_v35 = vld [vmem:[%s5302_s4 + $0x274] sm:$0xf0]  ;;  %v3609_v38 = vld [vmem:[%s5302_s4 + $0x164] sm:$0xf]  ;;  %v2819_v39 = vld [vmem:[%s5302_s4 + $0x168] sm:$0xf0] }
  0x39   : > { %683 = vmatmul.bf16.vlgmr.msrb.gmra.mxu1 %v4104_v3  ;;  %2775 = vmatmul.msk.bf16.vlgmr.msrb.gmra.mxu3 %vm475_vm0, %v4106_v5  ;;  %v795_v29 = vor.u32 %v794_v21, %v790_v20  ;;  %v2945_v42 = vld [vmem:[%s5302_s4 + $0x220] sm:$0xf]  ;;  %v3636_v43 = vld [vmem:[%s5302_s4 + $0x224] sm:$0xf0]  ;;  %v3607_v49 = vld [vmem:[%s5302_s4 + $0x154] sm:$0xf]  ;;  %v2822_v50 = vor.u32 %v3609_v38, %v2819_v39 }
  0x3a   : > { %714 = vmatpush.bf16.msrb.mxu0 %v2734_v61  ;;  %951 = vmatpush.bf16.msrb.mxu3 %v2874_v23  ;;  %v4212_v61 = vunpack.c.h.b16 %v748_v36  ;;  %v2811_v54 = vld [vmem:[%s5302_s4 + $0x158] sm:$0xf0]  ;;  %v2937_v55 = vld [vmem:[%s5302_s4 + $0x210] sm:$0xf]  ;;  %v2977_v57 = vld [vmem:[%s5302_s4 + $0x260] sm:$0xf] }
  0x3b   : > { %928 = vmatpush.bf16.msra.mxu1 %v2850_v62  ;;  %988 = vmatpush.bf16.msra.mxu2 %v2870_v27  ;;  %v3606_v62 = vld [vmem:[%s5302_s4 + $0x144] sm:$0xf0]  ;;  %v2953_v27 = vld [vmem:[%s5302_s4 + $0x230] sm:$0xf]  ;;  %v3605_v2 = vld [vmem:[%s5302_s4 + $0x144] sm:$0xf] }
  0x3c   : > { %v2802_v11 = vor.u32 %v3606_v62, %v2801_v59  ;;  %v785_v12 = vpack.c.b16 %v4212_v61, %v777_v60  ;;  %v2954_v37 = vor.u32 %v3638_v28, %v2953_v27  ;;  %v3643_v59 = vld [vmem:[%s5302_s4 + $0x264] sm:$0xf]  ;;  %v2803_v6 = vld [vmem:[%s5302_s4 + $0x148] sm:$0xf0]  ;;  %v3632_v9 = vld [vmem:[%s5302_s4 + $0x204] sm:$0xf0] }
  0x3d   : > { %495 = vmatmul.bf16.gmra.mxu0 %v371_v14  ;;  %v3639_v16 = vld [vmem:[%s5302_s4 + $0x244] sm:$0xf]  ;;  %v2963_v17 = vld [vmem:[%s5302_s4 + $0x248] sm:$0xf0]  ;;  %v3628_v20 = vld [vmem:[%s5302_s4 + $0x1e4] sm:$0xf0] }
  0x3e   : > { %715 = vmatpush.bf16.msrb.mxu0 %v2726_v7  ;;  %531 = vmatmul.bf16.gmra.mxu2 %v371_v14  ;;  %v3645_v7 = vld [vmem:[%s5302_s4 + $0x274] sm:$0xf]  ;;  %v2846_v14 = vor.u32 %v3615_v0, %v2843_v1  ;;  %v804_v23 = vshll.u32 %v785_v12, 16  ;;  %v2814_v0 = vor.u32 %v3607_v49, %v2811_v54  ;;  %v3097_v27 = vld [vmem:[%s5302_s4 + $0x310] sm:$0xf] }
  0x3f   : > { %929 = vmatpush.bf16.msra.mxu1 %v2842_v8  ;;  %952 = vmatpush.bf16.msrb.mxu3 %v2866_v31  ;;  %v4236_v8 = vpack.c.b16 %v782_v56, %v4175_v40  ;;  %v2990_v13 = vor.u32 %v3645_v7, %v2987_v10  ;;  %v802_v31 = vshrl.u32 %v785_v12, 16  ;;  %v3634_v56 = vld [vmem:[%s5302_s4 + $0x214] sm:$0xf0]  ;;  %v2929_v7 = vld [vmem:[%s5302_s4 + $0x200] sm:$0xf] }
  0x40   : > { %v2938_v1 = vor.u32 %v3634_v56, %v2937_v55  ;;  %v3641_v10 = vld [vmem:[%s5302_s4 + $0x254] sm:$0xf]  ;;  %v3668_v28 = vld [vmem:[%s5302_s4 + $0x314] sm:$0xf0]  ;;  %v2905_v49 = vld [vmem:[%s4423_s17] sm:$0xf] }
  0x41   : > { %v797_v22 = vshll.u32 %v4236_v8, 16  ;;  %v813_v12 = vshrl.u32 %v4236_v8, 16  ;;  %v3631_v54 = vld [vmem:[%s5302_s4 + $0x204] sm:$0xf]  ;;  %v2931_v55 = vld [vmem:[%s5302_s4 + $0x208] sm:$0xf0] }
  0x42   : > { %716 = vmatpush.bf16.msrb.mxu0 %v2718_v18  ;;  %v2961_v18 = vld [vmem:[%s5302_s4 + $0x240] sm:$0xf]  ;;  %vm1741_vm2 = vsmask.f32 5376 }
  0x43   : > { %930 = vmatpush.bf16.msra.mxu1 %v2834_v19  ;;  %v3640_v19 = vld [vmem:[%s5302_s4 + $0x244] sm:$0xf0]  ;;  %v4273_v30 = vrot.slane %v797_v22, 1  ;;  %v2966_v22 = vor.u32 %v3639_v16, %v2963_v17  ;;  %v3057_v56 = vld [vmem:[%s5302_s4 + $0x2c0] sm:$0xf] }
  0x44   : > { %v2962_v25 = vor.u32 %v3640_v19, %v2961_v18  ;;  %v2913_v19 = vld [vmem:[%s5302_s4 + $0x1e0] sm:$0xf]  ;;  %v3654_v17 = vld [vmem:[%s5302_s4 + $0x2a4] sm:$0xf0] }
  0x45   : > { %v4296_v44 = vsel %vm788_vm1, %v795_v29, %v4273_v30  ;;  %v4363_v18 = vor.u32 %v813_v12, %v4273_v30  ;;  %v3667_v29 = vld [vmem:[%s5302_s4 + $0x314] sm:$0xf] }
  0x46   : > { %717 = vmatpush.bf16.msrb.mxu0 %v2710_v32  ;;  %v806_v32 = vrot.slane %v804_v23, 1  ;;  %v3081_v23 = vld [vmem:[%s5302_s4 + $0x2f0] sm:$0xf] }
  0x47   : > { %931 = vmatpush.bf16.msra.mxu1 %v2826_v33 }
  0x49   : > { %688 = vmatmul.bf16.gmra.mxu1 %v4196_v52  ;;  %2776 = vmatmul.msk.bf16.gmra.mxu3 %vm475_vm0, %v4200_v53 }
  0x4a   : > { %718 = vmatpush.bf16.msrb.mxu0 %v2702_v46  ;;  %v2986_v46 = vor.u32 %v3646_v35, %v2985_v34  ;;  %v3098_v34 = vor.u32 %v3668_v28, %v3097_v27  ;;  %v3099_v35 = vld [vmem:[%s5302_s4 + $0x318] sm:$0xf0]  ;;  %v3025_v27 = vld [vmem:[%s5302_s4 + $0x280] sm:$0xf] }
  0x4b   : > { %932 = vmatpush.bf16.msra.mxu1 %v2818_v47  ;;  %v807_v47 = vor.u32 %v806_v32, %v802_v31  ;;  %v3073_v32 = vld [vmem:[%s5302_s4 + $0x2e0] sm:$0xf]  ;;  %v3102_v38 = vor.u32 %v3667_v29, %v3099_v35  ;;  %v3650_v29 = vld [vmem:[%s5302_s4 + $0x284] sm:$0xf0] }
  0x4d   : > { %719 = vmatmul.bf16.vlgmr.msrb.gmra.mxu0 %v4104_v3  ;;  %v4259_v3 = vpack.c.b16 %v783_v4, %v4177_v41  ;;  %v2930_v4 = vor.u32 %v3632_v9, %v2929_v7  ;;  %v3666_v7 = vld [vmem:[%s5302_s4 + $0x304] sm:$0xf0]  ;;  %v3665_v9 = vld [vmem:[%s5302_s4 + $0x304] sm:$0xf] }
  0x4e   : > { %963 = vmatpush.bf16.msra.mxu0 %v2862_v51  ;;  %2777 = vmatmul.msk.bf16.vlgmr.msrb.gmra.mxu2 %vm475_vm0, %v4106_v5  ;;  %v2827_v5 = vld [vmem:[%s5302_s4 + $0x178] sm:$0xf0]  ;;  %v2946_v51 = vor.u32 %v3636_v43, %v2945_v42  ;;  %v3065_v43 = vld [vmem:[%s5302_s4 + $0x2d0] sm:$0xf] }
  0x4f   : > { %933 = vmatpush.bf16.msra.mxu1 %v2810_v58  ;;  %1210 = vmatpush.bf16.msrb.mxu2 %v2990_v13  ;;  %v809_v33 = vshll.u32 %v4259_v3, 16  ;;  %v2830_v36 = vor.u32 %v3611_v26, %v2827_v5  ;;  %v3644_v58 = vld [vmem:[%s5302_s4 + $0x264] sm:$0xf0]  ;;  %v2921_v13 = vld [vmem:[%s5302_s4 + $0x1f0] sm:$0xf]  ;;  %v816_v21 = vshrl.u32 %v4259_v3, 16  ;;  %v2914_v5 = vor.u32 %v3628_v20, %v2913_v19 }
  0x50   : > { %v2978_v60 = vor.u32 %v3644_v58, %v2977_v57  ;;  %v2955_v26 = vld [vmem:[%s5302_s4 + $0x238] sm:$0xf0]  ;;  %v3658_v57 = vld [vmem:[%s5302_s4 + $0x2c4] sm:$0xf0]  ;;  %v1007_v20 = vld [vmem:[%s4423_s17 + $0x10] sm:$0xff] }
  0x51   : > { %v4298_v48 = vrot.slane %v809_v33, 1  ;;  %v3662_v33 = vld [vmem:[%s5302_s4 + $0x2e4] sm:$0xf0]  ;;  %v3083_v19 = vld [vmem:[%s5302_s4 + $0x2f8] sm:$0xf0]  ;;  %v1037_v35 = vunpack.c.h.b16 %v1007_v20 }
  0x52   : > { %964 = vmatpush.bf16.msra.mxu0 %v2854_v63  ;;  %v3074_v39 = vor.u32 %v3662_v33, %v3073_v32  ;;  %v3201_v33 = vld [vmem:[%s5302_s4 + $0x390] sm:$0xf] }
  0x53   : > { %934 = vmatpush.bf16.msra.mxu1 %v2802_v11  ;;  %v812_v62 = vsel %vm788_vm1, %v807_v47, %v4298_v48  ;;  %v2806_v11 = vor.u32 %v3605_v2, %v2803_v6  ;;  %v818_v30 = vor.u32 %v816_v21, %v4298_v48  ;;  %v2939_v47 = vld [vmem:[%s5302_s4 + $0x218] sm:$0xf0]  ;;  %v3656_v2 = vld [vmem:[%s5302_s4 + $0x2b4] sm:$0xf0]  ;;  %v3089_v6 = vld [vmem:[%s5302_s4 + $0x300] sm:$0xf] }
  0x56   : > { %965 = vmatpush.bf16.msra.mxu0 %v2846_v14  ;;  %v3630_v14 = vld [vmem:[%s5302_s4 + $0x1f4] sm:$0xf0] }
  0x57   : > { %1150 = vmatpush.bf16.msrb.mxu1 %v2970_v15  ;;  %v2922_v8 = vor.u32 %v3630_v14, %v2921_v13  ;;  %v3627_v13 = vld [vmem:[%s5302_s4 + $0x1e4] sm:$0xf]  ;;  %v2915_v14 = vld [vmem:[%s5302_s4 + $0x1e8] sm:$0xf0] }
  0x58   : > { %v2918_v21 = vor.u32 %v3627_v13, %v2915_v14  ;;  %v3169_v13 = vld [vmem:[%s5302_s4 + $0x350] sm:$0xf]  ;;  %v3680_v14 = vld [vmem:[%s5302_s4 + $0x354] sm:$0xf0] }
  0x59   : > { %2778 = vmatmul.msk.bf16.vlgmr.msra.gmra.mxu3 %vm475_vm0, %v4200_v53  ;;  %935 = vmatmul.bf16.vlgmr.msra.gmra.mxu1 %v4296_v44  ;;  %v2979_v53 = vld [vmem:[%s5302_s4 + $0x268] sm:$0xf0] }
  0x5a   : > { %966 = vmatpush.bf16.msra.mxu0 %v2838_v24  ;;  %1174 = vmatpush.bf16.msra.mxu3 %v2986_v46  ;;  %v2982_v63 = vor.u32 %v3643_v59, %v2979_v53  ;;  %v3664_v24 = vld [vmem:[%s5302_s4 + $0x2f4] sm:$0xf0]  ;;  %v3625_v59 = vld [vmem:[%s4423_s17 + $0x4] sm:$0xf]  ;;  %v3058_v53 = vor.u32 %v3658_v57, %v3057_v56  ;;  %v3655_v57 = vld [vmem:[%s5302_s4 + $0x2b4] sm:$0xf] }
  0x5b   : > { %1151 = vmatpush.bf16.msrb.mxu1 %v2962_v25  ;;  %v3637_v25 = vld [vmem:[%s5302_s4 + $0x234] sm:$0xf]  ;;  %v3082_v3 = vor.u32 %v3664_v24, %v3081_v23  ;;  %v3660_v46 = vld [vmem:[%s5302_s4 + $0x2d4] sm:$0xf0]  ;;  %v3033_v23 = vld [vmem:[%s5302_s4 + $0x290] sm:$0xf] }
  0x5c   : > { %1211 = vmatpush.bf16.msrb.mxu2 %v2982_v63  ;;  %v2958_v31 = vor.u32 %v3637_v25, %v2955_v26  ;;  %v3066_v48 = vor.u32 %v3660_v46, %v3065_v43  ;;  %v3629_v63 = vld [vmem:[%s5302_s4 + $0x1f4] sm:$0xf]  ;;  %v3652_v25 = vld [vmem:[%s5302_s4 + $0x294] sm:$0xf0]  ;;  %v3075_v26 = vld [vmem:[%s5302_s4 + $0x2e8] sm:$0xf0] }
  0x5d   : > { %724 = vmatmul.bf16.gmra.mxu0 %v4196_v52  ;;  %v2971_v52 = vld [vmem:[%s5302_s4 + $0x258] sm:$0xf0]  ;;  %v3193_v43 = vld [vmem:[%s5302_s4 + $0x380] sm:$0xf]  ;;  %v3686_v46 = vld [vmem:[%s5302_s4 + $0x384] sm:$0xf0] }
  0x5e   : > { %967 = vmatpush.bf16.msra.mxu0 %v2830_v36  ;;  %2881 = vmatmul.msk.bf16.vlgmr.msra.gmra.mxu2 %vm475_vm0, %v812_v62  ;;  %v2974_v15 = vor.u32 %v3641_v10, %v2971_v52  ;;  %v3635_v36 = vld [vmem:[%s5302_s4 + $0x224] sm:$0xf]  ;;  %v3194_v56 = vor.u32 %v3686_v46, %v3193_v43 }
  0x5f   : > { %1152 = vmatpush.bf16.msrb.mxu1 %v2954_v37  ;;  %1175 = vmatpush.bf16.msra.mxu3 %v2978_v60  ;;  %v2947_v37 = vld [vmem:[%s5302_s4 + $0x228] sm:$0xf0]  ;;  %v2934_v60 = vor.u32 %v3631_v54, %v2931_v55 }
  0x60   : > { %v2950_v42 = vor.u32 %v3635_v36, %v2947_v37  ;;  %1433 = vmatpush.bf16.msra.mxu2 %v3102_v38  ;;  %v3026_v36 = vor.u32 %v3650_v29, %v3025_v27  ;;  %v3657_v38 = vld [vmem:[%s5302_s4 + $0x2c4] sm:$0xf] }
  0x62   : > { %968 = vmatpush.bf16.msra.mxu0 %v2822_v50  ;;  %v3626_v50 = vld [vmem:[%s4423_s17 + $0x4] sm:$0xf0] }
  0x63   : > { %1153 = vmatpush.bf16.msrb.mxu1 %v2946_v51  ;;  %v4445_v58 = vor.u32 %v3626_v50, %v2905_v49  ;;  %v1041_v49 = vpack.c.b16 %v1037_v35, %v1037_v35 }
  0x66   : > { %969 = vmatpush.bf16.msra.mxu0 %v2814_v0  ;;  %v2923_v0 = vld [vmem:[%s5302_s4 + $0x1f8] sm:$0xf0] }
  0x67   : > { %1154 = vmatpush.bf16.msrb.mxu1 %v2938_v1  ;;  %v3049_v1 = vld [vmem:[%s5302_s4 + $0x2b0] sm:$0xf]  ;;  %v2926_v52 = vor.u32 %v3629_v63, %v2923_v0  ;;  %v3653_v63 = vld [vmem:[%s5302_s4 + $0x2a4] sm:$0xf]  ;;  %v3043_v0 = vld [vmem:[%s5302_s4 + $0x2a8] sm:$0xf0] }
  0x68   : > { %v3050_v12 = vor.u32 %v3656_v2, %v3049_v1  ;;  %v3177_v1 = vld [vmem:[%s5302_s4 + $0x360] sm:$0xf]  ;;  %v3682_v2 = vld [vmem:[%s5302_s4 + $0x364] sm:$0xf0] }
  0x69   : > { %940 = vmatmul.bf16.gmra.mxu1 %v4363_v18  ;;  %2879 = vmatmul.msk.bf16.vlgmr.msrb.gmra.mxu3 %vm475_vm0, %v812_v62  ;;  %v2907_v62 = vld [vmem:[%s4423_s17 + $0x8] sm:$0xf0] }
  0x6a   : > { %970 = vmatpush.bf16.msra.mxu0 %v2806_v11  ;;  %1397 = vmatpush.bf16.msrb.mxu3 %v3098_v34  ;;  %v2910_v10 = vor.u32 %v3625_v59, %v2907_v62  ;;  %v3090_v11 = vor.u32 %v3666_v7, %v3089_v6  ;;  %v3688_v34 = vld [vmem:[%s5302_s4 + $0x394] sm:$0xf0]  ;;  %v3051_v59 = vld [vmem:[%s5302_s4 + $0x2b8] sm:$0xf0]  ;;  %v3017_v6 = vld [vmem:[%s4572_s13] sm:$0xf] }
  0x6b   : > { %1155 = vmatpush.bf16.msrb.mxu1 %v2930_v4  ;;  %v3091_v4 = vld [vmem:[%s5302_s4 + $0x308] sm:$0xf0]  ;;  %v3648_v7 = vld [vmem:[%s4572_s13 + $0x4] sm:$0xf0] }
  0x6c   : > { %v3094_v16 = vor.u32 %v3665_v9, %v3091_v4  ;;  %v3046_v9 = vor.u32 %v3653_v63, %v3043_v0  ;;  %v4594_v4 = vor.u32 %v3648_v7, %v3017_v6  ;;  %v3129_v63 = vld [vmem:[%s4423_s17] sm:$0xf]  ;;  %v3708_v6 = vld [vmem:[%s5302_s4 + $0x434] sm:$0xf0] }
  0x6d   : > { %971 = vmatmul.bf16.vlgmr.msra.gmra.mxu0 %v4296_v44  ;;  %v3633_v44 = vld [vmem:[%s5302_s4 + $0x214] sm:$0xf] }
  0x6e   : > { %1186 = vmatpush.bf16.msrb.mxu0 %v2974_v15  ;;  %2882 = vmatmul.msk.bf16.gmra.mxu2 %vm475_vm0, %v818_v30  ;;  %v2942_v51 = vor.u32 %v3633_v44, %v2939_v47  ;;  %v3041_v15 = vld [vmem:[%s5302_s4 + $0x2a0] sm:$0xf]  ;;  %v3217_v44 = vld [vmem:[%s5302_s4 + $0x3b0] sm:$0xf]  ;;  %v3692_v47 = vld [vmem:[%s5302_s4 + $0x3b4] sm:$0xf0] }
  0x6f   : > { %1156 = vmatpush.bf16.msrb.mxu1 %v2922_v8  ;;  %v3663_v8 = vld [vmem:[%s5302_s4 + $0x2f4] sm:$0xf]  ;;  %1398 = vmatpush.bf16.msrb.mxu3 %v3090_v11  ;;  %v3218_v50 = vor.u32 %v3692_v47, %v3217_v44  ;;  %v3035_v11 = vld [vmem:[%s5302_s4 + $0x298] sm:$0xf0]  ;;  %v3685_v47 = vld [vmem:[%s5302_s4 + $0x384] sm:$0xf] }
  0x70   : > { %1434 = vmatpush.bf16.msra.mxu2 %v3094_v16  ;;  %v3086_v24 = vor.u32 %v3663_v8, %v3083_v19  ;;  %v3019_v16 = vld [vmem:[%s4572_s13 + $0x8] sm:$0xf0] }
  0x71   : > { %v3027_v8 = vld [vmem:[%s5302_s4 + $0x288] sm:$0xf0] }
  0x72   : > { %1187 = vmatpush.bf16.msrb.mxu0 %v2966_v22  ;;  %v3042_v22 = vor.u32 %v3654_v17, %v3041_v15  ;;  %v3649_v17 = vld [vmem:[%s5302_s4 + $0x284] sm:$0xf] }
  0x73   : > { %1157 = vmatpush.bf16.msrb.mxu1 %v2914_v5  ;;  %v1036_v5 = vunpack.c.l.b16 %v1007_v20  ;;  %v3161_v20 = vld [vmem:[%s5302_s4 + $0x340] sm:$0xf] }
  0x75   : > { %v4520_v32 = vpack.c.b16 %v1036_v5, %v1036_v5  ;;  %v3690_v5 = vld [vmem:[%s5302_s4 + $0x3a4] sm:$0xf0] }
  0x76   : > { %1188 = vmatpush.bf16.msrb.mxu0 %v2958_v31  ;;  %v3067_v31 = vld [vmem:[%s5302_s4 + $0x2d8] sm:$0xf0] }
  0x77   : > { %1373 = vmatpush.bf16.msra.mxu1 %v3082_v3  ;;  %v3034_v3 = vor.u32 %v3652_v25, %v3033_v23  ;;  %v3170_v23 = vor.u32 %v3680_v14, %v3169_v13  ;;  %v3669_v25 = vld [vmem:[%s4423_s17 + $0x4] sm:$0xf]  ;;  %v3179_v13 = vld [vmem:[%s5302_s4 + $0x368] sm:$0xf0] }
  0x79   : > { %2880 = vmatmul.msk.bf16.gmra.mxu3 %vm475_vm0, %v818_v30  ;;  %1158 = vmatmul.bf16.vlgmr.msrb.gmra.mxu1 %v4445_v58  ;;  %v3659_v30 = vld [vmem:[%s5302_s4 + $0x2d4] sm:$0xf] }
  0x7a   : > { %1189 = vmatpush.bf16.msrb.mxu0 %v2950_v42  ;;  %v3070_v37 = vor.u32 %v3659_v30, %v3067_v31  ;;  %v3059_v42 = vld [vmem:[%s5302_s4 + $0x2c8] sm:$0xf0]  ;;  %v3671_v31 = vld [vmem:[%s4423_s17 + $0x14] sm:$0xf] }
  0x7b   : > { %1374 = vmatpush.bf16.msra.mxu1 %v3074_v39  ;;  %v3202_v39 = vor.u32 %v3688_v34, %v3201_v33  ;;  %v3062_v54 = vor.u32 %v3657_v38, %v3059_v42  ;;  %v3211_v30 = vld [vmem:[%s5302_s4 + $0x3a8] sm:$0xf0]  ;;  %v3139_v33 = vld [vmem:[%s4423_s17 + $0x18] sm:$0x10]  ;;  %v3030_v34 = vor.u32 %v3649_v17, %v3027_v8  ;;  %v3676_v42 = vld [vmem:[%s5302_s4 + $0x334] sm:$0xf0] }
  0x7d   : > { %976 = vmatmul.bf16.gmra.mxu0 %v4363_v18  ;;  %v3661_v18 = vld [vmem:[%s5302_s4 + $0x2e4] sm:$0xf] }
  0x7e   : > { %1190 = vmatpush.bf16.msrb.mxu0 %v2942_v51  ;;  %2993 = vmatmul.msk.bf16.vlgmr.msrb.gmra.mxu2 %vm475_vm0, %v2910_v10  ;;  %v3078_v28 = vor.u32 %v3661_v18, %v3075_v26  ;;  %v3219_v51 = vld [vmem:[%s5302_s4 + $0x3b8] sm:$0xf0]  ;;  %v3131_v18 = vld [vmem:[%s4423_s17 + $0x8] sm:$0xf0]  ;;  %v3209_v26 = vld [vmem:[%s5302_s4 + $0x3a0] sm:$0xf] }
  0x7f   : > { %1375 = vmatpush.bf16.msra.mxu1 %v3066_v48  ;;  %v3691_v48 = vld [vmem:[%s5302_s4 + $0x3b4] sm:$0xf]  ;;  %v3134_v27 = vor.u32 %v3669_v25, %v3131_v18  ;;  %v3210_v29 = vor.u32 %v3690_v5, %v3209_v26  ;;  %v3321_v18 = vld [vmem:[%s5302_s4 + $0x450] sm:$0xf]  ;;  %v3712_v26 = vld [vmem:[%s5302_s4 + $0x454] sm:$0xf0] }
  0x80   : > { %v3222_v55 = vor.u32 %v3691_v48, %v3219_v51  ;;  %v3195_v48 = vld [vmem:[%s5302_s4 + $0x388] sm:$0xf0]  ;;  %v1230_v51 = vld [vmem:[%s4572_s13 + $0x10] sm:$0xff] }
  0x81   : > { %v1505_v46 = vshrl.u32 %v3134_v27, 16  ;;  %v1507_v44 = vshll.u32 %v3134_v27, 16  ;;  %v3711_v5 = vld [vmem:[%s5302_s4 + $0x454] sm:$0xf] }
  0x82   : > { %1191 = vmatpush.bf16.msrb.mxu0 %v2934_v60  ;;  %v3185_v60 = vld [vmem:[%s5302_s4 + $0x370] sm:$0xf]  ;;  %1690 = vmatpush.bf16.msrb.mxu2 %v3222_v55 }
  0x83   : > { %1376 = vmatpush.bf16.msra.mxu1 %v3058_v53  ;;  %v3684_v53 = vld [vmem:[%s5302_s4 + $0x374] sm:$0xf0] }
  0x84   : > { %v3186_v62 = vor.u32 %v3684_v53, %v3185_v60  ;;  %v1259_v60 = vunpack.c.l.b16 %v1230_v51  ;;  %v3674_v53 = vld [vmem:[%s5302_s4 + $0x324] sm:$0xf0] }
  0x86   : > { %1192 = vmatpush.bf16.msrb.mxu0 %v2926_v52  ;;  %v3651_v52 = vld [vmem:[%s5302_s4 + $0x294] sm:$0xf] }
  0x87   : > { %1377 = vmatpush.bf16.msra.mxu1 %v3050_v12  ;;  %v3647_v12 = vld [vmem:[%s4572_s13 + $0x4] sm:$0xf]  ;;  %v3038_v19 = vor.u32 %v3651_v52, %v3035_v11  ;;  %v1260_v52 = vunpack.c.h.b16 %v1230_v51  ;;  %v4695_v11 = vpack.c.b16 %v1259_v60, %v1259_v60  ;;  %v3702_v51 = vld [vmem:[%s5302_s4 + $0x404] sm:$0xf0] }
  0x89   : > { %1163 = vmatmul.bf16.gmra.mxu1 %v4520_v32  ;;  %2991 = vmatmul.msk.bf16.vlgmr.msra.gmra.mxu3 %vm475_vm0, %v2910_v10  ;;  %v3178_v10 = vor.u32 %v3682_v2, %v3177_v1  ;;  %v3670_v1 = vld [vmem:[%s4423_s17 + $0x4] sm:$0xf0]  ;;  %v3305_v2 = vld [vmem:[%s5302_s4 + $0x430] sm:$0xf]  ;;  %v1264_v25 = vpack.c.b16 %v1260_v52, %v1260_v52 }
  0x8a   : > { %1193 = vmatpush.bf16.msrb.mxu0 %v2918_v21  ;;  %1654 = vmatpush.bf16.msra.mxu3 %v3218_v50  ;;  %v3678_v21 = vld [vmem:[%s5302_s4 + $0x344] sm:$0xf0]  ;;  %v3130_v17 = vor.u32 %v3670_v1, %v3129_v63  ;;  %v3306_v8 = vor.u32 %v3708_v6, %v3305_v2  ;;  %v3273_v1 = vld [vmem:[%s5302_s4 + $0x3f0] sm:$0xf]  ;;  %v3700_v2 = vld [vmem:[%s5302_s4 + $0x3f4] sm:$0xf0] }
  0x8b   : > { %1378 = vmatpush.bf16.msra.mxu1 %v3042_v22  ;;  %v3687_v22 = vld [vmem:[%s5302_s4 + $0x394] sm:$0xf]  ;;  %v3162_v38 = vor.u32 %v3678_v21, %v3161_v20  ;;  %v3297_v20 = vld [vmem:[%s5302_s4 + $0x420] sm:$0xf]  ;;  %v3706_v21 = vld [vmem:[%s5302_s4 + $0x424] sm:$0xf0] }
  0x8d   : > { %1194 = vmatmul.bf16.vlgmr.msrb.gmra.mxu0 %v4445_v58  ;;  %v3054_v58 = vor.u32 %v3655_v57, %v3051_v59  ;;  %v3198_v57 = vor.u32 %v3685_v47, %v3195_v48 }
  0x8e   : > { %1409 = vmatpush.bf16.msra.mxu0 %v3086_v24  ;;  %2994 = vmatmul.msk.bf16.gmra.mxu2 %vm475_vm0, %v1041_v49  ;;  %v3203_v24 = vld [vmem:[%s5302_s4 + $0x398] sm:$0xf0] }
  0x8f   : > { %1379 = vmatpush.bf16.msra.mxu1 %v3034_v3  ;;  %v3689_v3 = vld [vmem:[%s5302_s4 + $0x3a4] sm:$0xf]  ;;  %v3206_v43 = vor.u32 %v3687_v22, %v3203_v24  ;;  %1655 = vmatpush.bf16.msra.mxu3 %v3210_v29  ;;  %v3171_v24 = vld [vmem:[%s5302_s4 + $0x358] sm:$0xf0]  ;;  %v1495_v29 = vshll.u32 %v3130_v17, 16 }
  0x90   : > { %v3214_v35 = vor.u32 %v3689_v3, %v3211_v30  ;;  %v3298_v30 = vor.u32 %v3706_v21, %v3297_v20  ;;  %v3307_v20 = vld [vmem:[%s5302_s4 + $0x438] sm:$0xf0] }
  0x91   : > { %v1497_v47 = vrot.slane %v1495_v29, 1 }
  0x92   : > { %1410 = vmatpush.bf16.msra.mxu0 %v3078_v28  ;;  %v4637_v28 = vor.u32 %v3647_v12, %v3019_v16  ;;  %1691 = vmatpush.bf16.msrb.mxu2 %v3214_v35  ;;  %v3681_v12 = vld [vmem:[%s5302_s4 + $0x364] sm:$0xf]  ;;  %v3137_v16 = vld [vmem:[%s4423_s17 + $0x10] sm:$0xf]  ;;  %v3704_v35 = vld [vmem:[%s5302_s4 + $0x414] sm:$0xf0] }
  0x93   : > { %1380 = vmatpush.bf16.msra.mxu1 %v3026_v36  ;;  %v4644_v36 = vor.u32 %v3671_v31, %v3139_v33  ;;  %v3182_v22 = vor.u32 %v3681_v12, %v3179_v13  ;;  %v3323_v31 = vld [vmem:[%s5302_s4 + $0x458] sm:$0xf0]  ;;  %v3274_v12 = vor.u32 %v3700_v2, %v3273_v1 }
  0x96   : > { %1411 = vmatpush.bf16.msra.mxu0 %v3070_v37  ;;  %v4603_v15 = vpop.f32.mrf.mxu1 }
  0x97   : > { %1630 = vmatpush.bf16.msrb.mxu1 %v3202_v39  ;;  %v3153_v39 = vld [vmem:[%s5302_s4 + $0x330] sm:$0xf] }
  0x98   : > { %v3154_v55 = vor.u32 %v3676_v42, %v3153_v39 }
  0x99   : > { %2992 = vmatmul.msk.bf16.gmra.mxu3 %vm475_vm0, %v1041_v49  ;;  %1381 = vmatmul.bf16.vlgmr.msra.gmra.mxu1 %v4594_v4  ;;  %v1512_v49 = vshll.u32 %v4644_v36, 16 }
  0x9a   : > { %1412 = vmatpush.bf16.msra.mxu0 %v3062_v54 }
  0x9b   : > { %1631 = vmatpush.bf16.msrb.mxu1 %v3194_v56  ;;  %v4667_v54 = vrot.slane %v1512_v49, 1  ;;  %v3145_v56 = vld [vmem:[%s5302_s4 + $0x320] sm:$0xf] }
  0x9c   : > { %v4646_v37 = vpop.f32.mrf.mxu3 }
  0x9d   : > { %1199 = vmatmul.bf16.gmra.mxu0 %v4520_v32  ;;  %v1509_v32 = vrot.slane %v1507_v44, 1  ;;  %v1493_v44 = vshrl.u32 %v3130_v17, 16  ;;  %v3698_v17 = vld [vmem:[%s5302_s4 + $0x3e4] sm:$0xf0] }
  0x9e   : > { %1413 = vmatpush.bf16.msra.mxu0 %v3054_v58  ;;  %v4662_v50 = vpop.f32.mrf.mxu1  ;;  %3105 = vmatmul.msk.bf16.vlgmr.msra.gmra.mxu2 %vm475_vm0, %v4637_v28  ;;  %v3683_v58 = vld [vmem:[%s5302_s4 + $0x374] sm:$0xf] }
  0x9f   : > { %1632 = vmatpush.bf16.msrb.mxu1 %v3186_v62  ;;  %v1510_v59 = vor.u32 %v1509_v32, %v1505_v46  ;;  %v3187_v62 = vld [vmem:[%s5302_s4 + $0x378] sm:$0xf0] }
  0xa1   : > { %v4684_v0 = vsel %vm788_vm1, %v1510_v59, %v4667_v54 }
  0xa2   : > { %1414 = vmatpush.bf16.msra.mxu0 %v3046_v9  ;;  %v3146_v9 = vor.u32 %v3674_v53, %v3145_v56  ;;  %v3675_v56 = vld [vmem:[%s5302_s4 + $0x334] sm:$0xf]  ;;  %v1498_v53 = vor.u32 %v1497_v47, %v1493_v44  ;;  %v3249_v47 = vld [vmem:[%s5302_s4 + $0x3c0] sm:$0xf] }
  0xa3   : > { %1633 = vmatpush.bf16.msrb.mxu1 %v3178_v10  ;;  %v3190_v10 = vor.u32 %v3683_v58, %v3187_v62 }
  0xa4   : > { %v4693_v7 = vpop.f32.mrf.mxu3 }
  0xa6   : > { %1415 = vmatpush.bf16.msra.mxu0 %v3038_v19  ;;  %v4703_v14 = vpop.f32.mrf.mxu1  ;;  %v3672_v19 = vld [vmem:[%s4423_s17 + $0x14] sm:$0x10] }
  0xa7   : > { %1634 = vmatpush.bf16.msrb.mxu1 %v3170_v23  ;;  %v3679_v23 = vld [vmem:[%s5302_s4 + $0x354] sm:$0xf]  ;;  %v4731_v27 = vor.u32 %v3672_v19, %v3137_v16  ;;  %v3265_v16 = vld [vmem:[%s5302_s4 + $0x3e0] sm:$0xf] }
  0xa8   : > { %v3174_v42 = vor.u32 %v3679_v23, %v3171_v24  ;;  %v3707_v19 = vld [vmem:[%s5302_s4 + $0x434] sm:$0xf]  ;;  %v3710_v23 = vld [vmem:[%s5302_s4 + $0x444] sm:$0xf0]  ;;  %v3709_v24 = vld [vmem:[%s5302_s4 + $0x444] sm:$0xf] }
  0xa9   : > { %1386 = vmatmul.bf16.gmra.mxu1 %v4695_v11  ;;  %3103 = vmatmul.msk.bf16.vlgmr.msrb.gmra.mxu3 %vm475_vm0, %v4637_v28  ;;  %v3322_v28 = vor.u32 %v3712_v26, %v3321_v18  ;;  %v1500_v48 = vshll.u32 %v4731_v27, 16  ;;  %v3266_v26 = vor.u32 %v3698_v17, %v3265_v16  ;;  %v1519_v17 = vshrl.u32 %v4644_v36, 16 }
  0xaa   : > { %1416 = vmatpush.bf16.msra.mxu0 %v3030_v34  ;;  %v491_v3 = vpop.f32.mrf.mxu0  ;;  %v3289_v34 = vld [vmem:[%s5302_s4 + $0x410] sm:$0xf] }
  0xab   : > { %1635 = vmatpush.bf16.msrb.mxu1 %v3162_v38  ;;  %v510_v33 = vadd.f32 %v4603_v15, %v491_v3  ;;  %v3326_v38 = vor.u32 %v3711_v5, %v3323_v31  ;;  %1908 = vmatpush.bf16.msrb.mxu3 %v3322_v28  ;;  %v3677_v15 = vld [vmem:[%s5302_s4 + $0x344] sm:$0xf]  ;;  %v3290_v49 = vor.u32 %v3704_v35, %v3289_v34  ;;  %v4769_v58 = vrot.slane %v1500_v48, 1  ;;  %v3315_v3 = vld [vmem:[%s5302_s4 + $0x448] sm:$0xf0] }
  0xac   : > { %v4743_v39 = vpop.f32.mrf.mxu3  ;;  %v3310_v28 = vor.u32 %v3707_v19, %v3307_v20  ;;  %v4825_v31 = vld [vmem:[%s4074_s27] sm:$0xcc]  ;;  %v3694_v48 = vld [vmem:[%s5302_s4 + $0x3c4] sm:$0xf0] }
  0xad   : > { %1417 = vmatmul.bf16.vlgmr.msra.gmra.mxu0 %v4594_v4  ;;  %1944 = vmatpush.bf16.msra.mxu2 %v3326_v38  ;;  %v3281_v4 = vld [vmem:[%s5302_s4 + $0x400] sm:$0xf]  ;;  %v4786_v52 = vsel %vm788_vm1, %v1498_v53, %v4769_v58  ;;  %v3705_v35 = vld [vmem:[%s5302_s4 + $0x424] sm:$0xf]  ;;  %v1709_v38 = vld [vmem:[%s4074_s27 + $0x18] sm:$0x77] }
  0xae   : > { %1666 = vmatpush.bf16.msrb.mxu0 %v3206_v43  ;;  %v3163_v43 = vld [vmem:[%s5302_s4 + $0x348] sm:$0xf0]  ;;  %v516_v46 = vpop.f32.mrf.mxu1  ;;  %3106 = vmatmul.msk.bf16.gmra.mxu2 %vm475_vm0, %v1264_v25  ;;  %v3282_v62 = vor.u32 %v3702_v51, %v3281_v4  ;;  %v1735_v4 = vunpack.c.l.b16 %v1709_v38  ;;  %v3291_v51 = vld [vmem:[%s5302_s4 + $0x418] sm:$0xf0] }
  0xaf   : > { %1636 = vmatpush.bf16.msrb.mxu1 %v3154_v55  ;;  %v3166_v32 = vor.u32 %v3677_v15, %v3163_v43  ;;  %v1733_v46 = vunpack.c.l.b16 %v4825_v31 }
  0xb1   : > { %v527_v55 = vpop.f32.mrf.mxu2 }
  0xb2   : > { %1667 = vmatpush.bf16.msrb.mxu0 %v3198_v57  ;;  %v3155_v57 = vld [vmem:[%s5302_s4 + $0x338] sm:$0xf0]  ;;  %v4767_v59 = vadd.f32 %v4646_v37, %v527_v55  ;;  %v493_v60 = vpop.f32.mrf.mxu0  ;;  %v3732_v55 = vld [vmem:[%s5302_s4 + $0x4d4] sm:$0xf0] }
  0xb3   : > { %1637 = vmatpush.bf16.msrb.mxu1 %v3146_v9  ;;  %v512_v63 = vadd.f32 %v4662_v50, %v493_v60  ;;  %v3158_v37 = vor.u32 %v3675_v56, %v3155_v57  ;;  %v3673_v9 = vld [vmem:[%s5302_s4 + $0x324] sm:$0xf]  ;;  %v1516_v57 = vshrl.u32 %v4731_v27, 16  ;;  %v3283_v27 = vld [vmem:[%s5302_s4 + $0x408] sm:$0xf0] }
  0xb4   : > { %v552_v6 = vpop.f32.mrf.mxu3 }
  0xb5   : > { %v3701_v6 = vld [vmem:[%s5302_s4 + $0x404] sm:$0xf] }
  0xb6   : > { %1668 = vmatpush.bf16.msrb.mxu0 %v3190_v10  ;;  %v3147_v10 = vld [vmem:[%s5302_s4 + $0x328] sm:$0xf0]  ;;  %v684_v50 = vpop.f32.mrf.mxu1 }
  0xb7   : > { %1884 = vmatpush.bf16.msra.mxu1 %v3306_v8  ;;  %v685_v13 = vadd.f32 %v684_v50, %v510_v33  ;;  %v3150_v8 = vor.u32 %v3673_v9, %v3147_v10  ;;  %v3318_v33 = vor.u32 %v3709_v24, %v3315_v3  ;;  %v3730_v10 = vld [vmem:[%s5302_s4 + $0x4c4] sm:$0xf0]  ;;  %v1736_v50 = vunpack.c.h.b16 %v1709_v38 }
  0xb9   : > { %3104 = vmatmul.msk.bf16.gmra.mxu3 %vm475_vm0, %v1264_v25  ;;  %1638 = vmatmul.bf16.vlgmr.msrb.gmra.mxu1 %v4786_v52  ;;  %v529_v21 = vpop.f32.mrf.mxu2 }
  0xba   : > { %1669 = vmatpush.bf16.msrb.mxu0 %v3182_v22  ;;  %v3313_v22 = vld [vmem:[%s5302_s4 + $0x440] sm:$0xf]  ;;  %v4812_v18 = vadd.f32 %v4693_v7, %v529_v21  ;;  %v496_v25 = vpop.f32.mrf.mxu0  ;;  %v3696_v7 = vld [vmem:[%s5302_s4 + $0x3d4] sm:$0xf0]  ;;  %1945 = vmatpush.bf16.msra.mxu2 %v3318_v33  ;;  %v3286_v21 = vor.u32 %v3701_v6, %v3283_v27 }
  0xbb   : > { %1885 = vmatpush.bf16.msra.mxu1 %v3298_v30  ;;  %v3314_v5 = vor.u32 %v3710_v23, %v3313_v22  ;;  %v515_v29 = vadd.f32 %v4703_v14, %v496_v25  ;;  %v3257_v30 = vld [vmem:[%s5302_s4 + $0x3d0] sm:$0xf]  ;;  %v3299_v14 = vld [vmem:[%s5302_s4 + $0x428] sm:$0xf0]  ;;  %v3699_v23 = vld [vmem:[%s5302_s4 + $0x3f4] sm:$0xf] }
  0xbc   : > { %v702_v34 = vpop.f32.mrf.mxu3  ;;  %v3258_v43 = vor.u32 %v3696_v7, %v3257_v30  ;;  %v3409_v25 = vld [vmem:[%s5302_s4 + $0x4b0] sm:$0xf]  ;;  %v3736_v7 = vld [vmem:[%s5302_s4 + $0x4f4] sm:$0xf0] }
  0xbd   : > { %1909 = vmatpush.bf16.msrb.mxu3 %v3314_v5  ;;  %1422 = vmatmul.bf16.gmra.mxu0 %v4695_v11  ;;  %v3302_v11 = vor.u32 %v3705_v35, %v3299_v14  ;;  %v4900_v5 = vpack.c.b16 %v1736_v50, %v4177_v41  ;;  %v3441_v30 = vld [vmem:[%s5302_s4 + $0x4f0] sm:$0xf]  ;;  %v3735_v41 = vld [vmem:[%s5302_s4 + $0x4f4] sm:$0xf]  ;;  %v3443_v35 = vld [vmem:[%s5302_s4 + $0x4f8] sm:$0xf0] }
  0xbe   : > { %1670 = vmatpush.bf16.msrb.mxu0 %v3174_v42  ;;  %v4834_v42 = vadd.f32 %v702_v34, %v685_v13  ;;  %v686_v15 = vpop.f32.mrf.mxu1  ;;  %3225 = vmatmul.msk.bf16.vlgmr.msrb.gmra.mxu2 %vm475_vm0, %v4684_v0  ;;  %v4881_v13 = vor.u32 %v1516_v57, %v4769_v58  ;;  %v3275_v58 = vld [vmem:[%s5302_s4 + $0x3f8] sm:$0xf0]  ;;  %v3442_v34 = vor.u32 %v3736_v7, %v3441_v30  ;;  %v3377_v7 = vld [vmem:[%s5302_s4 + $0x470] sm:$0xf] }
  0xbf   : > { %1886 = vmatpush.bf16.msra.mxu1 %v3290_v49  ;;  %v687_v44 = vadd.f32 %v686_v15, %v512_v63  ;;  %v3703_v49 = vld [vmem:[%s5302_s4 + $0x414] sm:$0xf]  ;;  %v1737_v63 = vpack.c.b16 %v4185_v45, %v1733_v46  ;;  %v3278_v33 = vor.u32 %v3699_v23, %v3275_v58  ;;  %v3446_v46 = vor.u32 %v3735_v41, %v3443_v35  ;;  %v3385_v23 = vld [vmem:[%s5302_s4 + $0x480] sm:$0xf]  ;;  %v3720_v41 = vld [vmem:[%s5302_s4 + $0x474] sm:$0xf0] }
  0xc0   : > { %v3294_v1 = vor.u32 %v3703_v49, %v3291_v51  ;;  %v3731_v58 = vld [vmem:[%s5302_s4 + $0x4d4] sm:$0xf]  ;;  %v3433_v35 = vld [vmem:[%s5302_s4 + $0x4e0] sm:$0xf] }
  0xc1   : > { %v532_v56 = vpop.f32.mrf.mxu2  ;;  %v1746_v20 = vshll.u32 %v1737_v63, 16  ;;  %2205 = vmatpush.bf16.msrb.mxu2 %v3446_v46 }
  0xc2   : > { %1671 = vmatpush.bf16.msrb.mxu0 %v3166_v32  ;;  %v3425_v32 = vld [vmem:[%s5302_s4 + $0x4d0] sm:$0xf]  ;;  %v4860_v60 = vadd.f32 %v4743_v39, %v532_v56  ;;  %v498_v53 = vpop.f32.mrf.mxu0  ;;  %v3417_v39 = vld [vmem:[%s5302_s4 + $0x4c0] sm:$0xf]  ;;  %v1771_v56 = vshll.u32 %v4900_v5, 16 }
  0xc3   : > { %1887 = vmatpush.bf16.msra.mxu1 %v3282_v62  ;;  %v3250_v62 = vor.u32 %v3694_v48, %v3249_v47  ;;  %v3426_v2 = vor.u32 %v3732_v55, %v3425_v32  ;;  %v3418_v22 = vor.u32 %v3730_v10, %v3417_v39  ;;  %v1748_v38 = vrot.slane %v1746_v20, 3  ;;  %v3401_v47 = vld [vmem:[%s5302_s4 + $0x4a0] sm:$0xf]  ;;  %v3693_v20 = vld [vmem:[%s5302_s4 + $0x3c4] sm:$0xf] }
  0xc4   : > { %v704_v9 = vpop.f32.mrf.mxu3  ;;  %v1768_v55 = vshrl.u32 %v4900_v5, 16 }
  0xc6   : > { %1672 = vmatpush.bf16.msrb.mxu0 %v3158_v37  ;;  %v4867_v37 = vpack.c.b16 %v1735_v4, %v4175_v40  ;;  %v1734_v40 = vunpack.c.h.b16 %v4825_v31  ;;  %v689_v16 = vpop.f32.mrf.mxu1  ;;  %v4916_v31 = vor.u32 %v1519_v17, %v4667_v54 }
  0xc7   : > { %1888 = vmatpush.bf16.msra.mxu1 %v3274_v12  ;;  %v4878_v12 = vadd.f32 %v704_v9, %v687_v44  ;;  %v690_v19 = vadd.f32 %v689_v16, %v515_v29  ;;  %v3267_v44 = vld [vmem:[%s5302_s4 + $0x3e8] sm:$0xf0]  ;;  %v1773_v16 = vrot.slane %v1771_v56, 3  ;;  %v3529_v56 = vld [vmem:[%s5302_s4 + $0x570] sm:$0xf] }
  0xc8   : > { %v1751_v24 = vshrl.u32 %v4867_v37, 16  ;;  %v1754_v36 = vshll.u32 %v4867_v37, 16  ;;  %v1738_v29 = vpack.c.b16 %v4212_v61, %v1734_v40  ;;  %v1770_v40 = vrot.slane %v1768_v55, 2  ;;  %v3411_v55 = vld [vmem:[%s5302_s4 + $0x4b8] sm:$0xf0] }
  0xc9   : > { %1643 = vmatmul.bf16.gmra.mxu1 %v4881_v13  ;;  %3223 = vmatmul.msk.bf16.vlgmr.msra.gmra.mxu3 %vm475_vm0, %v4684_v0  ;;  %v534_v3 = vpop.f32.mrf.mxu2 }
  0xca   : > { %1673 = vmatpush.bf16.msrb.mxu0 %v3150_v8  ;;  %v1743_v8 = vshrl.u32 %v1737_v63, 16  ;;  %2169 = vmatpush.bf16.msra.mxu3 %v3442_v34  ;;  %v1756_v49 = vrot.slane %v1754_v36, 3  ;;  %v1760_v4 = vshrl.u32 %v1738_v29, 16  ;;  %v1763_v32 = vshll.u32 %v1738_v29, 16  ;;  %v3393_v63 = vld [vmem:[%s5302_s4 + $0x490] sm:$0xf] }
  0xcb   : > { %1889 = vmatpush.bf16.msra.mxu1 %v3266_v26  ;;  %v3728_v26 = vld [vmem:[%s5302_s4 + $0x4b4] sm:$0xf0]  ;;  %v4982_v3 = vor.u32 %v1773_v16, %v1770_v40 }
  0xcc   : > { %v1745_v0 = vrot.slane %v1743_v8, 2  ;;  %v3410_v15 = vor.u32 %v3728_v26, %v3409_v25  ;;  %v707_v54 = vpop.f32.mrf.mxu3  ;;  %v1762_v27 = vrot.slane %v1760_v4, 2  ;;  %v1765_v50 = vrot.slane %v1763_v32, 3  ;;  %v3718_v4 = vld [vmem:[%s5302_s4 + $0x464] sm:$0xf0] }
  0xcd   : > { %v4934_v48 = vadd.f32 %v707_v54, %v690_v19  ;;  %1674 = vmatmul.bf16.vlgmr.msrb.gmra.mxu0 %v4786_v52  ;;  %v3695_v52 = vld [vmem:[%s5302_s4 + $0x3d4] sm:$0xf]  ;;  %v3435_v54 = vld [vmem:[%s5302_s4 + $0x4e8] sm:$0xf0] }
  0xce   : > { %1920 = vmatpush.bf16.msra.mxu0 %v3310_v28  ;;  %v720_v28 = vpop.f32.mrf.mxu0  ;;  %v691_v51 = vpop.f32.mrf.mxu1  ;;  %3226 = vmatmul.msk.bf16.gmra.mxu2 %vm475_vm0, %v4916_v31  ;;  %v1749_v6 = vor.u32 %v1748_v38, %v1745_v0  ;;  %v1766_v26 = vor.u32 %v1765_v50, %v1762_v27  ;;  %v3729_v0 = vld [vmem:[%s5302_s4 + $0x4c4] sm:$0xf]  ;;  %v3403_v27 = vld [vmem:[%s5302_s4 + $0x4a8] sm:$0xf0]  ;;  %v3750_v50 = vld [vmem:[%s5302_s4 + $0x564] sm:$0xf0] }
  0xcf   : > { %1890 = vmatpush.bf16.msra.mxu1 %v3258_v43  ;;  %v721_v14 = vadd.f32 %v720_v28, %v4767_v59  ;;  %v3697_v43 = vld [vmem:[%s5302_s4 + $0x3e4] sm:$0xf]  ;;  %v3726_v59 = vld [vmem:[%s5302_s4 + $0x4a4] sm:$0xf0] }
  0xd0   : > { %v3270_v57 = vor.u32 %v3697_v43, %v3267_v44  ;;  %v3402_v53 = vor.u32 %v3726_v59, %v3401_v47  ;;  %v3733_v38 = vld [vmem:[%s5302_s4 + $0x4e4] sm:$0xf]  ;;  %v3378_v47 = vor.u32 %v3720_v41, %v3377_v7  ;;  %v3355_v41 = vld [vmem:[%s3921_s12 + $0x8] sm:$0xf0] }
  0xd1   : > { %v3438_v59 = vor.u32 %v3733_v38, %v3435_v54  ;;  %v3713_v7 = vld [vmem:[%s3921_s12 + $0x4] sm:$0xc]  ;;  %v3505_v38 = vld [vmem:[%s5302_s4 + $0x540] sm:$0xf]  ;;  %v3545_v54 = vld [vmem:[%s5302_s4 + $0x590] sm:$0xf] }
  0xd2   : > { %1921 = vmatpush.bf16.msra.mxu0 %v3302_v11  ;;  %v1753_v11 = vrot.slane %v1751_v24, 2  ;;  %v3427_v24 = vld [vmem:[%s5302_s4 + $0x4d8] sm:$0xf0] }
  0xd3   : > { %1891 = vmatpush.bf16.msra.mxu1 %v3250_v62  ;;  %v3259_v62 = vld [vmem:[%s5302_s4 + $0x3d8] sm:$0xf0]  ;;  %v3430_v28 = vor.u32 %v3731_v58, %v3427_v24  ;;  %2206 = vmatpush.bf16.msrb.mxu2 %v3438_v59  ;;  %v3748_v58 = vld [vmem:[%s5302_s4 + $0x554] sm:$0xf0] }
  0xd4   : > { %v4953_v9 = vor.u32 %v1756_v49, %v1753_v11  ;;  %v3262_v8 = vor.u32 %v3695_v52, %v3259_v62  ;;  %v3369_v49 = vld [vmem:[%s5302_s4 + $0x460] sm:$0xf]  ;;  %v3714_v62 = vld [vmem:[%s3921_s12 + $0x4] sm:$0xf0] }
  0xd5   : > { %v3353_v52 = vld [vmem:[%s3921_s12] sm:$0xc] }
  0xd6   : > { %1922 = vmatpush.bf16.msra.mxu0 %v3294_v1  ;;  %v3724_v1 = vld [vmem:[%s5302_s4 + $0x494] sm:$0xf0]  ;;  %v722_v10 = vpop.f32.mrf.mxu0  ;;  %v4976_v36 = vpop.f32.mrf.mxu1  ;;  %v4980_v25 = vsel %vm1741_vm2, %v1749_v6, %v4953_v9  ;;  %v3354_v16 = vor.u32 %v3714_v62, %v3353_v52 }
  0xd7   : > { %2145 = vmatpush.bf16.msrb.mxu1 %v3426_v2  ;;  %v738_v2 = vpop.f32.mrf.mxu2  ;;  %v723_v17 = vadd.f32 %v722_v10, %v4812_v18  ;;  %v3394_v19 = vor.u32 %v3724_v1, %v3393_v63  ;;  %v3722_v18 = vld [vmem:[%s5302_s4 + $0x484] sm:$0xf0]  ;;  %v3521_v10 = vld [vmem:[%s5302_s4 + $0x560] sm:$0xf] }
  0xd8   : > { %v4955_v39 = vadd.f32 %v738_v2, %v721_v14  ;;  %v3386_v30 = vor.u32 %v3722_v18, %v3385_v23  ;;  %v3734_v14 = vld [vmem:[%s5302_s4 + $0x4e4] sm:$0xf0]  ;;  %v3725_v2 = vld [vmem:[%s5302_s4 + $0x4a4] sm:$0xf]  ;;  %v3395_v23 = vld [vmem:[%s5302_s4 + $0x498] sm:$0xf0] }
  0xd9   : > { %3224 = vmatmul.msk.bf16.gmra.mxu3 %vm475_vm0, %v4916_v31  ;;  %1892 = vmatmul.bf16.vlgmr.msra.gmra.mxu1 %v4980_v25  ;;  %v5012_v31 = vsel %vm1741_vm2, %v1766_v26, %v4982_v3  ;;  %v3434_v46 = vor.u32 %v3734_v14, %v3433_v35  ;;  %v3513_v18 = vld [vmem:[%s5302_s4 + $0x550] sm:$0xf]  ;;  %v3387_v14 = vld [vmem:[%s5302_s4 + $0x488] sm:$0xf0] }
  0xda   : > { %1923 = vmatpush.bf16.msra.mxu0 %v3286_v21  ;;  %v709_v21 = vpop.f32.mrf.mxu3  ;;  %v3514_v35 = vor.u32 %v3748_v58, %v3513_v18  ;;  %v3371_v18 = vld [vmem:[%s5302_s4 + $0x468] sm:$0xf0]  ;;  %v3742_v58 = vld [vmem:[%s5302_s4 + $0x524] sm:$0xf0] }
  0xdb   : > { %2146 = vmatpush.bf16.msrb.mxu1 %v3418_v22  ;;  %v3251_v22 = vld [vmem:[%s5302_s4 + $0x3c8] sm:$0xf0]  ;;  %2170 = vmatpush.bf16.msra.mxu3 %v3434_v46  ;;  %v3522_v21 = vor.u32 %v3750_v50, %v3521_v10  ;;  %v3497_v10 = vld [vmem:[%s5302_s4 + $0x530] sm:$0xf]  ;;  %v3744_v50 = vld [vmem:[%s5302_s4 + $0x534] sm:$0xf0] }
  0xdc   : > { %v3254_v29 = vor.u32 %v3693_v20, %v3251_v22  ;;  %v3406_v20 = vor.u32 %v3725_v2, %v3403_v27  ;;  %v3723_v22 = vld [vmem:[%s5302_s4 + $0x494] sm:$0xf] }
  0xdd   : > { %1679 = vmatmul.bf16.gmra.mxu0 %v4881_v13  ;;  %v3370_v13 = vor.u32 %v3718_v4, %v3369_v49  ;;  %v3358_v4 = vor.u32 %v3713_v7, %v3355_v41 }
  0xde   : > { %1924 = vmatpush.bf16.msra.mxu0 %v3278_v33  ;;  %v3419_v33 = vld [vmem:[%s5302_s4 + $0x4c8] sm:$0xf0]  ;;  %v725_v43 = vpop.f32.mrf.mxu0  ;;  %3329 = vmatmul.msk.bf16.vlgmr.msra.gmra.mxu2 %vm475_vm0, %v5012_v31 }
  0xdf   : > { %2147 = vmatpush.bf16.msrb.mxu1 %v3410_v15  ;;  %v740_v34 = vpop.f32.mrf.mxu2  ;;  %v726_v44 = vadd.f32 %v725_v43, %v4860_v60  ;;  %v3422_v51 = vor.u32 %v3729_v0, %v3419_v33  ;;  %v3727_v60 = vld [vmem:[%s5302_s4 + $0x4b4] sm:$0xf]  ;;  %v3363_v0 = vld [vmem:[%s3921_s12 + $0x18] sm:$0x70]  ;;  %v3721_v33 = vld [vmem:[%s5302_s4 + $0x484] sm:$0xf] }
  0xe0   : > { %v5008_v15 = vadd.f32 %v740_v34, %v723_v17  ;;  %v3414_v63 = vor.u32 %v3727_v60, %v3411_v55  ;;  %v3361_v17 = vld [vmem:[%s3921_s12 + $0x10] sm:$0xf]  ;;  %v3398_v34 = vor.u32 %v3723_v22, %v3395_v23  ;;  %v3746_v43 = vld [vmem:[%s5302_s4 + $0x544] sm:$0xf0]  ;;  %v3390_v62 = vor.u32 %v3721_v33, %v3387_v14  ;;  %v3717_v22 = vld [vmem:[%s5302_s4 + $0x464] sm:$0xf] }
  0xe2   : > { %1925 = vmatpush.bf16.msra.mxu0 %v3270_v57  ;;  %v743_v11 = vpop.f32.mrf.mxu3  ;;  %v3752_v57 = vld [vmem:[%s5302_s4 + $0x574] sm:$0xf0] }
  0xe3   : > { %2148 = vmatpush.bf16.msrb.mxu1 %v3402_v53  ;;  %v5027_v32 = vadd.f32 %v743_v11, %v726_v44  ;;  %v5039_v53 = vpop.f32.mrf.mxu1  ;;  %v3530_v1 = vor.u32 %v3752_v57, %v3529_v56  ;;  %v3756_v44 = vld [vmem:[%s5302_s4 + $0x594] sm:$0xf0] }
  0xe6   : > { %1926 = vmatpush.bf16.msra.mxu0 %v3262_v8  ;;  %v727_v40 = vpop.f32.mrf.mxu0  ;;  %v3716_v8 = vld [vmem:[%s3921_s12 + $0x14] sm:$0x70] }
  0xe7   : > { %2149 = vmatpush.bf16.msrb.mxu1 %v3394_v19  ;;  %v990_v6 = vpop.f32.mrf.mxu2  ;;  %v3362_v26 = vor.u32 %v3716_v8, %v3361_v17 }
  0xe9   : > { %1897 = vmatmul.bf16.gmra.mxu1 %v4953_v9  ;;  %3327 = vmatmul.msk.bf16.vlgmr.msrb.gmra.mxu3 %vm475_vm0, %v5012_v31  ;;  %v2012_v11 = vshrl.u32 %v3362_v26, 16  ;;  %v2015_v49 = vshll.u32 %v3362_v26, 16  ;;  %v3547_v31 = vld [vmem:[%s5302_s4 + $0x598] sm:$0xf0] }
  0xea   : > { %1927 = vmatpush.bf16.msra.mxu0 %v3254_v29  ;;  %v745_v19 = vpop.f32.mrf.mxu3  ;;  %v2004_v29 = vshrl.u32 %v3354_v16, 16 }
  0xeb   : > { %2150 = vmatpush.bf16.msrb.mxu1 %v3386_v30  ;;  %v5071_v24 = vpop.f32.mrf.mxu1  ;;  %v2007_v30 = vshll.u32 %v3354_v16, 16  ;;  %v2024_v16 = vshll.u32 %v3358_v4, 16 }
  0xed   : > { %v2009_v52 = vrot.slane %v2007_v30, 3  ;;  %1928 = vmatmul.bf16.vlgmr.msra.gmra.mxu0 %v4980_v25  ;;  %v2021_v25 = vshrl.u32 %v3358_v4, 16  ;;  %v2026_v41 = vrot.slane %v2024_v16, 3 }
  0xee   : > { %2181 = vmatpush.bf16.msrb.mxu0 %v3430_v28  ;;  %v3715_v28 = vld [vmem:[%s3921_s12 + $0x14] sm:$0xf]  ;;  %v972_v59 = vpop.f32.mrf.mxu0  ;;  %3330 = vmatmul.msk.bf16.gmra.mxu2 %vm475_vm0, %v4982_v3 }
  0xef   : > { %2151 = vmatpush.bf16.msrb.mxu1 %v3378_v47  ;;  %v992_v46 = vpop.f32.mrf.mxu2  ;;  %v3755_v47 = vld [vmem:[%s5302_s4 + $0x594] sm:$0xf]  ;;  %v991_v60 = vadd.f32 %v990_v6, %v972_v59  ;;  %v3366_v55 = vor.u32 %v3715_v28, %v3363_v0  ;;  %v3379_v6 = vld [vmem:[%s5302_s4 + $0x478] sm:$0xf0]  ;;  %v2023_v7 = vrot.slane %v2021_v25, 2 }
  0xf0   : > { %v3550_v56 = vor.u32 %v3755_v47, %v3547_v31  ;;  %v3740_v47 = vld [vmem:[%s5302_s4 + $0x514] sm:$0xf0]  ;;  %v3523_v31 = vld [vmem:[%s5302_s4 + $0x568] sm:$0xf0] }
  0xf1   : > { %v5109_v27 = vadd.f32 %v991_v60, %v4955_v39  ;;  %v2014_v39 = vrot.slane %v2012_v11, 2  ;;  %v2029_v8 = vshrl.u32 %v3366_v55, 16  ;;  %v2032_v19 = vshll.u32 %v3366_v55, 16  ;;  %v3473_v55 = vld [vmem:[%s5302_s4 + $0x500] sm:$0xf] }
  0xf2   : > { %2182 = vmatpush.bf16.msrb.mxu0 %v3422_v51  ;;  %v3546_v51 = vor.u32 %v3756_v44, %v3545_v54  ;;  %v954_v57 = vpop.f32.mrf.mxu3  ;;  %2425 = vmatpush.bf16.msra.mxu2 %v3550_v56 }
  0xf3   : > { %2152 = vmatpush.bf16.msrb.mxu1 %v3370_v13  ;;  %v2006_v13 = vrot.slane %v2004_v29, 2  ;;  %v955_v2 = vadd.f32 %v954_v57, %v4976_v36  ;;  %v943_v40 = vpop.f32.mrf.mxu1  ;;  %v2017_v36 = vrot.slane %v2015_v49, 3  ;;  %v2031_v0 = vrot.slane %v2029_v8, 2  ;;  %v3537_v57 = vld [vmem:[%s5302_s4 + $0x580] sm:$0xf] }
  0xf4   : > { %2389 = vmatpush.bf16.msrb.mxu3 %v3546_v51  ;;  %v2034_v33 = vrot.slane %v2032_v19, 3  ;;  %v3749_v51 = vld [vmem:[%s5302_s4 + $0x564] sm:$0xf]  ;;  %v3515_v40 = vld [vmem:[%s5302_s4 + $0x558] sm:$0xf0] }
  0xf5   : > { %v5124_v17 = vadd.f32 %v955_v2, %v4834_v42  ;;  %v3489_v42 = vld [vmem:[%s5302_s4 + $0x520] sm:$0xf]  ;;  %v2010_v29 = vor.u32 %v2009_v52, %v2006_v13  ;;  %v5138_v30 = vor.u32 %v2017_v36, %v2014_v39  ;;  %v3754_v13 = vld [vmem:[%s5302_s4 + $0x584] sm:$0xf0]  ;;  %v3753_v52 = vld [vmem:[%s5302_s4 + $0x584] sm:$0xf] }
  0xf6   : > { %2183 = vmatpush.bf16.msrb.mxu0 %v3414_v63  ;;  %v3506_v63 = vor.u32 %v3746_v43, %v3505_v38  ;;  %v974_v26 = vpop.f32.mrf.mxu0  ;;  %v3374_v38 = vor.u32 %v3717_v22, %v3371_v18  ;;  %v3490_v43 = vor.u32 %v3742_v58, %v3489_v42  ;;  %v5165_v4 = vor.u32 %v2034_v33, %v2031_v0 }
  0xf7   : > { %2365 = vmatpush.bf16.msra.mxu1 %v3530_v1  ;;  %v3719_v1 = vld [vmem:[%s5302_s4 + $0x474] sm:$0xf]  ;;  %v995_v23 = vpop.f32.mrf.mxu2  ;;  %v993_v28 = vadd.f32 %v992_v46, %v974_v26  ;;  %v3481_v46 = vld [vmem:[%s5302_s4 + $0x510] sm:$0xf]  ;;  %v5160_v11 = vsel %vm1741_vm2, %v2010_v29, %v5138_v30  ;;  %v2223_v26 = vld [vmem:[%s4074_s27] sm:$0x88] }
  0xf8   : > { %v3482_v60 = vor.u32 %v3740_v47, %v3481_v46  ;;  %v3741_v29 = vld [vmem:[%s5302_s4 + $0x524] sm:$0xf]  ;;  %v2246_v0 = vunpack.c.l.b16 %v2223_v26 }
  0xf9   : > { %v5148_v44 = vadd.f32 %v993_v28, %v5008_v15  ;;  %v2027_v15 = vor.u32 %v2026_v41, %v2023_v7  ;;  %3328 = vmatmul.msk.bf16.gmra.mxu3 %vm475_vm0, %v4982_v3  ;;  %2153 = vmatmul.bf16.vlgmr.msrb.gmra.mxu1 %v5160_v11  ;;  %v3539_v3 = vld [vmem:[%s5302_s4 + $0x588] sm:$0xf0] }
  0xfa   : > { %2184 = vmatpush.bf16.msrb.mxu0 %v3406_v20  ;;  %v3382_v20 = vor.u32 %v3719_v1, %v3379_v6  ;;  %v956_v14 = vpop.f32.mrf.mxu3  ;;  %v3538_v1 = vor.u32 %v3754_v13, %v3537_v57  ;;  %v3491_v7 = vld [vmem:[%s5302_s4 + $0x528] sm:$0xf0]  ;;  %v2248_v47 = vpack.c.b16 %v4185_v45, %v2246_v0 }
  0xfb   : > { %2366 = vmatpush.bf16.msra.mxu1 %v3522_v21  ;;  %v3498_v21 = vor.u32 %v3744_v50, %v3497_v10  ;;  %v957_v54 = vadd.f32 %v956_v14, %v5039_v53  ;;  %v5156_v59 = vpop.f32.mrf.mxu1  ;;  %v2036_v6 = vsel %vm1741_vm2, %v2027_v15, %v5165_v4  ;;  %v3542_v10 = vor.u32 %v3753_v52, %v3539_v3  ;;  %v3747_v50 = vld [vmem:[%s5302_s4 + $0x554] sm:$0xf] }
  0xfc   : > { %2390 = vmatpush.bf16.msrb.mxu3 %v3538_v1  ;;  %v3518_v19 = vor.u32 %v3747_v50, %v3515_v40  ;;  %v3739_v14 = vld [vmem:[%s5302_s4 + $0x514] sm:$0xf]  ;;  %v2247_v15 = vunpack.c.h.b16 %v2223_v26 }
  0xfd   : > { %v5163_v53 = vadd.f32 %v957_v54, %v4878_v12  ;;  %v3738_v12 = vld [vmem:[%s5302_s4 + $0x504] sm:$0xf0]  ;;  %1933 = vmatmul.bf16.gmra.mxu0 %v4953_v9  ;;  %2426 = vmatpush.bf16.msra.mxu2 %v3542_v10 }
  0xfe   : > { %2185 = vmatpush.bf16.msrb.mxu0 %v3398_v34  ;;  %v3751_v34 = vld [vmem:[%s5302_s4 + $0x574] sm:$0xf]  ;;  %v3474_v36 = vor.u32 %v3738_v12, %v3473_v55  ;;  %3449 = vmatmul.msk.bf16.vlgmr.msrb.gmra.mxu2 %vm475_vm0, %v2036_v6  ;;  %v2252_v55 = vrot.slane %v4867_v37, 3  ;;  %v2255_v37 = vrot.slane %v4900_v5, 3 }
  0xff   : > { %2367 = vmatpush.bf16.msra.mxu1 %v3514_v35  ;;  %v3531_v35 = vld [vmem:[%s5302_s4 + $0x578] sm:$0xf0]  ;;  %v997_v56 = vpop.f32.mrf.mxu2 }
 0x100   : > { %v3534_v49 = vor.u32 %v3751_v34, %v3531_v35  ;;  %v3494_v34 = vor.u32 %v3741_v29, %v3491_v7 }
 0x102   : > { %2186 = vmatpush.bf16.msrb.mxu0 %v3390_v62  ;;  %v977_v62 = vpop.f32.mrf.mxu0  ;;  %v959_v39 = vpop.f32.mrf.mxu3 }
 0x103   : > { %2368 = vmatpush.bf16.msra.mxu1 %v3506_v63  ;;  %v3526_v63 = vor.u32 %v3749_v51, %v3523_v31  ;;  %v996_v2 = vadd.f32 %v995_v23, %v977_v62  ;;  %v960_v25 = vadd.f32 %v959_v39, %v5071_v24  ;;  %v1161_v8 = vpop.f32.mrf.mxu1  ;;  %v3499_v23 = vld [vmem:[%s5302_s4 + $0x538] sm:$0xf0] }
 0x105   : > { %v5204_v16 = vadd.f32 %v996_v2, %v5027_v32  ;;  %v3507_v32 = vld [vmem:[%s5302_s4 + $0x548] sm:$0xf0] }
 0x106   : > { %2187 = vmatpush.bf16.msrb.mxu0 %v3382_v20  ;;  %v5209_v20 = vadd.f32 %v960_v25, %v4934_v48  ;;  %v3743_v48 = vld [vmem:[%s5302_s4 + $0x534] sm:$0xf] }
 0x107   : > { %2369 = vmatpush.bf16.msra.mxu1 %v3498_v21  ;;  %v3745_v21 = vld [vmem:[%s5302_s4 + $0x544] sm:$0xf]  ;;  %v1213_v9 = vpop.f32.mrf.mxu2  ;;  %v3502_v58 = vor.u32 %v3743_v48, %v3499_v23 }
 0x108   : > { %v3510_v22 = vor.u32 %v3745_v21, %v3507_v32 }
 0x109   : > { %2158 = vmatmul.bf16.gmra.mxu1 %v5138_v30  ;;  %3447 = vmatmul.msk.bf16.vlgmr.msra.gmra.mxu3 %vm475_vm0, %v2036_v6 }
 0x10a   : > { %2188 = vmatpush.bf16.msrb.mxu0 %v3374_v38  ;;  %v979_v24 = vpop.f32.mrf.mxu0  ;;  %v961_v18 = vpop.f32.mrf.mxu3  ;;  %v3483_v38 = vld [vmem:[%s5302_s4 + $0x518] sm:$0xf0] }
 0x10b   : > { %2370 = vmatpush.bf16.msra.mxu1 %v3490_v43  ;;  %v1164_v42 = vpop.f32.mrf.mxu1  ;;  %v3486_v51 = vor.u32 %v3739_v14, %v3483_v38 }
 0x10d   : > { %2189 = vmatmul.bf16.vlgmr.msrb.gmra.mxu0 %v5160_v11 }
 0x10e   : > { %2401 = vmatpush.bf16.msra.mxu0 %v3534_v49  ;;  %3450 = vmatmul.msk.bf16.gmra.mxu2 %vm475_vm0, %v5165_v4 }
 0x10f   : > { %2371 = vmatpush.bf16.msra.mxu1 %v3482_v60  ;;  %v1215_v41 = vpop.f32.mrf.mxu2  ;;  %v2251_v60 = vrot.slane %v2248_v47, 3 }
 0x111   : > { %v2253_v62 = vsel %vm2250_vm3, %v2251_v60, %v2252_v55 }
 0x112   : > { %2402 = vmatpush.bf16.msra.mxu0 %v3526_v63  ;;  %v1195_v28 = vpop.f32.mrf.mxu0  ;;  %v1177_v35 = vpop.f32.mrf.mxu3 }
 0x113   : > { %2372 = vmatpush.bf16.msra.mxu1 %v3474_v36  ;;  %v1214_v33 = vadd.f32 %v1213_v9, %v1195_v28  ;;  %v1178_v43 = vadd.f32 %v1177_v35, %v5156_v59  ;;  %v1166_v46 = vpop.f32.mrf.mxu1  ;;  %v3737_v59 = vld [vmem:[%s5302_s4 + $0x504] sm:$0xf] }
 0x115   : > { %v1223_v54 = vadd.f32 %v1214_v33, %v5109_v27  ;;  %v3475_v27 = vld [vmem:[%s5302_s4 + $0x508] sm:$0xf0] }
 0x116   : > { %2403 = vmatpush.bf16.msra.mxu0 %v3518_v19  ;;  %v3478_v12 = vor.u32 %v3737_v59, %v3475_v27 }
 0x117   : > { %3759 = vmatpush.bf16.msrb.mxu1 %v3534_v49  ;;  %v1222_v49 = vadd.f32 %v1178_v43, %v5124_v17  ;;  %v1218_v11 = vpop.f32.mrf.mxu2  ;;  %v2249_v17 = vpack.c.b16 %v4212_v61, %v2247_v15 }
 0x119   : > { %v2254_v1 = vrot.slane %v2249_v17, 3  ;;  %3448 = vmatmul.msk.bf16.gmra.mxu3 %vm475_vm0, %v5165_v4  ;;  %2373 = vmatmul.bf16.vlgmr.msra.gmra.mxu1 %v2253_v62 }
 0x11a   : > { %2404 = vmatpush.bf16.msra.mxu0 %v3510_v22  ;;  %v1197_v31 = vpop.f32.mrf.mxu0  ;;  %v1179_v56 = vpop.f32.mrf.mxu3 }
 0x11b   : > { %3760 = vmatpush.bf16.msrb.mxu1 %v3526_v63  ;;  %v1216_v45 = vadd.f32 %v1215_v41, %v1197_v31  ;;  %v1180_v57 = vadd.f32 %v1179_v56, %v1161_v8  ;;  %v1382_v52 = vpop.f32.mrf.mxu1 }
 0x11d   : > { %v1225_v13 = vadd.f32 %v1216_v45, %v5148_v44  ;;  %v1224_v63 = vadd.f32 %v1180_v57, %v5163_v53  ;;  %v2256_v44 = vsel %vm2250_vm3, %v2254_v1, %v2255_v37  ;;  %2194 = vmatmul.bf16.gmra.mxu0 %v5138_v30 }
 0x11e   : > { %2405 = vmatpush.bf16.msra.mxu0 %v3502_v58  ;;  %3553 = vmatmul.msk.bf16.vlgmr.msra.gmra.mxu2 %vm475_vm0, %v2256_v44 }
 0x11f   : > { %3761 = vmatpush.bf16.msrb.mxu1 %v3518_v19  ;;  %v1220_v61 = vpop.f32.mrf.mxu2 }
 0x122   : > { %2406 = vmatpush.bf16.msra.mxu0 %v3494_v34  ;;  %v1200_v3 = vpop.f32.mrf.mxu0  ;;  %v1182_v6 = vpop.f32.mrf.mxu3 }
 0x123   : > { %3762 = vmatpush.bf16.msrb.mxu1 %v3510_v22  ;;  %v1219_v2 = vadd.f32 %v1218_v11, %v1200_v3  ;;  %v1183_v10 = vadd.f32 %v1182_v6, %v1164_v42  ;;  %v1384_v53 = vpop.f32.mrf.mxu1 }
 0x125   : > { %v1227_v50 = vadd.f32 %v1219_v2, %v5204_v16  ;;  %v1226_v5 = vadd.f32 %v1183_v10, %v5209_v20 }
 0x126   : > { %2407 = vmatpush.bf16.msra.mxu0 %v3486_v51 }
 0x127   : > { %3763 = vmatpush.bf16.msrb.mxu1 %v3502_v58  ;;  %v1436_v4 = vpop.f32.mrf.mxu2 }
 0x129   : > { %2378 = vmatmul.bf16.gmra.mxu1 %v2252_v55  ;;  %3551 = vmatmul.msk.bf16.vlgmr.msrb.gmra.mxu3 %vm475_vm0, %v2256_v44 }
 0x12a   : > { %2408 = vmatpush.bf16.msra.mxu0 %v3478_v12  ;;  %v1202_v40 = vpop.f32.mrf.mxu0  ;;  %v1184_v39 = vpop.f32.mrf.mxu3 }
 0x12b   : > { %3764 = vmatpush.bf16.msrb.mxu1 %v3494_v34  ;;  %v1387_v36 = vpop.f32.mrf.mxu1 }
 0x12d   : > { %2409 = vmatmul.bf16.vlgmr.msra.gmra.mxu0 %v2253_v62 }
 0x12e   : > { %3554 = vmatmul.msk.bf16.gmra.mxu2 %vm475_vm0, %v2255_v37 }
 0x12f   : > { %3765 = vmatpush.bf16.msrb.mxu1 %v3486_v51  ;;  %v1438_v25 = vpop.f32.mrf.mxu2 }
 0x132   : > { %v1418_v8 = vpop.f32.mrf.mxu0  ;;  %v1400_v21 = vpop.f32.mrf.mxu3 }
 0x133   : > { %3766 = vmatpush.bf16.msrb.mxu1 %v3478_v12  ;;  %v1437_v19 = vadd.f32 %v1436_v4, %v1418_v8  ;;  %v1401_v16 = vadd.f32 %v1400_v21, %v1382_v52  ;;  %v1389_v30 = vpop.f32.mrf.mxu1 }
 0x135   : > { %v1446_v32 = vadd.f32 %v1437_v19, %v1223_v54  ;;  %v1445_v9 = vadd.f32 %v1401_v16, %v1222_v49 }
 0x137   : > { %v1441_v24 = vpop.f32.mrf.mxu2 }
 0x139   : > { %3552 = vmatmul.msk.bf16.gmra.mxu3 %vm475_vm0, %v2255_v37  ;;  %2414 = vmatmul.bf16.vlgmr.msrb.gmra.mxu1 %v2252_v55 }
 0x13a   : > { %v1420_v20 = vpop.f32.mrf.mxu0  ;;  %v1402_v48 = vpop.f32.mrf.mxu3 }
 0x13b   : > { %v1439_v22 = vadd.f32 %v1438_v25, %v1420_v20  ;;  %v1403_v23 = vadd.f32 %v1402_v48, %v1384_v53  ;;  %v1639_v42 = vpop.f32.mrf.mxu1 }
 0x13d   : > { %v1448_v18 = vadd.f32 %v1439_v22, %v1225_v13  ;;  %v1447_v58 = vadd.f32 %v1403_v23, %v1224_v63 }
 0x13f   : > { %v1443_v26 = vpop.f32.mrf.mxu2 }
 0x142   : > { %v1423_v29 = vpop.f32.mrf.mxu0  ;;  %v1405_v41 = vpop.f32.mrf.mxu3 }
 0x143   : > { %v1442_v7 = vadd.f32 %v1441_v24, %v1423_v29  ;;  %v1406_v28 = vadd.f32 %v1405_v41, %v1387_v36  ;;  %v1641_v33 = vpop.f32.mrf.mxu1 }
 0x145   : > { %v1450_v0 = vadd.f32 %v1442_v7, %v1227_v50  ;;  %v1449_v34 = vadd.f32 %v1406_v28, %v1226_v5 }
 0x147   : > { %v1693_v35 = vpop.f32.mrf.mxu2 }
 0x14a   : > { %v1425_v14 = vpop.f32.mrf.mxu0  ;;  %v1407_v38 = vpop.f32.mrf.mxu3 }
 0x14b   : > { %v1644_v43 = vpop.f32.mrf.mxu1 }
 0x14f   : > { %v1695_v54 = vpop.f32.mrf.mxu2 }
 0x152   : > { %v1675_v46 = vpop.f32.mrf.mxu0  ;;  %v1657_v49 = vpop.f32.mrf.mxu3 }
 0x153   : > { %v1694_v47 = vadd.f32 %v1693_v35, %v1675_v46  ;;  %v1658_v15 = vadd.f32 %v1657_v49, %v1639_v42  ;;  %v1646_v59 = vpop.f32.mrf.mxu1 }
 0x155   : > { %v1703_v51 = vadd.f32 %v1694_v47, %v1446_v32  ;;  %v1702_v27 = vadd.f32 %v1658_v15, %v1445_v9 }
 0x157   : > { %v1698_v11 = vpop.f32.mrf.mxu2 }
 0x15a   : > { %v1677_v31 = vpop.f32.mrf.mxu0  ;;  %v1659_v55 = vpop.f32.mrf.mxu3 }
 0x15b   : > { %v1696_v60 = vadd.f32 %v1695_v54, %v1677_v31  ;;  %v1660_v45 = vadd.f32 %v1659_v55, %v1641_v33  ;;  %v1893_v12 = vpop.f32.mrf.mxu1  ;;  %v2443_v55 = vld [vmem:[%s5303_s5] sm:$0x3] }
 0x15d   : > { %v1705_v17 = vadd.f32 %v1696_v60, %v1448_v18  ;;  %v1704_v56 = vadd.f32 %v1660_v45, %v1447_v58 }
 0x15f   : > { %v1700_v57 = vpop.f32.mrf.mxu2 }
 0x162   : > { %v1680_v13 = vpop.f32.mrf.mxu0  ;;  %v1662_v62 = vpop.f32.mrf.mxu3 }
 0x163   : > { %v1699_v52 = vadd.f32 %v1698_v11, %v1680_v13  ;;  %v1663_v63 = vadd.f32 %v1662_v62, %v1644_v43  ;;  %v1895_v37 = vpop.f32.mrf.mxu1  ;;  %v2445_v62 = vperm.slane %v2443_v55, 0 }
 0x165   : > { %v1707_v1 = vadd.f32 %v1699_v52, %v1450_v0  ;;  %v1706_v61 = vadd.f32 %v1663_v63, %v1449_v34 }
 0x167   : > { %v1947_v3 = vpop.f32.mrf.mxu2 }
 0x16a   : > { %v1682_v2 = vpop.f32.mrf.mxu0  ;;  %v1664_v44 = vpop.f32.mrf.mxu3 }
 0x16b   : > { %v1898_v6 = vpop.f32.mrf.mxu1 }
 0x16f   : > { %v1949_v10 = vpop.f32.mrf.mxu2 }
 0x172   : > { %v1929_v50 = vpop.f32.mrf.mxu0  ;;  %v1911_v5 = vpop.f32.mrf.mxu3 }
 0x173   : > { %v1948_v53 = vadd.f32 %v1947_v3, %v1929_v50  ;;  %v1912_v4 = vadd.f32 %v1911_v5, %v1893_v12  ;;  %v1900_v39 = vpop.f32.mrf.mxu1 }
 0x175   : > { %v1957_v40 = vadd.f32 %v1948_v53, %v1703_v51  ;;  %v1956_v36 = vadd.f32 %v1912_v4, %v1702_v27 }
 0x177   : > { %v1952_v25 = vpop.f32.mrf.mxu2 }
 0x17a   : > { %v1931_v8 = vpop.f32.mrf.mxu0  ;;  %v1913_v21 = vpop.f32.mrf.mxu3 }
 0x17b   : > { %v1950_v19 = vadd.f32 %v1949_v10, %v1931_v8  ;;  %v1914_v16 = vadd.f32 %v1913_v21, %v1895_v37  ;;  %v2154_v30 = vpop.f32.mrf.mxu1 }
 0x17d   : > { %v1959_v32 = vadd.f32 %v1950_v19, %v1705_v17  ;;  %v1958_v9 = vadd.f32 %v1914_v16, %v1704_v56  ;;  %v2446_v56 = vperm.slane %v2443_v55, 1 }
 0x17f   : > { %v1954_v24 = vpop.f32.mrf.mxu2 }
 0x182   : > { %v1934_v20 = vpop.f32.mrf.mxu0  ;;  %v1916_v48 = vpop.f32.mrf.mxu3 }
 0x183   : > { %v1953_v22 = vadd.f32 %v1952_v25, %v1934_v20  ;;  %v1917_v23 = vadd.f32 %v1916_v48, %v1898_v6  ;;  %v2156_v42 = vpop.f32.mrf.mxu1 }
 0x185   : > { %v5267_v18 = vadd.f32 %v1953_v22, %v1707_v1  ;;  %v5269_v58 = vadd.f32 %v1917_v23, %v1706_v61 }
 0x187   : > { %v2208_v26 = vpop.f32.mrf.mxu2 }
 0x18a   : > { %v1936_v29 = vpop.f32.mrf.mxu0  ;;  %v1918_v7 = vpop.f32.mrf.mxu3 }
 0x18b   : > { %v2159_v41 = vpop.f32.mrf.mxu1 }
 0x18f   : > { %v2210_v28 = vpop.f32.mrf.mxu2 }
 0x192   : > { %v2190_v0 = vpop.f32.mrf.mxu0  ;;  %v2172_v33 = vpop.f32.mrf.mxu3 }
 0x193   : > { %v2161_v34 = vpop.f32.mrf.mxu1  ;;  %v2209_v11 = vadd.f32 %v2208_v26, %v2190_v0  ;;  %v2173_v31 = vadd.f32 %v2172_v33, %v2154_v30 }
 0x195   : > { %v2218_v17 = vadd.f32 %v2209_v11, %v1957_v40  ;;  %v2217_v13 = vadd.f32 %v2173_v31, %v1956_v36 }
 0x197   : > { %v2213_v35 = vpop.f32.mrf.mxu2 }
 0x19a   : > { %v2192_v14 = vpop.f32.mrf.mxu0  ;;  %v2174_v38 = vpop.f32.mrf.mxu3 }
 0x19b   : > { %v2374_v43 = vpop.f32.mrf.mxu1  ;;  %v2211_v37 = vadd.f32 %v2210_v28, %v2192_v14  ;;  %v2175_v2 = vadd.f32 %v2174_v38, %v2156_v42 }
 0x19d   : > { %v2220_v53 = vadd.f32 %v2211_v37, %v1959_v32  ;;  %v2219_v40 = vadd.f32 %v2175_v2, %v1958_v9 }
 0x19f   : > { %v2215_v54 = vpop.f32.mrf.mxu2 }
 0x1a2   : > { %v2195_v46 = vpop.f32.mrf.mxu0  ;;  %v2177_v47 = vpop.f32.mrf.mxu3 }
 0x1a3   : > { %v2376_v49 = vpop.f32.mrf.mxu1  ;;  %v2214_v25 = vadd.f32 %v2213_v35, %v2195_v46  ;;  %v2178_v24 = vadd.f32 %v2177_v47, %v2159_v41 }
 0x1a5   : > { %v2222_v20 = vadd.f32 %v2214_v25, %v5267_v18  ;;  %v2221_v7 = vadd.f32 %v2178_v24, %v5269_v58 }
 0x1a7   : > { %v2428_v15 = vpop.f32.mrf.mxu2 }
 0x1aa   : > { %v2197_v51 = vpop.f32.mrf.mxu0  ;;  %v2179_v59 = vpop.f32.mrf.mxu3 }
 0x1ab   : > { %v2379_v27 = vpop.f32.mrf.mxu1 }
 0x1af   : > { %v2430_v60 = vpop.f32.mrf.mxu2 }
 0x1b2   : > { %v2410_v45 = vpop.f32.mrf.mxu0  ;;  %v2392_v57 = vpop.f32.mrf.mxu3 }
 0x1b3   : > { %v2429_v12 = vadd.f32 %v2428_v15, %v2410_v45  ;;  %v2393_v52 = vadd.f32 %v2392_v57, %v2374_v43  ;;  %v2381_v1 = vpop.f32.mrf.mxu1 }
 0x1b5   : > { %v2438_v63 = vadd.f32 %v2429_v12, %v2218_v17  ;;  %v2437_v61 = vadd.f32 %v2393_v52, %v2217_v13 }
 0x1b7   : > { %v2450_v3 = vadd.f32 %v2446_v56, %v2438_v63  ;;  %v2449_v44 = vadd.f32 %v2445_v62, %v2437_v61  ;;  %v2433_v10 = vpop.f32.mrf.mxu2 }
 0x1b9   : > { %v2456_v6 = vmax.f32 %v2450_v3, 0.0  ;;  %v2455_v5 = vmax.f32 %v2449_v44, 0.0 }
 0x1ba   : > { %v2412_v50 = vpop.f32.mrf.mxu0  ;;  %v2394_v36 = vpop.f32.mrf.mxu3 }
 0x1bb   : > { %v2431_v4 = vadd.f32 %v2430_v60, %v2412_v50  ;;  %v2461_v8 = vpack.c.bf16 %v2456_v6, %v2455_v5  ;;  %v2395_v19 = vadd.f32 %v2394_v36, %v2376_v49  ;;  %v2415_v16 = vpop.f32.mrf.mxu1 }
 0x1bc   : > { %v2434_v9 = vadd.f32 %v2433_v10, %v2415_v16 }
 0x1bd   : > { %v2440_v21 = vadd.f32 %v2431_v4, %v2220_v53  ;;  %2467 = vst.msk [vmem:[%s5278_s9] sm:$0xff] %vm5280_vm6, %v2461_v8  ;;  %v2439_v32 = vadd.f32 %v2395_v19, %v2219_v40 }
 0x1be   : > { %v2442_v26 = vadd.f32 %v2434_v9, %v2222_v20 }
 0x1bf   : > { %v2452_v30 = vadd.f32 %v2446_v56, %v2440_v21  ;;  %v2451_v22 = vadd.f32 %v2445_v62, %v2439_v32  ;;  %v2435_v23 = vpop.f32.mrf.mxu2 }
 0x1c0   : > { %v2454_v34 = vadd.f32 %v2446_v56, %v2442_v26 }
 0x1c1   : > { %v2458_v48 = vmax.f32 %v2452_v30, 0.0  ;;  %v2457_v42 = vmax.f32 %v2451_v22, 0.0 }
 0x1c2   : > { %v2397_v29 = vpop.f32.mrf.mxu3  ;;  %v2460_v14 = vmax.f32 %v2454_v34, 0.0 }
 0x1c3   : > { %v2462_v28 = vpack.c.bf16 %v2458_v48, %v2457_v42  ;;  %v2398_v0 = vadd.f32 %v2397_v29, %v2379_v27  ;;  %v2417_v33 = vpop.f32.mrf.mxu1 }
 0x1c5   : > { %2468 = vst.msk [vmem:[%s5278_s9 + $0x8] sm:$0xff] %vm5280_vm6, %v2462_v28  ;;  %v2441_v35 = vadd.f32 %v2398_v0, %v2221_v7 }
 0x1c7   : > { %v2453_v41 = vadd.f32 %v2445_v62, %v2441_v35 }
 0x1c9   : > { %v2459_v18 = vmax.f32 %v2453_v41, 0.0 }
 0x1ca   : > { %v2399_v38 = vpop.f32.mrf.mxu3 }
 0x1cb   : > { %v2463_v43 = vpack.c.bf16 %v2460_v14, %v2459_v18 }
 0x1cd   : > { %2469 = vst.msk [vmem:[%s5278_s9 + $0x10] sm:$0xff] %vm5280_vm6, %v2463_v43 }
 0x1ce PF: > { %s16_s21 = sadd.s32 1, %s3782_s21  }
 0x1cf   : > { %p13_p4 = scmp.ge.s32.totalorder %s16_s21, 4  }
 0x1d1   :  { %15 = sbr.rel (!%p13_p4) target bundleno = 1 (0x1), region = 91 }

// kernel: mt_conv_cifar_forward.7
= control target key start
LH: loop header
LB: loop body
LE: loop exit
PB: predicated region body
PF: predicated region fallthrough
CT: control target
= control target key end

     0   :  { %vm4478_vm0 = vcmask 523264   ;;  %s11158_s1 = inlined_call_operand.vmem [shape: bf16[2560,320], index: 1, kind: input, shape index: {}]   ;;  %s11159_s0 = inlined_call_operand.vmem [shape: bf16[2,2560], index: 0, kind: input, shape index: {}]   ;;  %s11160_s2 = inlined_call_operand.vmem [shape: f32[1,320], index: 2, kind: input, shape index: {}]   ;;  %s11161_s3 = inlined_call_operand.vmem [shape: bf16[320,320], index: 3, kind: input, shape index: {}]   ;;  %s11162_s4 = inlined_call_operand.vmem [shape: f32[1,320], index: 4, kind: input, shape index: {}]   ;;  %s11163_s5 = inlined_call_operand.vmem [shape: bf16[320,128], index: 5, kind: input, shape index: {}]   ;;  %s11164_s6 = inlined_call_operand.vmem [shape: f32[1,128], index: 6, kind: input, shape index: {}]   ;;  %s11165_s7 = inlined_call_operand.vmem [shape: f32[2,128], index: 7, kind: output, shape index: {}]  }
   0x1   :  { %v4902_v0 = vld [vmem:[%s11158_s1 + $0xa8] sm:$0xf]  ;;  %v7082_v1 = vld [vmem:[%s11158_s1 + $0xb0] sm:$0xf0]  ;;  %v4890_v11 = vld [vmem:[%s11158_s1 + $0x90] sm:$0xf] }
   0x2   :  { %v4998_v2 = vld [vmem:[%s11158_s1 + $0x168] sm:$0xf]  ;;  %v4903_v3 = vor.u32 %v7082_v1, %v4902_v0  ;;  %v7106_v4 = vld [vmem:[%s11158_s1 + $0x170] sm:$0xf0]  ;;  %v7079_v13 = vld [vmem:[%s11158_s1 + $0x98] sm:$0xf0] }
   0x3   :  { %v5094_v5 = vld [vmem:[%s11158_s1 + $0x228] sm:$0xf]  ;;  %v7130_v6 = vld [vmem:[%s11158_s1 + $0x230] sm:$0xf0]  ;;  %v4999_v7 = vor.u32 %v7106_v4, %v4998_v2  ;;  %v4986_v14 = vld [vmem:[%s11158_s1 + $0x150] sm:$0xf]  ;;  %v4891_v16 = vor.u32 %v7079_v13, %v4890_v11 }
   0x4   :  { %v5095_v8 = vor.u32 %v7130_v6, %v5094_v5  ;;  %v5190_v9 = vld [vmem:[%s11158_s1 + $0x2e8] sm:$0xf]  ;;  %v7154_v10 = vld [vmem:[%s11158_s1 + $0x2f0] sm:$0xf0]  ;;  %3284 = vmatpush.bf16.msra.mxu0 %v4903_v3  ;;  %v7103_v15 = vld [vmem:[%s11158_s1 + $0x158] sm:$0xf0] }
   0x5   :  { %v5191_v12 = vor.u32 %v7154_v10, %v5190_v9  ;;  %3297 = vmatpush.bf16.msra.mxu1 %v4999_v7  ;;  %v4987_v17 = vor.u32 %v7103_v15, %v4986_v14  ;;  %v5082_v18 = vld [vmem:[%s11158_s1 + $0x210] sm:$0xf]  ;;  %v7127_v19 = vld [vmem:[%s11158_s1 + $0x218] sm:$0xf0]  ;;  %v4878_v23 = vld [vmem:[%s11158_s1 + $0x78] sm:$0xf] }
   0x6   :  { %3310 = vmatpush.bf16.msra.mxu2 %v5095_v8  ;;  %v5178_v20 = vld [vmem:[%s11158_s1 + $0x2d0] sm:$0xf]  ;;  %v5083_v21 = vor.u32 %v7127_v19, %v5082_v18  ;;  %v7151_v22 = vld [vmem:[%s11158_s1 + $0x2d8] sm:$0xf0]  ;;  %v7076_v24 = vld [vmem:[%s11158_s1 + $0x80] sm:$0xf0] }
   0x7   :  { %3323 = vmatpush.bf16.msra.mxu3 %v5191_v12  ;;  %v5179_v25 = vor.u32 %v7151_v22, %v5178_v20  ;;  %v4974_v26 = vld [vmem:[%s11158_s1 + $0x138] sm:$0xf]  ;;  %v7100_v27 = vld [vmem:[%s11158_s1 + $0x140] sm:$0xf0]  ;;  %v4879_v29 = vor.u32 %v7076_v24, %v4878_v23  ;;  %v4866_v35 = vld [vmem:[%s11158_s1 + $0x60] sm:$0xf] }
   0x8   :  { %v5070_v28 = vld [vmem:[%s11158_s1 + $0x1f8] sm:$0xf]  ;;  %3285 = vmatpush.bf16.msra.mxu0 %v4891_v16  ;;  %v7124_v30 = vld [vmem:[%s11158_s1 + $0x200] sm:$0xf0]  ;;  %v4975_v33 = vor.u32 %v7100_v27, %v4974_v26  ;;  %v7073_v36 = vld [vmem:[%s11158_s1 + $0x68] sm:$0xf0] }
   0x9   :  { %v5166_v31 = vld [vmem:[%s11158_s1 + $0x2b8] sm:$0xf]  ;;  %v7148_v32 = vld [vmem:[%s11158_s1 + $0x2c0] sm:$0xf0]  ;;  %3298 = vmatpush.bf16.msra.mxu1 %v4987_v17  ;;  %v5071_v34 = vor.u32 %v7124_v30, %v5070_v28  ;;  %v4962_v37 = vld [vmem:[%s11158_s1 + $0x120] sm:$0xf]  ;;  %v4867_v44 = vor.u32 %v7073_v36, %v4866_v35 }
   0xa   :  { %3311 = vmatpush.bf16.msra.mxu2 %v5083_v21  ;;  %v5167_v38 = vor.u32 %v7148_v32, %v5166_v31  ;;  %v7097_v39 = vld [vmem:[%s11158_s1 + $0x128] sm:$0xf0]  ;;  %v5058_v40 = vld [vmem:[%s11158_s1 + $0x1e0] sm:$0xf]  ;;  %v4854_v47 = vld [vmem:[%s11158_s1 + $0x48] sm:$0xf] }
   0xb   :  { %3324 = vmatpush.bf16.msra.mxu3 %v5179_v25  ;;  %v7121_v41 = vld [vmem:[%s11158_s1 + $0x1e8] sm:$0xf0]  ;;  %v5154_v42 = vld [vmem:[%s11158_s1 + $0x2a0] sm:$0xf]  ;;  %v4963_v45 = vor.u32 %v7097_v39, %v4962_v37  ;;  %v7070_v48 = vld [vmem:[%s11158_s1 + $0x50] sm:$0xf0] }
   0xc   :  { %v7145_v43 = vld [vmem:[%s11158_s1 + $0x2a8] sm:$0xf0]  ;;  %3286 = vmatpush.bf16.msra.mxu0 %v4879_v29  ;;  %v5059_v46 = vor.u32 %v7121_v41, %v5058_v40  ;;  %v4950_v49 = vld [vmem:[%s11158_s1 + $0x108] sm:$0xf]  ;;  %v7094_v51 = vld [vmem:[%s11158_s1 + $0x110] sm:$0xf0]  ;;  %v4855_v56 = vor.u32 %v7070_v48, %v4854_v47 }
   0xd   :  { %3299 = vmatpush.bf16.msra.mxu1 %v4975_v33  ;;  %v5155_v50 = vor.u32 %v7145_v43, %v5154_v42  ;;  %v5046_v52 = vld [vmem:[%s11158_s1 + $0x1c8] sm:$0xf]  ;;  %v7118_v53 = vld [vmem:[%s11158_s1 + $0x1d0] sm:$0xf0]  ;;  %v4951_v57 = vor.u32 %v7094_v51, %v4950_v49  ;;  %v4842_v59 = vld [vmem:[%s11158_s1 + $0x30] sm:$0xf] }
   0xe   :  { %3312 = vmatpush.bf16.msra.mxu2 %v5071_v34  ;;  %v5142_v54 = vld [vmem:[%s11158_s1 + $0x288] sm:$0xf]  ;;  %v7142_v55 = vld [vmem:[%s11158_s1 + $0x290] sm:$0xf0]  ;;  %v5047_v58 = vor.u32 %v7118_v53, %v5046_v52  ;;  %v7067_v60 = vld [vmem:[%s11158_s1 + $0x38] sm:$0xf0] }
   0xf   :  { %3325 = vmatpush.bf16.msra.mxu3 %v5167_v38  ;;  %v4938_v61 = vld [vmem:[%s11158_s1 + $0xf0] sm:$0xf]  ;;  %v5143_v62 = vor.u32 %v7142_v55, %v5142_v54  ;;  %v7091_v63 = vld [vmem:[%s11158_s1 + $0xf8] sm:$0xf0]  ;;  %v4843_v4 = vor.u32 %v7067_v60, %v4842_v59  ;;  %v4830_v7 = vld [vmem:[%s11158_s1 + $0x18] sm:$0xf] }
  0x10   :  { %3287 = vmatpush.bf16.msra.mxu0 %v4867_v44  ;;  %v5034_v0 = vld [vmem:[%s11158_s1 + $0x1b0] sm:$0xf]  ;;  %v7115_v1 = vld [vmem:[%s11158_s1 + $0x1b8] sm:$0xf0]  ;;  %v4939_v5 = vor.u32 %v7091_v63, %v4938_v61  ;;  %v7064_v8 = vld [vmem:[%s11158_s1 + $0x20] sm:$0xf0] }
  0x11   :  { %3300 = vmatpush.bf16.msra.mxu1 %v4963_v45  ;;  %v5130_v2 = vld [vmem:[%s11158_s1 + $0x270] sm:$0xf]  ;;  %v7139_v3 = vld [vmem:[%s11158_s1 + $0x278] sm:$0xf0]  ;;  %v5035_v6 = vor.u32 %v7115_v1, %v5034_v0  ;;  %v4926_v9 = vld [vmem:[%s11158_s1 + $0xd8] sm:$0xf]  ;;  %v4831_v16 = vor.u32 %v7064_v8, %v4830_v7 }
  0x12   :  { %3313 = vmatpush.bf16.msra.mxu2 %v5059_v46  ;;  %v5131_v10 = vor.u32 %v7139_v3, %v5130_v2  ;;  %v7088_v11 = vld [vmem:[%s11158_s1 + $0xe0] sm:$0xf0]  ;;  %v5022_v12 = vld [vmem:[%s11158_s1 + $0x198] sm:$0xf]  ;;  %v4818_v17 = vld [vmem:[%s11158_s1] sm:$0xf] }
  0x13   :  { %3326 = vmatpush.bf16.msra.mxu3 %v5155_v50  ;;  %v7112_v13 = vld [vmem:[%s11158_s1 + $0x1a0] sm:$0xf0]  ;;  %v5118_v14 = vld [vmem:[%s11158_s1 + $0x258] sm:$0xf]  ;;  %v7061_v18 = vld [vmem:[%s11158_s1 + $0x8] sm:$0xf0]  ;;  %v4927_v19 = vor.u32 %v7088_v11, %v4926_v9 }
  0x14   :  { %3288 = vmatpush.bf16.msra.mxu0 %v4855_v56  ;;  %v7136_v15 = vld [vmem:[%s11158_s1 + $0x260] sm:$0xf0]  ;;  %v5023_v20 = vor.u32 %v7112_v13, %v5022_v12  ;;  %v4914_v21 = vld [vmem:[%s11158_s1 + $0xc0] sm:$0xf]  ;;  %v7085_v22 = vld [vmem:[%s11158_s1 + $0xc8] sm:$0xf0]  ;;  %v4819_v31 = vor.u32 %v7061_v18, %v4818_v17 }
  0x15   :  { %3301 = vmatpush.bf16.msra.mxu1 %v4951_v57  ;;  %v5010_v23 = vld [vmem:[%s11158_s1 + $0x180] sm:$0xf]  ;;  %v5119_v24 = vor.u32 %v7136_v15, %v5118_v14  ;;  %v7109_v25 = vld [vmem:[%s11158_s1 + $0x188] sm:$0xf0]  ;;  %v5286_v28 = vld [vmem:[%s11158_s1 + $0x3a8] sm:$0xf]  ;;  %v4915_v35 = vor.u32 %v7085_v22, %v4914_v21 }
  0x16   :  { %3314 = vmatpush.bf16.msra.mxu2 %v5047_v58  ;;  %v5106_v26 = vld [vmem:[%s11158_s1 + $0x240] sm:$0xf]  ;;  %v7133_v27 = vld [vmem:[%s11158_s1 + $0x248] sm:$0xf0]  ;;  %v7178_v29 = vld [vmem:[%s11158_s1 + $0x3b0] sm:$0xf0]  ;;  %v5011_v36 = vor.u32 %v7109_v25, %v5010_v23 }
  0x17   :  { %3327 = vmatpush.bf16.msra.mxu3 %v5143_v62  ;;  %v5382_v30 = vld [vmem:[%s11158_s1 + $0x468] sm:$0xf]  ;;  %v7202_v32 = vld [vmem:[%s11158_s1 + $0x470] sm:$0xf0]  ;;  %v5107_v39 = vor.u32 %v7133_v27, %v5106_v26  ;;  %v5287_v40 = vor.u32 %v7178_v29, %v5286_v28  ;;  %v5274_v43 = vld [vmem:[%s11158_s1 + $0x390] sm:$0xf] }
  0x18   :  { %3289 = vmatpush.bf16.msra.mxu0 %v4843_v4  ;;  %v5478_v33 = vld [vmem:[%s11158_s1 + $0x528] sm:$0xf]  ;;  %v7226_v34 = vld [vmem:[%s11158_s1 + $0x530] sm:$0xf0]  ;;  %v5383_v41 = vor.u32 %v7202_v32, %v5382_v30  ;;  %v7175_v44 = vld [vmem:[%s11158_s1 + $0x398] sm:$0xf0] }
  0x19   :  { %3302 = vmatpush.bf16.msra.mxu1 %v4939_v5  ;;  %v5574_v37 = vld [vmem:[%s11158_s1 + $0x5e8] sm:$0xf]  ;;  %v7250_v38 = vld [vmem:[%s11158_s1 + $0x5f0] sm:$0xf0]  ;;  %v5479_v42 = vor.u32 %v7226_v34, %v5478_v33  ;;  %v5370_v45 = vld [vmem:[%s11158_s1 + $0x450] sm:$0xf]  ;;  %v5275_v52 = vor.u32 %v7175_v44, %v5274_v43 }
  0x1a   :  { %3315 = vmatpush.bf16.msra.mxu2 %v5035_v6  ;;  %v5575_v46 = vor.u32 %v7250_v38, %v5574_v37  ;;  %v7199_v47 = vld [vmem:[%s11158_s1 + $0x458] sm:$0xf0]  ;;  %v5466_v48 = vld [vmem:[%s11158_s1 + $0x510] sm:$0xf]  ;;  %v5262_v55 = vld [vmem:[%s11158_s1 + $0x378] sm:$0xf] }
  0x1b   :  { %3328 = vmatpush.bf16.msra.mxu3 %v5131_v10  ;;  %v7223_v49 = vld [vmem:[%s11158_s1 + $0x518] sm:$0xf0]  ;;  %v5562_v50 = vld [vmem:[%s11158_s1 + $0x5d0] sm:$0xf]  ;;  %v5371_v53 = vor.u32 %v7199_v47, %v5370_v45  ;;  %v7172_v56 = vld [vmem:[%s11158_s1 + $0x380] sm:$0xf0] }
  0x1c   :  { %3290 = vmatpush.bf16.msra.mxu0 %v4831_v16  ;;  %v7247_v51 = vld [vmem:[%s11158_s1 + $0x5d8] sm:$0xf0]  ;;  %v5467_v54 = vor.u32 %v7223_v49, %v5466_v48  ;;  %v5358_v57 = vld [vmem:[%s11158_s1 + $0x438] sm:$0xf]  ;;  %v7196_v59 = vld [vmem:[%s11158_s1 + $0x440] sm:$0xf0]  ;;  %v5263_v0 = vor.u32 %v7172_v56, %v5262_v55 }
  0x1d   :  { %3303 = vmatpush.bf16.msra.mxu1 %v4927_v19  ;;  %v5563_v58 = vor.u32 %v7247_v51, %v5562_v50  ;;  %v5454_v60 = vld [vmem:[%s11158_s1 + $0x4f8] sm:$0xf]  ;;  %v7220_v61 = vld [vmem:[%s11158_s1 + $0x500] sm:$0xf0]  ;;  %v5250_v1 = vld [vmem:[%s11158_s1 + $0x360] sm:$0xf]  ;;  %v5359_v3 = vor.u32 %v7196_v59, %v5358_v57 }
  0x1e   :  { %3316 = vmatpush.bf16.msra.mxu2 %v5023_v20  ;;  %v5550_v62 = vld [vmem:[%s11158_s1 + $0x5b8] sm:$0xf]  ;;  %v7244_v63 = vld [vmem:[%s11158_s1 + $0x5c0] sm:$0xf0]  ;;  %v5455_v4 = vor.u32 %v7220_v61, %v5454_v60  ;;  %v7169_v5 = vld [vmem:[%s11158_s1 + $0x368] sm:$0xf0] }
  0x1f   :  { %3329 = vmatpush.bf16.msra.mxu3 %v5119_v24  ;;  %v27_v2 = vld [vmem:[%s11159_s0] sm:$0xff]  ;;  %v5551_v7 = vor.u32 %v7244_v63, %v5550_v62  ;;  %v7193_v8 = vld [vmem:[%s11158_s1 + $0x428] sm:$0xf0]  ;;  %v5251_v13 = vor.u32 %v7169_v5, %v5250_v1  ;;  %v5238_v16 = vld [vmem:[%s11158_s1 + $0x348] sm:$0xf] }
  0x20   :  { %3291 = vmatpush.bf16.msra.mxu0 %v4819_v31  ;;  %v5346_v6 = vld [vmem:[%s11158_s1 + $0x420] sm:$0xf]  ;;  %679 = vst [vmem:[#allocation1] ss:$9 sm:$0xff] %v27_v2  ;;  %v7217_v10 = vld [vmem:[%s11158_s1 + $0x4e8] sm:$0xf0] }
  0x21   :  { %3304 = vmatpush.bf16.msra.mxu1 %v4915_v35  ;;  %v5442_v9 = vld [vmem:[%s11158_s1 + $0x4e0] sm:$0xf]  ;;  %v7241_v12 = vld [vmem:[%s11158_s1 + $0x5a8] sm:$0xf0]  ;;  %v5347_v14 = vor.u32 %v7193_v8, %v5346_v6  ;;  %v7166_v17 = vld [vmem:[%s11158_s1 + $0x350] sm:$0xf0] }
  0x22   :  { %3317 = vmatpush.bf16.msra.mxu2 %v5011_v36  ;;  %v5538_v11 = vld [vmem:[%s11158_s1 + $0x5a0] sm:$0xf]  ;;  %v5443_v15 = vor.u32 %v7217_v10, %v5442_v9  ;;  %v5334_v18 = vld [vmem:[%s11158_s1 + $0x408] sm:$0xf]  ;;  %v7190_v20 = vld [vmem:[%s11158_s1 + $0x410] sm:$0xf0]  ;;  %v5239_v26 = vor.u32 %v7166_v17, %v5238_v16 }
  0x23   :  { %3330 = vmatpush.bf16.msra.mxu3 %v5107_v39  ;;  %v5539_v19 = vor.u32 %v7241_v12, %v5538_v11  ;;  %v5430_v21 = vld [vmem:[%s11158_s1 + $0x4c8] sm:$0xf]  ;;  %v7214_v22 = vld [vmem:[%s11158_s1 + $0x4d0] sm:$0xf0]  ;;  %v5226_v25 = vld [vmem:[%s11158_s1 + $0x330] sm:$0xf]  ;;  %v5335_v30 = vor.u32 %v7190_v20, %v5334_v18 }
  0x24   :  { %3336 = vmatpush.bf16.msrb.mxu0 %v5287_v40  ;;  %v5526_v23 = vld [vmem:[%s11158_s1 + $0x588] sm:$0xf]  ;;  %v7238_v24 = vld [vmem:[%s11158_s1 + $0x590] sm:$0xf0]  ;;  %v5431_v31 = vor.u32 %v7214_v22, %v5430_v21  ;;  %v7163_v32 = vld [vmem:[%s11158_s1 + $0x338] sm:$0xf0] }
  0x25   :  { %3349 = vmatpush.bf16.msrb.mxu1 %v5383_v41  ;;  %v5322_v33 = vld [vmem:[%s11158_s1 + $0x3f0] sm:$0xf]  ;;  %v5527_v35 = vor.u32 %v7238_v24, %v5526_v23  ;;  %v7187_v36 = vld [vmem:[%s11158_s1 + $0x3f8] sm:$0xf0]  ;;  %v5227_v41 = vor.u32 %v7163_v32, %v5226_v25  ;;  %v28_v45 = vld [vmem:[%s11159_s0 + $0x8] sm:$0xff] }
  0x26   :  { %3362 = vmatpush.bf16.msrb.mxu2 %v5479_v42  ;;  %v5418_v37 = vld [vmem:[%s11158_s1 + $0x4b0] sm:$0xf]  ;;  %v7211_v38 = vld [vmem:[%s11158_s1 + $0x4b8] sm:$0xf0]  ;;  %v5214_v42 = vld [vmem:[%s11158_s1 + $0x318] sm:$0xf]  ;;  %v5323_v43 = vor.u32 %v7187_v36, %v5322_v33 }
  0x27   :  { %3375 = vmatpush.bf16.msrb.mxu3 %v5575_v46  ;;  %v7989_v27 = vld [vmem:[#allocation1 + $0x12] sm:$0xff]  ;;  %v7991_v28 = vld [vmem:[#allocation1] sm:$0xff]  ;;  %v8001_v34 = vld [vmem:[#allocation1 + $0x9] sm:$0xff]  ;;  %v5419_v44 = vor.u32 %v7211_v38, %v5418_v37 }
  0x28   :  { %3337 = vmatpush.bf16.msrb.mxu0 %v5275_v52  ;;  %v7993_v29 = vld [vmem:[#allocation1 + $0x1b] sm:$0xff]  ;;  %3318 = vmatmul.bf16.vlgmr.msra.gmra.mxu2 %v7989_v27  ;;  %v5514_v39 = vld [vmem:[%s11158_s1 + $0x570] sm:$0xf]  ;;  %v7160_v46 = vld [vmem:[%s11158_s1 + $0x320] sm:$0xf0] }
  0x29   :  { %3350 = vmatpush.bf16.msrb.mxu1 %v5371_v53  ;;  %v7235_v40 = vld [vmem:[%s11158_s1 + $0x578] sm:$0xf0]  ;;  %3292 = vmatmul.bf16.vlgmr.msra.gmra.mxu0 %v7991_v28  ;;  %v5310_v47 = vld [vmem:[%s11158_s1 + $0x3d8] sm:$0xf]  ;;  %v7184_v48 = vld [vmem:[%s11158_s1 + $0x3e0] sm:$0xf0]  ;;  %v5215_v56 = vor.u32 %v7160_v46, %v5214_v42 }
  0x2a   :  { %3363 = vmatpush.bf16.msrb.mxu2 %v5467_v54  ;;  %3331 = vmatmul.bf16.vlgmr.msra.gmra.mxu3 %v7993_v29  ;;  %v5515_v49 = vor.u32 %v7235_v40, %v5514_v39  ;;  %v5406_v50 = vld [vmem:[%s11158_s1 + $0x498] sm:$0xf]  ;;  %v7208_v51 = vld [vmem:[%s11158_s1 + $0x4a0] sm:$0xf0]  ;;  %v5202_v54 = vld [vmem:[%s11158_s1 + $0x300] sm:$0xf]  ;;  %v5311_v62 = vor.u32 %v7184_v48, %v5310_v47 }
  0x2b   :  { %3376 = vmatpush.bf16.msrb.mxu3 %v5563_v58  ;;  %3305 = vmatmul.bf16.vlgmr.msra.gmra.mxu1 %v8001_v34  ;;  %v5502_v52 = vld [vmem:[%s11158_s1 + $0x558] sm:$0xf]  ;;  %v7232_v53 = vld [vmem:[%s11158_s1 + $0x560] sm:$0xf0]  ;;  %v7157_v55 = vld [vmem:[%s11158_s1 + $0x308] sm:$0xf0]  ;;  %v5407_v63 = vor.u32 %v7208_v51, %v5406_v50 }
  0x2c   :  { %3338 = vmatpush.bf16.msrb.mxu0 %v5263_v0  ;;  %v5298_v57 = vld [vmem:[%s11158_s1 + $0x3c0] sm:$0xf]  ;;  %v7181_v58 = vld [vmem:[%s11158_s1 + $0x3c8] sm:$0xf0]  ;;  %v8067_v61 = vld [vmem:[#allocation1 + $0x36] sm:$0xff]  ;;  %v5203_v9 = vor.u32 %v7157_v55, %v5202_v54 }
  0x2d   :  { %3351 = vmatpush.bf16.msrb.mxu1 %v5359_v3  ;;  %v5394_v59 = vld [vmem:[%s11158_s1 + $0x480] sm:$0xf]  ;;  %v7205_v60 = vld [vmem:[%s11158_s1 + $0x488] sm:$0xf0]  ;;  %v8069_v0 = vld [vmem:[#allocation1 + $0x24] sm:$0xff]  ;;  %v5503_v3 = vor.u32 %v7232_v53, %v5502_v52 }
  0x2e   :  { %3364 = vmatpush.bf16.msrb.mxu2 %v5455_v4  ;;  %v8071_v1 = vld [vmem:[#allocation1 + $0x3f] sm:$0xff]  ;;  %v8073_v2 = vld [vmem:[#allocation1 + $0x2d] sm:$0xff]  ;;  %v5670_v6 = vld [vmem:[%s11158_s1 + $0x6a8] sm:$0xf] }
  0x2f   :  { %3377 = vmatpush.bf16.msrb.mxu3 %v5551_v7  ;;  %v5490_v4 = vld [vmem:[%s11158_s1 + $0x540] sm:$0xf]  ;;  %v7229_v5 = vld [vmem:[%s11158_s1 + $0x548] sm:$0xf0]  ;;  %689 = vst [vmem:[#allocation1] ss:$9 sm:$0xff] %v28_v45 }
  0x30   :  { %3339 = vmatpush.bf16.msrb.mxu0 %v5251_v13  ;;  %v7274_v7 = vld [vmem:[%s11158_s1 + $0x6b0] sm:$0xf0]  ;;  %v5766_v8 = vld [vmem:[%s11158_s1 + $0x768] sm:$0xf]  ;;  %v5299_v13 = vor.u32 %v7181_v58, %v5298_v57  ;;  %v5491_v17 = vor.u32 %v7229_v5, %v5490_v4  ;;  %v5658_v21 = vld [vmem:[%s11158_s1 + $0x690] sm:$0xf] }
  0x31   :  { %3352 = vmatpush.bf16.msrb.mxu1 %v5347_v14  ;;  %v7298_v10 = vld [vmem:[%s11158_s1 + $0x770] sm:$0xf0]  ;;  %v5862_v11 = vld [vmem:[%s11158_s1 + $0x828] sm:$0xf]  ;;  %v5395_v14 = vor.u32 %v7205_v60, %v5394_v59  ;;  %v5671_v18 = vor.u32 %v7274_v7, %v5670_v6  ;;  %v7271_v22 = vld [vmem:[%s11158_s1 + $0x698] sm:$0xf0] }
  0x32   :  { %3365 = vmatpush.bf16.msrb.mxu2 %v5443_v15  ;;  %v7322_v12 = vld [vmem:[%s11158_s1 + $0x830] sm:$0xf0]  ;;  %v5958_v15 = vld [vmem:[%s11158_s1 + $0x8e8] sm:$0xf]  ;;  %v5754_v23 = vld [vmem:[%s11158_s1 + $0x750] sm:$0xf]  ;;  %v5659_v33 = vor.u32 %v7271_v22, %v5658_v21 }
  0x33   :  { %3378 = vmatpush.bf16.msrb.mxu3 %v5539_v19  ;;  %v7346_v16 = vld [vmem:[%s11158_s1 + $0x8f0] sm:$0xf0]  ;;  %v5767_v19 = vor.u32 %v7298_v10, %v5766_v8  ;;  %v5863_v20 = vor.u32 %v7322_v12, %v5862_v11  ;;  %v7295_v25 = vld [vmem:[%s11158_s1 + $0x758] sm:$0xf0]  ;;  %v5646_v37 = vld [vmem:[%s11158_s1 + $0x678] sm:$0xf] }
  0x34   :  { %3340 = vmatpush.bf16.msrb.mxu0 %v5239_v26  ;;  %v5959_v24 = vor.u32 %v7346_v16, %v5958_v15  ;;  %v5850_v26 = vld [vmem:[%s11158_s1 + $0x810] sm:$0xf]  ;;  %v7343_v32 = vld [vmem:[%s11158_s1 + $0x8d8] sm:$0xf0]  ;;  %v7268_v38 = vld [vmem:[%s11158_s1 + $0x680] sm:$0xf0] }
  0x35   :  { %3353 = vmatpush.bf16.msrb.mxu1 %v5335_v30  ;;  %v7319_v30 = vld [vmem:[%s11158_s1 + $0x818] sm:$0xf0]  ;;  %v5742_v39 = vld [vmem:[%s11158_s1 + $0x738] sm:$0xf]  ;;  %v7340_v45 = vld [vmem:[%s11158_s1 + $0x8c0] sm:$0xf0]  ;;  %v5647_v46 = vor.u32 %v7268_v38, %v5646_v37 }
  0x36   :  { %3366 = vmatpush.bf16.msrb.mxu2 %v5431_v31  ;;  %v5946_v31 = vld [vmem:[%s11158_s1 + $0x8d0] sm:$0xf]  ;;  %v5851_v36 = vor.u32 %v7319_v30, %v5850_v26  ;;  %v5838_v42 = vld [vmem:[%s11158_s1 + $0x7f8] sm:$0xf]  ;;  %v7265_v50 = vld [vmem:[%s11158_s1 + $0x668] sm:$0xf0] }
  0x37   :  { %3379 = vmatpush.bf16.msrb.mxu3 %v5527_v35  ;;  %v5755_v35 = vor.u32 %v7295_v25, %v5754_v23  ;;  %v5947_v40 = vor.u32 %v7343_v32, %v5946_v31  ;;  %v5730_v51 = vld [vmem:[%s11158_s1 + $0x720] sm:$0xf]  ;;  %v7289_v53 = vld [vmem:[%s11158_s1 + $0x728] sm:$0xf0]  ;;  %v7286_v5 = vld [vmem:[%s11158_s1 + $0x710] sm:$0xf0] }
  0x38   :  { %3341 = vmatpush.bf16.msrb.mxu0 %v5227_v41  ;;  %v7292_v41 = vld [vmem:[%s11158_s1 + $0x740] sm:$0xf0]  ;;  %v5826_v54 = vld [vmem:[%s11158_s1 + $0x7e0] sm:$0xf]  ;;  %v7313_v55 = vld [vmem:[%s11158_s1 + $0x7e8] sm:$0xf0]  ;;  %v5731_v59 = vor.u32 %v7289_v53, %v5730_v51 }
  0x39   :  { %3354 = vmatpush.bf16.msrb.mxu1 %v5323_v43  ;;  %v7316_v43 = vld [vmem:[%s11158_s1 + $0x800] sm:$0xf0]  ;;  %v5743_v47 = vor.u32 %v7292_v41, %v5742_v39  ;;  %v7337_v57 = vld [vmem:[%s11158_s1 + $0x8a8] sm:$0xf0]  ;;  %v5827_v60 = vor.u32 %v7313_v55, %v5826_v54  ;;  %v5814_v6 = vld [vmem:[%s11158_s1 + $0x7c8] sm:$0xf] }
  0x3a   :  { %3367 = vmatpush.bf16.msrb.mxu2 %v5419_v44  ;;  %v5934_v44 = vld [vmem:[%s11158_s1 + $0x8b8] sm:$0xf]  ;;  %v5839_v48 = vor.u32 %v7316_v43, %v5838_v42  ;;  %v7310_v7 = vld [vmem:[%s11158_s1 + $0x7d0] sm:$0xf0]  ;;  %v5910_v8 = vld [vmem:[%s11158_s1 + $0x888] sm:$0xf] }
  0x3b   :  { %3380 = vmatpush.bf16.msrb.mxu3 %v5515_v49  ;;  %v5634_v49 = vld [vmem:[%s11158_s1 + $0x660] sm:$0xf]  ;;  %v5935_v52 = vor.u32 %v7340_v45, %v5934_v44  ;;  %v5815_v12 = vor.u32 %v7310_v7, %v5814_v6  ;;  %v5706_v15 = vld [vmem:[%s11158_s1 + $0x6f0] sm:$0xf]  ;;  %v7331_v21 = vld [vmem:[%s11158_s1 + $0x878] sm:$0xf0] }
  0x3c   :  { %3342 = vmatpush.bf16.msrb.mxu0 %v5215_v56  ;;  %v5922_v56 = vld [vmem:[%s11158_s1 + $0x8a0] sm:$0xf]  ;;  %v5635_v58 = vor.u32 %v7265_v50, %v5634_v49  ;;  %v5598_v25 = vld [vmem:[%s11158_s1 + $0x618] sm:$0xf]  ;;  %v7256_v26 = vld [vmem:[%s11158_s1 + $0x620] sm:$0xf0] }
  0x3d   :  { %3355 = vmatpush.bf16.msrb.mxu1 %v5311_v62  ;;  %v5622_v62 = vld [vmem:[%s11158_s1 + $0x648] sm:$0xf]  ;;  %v5923_v4 = vor.u32 %v7337_v57, %v5922_v56  ;;  %v5694_v30 = vld [vmem:[%s11158_s1 + $0x6d8] sm:$0xf]  ;;  %v7280_v32 = vld [vmem:[%s11158_s1 + $0x6e0] sm:$0xf0]  ;;  %v5599_v38 = vor.u32 %v7256_v26, %v5598_v25 }
  0x3e   :  { %3368 = vmatpush.bf16.msrb.mxu2 %v5407_v63  ;;  %v7262_v63 = vld [vmem:[%s11158_s1 + $0x650] sm:$0xf0]  ;;  %v7328_v37 = vld [vmem:[%s11158_s1 + $0x860] sm:$0xf0]  ;;  %v5586_v39 = vld [vmem:[%s11158_s1 + $0x600] sm:$0xf]  ;;  %v5695_v41 = vor.u32 %v7280_v32, %v5694_v30 }
  0x3f   :  { %3381 = vmatpush.bf16.msrb.mxu3 %v5503_v3  ;;  %v5718_v3 = vld [vmem:[%s11158_s1 + $0x708] sm:$0xf]  ;;  %v5623_v10 = vor.u32 %v7262_v63, %v5622_v62  ;;  %v5682_v43 = vld [vmem:[%s11158_s1 + $0x6c0] sm:$0xf]  ;;  %v7277_v44 = vld [vmem:[%s11158_s1 + $0x6c8] sm:$0xf0] }
  0x40   :  { %3343 = vmatpush.bf16.msrb.mxu0 %v5203_v9  ;;  %v7334_v9 = vld [vmem:[%s11158_s1 + $0x890] sm:$0xf0]  ;;  %v5719_v11 = vor.u32 %v7286_v5, %v5718_v3  ;;  %v5778_v45 = vld [vmem:[%s11158_s1 + $0x780] sm:$0xf]  ;;  %v7325_v49 = vld [vmem:[%s11158_s1 + $0x848] sm:$0xf0]  ;;  %v5683_v57 = vor.u32 %v7277_v44, %v5682_v43 }
  0x41   :  { %3356 = vmatpush.bf16.msrb.mxu1 %v5299_v13  ;;  %v5610_v13 = vld [vmem:[%s11158_s1 + $0x630] sm:$0xf]  ;;  %v5911_v16 = vor.u32 %v7334_v9, %v5910_v8  ;;  %v6054_v50 = vld [vmem:[%s11158_s1 + $0x9a8] sm:$0xf]  ;;  %v7370_v51 = vld [vmem:[%s11158_s1 + $0x9b0] sm:$0xf0] }
  0x42   :  { %3369 = vmatpush.bf16.msrb.mxu2 %v5395_v14  ;;  %v7259_v14 = vld [vmem:[%s11158_s1 + $0x638] sm:$0xf0]  ;;  %v7394_v54 = vld [vmem:[%s11158_s1 + $0xa70] sm:$0xf0]  ;;  %v6246_v55 = vld [vmem:[%s11158_s1 + $0xb28] sm:$0xf]  ;;  %v6055_v63 = vor.u32 %v7370_v51, %v6054_v50 }
  0x43   :  { %3382 = vmatpush.bf16.msrb.mxu3 %v5491_v17  ;;  %3344 = vmatmul.bf16.vlgmr.msrb.gmra.mxu0 %v8069_v0  ;;  %v7283_v17 = vld [vmem:[%s11158_s1 + $0x6f8] sm:$0xf0]  ;;  %v5611_v22 = vor.u32 %v7259_v14, %v5610_v13  ;;  %v7418_v56 = vld [vmem:[%s11158_s1 + $0xb30] sm:$0xf0]  ;;  %v6042_v3 = vld [vmem:[%s11158_s1 + $0x990] sm:$0xf] }
  0x44   :  { %3388 = vmatpush.bf16.msra.mxu0 %v5671_v18  ;;  %3357 = vmatmul.bf16.vlgmr.msrb.gmra.mxu1 %v8073_v2  ;;  %v5802_v18 = vld [vmem:[%s11158_s1 + $0x7b0] sm:$0xf]  ;;  %v5707_v23 = vor.u32 %v7283_v17, %v5706_v15  ;;  %v6247_v6 = vor.u32 %v7418_v56, %v6246_v55  ;;  %v8307_v7 = vld [vmem:[#allocation1] sm:$0xff]  ;;  %v7367_v8 = vld [vmem:[%s11158_s1 + $0x998] sm:$0xf0] }
  0x45   :  { %3401 = vmatpush.bf16.msra.mxu1 %v5767_v19  ;;  %3370 = vmatmul.bf16.vlgmr.msrb.gmra.mxu2 %v8067_v61  ;;  %v7307_v19 = vld [vmem:[%s11158_s1 + $0x7b8] sm:$0xf0]  ;;  %v6138_v9 = vld [vmem:[%s11158_s1 + $0xa50] sm:$0xf]  ;;  %v7361_v43 = vld [vmem:[%s11158_s1 + $0x968] sm:$0xf0] }
  0x46   :  { %3414 = vmatpush.bf16.msra.mxu2 %v5863_v20  ;;  %3383 = vmatmul.bf16.vlgmr.msrb.gmra.mxu3 %v8071_v1  ;;  %v5898_v20 = vld [vmem:[%s11158_s1 + $0x870] sm:$0xf]  ;;  %v7415_v15 = vld [vmem:[%s11158_s1 + $0xb18] sm:$0xf0]  ;;  %v6114_v44 = vld [vmem:[%s11158_s1 + $0xa20] sm:$0xf] }
  0x47   :  { %3427 = vmatpush.bf16.msra.mxu3 %v5959_v24  ;;  %v5803_v24 = vor.u32 %v7307_v19, %v5802_v18  ;;  %v5899_v31 = vor.u32 %v7331_v21, %v5898_v20  ;;  %v8320_v13 = vld [vmem:[#allocation1 + $0x9] sm:$0xff]  ;;  %v8331_v17 = vld [vmem:[#allocation1 + $0x1b] sm:$0xff]  ;;  %v7364_v20 = vld [vmem:[%s11158_s1 + $0x980] sm:$0xf0]  ;;  %v6043_v21 = vor.u32 %v7367_v8, %v6042_v3 }
  0x48   :  { %3389 = vmatpush.bf16.msra.mxu0 %v5659_v33  ;;  %v5790_v33 = vld [vmem:[%s11158_s1 + $0x798] sm:$0xf]  ;;  %v6234_v14 = vld [vmem:[%s11158_s1 + $0xb10] sm:$0xf]  ;;  %v7439_v18 = vld [vmem:[%s11158_s1 + $0xbd8] sm:$0xf0] }
  0x49   :  { %3402 = vmatpush.bf16.msra.mxu1 %v5755_v35  ;;  %v7304_v35 = vld [vmem:[%s11158_s1 + $0x7a0] sm:$0xf0]  ;;  %v6030_v19 = vld [vmem:[%s11158_s1 + $0x978] sm:$0xf]  ;;  %v6235_v26 = vor.u32 %v7415_v15, %v6234_v14  ;;  %v7433_v50 = vld [vmem:[%s11158_s1 + $0xba8] sm:$0xf0] }
  0x4a   :  { %3415 = vmatpush.bf16.msra.mxu2 %v5851_v36  ;;  %v5886_v36 = vld [vmem:[%s11158_s1 + $0x858] sm:$0xf]  ;;  %v5791_v42 = vor.u32 %v7304_v35, %v5790_v33  ;;  %v8354_v32 = vld [vmem:[#allocation1 + $0x3f] sm:$0xff]  ;;  %v7358_v55 = vld [vmem:[%s11158_s1 + $0x950] sm:$0xf0] }
  0x4b   :  { %3428 = vmatpush.bf16.msra.mxu3 %v5947_v40  ;;  %v7253_v40 = vld [vmem:[%s11158_s1 + $0x608] sm:$0xf0]  ;;  %v8350_v30 = vld [vmem:[#allocation1 + $0x36] sm:$0xff]  ;;  %v6102_v56 = vld [vmem:[%s11158_s1 + $0xa08] sm:$0xf] }
  0x4c   :  { %3390 = vmatpush.bf16.msra.mxu0 %v5647_v46  ;;  %v5887_v46 = vor.u32 %v7328_v37, %v5886_v36  ;;  %v5587_v53 = vor.u32 %v7253_v40, %v5586_v39  ;;  %v6222_v35 = vld [vmem:[%s11158_s1 + $0xaf8] sm:$0xf]  ;;  %v7412_v36 = vld [vmem:[%s11158_s1 + $0xb00] sm:$0xf0]  ;;  %v6031_v39 = vor.u32 %v7364_v20, %v6030_v19  ;;  %v7355_v8 = vld [vmem:[%s11158_s1 + $0x938] sm:$0xf0] }
  0x4d   :  { %3403 = vmatpush.bf16.msra.mxu1 %v5743_v47  ;;  %v7301_v47 = vld [vmem:[%s11158_s1 + $0x788] sm:$0xf0]  ;;  %v6318_v37 = vld [vmem:[%s11158_s1 + $0xbb8] sm:$0xf]  ;;  %v6186_v14 = vld [vmem:[%s11158_s1 + $0xab0] sm:$0xf] }
  0x4e   :  { %3416 = vmatpush.bf16.msra.mxu2 %v5839_v48  ;;  %v5874_v48 = vld [vmem:[%s11158_s1 + $0x840] sm:$0xf]  ;;  %v7403_v15 = vld [vmem:[%s11158_s1 + $0xab8] sm:$0xf0] }
  0x4f   :  { %3429 = vmatpush.bf16.msra.mxu3 %v5935_v52  ;;  %v6150_v52 = vld [vmem:[%s11158_s1 + $0xa68] sm:$0xf]  ;;  %v5875_v62 = vor.u32 %v7325_v49, %v5874_v48  ;;  %v7409_v48 = vld [vmem:[%s11158_s1 + $0xae8] sm:$0xf0]  ;;  %v6306_v49 = vld [vmem:[%s11158_s1 + $0xba0] sm:$0xf] }
  0x50   :  { %3391 = vmatpush.bf16.msra.mxu0 %v5635_v58  ;;  %v5779_v58 = vor.u32 %v7301_v47, %v5778_v45  ;;  %v6151_v5 = vor.u32 %v7394_v54, %v6150_v52  ;;  %v6210_v47 = vld [vmem:[%s11158_s1 + $0xae0] sm:$0xf]  ;;  %v6006_v54 = vld [vmem:[%s11158_s1 + $0x948] sm:$0xf] }
  0x51   :  { %3404 = vmatpush.bf16.msra.mxu1 %v5731_v59  ;;  %v6342_v59 = vld [vmem:[%s11158_s1 + $0xbe8] sm:$0xf]  ;;  %v6007_v3 = vor.u32 %v7358_v55, %v6006_v54  ;;  %v7490_v55 = vld [vmem:[%s11158_s1 + $0xd70] sm:$0xf0] }
  0x52   :  { %3417 = vmatpush.bf16.msra.mxu2 %v5827_v60  ;;  %v7442_v60 = vld [vmem:[%s11158_s1 + $0xbf0] sm:$0xf0] }
  0x53   :  { %3430 = vmatpush.bf16.msra.mxu3 %v5923_v4  ;;  %v29_v4 = vld [vmem:[%s11159_s0 + $0x10] sm:$0xf] }
  0x54   :  { %3392 = vmatpush.bf16.msra.mxu0 %v5623_v10  ;;  %v7391_v10 = vld [vmem:[%s11158_s1 + $0xa58] sm:$0xf0] }
  0x55   :  { %3405 = vmatpush.bf16.msra.mxu1 %v5719_v11  ;;  %v6343_v11 = vor.u32 %v7442_v60, %v6342_v59  ;;  %v6139_v25 = vor.u32 %v7391_v10, %v6138_v9  ;;  %v6198_v59 = vld [vmem:[%s11158_s1 + $0xac8] sm:$0xf]  ;;  %v7406_v60 = vld [vmem:[%s11158_s1 + $0xad0] sm:$0xf0]  ;;  %v6090_v9 = vld [vmem:[%s11158_s1 + $0x9f0] sm:$0xf] }
  0x56   :  { %3418 = vmatpush.bf16.msra.mxu2 %v5815_v12  ;;  %v8318_v12 = vld [vmem:[#allocation1 + $0x12] sm:$0xff] }
  0x57   :  { %3431 = vmatpush.bf16.msra.mxu3 %v5911_v16  ;;  %v6330_v16 = vld [vmem:[%s11158_s1 + $0xbd0] sm:$0xf] }
  0x58   :  { %3393 = vmatpush.bf16.msra.mxu0 %v5611_v22  ;;  %v6126_v22 = vld [vmem:[%s11158_s1 + $0xa38] sm:$0xf]  ;;  %v6331_v33 = vor.u32 %v7439_v18, %v6330_v16  ;;  %v6282_v16 = vld [vmem:[%s11158_s1 + $0xb70] sm:$0xf]  ;;  %v7427_v18 = vld [vmem:[%s11158_s1 + $0xb78] sm:$0xf0] }
  0x59   :  { %3406 = vmatpush.bf16.msra.mxu1 %v5707_v23  ;;  %v7388_v23 = vld [vmem:[%s11158_s1 + $0xa40] sm:$0xf0] }
  0x5a   :  { %3419 = vmatpush.bf16.msra.mxu2 %v5803_v24  ;;  %v8348_v24 = vld [vmem:[#allocation1 + $0x24] sm:$0xff]  ;;  %v6127_v40 = vor.u32 %v7388_v23, %v6126_v22  ;;  %v5982_v22 = vld [vmem:[%s11158_s1 + $0x918] sm:$0xf] }
  0x5b   :  { %3432 = vmatpush.bf16.msra.mxu3 %v5899_v31  ;;  %v8352_v31 = vld [vmem:[#allocation1 + $0x2d] sm:$0xff]  ;;  %v7352_v23 = vld [vmem:[%s11158_s1 + $0x920] sm:$0xf0] }
  0x5c   :  { %3394 = vmatpush.bf16.msra.mxu0 %v5599_v38  ;;  %699 = vst [vmem:[#allocation1] ss:$9 sm:$0xff] %v29_v4  ;;  %v7436_v38 = vld [vmem:[%s11158_s1 + $0xbc0] sm:$0xf0] }
  0x5d   :  { %3407 = vmatpush.bf16.msra.mxu1 %v5695_v41  ;;  %v6223_v41 = vor.u32 %v7412_v36, %v6222_v35  ;;  %v6319_v45 = vor.u32 %v7436_v38, %v6318_v37  ;;  %v6174_v35 = vld [vmem:[%s11158_s1 + $0xa98] sm:$0xf]  ;;  %v7400_v36 = vld [vmem:[%s11158_s1 + $0xaa0] sm:$0xf0] }
  0x5e   :  { %3420 = vmatpush.bf16.msra.mxu2 %v5791_v42  ;;  %v6018_v42 = vld [vmem:[%s11158_s1 + $0x960] sm:$0xf]  ;;  %v6270_v37 = vld [vmem:[%s11158_s1 + $0xb58] sm:$0xf]  ;;  %v7424_v38 = vld [vmem:[%s11158_s1 + $0xb60] sm:$0xf0] }
  0x5f   :  { %3433 = vmatpush.bf16.msra.mxu3 %v5887_v46  ;;  %v7385_v46 = vld [vmem:[%s11158_s1 + $0xa28] sm:$0xf0]  ;;  %v6019_v51 = vor.u32 %v7361_v43, %v6018_v42  ;;  %v6175_v43 = vor.u32 %v7400_v36, %v6174_v35  ;;  %v6606_v35 = vld [vmem:[%s11158_s1 + $0xdf8] sm:$0xf]  ;;  %v7508_v36 = vld [vmem:[%s11158_s1 + $0xe00] sm:$0xf0] }
  0x60   :  { %3395 = vmatpush.bf16.msra.mxu0 %v5587_v53  ;;  %v6115_v52 = vor.u32 %v7385_v46, %v6114_v44  ;;  %v6211_v53 = vor.u32 %v7409_v48, %v6210_v47  ;;  %v6066_v44 = vld [vmem:[%s11158_s1 + $0x9c0] sm:$0xf]  ;;  %v6271_v47 = vor.u32 %v7424_v38, %v6270_v37  ;;  %v7397_v48 = vld [vmem:[%s11158_s1 + $0xa88] sm:$0xf0]  ;;  %v6702_v37 = vld [vmem:[%s11158_s1 + $0xeb8] sm:$0xf] }
  0x61   :  { %3408 = vmatpush.bf16.msra.mxu1 %v5683_v57  ;;  %v6307_v57 = vor.u32 %v7433_v50, %v6306_v49  ;;  %v6162_v46 = vld [vmem:[%s11158_s1 + $0xa80] sm:$0xf]  ;;  %v7421_v50 = vld [vmem:[%s11158_s1 + $0xb48] sm:$0xf0]  ;;  %v7532_v38 = vld [vmem:[%s11158_s1 + $0xec0] sm:$0xf0] }
  0x62   :  { %3421 = vmatpush.bf16.msra.mxu2 %v5779_v58  ;;  %v7382_v58 = vld [vmem:[%s11158_s1 + $0xa10] sm:$0xf0]  ;;  %v6258_v49 = vld [vmem:[%s11158_s1 + $0xb40] sm:$0xf] }
  0x63   :  { %3434 = vmatpush.bf16.msra.mxu3 %v5875_v62  ;;  %3396 = vmatmul.bf16.vlgmr.msra.gmra.mxu0 %v8307_v7  ;;  %v6294_v62 = vld [vmem:[%s11158_s1 + $0xb88] sm:$0xf]  ;;  %v6103_v4 = vor.u32 %v7382_v58, %v6102_v56 }
  0x64   :  { %3440 = vmatpush.bf16.msrb.mxu0 %v6055_v63  ;;  %3409 = vmatmul.bf16.vlgmr.msra.gmra.mxu1 %v8320_v13  ;;  %v7430_v63 = vld [vmem:[%s11158_s1 + $0xb90] sm:$0xf0]  ;;  %v6630_v56 = vld [vmem:[%s11158_s1 + $0xe28] sm:$0xf] }
  0x65   :  { %3453 = vmatpush.bf16.msrb.mxu1 %v6151_v5  ;;  %3422 = vmatmul.bf16.vlgmr.msra.gmra.mxu2 %v8318_v12  ;;  %v6199_v5 = vor.u32 %v7406_v60, %v6198_v59  ;;  %v6295_v10 = vor.u32 %v7430_v63, %v6294_v62  ;;  %v6163_v59 = vor.u32 %v7397_v48, %v6162_v46  ;;  %v6726_v60 = vld [vmem:[%s11158_s1 + $0xee8] sm:$0xf]  ;;  %v7538_v62 = vld [vmem:[%s11158_s1 + $0xef0] sm:$0xf0]  ;;  %v7481_v46 = vld [vmem:[%s11158_s1 + $0xd28] sm:$0xf0] }
  0x66   :  { %3466 = vmatpush.bf16.msrb.mxu2 %v6247_v6  ;;  %3435 = vmatmul.bf16.vlgmr.msra.gmra.mxu3 %v8331_v17  ;;  %v5994_v6 = vld [vmem:[%s11158_s1 + $0x930] sm:$0xf]  ;;  %v6259_v63 = vor.u32 %v7421_v50, %v6258_v49  ;;  %v7505_v48 = vld [vmem:[%s11158_s1 + $0xde8] sm:$0xf0]  ;;  %v6690_v49 = vld [vmem:[%s11158_s1 + $0xea0] sm:$0xf] }
  0x67   :  { %3479 = vmatpush.bf16.msrb.mxu3 %v6343_v11  ;;  %v7379_v11 = vld [vmem:[%s11158_s1 + $0x9f8] sm:$0xf0]  ;;  %v5995_v19 = vor.u32 %v7355_v8, %v5994_v6  ;;  %v6426_v6 = vld [vmem:[%s11158_s1 + $0xc90] sm:$0xf]  ;;  %v7529_v50 = vld [vmem:[%s11158_s1 + $0xea8] sm:$0xf0] }
  0x68   :  { %3441 = vmatpush.bf16.msrb.mxu0 %v6043_v21  ;;  %v6091_v20 = vor.u32 %v7379_v11, %v6090_v9  ;;  %v6187_v21 = vor.u32 %v7403_v15, %v6186_v14  ;;  %v7463_v8 = vld [vmem:[%s11158_s1 + $0xc98] sm:$0xf0]  ;;  %v6522_v9 = vld [vmem:[%s11158_s1 + $0xd50] sm:$0xf] }
  0x69   :  { %3454 = vmatpush.bf16.msrb.mxu1 %v6139_v25  ;;  %v6078_v25 = vld [vmem:[%s11158_s1 + $0x9d8] sm:$0xf]  ;;  %v7487_v11 = vld [vmem:[%s11158_s1 + $0xd58] sm:$0xf0]  ;;  %v6618_v14 = vld [vmem:[%s11158_s1 + $0xe10] sm:$0xf] }
  0x6a   :  { %3467 = vmatpush.bf16.msrb.mxu2 %v6235_v26  ;;  %v6283_v26 = vor.u32 %v7427_v18, %v6282_v16  ;;  %v7511_v15 = vld [vmem:[%s11158_s1 + $0xe18] sm:$0xf0]  ;;  %v6714_v16 = vld [vmem:[%s11158_s1 + $0xed0] sm:$0xf] }
  0x6b   :  { %3480 = vmatpush.bf16.msrb.mxu3 %v6331_v33  ;;  %v7376_v33 = vld [vmem:[%s11158_s1 + $0x9e0] sm:$0xf0]  ;;  %v7535_v18 = vld [vmem:[%s11158_s1 + $0xed8] sm:$0xf0] }
  0x6c   :  { %3442 = vmatpush.bf16.msrb.mxu0 %v6031_v39  ;;  %v5983_v39 = vor.u32 %v7352_v23, %v5982_v22  ;;  %v6079_v42 = vor.u32 %v7376_v33, %v6078_v25  ;;  %v6414_v22 = vld [vmem:[%s11158_s1 + $0xc78] sm:$0xf]  ;;  %v7460_v23 = vld [vmem:[%s11158_s1 + $0xc80] sm:$0xf0] }
  0x6d   :  { %3455 = vmatpush.bf16.msrb.mxu1 %v6127_v40  ;;  %v5970_v40 = vld [vmem:[%s11158_s1 + $0x900] sm:$0xf]  ;;  %v6510_v25 = vld [vmem:[%s11158_s1 + $0xd38] sm:$0xf]  ;;  %v7484_v33 = vld [vmem:[%s11158_s1 + $0xd40] sm:$0xf0] }
  0x6e   :  { %3468 = vmatpush.bf16.msrb.mxu2 %v6223_v41  ;;  %v7349_v41 = vld [vmem:[%s11158_s1 + $0x908] sm:$0xf0] }
  0x6f   :  { %3481 = vmatpush.bf16.msrb.mxu3 %v6319_v45  ;;  %v7373_v45 = vld [vmem:[%s11158_s1 + $0x9c8] sm:$0xf0]  ;;  %v5971_v54 = vor.u32 %v7349_v41, %v5970_v40  ;;  %v6511_v40 = vor.u32 %v7484_v33, %v6510_v25  ;;  %v6607_v41 = vor.u32 %v7508_v36, %v6606_v35  ;;  %v6462_v25 = vld [vmem:[%s11158_s1 + $0xcd8] sm:$0xf]  ;;  %v7472_v33 = vld [vmem:[%s11158_s1 + $0xce0] sm:$0xf0] }
  0x70   :  { %3443 = vmatpush.bf16.msrb.mxu0 %v6019_v51  ;;  %v6438_v51 = vld [vmem:[%s11158_s1 + $0xca8] sm:$0xf]  ;;  %v6067_v58 = vor.u32 %v7373_v45, %v6066_v44  ;;  %v6498_v44 = vld [vmem:[%s11158_s1 + $0xd20] sm:$0xf]  ;;  %v6703_v45 = vor.u32 %v7532_v38, %v6702_v37  ;;  %v6558_v35 = vld [vmem:[%s11158_s1 + $0xd98] sm:$0xf] }
  0x71   :  { %3456 = vmatpush.bf16.msrb.mxu1 %v6115_v52  ;;  %v7466_v52 = vld [vmem:[%s11158_s1 + $0xcb0] sm:$0xf0]  ;;  %v7496_v36 = vld [vmem:[%s11158_s1 + $0xda0] sm:$0xf0]  ;;  %v6654_v37 = vld [vmem:[%s11158_s1 + $0xe58] sm:$0xf] }
  0x72   :  { %3469 = vmatpush.bf16.msrb.mxu2 %v6211_v53  ;;  %v6534_v53 = vld [vmem:[%s11158_s1 + $0xd68] sm:$0xf]  ;;  %v7520_v38 = vld [vmem:[%s11158_s1 + $0xe60] sm:$0xf0] }
  0x73   :  { %3482 = vmatpush.bf16.msrb.mxu3 %v6307_v57  ;;  %v7514_v57 = vld [vmem:[%s11158_s1 + $0xe30] sm:$0xf0] }
  0x74   :  { %3444 = vmatpush.bf16.msrb.mxu0 %v6007_v3  ;;  %v6439_v3 = vor.u32 %v7466_v52, %v6438_v51  ;;  %v6499_v52 = vor.u32 %v7481_v46, %v6498_v44  ;;  %v6450_v44 = vld [vmem:[%s11158_s1 + $0xcc0] sm:$0xf] }
  0x75   :  { %3457 = vmatpush.bf16.msrb.mxu1 %v6103_v4  ;;  %v6535_v4 = vor.u32 %v7490_v55, %v6534_v53  ;;  %v7454_v55 = vld [vmem:[%s11158_s1 + $0xc50] sm:$0xf0]  ;;  %v6546_v46 = vld [vmem:[%s11158_s1 + $0xd80] sm:$0xf] }
  0x76   :  { %3470 = vmatpush.bf16.msrb.mxu2 %v6199_v5  ;;  %v6631_v5 = vor.u32 %v7514_v57, %v6630_v56  ;;  %v6486_v56 = vld [vmem:[%s11158_s1 + $0xd08] sm:$0xf]  ;;  %v6691_v57 = vor.u32 %v7529_v50, %v6690_v49  ;;  %v6642_v49 = vld [vmem:[%s11158_s1 + $0xe40] sm:$0xf]  ;;  %v7517_v50 = vld [vmem:[%s11158_s1 + $0xe48] sm:$0xf0] }
  0x77   :  { %3483 = vmatpush.bf16.msrb.mxu3 %v6295_v10  ;;  %v6727_v10 = vor.u32 %v7538_v62, %v6726_v60  ;;  %v7502_v60 = vld [vmem:[%s11158_s1 + $0xdd0] sm:$0xf0]  ;;  %v6678_v62 = vld [vmem:[%s11158_s1 + $0xe88] sm:$0xf] }
  0x78   :  { %3445 = vmatpush.bf16.msrb.mxu0 %v5995_v19  ;;  %v6427_v19 = vor.u32 %v7463_v8, %v6426_v6  ;;  %v6378_v6 = vld [vmem:[%s11158_s1 + $0xc30] sm:$0xf]  ;;  %v7451_v8 = vld [vmem:[%s11158_s1 + $0xc38] sm:$0xf0] }
  0x79   :  { %3458 = vmatpush.bf16.msrb.mxu1 %v6091_v20  ;;  %v6523_v20 = vor.u32 %v7487_v11, %v6522_v9  ;;  %v6474_v9 = vld [vmem:[%s11158_s1 + $0xcf0] sm:$0xf]  ;;  %v7475_v11 = vld [vmem:[%s11158_s1 + $0xcf8] sm:$0xf0] }
  0x7a   :  { %3471 = vmatpush.bf16.msrb.mxu2 %v6187_v21  ;;  %v6619_v21 = vor.u32 %v7511_v15, %v6618_v14  ;;  %v6570_v14 = vld [vmem:[%s11158_s1 + $0xdb0] sm:$0xf]  ;;  %v7499_v15 = vld [vmem:[%s11158_s1 + $0xdb8] sm:$0xf0] }
  0x7b   :  { %3484 = vmatpush.bf16.msrb.mxu3 %v6283_v26  ;;  %v6715_v26 = vor.u32 %v7535_v18, %v6714_v16  ;;  %v6666_v16 = vld [vmem:[%s11158_s1 + $0xe70] sm:$0xf]  ;;  %v7523_v18 = vld [vmem:[%s11158_s1 + $0xe78] sm:$0xf0] }
  0x7c   :  { %3446 = vmatpush.bf16.msrb.mxu0 %v5983_v39  ;;  %v6415_v39 = vor.u32 %v7460_v23, %v6414_v22  ;;  %v6366_v22 = vld [vmem:[%s11158_s1 + $0xc18] sm:$0xf]  ;;  %v7448_v23 = vld [vmem:[%s11158_s1 + $0xc20] sm:$0xf0] }
  0x7d   :  { %3459 = vmatpush.bf16.msrb.mxu1 %v6079_v42  ;;  %v6402_v42 = vld [vmem:[%s11158_s1 + $0xc60] sm:$0xf] }
  0x7e   :  { %3472 = vmatpush.bf16.msrb.mxu2 %v6175_v43  ;;  %v7457_v43 = vld [vmem:[%s11158_s1 + $0xc68] sm:$0xf0] }
  0x7f   :  { %3485 = vmatpush.bf16.msrb.mxu3 %v6271_v47  ;;  %v6594_v47 = vld [vmem:[%s11158_s1 + $0xde0] sm:$0xf]  ;;  %v6403_v51 = vor.u32 %v7457_v43, %v6402_v42  ;;  %v6463_v42 = vor.u32 %v7472_v33, %v6462_v25  ;;  %v6559_v43 = vor.u32 %v7496_v36, %v6558_v35  ;;  %v7075_v33 = vld [vmem:[%s11158_s1 + $0x7c] sm:$0xf]  ;;  %v4880_v35 = vld [vmem:[%s11158_s1 + $0x84] sm:$0xf0] }
  0x80   :  { %3447 = vmatpush.bf16.msrb.mxu0 %v5971_v54  ;;  %v6595_v53 = vor.u32 %v7505_v48, %v6594_v47  ;;  %v6390_v54 = vld [vmem:[%s11158_s1 + $0xc48] sm:$0xf]  ;;  %v6655_v47 = vor.u32 %v7520_v38, %v6654_v37  ;;  %v7493_v48 = vld [vmem:[%s11158_s1 + $0xd88] sm:$0xf0]  ;;  %v7099_v36 = vld [vmem:[%s11158_s1 + $0x13c] sm:$0xf] }
  0x81   :  { %3460 = vmatpush.bf16.msrb.mxu1 %v6067_v58  ;;  %v7478_v58 = vld [vmem:[%s11158_s1 + $0xd10] sm:$0xf0]  ;;  %v4976_v38 = vld [vmem:[%s11158_s1 + $0x144] sm:$0xf0] }
  0x82   :  { %3473 = vmatpush.bf16.msrb.mxu2 %v6163_v59  ;;  %v6582_v59 = vld [vmem:[%s11158_s1 + $0xdc8] sm:$0xf] }
  0x83   :  { %3486 = vmatpush.bf16.msrb.mxu3 %v6259_v63  ;;  %3448 = vmatmul.bf16.vlgmr.msrb.gmra.mxu0 %v8348_v24  ;;  %v7526_v63 = vld [vmem:[%s11158_s1 + $0xe90] sm:$0xf0] }
  0x84   :  { %3492 = vmatpush.bf16.msra.mxu0 %v6439_v3  ;;  %3461 = vmatmul.bf16.vlgmr.msrb.gmra.mxu1 %v8352_v31  ;;  %v6391_v3 = vor.u32 %v7454_v55, %v6390_v54  ;;  %v5000_v55 = vld [vmem:[%s11158_s1 + $0x174] sm:$0xf0] }
  0x85   :  { %3505 = vmatpush.bf16.msra.mxu1 %v6535_v4  ;;  %3474 = vmatmul.bf16.vlgmr.msrb.gmra.mxu2 %v8350_v30  ;;  %v6487_v4 = vor.u32 %v7478_v58, %v6486_v56  ;;  %v7129_v56 = vld [vmem:[%s11158_s1 + $0x22c] sm:$0xf] }
  0x86   :  { %3518 = vmatpush.bf16.msra.mxu2 %v6631_v5  ;;  %3487 = vmatmul.bf16.vlgmr.msrb.gmra.mxu3 %v8354_v32  ;;  %v6583_v5 = vor.u32 %v7502_v60, %v6582_v59  ;;  %v6547_v59 = vor.u32 %v7493_v48, %v6546_v46  ;;  %v7153_v60 = vld [vmem:[%s11158_s1 + $0x2ec] sm:$0xf]  ;;  %v7072_v46 = vld [vmem:[%s11158_s1 + $0x64] sm:$0xf] }
  0x87   :  { %3531 = vmatpush.bf16.msra.mxu3 %v6727_v10  ;;  %v6679_v10 = vor.u32 %v7526_v63, %v6678_v62  ;;  %v5192_v62 = vld [vmem:[%s11158_s1 + $0x2f4] sm:$0xf0]  ;;  %v6643_v63 = vor.u32 %v7517_v50, %v6642_v49  ;;  %v7096_v48 = vld [vmem:[%s11158_s1 + $0x124] sm:$0xf]  ;;  %v4964_v50 = vld [vmem:[%s11158_s1 + $0x12c] sm:$0xf0] }
  0x88   :  { %3493 = vmatpush.bf16.msra.mxu0 %v6427_v19  ;;  %v6379_v19 = vor.u32 %v7451_v8, %v6378_v6  ;;  %v7078_v6 = vld [vmem:[%s11158_s1 + $0x94] sm:$0xf]  ;;  %v4892_v8 = vld [vmem:[%s11158_s1 + $0x9c] sm:$0xf0] }
  0x89   :  { %3506 = vmatpush.bf16.msra.mxu1 %v6523_v20  ;;  %v6475_v20 = vor.u32 %v7475_v11, %v6474_v9  ;;  %v7102_v9 = vld [vmem:[%s11158_s1 + $0x154] sm:$0xf]  ;;  %v4988_v11 = vld [vmem:[%s11158_s1 + $0x15c] sm:$0xf0] }
  0x8a   :  { %3519 = vmatpush.bf16.msra.mxu2 %v6619_v21  ;;  %v6571_v21 = vor.u32 %v7499_v15, %v6570_v14  ;;  %v7126_v14 = vld [vmem:[%s11158_s1 + $0x214] sm:$0xf]  ;;  %v5084_v15 = vld [vmem:[%s11158_s1 + $0x21c] sm:$0xf0]  ;;  %v4991_v25 = vor.u32 %v7102_v9, %v4988_v11 }
  0x8b   :  { %3532 = vmatpush.bf16.msra.mxu3 %v6715_v26  ;;  %v6667_v26 = vor.u32 %v7523_v18, %v6666_v16  ;;  %v700_v16 = vld [vmem:[#allocation1] sm:$0xff]  ;;  %v7150_v18 = vld [vmem:[%s11158_s1 + $0x2d4] sm:$0xf] }
  0x8c   :  { %3494 = vmatpush.bf16.msra.mxu0 %v6415_v39  ;;  %v6367_v39 = vor.u32 %v7448_v23, %v6366_v22  ;;  %v703_v22 = vld [vmem:[#allocation1 + $0x1b] sm:$0xff]  ;;  %v4895_v23 = vor.u32 %v7078_v6, %v4892_v8  ;;  %v7066_v9 = vld [vmem:[%s11158_s1 + $0x34] sm:$0xf] }
  0x8d   :  { %3507 = vmatpush.bf16.msra.mxu1 %v6511_v40  ;;  %v6354_v40 = vld [vmem:[%s11158_s1 + $0xc00] sm:$0xf]  ;;  %v5144_v6 = vld [vmem:[%s11158_s1 + $0x294] sm:$0xf0] }
  0x8e   :  { %3520 = vmatpush.bf16.msra.mxu2 %v6607_v41  ;;  %v7445_v41 = vld [vmem:[%s11158_s1 + $0xc08] sm:$0xf0] }
  0x8f   :  { %3533 = vmatpush.bf16.msra.mxu3 %v6703_v45  ;;  %v7469_v45 = vld [vmem:[%s11158_s1 + $0xcc8] sm:$0xf0]  ;;  %v6355_v54 = vor.u32 %v7445_v41, %v6354_v40  ;;  %v5072_v40 = vld [vmem:[%s11158_s1 + $0x204] sm:$0xf0]  ;;  %v7147_v41 = vld [vmem:[%s11158_s1 + $0x2bc] sm:$0xf] }
  0x90   :  { %3495 = vmatpush.bf16.msra.mxu0 %v6403_v51  ;;  %v7081_v51 = vld [vmem:[%s11158_s1 + $0xac] sm:$0xf]  ;;  %v6451_v58 = vor.u32 %v7469_v45, %v6450_v44  ;;  %v4979_v44 = vor.u32 %v7099_v36, %v4976_v38  ;;  %v4832_v36 = vld [vmem:[%s11158_s1 + $0x24] sm:$0xf0] }
  0x91   :  { %3508 = vmatpush.bf16.msra.mxu1 %v6499_v52  ;;  %v4904_v52 = vld [vmem:[%s11158_s1 + $0xb4] sm:$0xf0] }
  0x92   :  { %3521 = vmatpush.bf16.msra.mxu2 %v6595_v53  ;;  %v7105_v53 = vld [vmem:[%s11158_s1 + $0x16c] sm:$0xf] }
  0x93   :  { %3534 = vmatpush.bf16.msra.mxu3 %v6691_v57  ;;  %v5096_v57 = vld [vmem:[%s11158_s1 + $0x234] sm:$0xf0] }
  0x94   :  { %3496 = vmatpush.bf16.msra.mxu0 %v6391_v3  ;;  %v4907_v3 = vor.u32 %v7081_v51, %v4904_v52  ;;  %v7120_v51 = vld [vmem:[%s11158_s1 + $0x1e4] sm:$0xf]  ;;  %v5060_v52 = vld [vmem:[%s11158_s1 + $0x1ec] sm:$0xf0] }
  0x95   :  { %3509 = vmatpush.bf16.msra.mxu1 %v6487_v4  ;;  %v5003_v4 = vor.u32 %v7105_v53, %v5000_v55  ;;  %v7144_v53 = vld [vmem:[%s11158_s1 + $0x2a4] sm:$0xf] }
  0x96   :  { %3522 = vmatpush.bf16.msra.mxu2 %v6583_v5  ;;  %v5099_v5 = vor.u32 %v7129_v56, %v5096_v57  ;;  %v4967_v56 = vor.u32 %v7096_v48, %v4964_v50  ;;  %v5063_v57 = vor.u32 %v7120_v51, %v5060_v52  ;;  %v7084_v51 = vld [vmem:[%s11158_s1 + $0xc4] sm:$0xf]  ;;  %v4916_v52 = vld [vmem:[%s11158_s1 + $0xcc] sm:$0xf0] }
  0x97   :  { %3535 = vmatpush.bf16.msra.mxu3 %v6679_v10  ;;  %v5195_v10 = vor.u32 %v7153_v60, %v5192_v62  ;;  %v7093_v60 = vld [vmem:[%s11158_s1 + $0x10c] sm:$0xf] }
  0x98   :  { %3497 = vmatpush.bf16.msra.mxu0 %v6379_v19  ;;  %v5180_v19 = vld [vmem:[%s11158_s1 + $0x2dc] sm:$0xf0] }
  0x99   :  { %3510 = vmatpush.bf16.msra.mxu1 %v6475_v20  ;;  %v702_v20 = vld [vmem:[#allocation1 + $0x12] sm:$0xff]  ;;  %v5183_v37 = vor.u32 %v7150_v18, %v5180_v19 }
  0x9a   :  { %3523 = vmatpush.bf16.msra.mxu2 %v6571_v21  ;;  %v701_v21 = vld [vmem:[#allocation1 + $0x9] sm:$0xff]  ;;  %v7114_v19 = vld [vmem:[%s11158_s1 + $0x1b4] sm:$0xf] }
  0x9b   :  { %3536 = vmatpush.bf16.msra.mxu3 %v6667_v26  ;;  %v5087_v26 = vor.u32 %v7126_v14, %v5084_v15  ;;  %v4844_v14 = vld [vmem:[%s11158_s1 + $0x3c] sm:$0xf0]  ;;  %v7090_v15 = vld [vmem:[%s11158_s1 + $0xf4] sm:$0xf] }
  0x9c   :  { %3498 = vmatpush.bf16.msra.mxu0 %v6367_v39  ;;  %v7123_v39 = vld [vmem:[%s11158_s1 + $0x1fc] sm:$0xf] }
  0x9d   :  { %3511 = vmatpush.bf16.msra.mxu1 %v6463_v42  ;;  %v5168_v42 = vld [vmem:[%s11158_s1 + $0x2c4] sm:$0xf0]  ;;  %v5075_v45 = vor.u32 %v7123_v39, %v5072_v40 }
  0x9e   :  { %3524 = vmatpush.bf16.msra.mxu2 %v6559_v43  ;;  %v4883_v43 = vor.u32 %v7075_v33, %v4880_v35  ;;  %v5171_v49 = vor.u32 %v7147_v41, %v5168_v42  ;;  %v4928_v40 = vld [vmem:[%s11158_s1 + $0xe4] sm:$0xf0]  ;;  %v7111_v41 = vld [vmem:[%s11158_s1 + $0x19c] sm:$0xf] }
  0x9f   :  { %3537 = vmatpush.bf16.msra.mxu3 %v6655_v47  ;;  %v4868_v47 = vld [vmem:[%s11158_s1 + $0x6c] sm:$0xf0]  ;;  %v5024_v42 = vld [vmem:[%s11158_s1 + $0x1a4] sm:$0xf0] }
  0xa0   :  { %3499 = vmatpush.bf16.msra.mxu0 %v6355_v54  ;;  %v5156_v54 = vld [vmem:[%s11158_s1 + $0x2ac] sm:$0xf0]  ;;  %v4871_v55 = vor.u32 %v7072_v46, %v4868_v47  ;;  %v7060_v46 = vld [vmem:[%s11158_s1 + $0x4] sm:$0xf]  ;;  %v5027_v50 = vor.u32 %v7111_v41, %v5024_v42  ;;  %v5564_v41 = vld [vmem:[%s11158_s1 + $0x5dc] sm:$0xf0] }
  0xa1   :  { %3512 = vmatpush.bf16.msra.mxu1 %v6451_v58  ;;  %v7069_v58 = vld [vmem:[%s11158_s1 + $0x4c] sm:$0xf]  ;;  %v5159_v62 = vor.u32 %v7144_v53, %v5156_v54  ;;  %v4820_v47 = vld [vmem:[%s11158_s1 + $0xc] sm:$0xf0]  ;;  %v7108_v53 = vld [vmem:[%s11158_s1 + $0x184] sm:$0xf] }
  0xa2   :  { %3525 = vmatpush.bf16.msra.mxu2 %v6547_v59  ;;  %v4856_v59 = vld [vmem:[%s11158_s1 + $0x54] sm:$0xf0] }
  0xa3   :  { %3538 = vmatpush.bf16.msra.mxu3 %v6643_v63  ;;  %3500 = vmatmul.bf16.vlgmr.msra.gmra.mxu0 %v700_v16  ;;  %v4952_v63 = vld [vmem:[%s11158_s1 + $0x114] sm:$0xf0]  ;;  %v4859_v8 = vor.u32 %v7069_v58, %v4856_v59  ;;  %v4940_v16 = vld [vmem:[%s11158_s1 + $0xfc] sm:$0xf0]  ;;  %v7132_v58 = vld [vmem:[%s11158_s1 + $0x244] sm:$0xf] }
  0xa4   :  { %3544 = vmatpush.bf16.msrb.mxu0 %v4907_v3  ;;  %3513 = vmatmul.bf16.vlgmr.msra.gmra.mxu1 %v701_v21  ;;  %v7117_v3 = vld [vmem:[%s11158_s1 + $0x1cc] sm:$0xf]  ;;  %v670_v21 = vld [vmem:[%s11160_s2] sm:$0x7]  ;;  %v4943_v33 = vor.u32 %v7090_v15, %v4940_v16  ;;  %v5108_v59 = vld [vmem:[%s11158_s1 + $0x24c] sm:$0xf0] }
  0xa5   :  { %3557 = vmatpush.bf16.msrb.mxu1 %v5003_v4  ;;  %3526 = vmatmul.bf16.vlgmr.msra.gmra.mxu2 %v702_v20  ;;  %v5048_v4 = vld [vmem:[%s11158_s1 + $0x1d4] sm:$0xf0]  ;;  %v5036_v20 = vld [vmem:[%s11158_s1 + $0x1bc] sm:$0xf0]  ;;  %v672_v38 = vperm.slane %v670_v21, 0  ;;  %v5111_v16 = vor.u32 %v7132_v58, %v5108_v59 }
  0xa6   :  { %3570 = vmatpush.bf16.msrb.mxu2 %v5099_v5  ;;  %3539 = vmatmul.bf16.vlgmr.msra.gmra.mxu3 %v703_v22  ;;  %v7141_v5 = vld [vmem:[%s11158_s1 + $0x28c] sm:$0xf]  ;;  %v5051_v11 = vor.u32 %v7117_v3, %v5048_v4  ;;  %v7138_v22 = vld [vmem:[%s11158_s1 + $0x274] sm:$0xf]  ;;  %v5039_v35 = vor.u32 %v7114_v19, %v5036_v20  ;;  %v3293_v48 = vpop.f32.mrf.mxu0  ;;  %v4823_v4 = vor.u32 %v7060_v46, %v4820_v47  ;;  %v7171_v46 = vld [vmem:[%s11158_s1 + $0x37c] sm:$0xf] }
  0xa7   :  { %3583 = vmatpush.bf16.msrb.mxu3 %v5195_v10  ;;  %v4955_v10 = vor.u32 %v7093_v60, %v4952_v63  ;;  %v5147_v18 = vor.u32 %v7141_v5, %v5144_v6  ;;  %v3294_v54 = vadd.f32 %v3293_v48, %v672_v38  ;;  %v7177_v60 = vld [vmem:[%s11158_s1 + $0x3ac] sm:$0xf]  ;;  %v5384_v5 = vld [vmem:[%s11158_s1 + $0x474] sm:$0xf0]  ;;  %v5264_v47 = vld [vmem:[%s11158_s1 + $0x384] sm:$0xf0] }
  0xa8   :  { %3545 = vmatpush.bf16.msrb.mxu0 %v4895_v23  ;;  %v5132_v23 = vld [vmem:[%s11158_s1 + $0x27c] sm:$0xf0]  ;;  %v7201_v63 = vld [vmem:[%s11158_s1 + $0x46c] sm:$0xf]  ;;  %v7195_v48 = vld [vmem:[%s11158_s1 + $0x43c] sm:$0xf] }
  0xa9   :  { %3558 = vmatpush.bf16.msrb.mxu1 %v4991_v25  ;;  %v4847_v25 = vor.u32 %v7066_v9, %v4844_v14  ;;  %v5135_v39 = vor.u32 %v7138_v22, %v5132_v23  ;;  %v7225_v6 = vld [vmem:[%s11158_s1 + $0x52c] sm:$0xf]  ;;  %v4919_v9 = vor.u32 %v7084_v51, %v4916_v52  ;;  %v5576_v14 = vld [vmem:[%s11158_s1 + $0x5f4] sm:$0xf0]  ;;  %v5387_v21 = vor.u32 %v7201_v63, %v5384_v5  ;;  %v7174_v23 = vld [vmem:[%s11158_s1 + $0x394] sm:$0xf] }
  0xaa   :  { %3571 = vmatpush.bf16.msrb.mxu2 %v5087_v26  ;;  %v7063_v26 = vld [vmem:[%s11158_s1 + $0x1c] sm:$0xf]  ;;  %v5456_v52 = vld [vmem:[%s11158_s1 + $0x504] sm:$0xf0]  ;;  %v7192_v63 = vld [vmem:[%s11158_s1 + $0x424] sm:$0xf] }
  0xab   :  { %3584 = vmatpush.bf16.msrb.mxu3 %v5183_v37  ;;  %v7087_v37 = vld [vmem:[%s11158_s1 + $0xdc] sm:$0xf]  ;;  %v3319_v15 = vpop.f32.mrf.mxu2  ;;  %v7216_v5 = vld [vmem:[%s11158_s1 + $0x4e4] sm:$0xf] }
  0xac   :  { %3546 = vmatpush.bf16.msrb.mxu0 %v4883_v43  ;;  %v7135_v43 = vld [vmem:[%s11158_s1 + $0x25c] sm:$0xf] }
  0xad   :  { %3559 = vmatpush.bf16.msrb.mxu1 %v4979_v44  ;;  %v5120_v44 = vld [vmem:[%s11158_s1 + $0x264] sm:$0xf0]  ;;  %v3332_v20 = vpop.f32.mrf.mxu3  ;;  %v7219_v51 = vld [vmem:[%s11158_s1 + $0x4fc] sm:$0xf] }
  0xae   :  { %3572 = vmatpush.bf16.msrb.mxu2 %v5075_v45  ;;  %v4835_v45 = vor.u32 %v7063_v26, %v4832_v36  ;;  %v7198_v26 = vld [vmem:[%s11158_s1 + $0x454] sm:$0xf]  ;;  %v5459_v59 = vor.u32 %v7219_v51, %v5456_v52  ;;  %v5516_v51 = vld [vmem:[%s11158_s1 + $0x57c] sm:$0xf0] }
  0xaf   :  { %3585 = vmatpush.bf16.msrb.mxu3 %v5171_v49  ;;  %v4931_v49 = vor.u32 %v7087_v37, %v4928_v40  ;;  %v7222_v36 = vld [vmem:[%s11158_s1 + $0x514] sm:$0xf]  ;;  %v5468_v37 = vld [vmem:[%s11158_s1 + $0x51c] sm:$0xf0] }
  0xb0   :  { %3547 = vmatpush.bf16.msrb.mxu0 %v4871_v55  ;;  %v3306_v55 = vpop.f32.mrf.mxu1  ;;  %v7246_v40 = vld [vmem:[%s11158_s1 + $0x5d4] sm:$0xf] }
  0xb1   :  { %3560 = vmatpush.bf16.msrb.mxu1 %v4967_v56  ;;  %v5123_v56 = vor.u32 %v7135_v43, %v5120_v44  ;;  %v3307_v3 = vadd.f32 %v3306_v55, %v3294_v54  ;;  %v5552_v54 = vld [vmem:[%s11158_s1 + $0x5c4] sm:$0xf0] }
  0xb2   :  { %3573 = vmatpush.bf16.msrb.mxu2 %v5063_v57  ;;  %v5012_v57 = vld [vmem:[%s11158_s1 + $0x18c] sm:$0xf0] }
  0xb3   :  { %3586 = vmatpush.bf16.msrb.mxu3 %v5159_v62  ;;  %v5288_v62 = vld [vmem:[%s11158_s1 + $0x3b4] sm:$0xf0]  ;;  %v3320_v19 = vadd.f32 %v3319_v15, %v3307_v3  ;;  %v3321_v55 = vpop.f32.mrf.mxu2 }
  0xb4   :  { %3548 = vmatpush.bf16.msrb.mxu0 %v4859_v8  ;;  %v5480_v8 = vld [vmem:[%s11158_s1 + $0x534] sm:$0xf0] }
  0xb5   :  { %3561 = vmatpush.bf16.msrb.mxu1 %v4955_v10  ;;  %v5015_v10 = vor.u32 %v7108_v53, %v5012_v57  ;;  %v5483_v22 = vor.u32 %v7225_v6, %v5480_v8  ;;  %v3333_v38 = vadd.f32 %v3332_v20, %v3320_v19  ;;  %v7243_v53 = vld [vmem:[%s11158_s1 + $0x5bc] sm:$0xf]  ;;  %v3334_v57 = vpop.f32.mrf.mxu3  ;;  %v5444_v6 = vld [vmem:[%s11158_s1 + $0x4ec] sm:$0xf0]  ;;  %v7240_v8 = vld [vmem:[%s11158_s1 + $0x5a4] sm:$0xf] }
  0xb6   :  { %3574 = vmatpush.bf16.msrb.mxu2 %v5051_v11  ;;  %v7249_v11 = vld [vmem:[%s11158_s1 + $0x5ec] sm:$0xf]  ;;  %v5555_v3 = vor.u32 %v7243_v53, %v5552_v54  ;;  %v5447_v15 = vor.u32 %v7216_v5, %v5444_v6  ;;  %v7159_v57 = vld [vmem:[%s11158_s1 + $0x31c] sm:$0xf]  ;;  %v5504_v6 = vld [vmem:[%s11158_s1 + $0x564] sm:$0xf0] }
  0xb7   :  { %3587 = vmatpush.bf16.msrb.mxu3 %v5147_v18  ;;  %v5291_v18 = vor.u32 %v7177_v60, %v5288_v62  ;;  %v7168_v60 = vld [vmem:[%s11158_s1 + $0x364] sm:$0xf]  ;;  %v5252_v62 = vld [vmem:[%s11158_s1 + $0x36c] sm:$0xf0]  ;;  %v7189_v19 = vld [vmem:[%s11158_s1 + $0x40c] sm:$0xf] }
  0xb8   :  { %3549 = vmatpush.bf16.msrb.mxu0 %v4847_v25  ;;  %v5276_v25 = vld [vmem:[%s11158_s1 + $0x39c] sm:$0xf0]  ;;  %v3308_v42 = vpop.f32.mrf.mxu1  ;;  %v7231_v5 = vld [vmem:[%s11158_s1 + $0x55c] sm:$0xf] }
  0xb9   :  { %3562 = vmatpush.bf16.msrb.mxu1 %v4943_v33  ;;  %v5579_v33 = vor.u32 %v7249_v11, %v5576_v14  ;;  %v5279_v43 = vor.u32 %v7174_v23, %v5276_v25  ;;  %v5336_v23 = vld [vmem:[%s11158_s1 + $0x414] sm:$0xf0]  ;;  %v7213_v25 = vld [vmem:[%s11158_s1 + $0x4cc] sm:$0xf]  ;;  %v7186_v42 = vld [vmem:[%s11158_s1 + $0x3f4] sm:$0xf] }
  0xba   :  { %3575 = vmatpush.bf16.msrb.mxu2 %v5039_v35  ;;  %v5372_v35 = vld [vmem:[%s11158_s1 + $0x45c] sm:$0xf0] }
  0xbb   :  { %3588 = vmatpush.bf16.msrb.mxu3 %v5135_v39  ;;  %v3295_v39 = vpop.f32.mrf.mxu0  ;;  %v5375_v44 = vor.u32 %v7198_v26, %v5372_v35  ;;  %v5432_v26 = vld [vmem:[%s11158_s1 + $0x4d4] sm:$0xf0] }
  0xbc   :  { %3550 = vmatpush.bf16.msrb.mxu0 %v4835_v45  ;;  %v5471_v45 = vor.u32 %v7222_v36, %v5468_v37  ;;  %v5528_v35 = vld [vmem:[%s11158_s1 + $0x594] sm:$0xf0]  ;;  %v5435_v39 = vor.u32 %v7213_v25, %v5432_v26  ;;  %v7273_v26 = vld [vmem:[%s11158_s1 + $0x6ac] sm:$0xf] }
  0xbd   :  { %3563 = vmatpush.bf16.msrb.mxu1 %v4931_v49  ;;  %v5567_v49 = vor.u32 %v7246_v40, %v5564_v41  ;;  %v7162_v40 = vld [vmem:[%s11158_s1 + $0x334] sm:$0xf]  ;;  %v5228_v41 = vld [vmem:[%s11158_s1 + $0x33c] sm:$0xf0] }
  0xbe   :  { %3576 = vmatpush.bf16.msrb.mxu2 %v5027_v50  ;;  %v5360_v50 = vld [vmem:[%s11158_s1 + $0x444] sm:$0xf0]  ;;  %v5231_v52 = vor.u32 %v7162_v40, %v5228_v41 }
  0xbf   :  { %3589 = vmatpush.bf16.msrb.mxu3 %v5123_v56  ;;  %v5267_v56 = vor.u32 %v7171_v46, %v5264_v47  ;;  %v5363_v58 = vor.u32 %v7195_v48, %v5360_v50  ;;  %v7210_v46 = vld [vmem:[%s11158_s1 + $0x4b4] sm:$0xf]  ;;  %v5420_v47 = vld [vmem:[%s11158_s1 + $0x4bc] sm:$0xf0] }
  0xc0   :  { %3551 = vmatpush.bf16.msrb.mxu0 %v4823_v4  ;;  %v5348_v4 = vld [vmem:[%s11158_s1 + $0x42c] sm:$0xf0]  ;;  %v7234_v50 = vld [vmem:[%s11158_s1 + $0x574] sm:$0xf] }
  0xc1   :  { %3564 = vmatpush.bf16.msrb.mxu1 %v4919_v9  ;;  %v5540_v9 = vld [vmem:[%s11158_s1 + $0x5ac] sm:$0xf0]  ;;  %v5351_v14 = vor.u32 %v7192_v63, %v5348_v4  ;;  %v5312_v63 = vld [vmem:[%s11158_s1 + $0x3e4] sm:$0xf0] }
  0xc2   :  { %3577 = vmatpush.bf16.msrb.mxu2 %v5015_v10  ;;  %v5255_v10 = vor.u32 %v7168_v60, %v5252_v62  ;;  %v5519_v62 = vor.u32 %v7234_v50, %v5516_v51  ;;  %v5408_v4 = vld [vmem:[%s11158_s1 + $0x4a4] sm:$0xf0]  ;;  %v7294_v50 = vld [vmem:[%s11158_s1 + $0x754] sm:$0xf] }
  0xc3   :  { %3590 = vmatpush.bf16.msrb.mxu3 %v5111_v16  ;;  %3552 = vmatmul.bf16.vlgmr.msrb.gmra.mxu0 %v7991_v28  ;;  %v3345_v11 = vpop.f32.mrf.mxu0  ;;  %v7165_v16 = vld [vmem:[%s11158_s1 + $0x34c] sm:$0xf] }
  0xc4   :  { %3596 = vmatpush.bf16.msra.mxu0 %v5291_v18  ;;  %3565 = vmatmul.bf16.vlgmr.msrb.gmra.mxu1 %v8001_v34  ;;  %v5240_v18 = vld [vmem:[%s11158_s1 + $0x354] sm:$0xf0]  ;;  %v3346_v20 = vadd.f32 %v3345_v11, %v3333_v38  ;;  %v5339_v38 = vor.u32 %v7189_v19, %v5336_v23  ;;  %v5492_v23 = vld [vmem:[%s11158_s1 + $0x54c] sm:$0xf0] }
  0xc5   :  { %3609 = vmatpush.bf16.msra.mxu1 %v5387_v21  ;;  %3578 = vmatmul.bf16.vlgmr.msrb.gmra.mxu2 %v7989_v27  ;;  %v3358_v21 = vpop.f32.mrf.mxu1  ;;  %v5243_v37 = vor.u32 %v7165_v16, %v5240_v18  ;;  %v5300_v16 = vld [vmem:[%s11158_s1 + $0x3cc] sm:$0xf0]  ;;  %v7204_v18 = vld [vmem:[%s11158_s1 + $0x484] sm:$0xf] }
  0xc6   :  { %3622 = vmatpush.bf16.msra.mxu2 %v5483_v22  ;;  %3591 = vmatmul.bf16.vlgmr.msrb.gmra.mxu3 %v7993_v29  ;;  %v5543_v22 = vor.u32 %v7240_v8, %v5540_v9  ;;  %v3359_v36 = vadd.f32 %v3358_v21, %v3346_v20  ;;  %v7156_v9 = vld [vmem:[%s11158_s1 + $0x304] sm:$0xf]  ;;  %v5507_v20 = vor.u32 %v7231_v5, %v5504_v6  ;;  %v5396_v21 = vld [vmem:[%s11158_s1 + $0x48c] sm:$0xf0]  ;;  %v5744_v5 = vld [vmem:[%s11158_s1 + $0x744] sm:$0xf0] }
  0xc7   :  { %3635 = vmatpush.bf16.msra.mxu3 %v5579_v33  ;;  %v7237_v33 = vld [vmem:[%s11158_s1 + $0x58c] sm:$0xf]  ;;  %v5399_v41 = vor.u32 %v7204_v18, %v5396_v21  ;;  %v7315_v6 = vld [vmem:[%s11158_s1 + $0x7fc] sm:$0xf]  ;;  %v5636_v18 = vld [vmem:[%s11158_s1 + $0x66c] sm:$0xf0] }
  0xc8   :  { %3597 = vmatpush.bf16.msra.mxu0 %v5279_v43  ;;  %v3371_v43 = vpop.f32.mrf.mxu2  ;;  %v5732_v21 = vld [vmem:[%s11158_s1 + $0x72c] sm:$0xf0] }
  0xc9   :  { %3610 = vmatpush.bf16.msra.mxu1 %v5375_v44  ;;  %v5531_v44 = vor.u32 %v7237_v33, %v5528_v35  ;;  %v3372_v48 = vadd.f32 %v3371_v43, %v3359_v36  ;;  %v5672_v33 = vld [vmem:[%s11158_s1 + $0x6b4] sm:$0xf0]  ;;  %v7297_v35 = vld [vmem:[%s11158_s1 + $0x76c] sm:$0xf] }
  0xca   :  { %3623 = vmatpush.bf16.msra.mxu2 %v5471_v45  ;;  %v5324_v45 = vld [vmem:[%s11158_s1 + $0x3fc] sm:$0xf0]  ;;  %v5960_v43 = vld [vmem:[%s11158_s1 + $0x8f4] sm:$0xf0] }
  0xcb   :  { %3636 = vmatpush.bf16.msra.mxu3 %v5567_v49  ;;  %v3384_v49 = vpop.f32.mrf.mxu3  ;;  %v3347_v54 = vpop.f32.mrf.mxu0  ;;  %v5327_v55 = vor.u32 %v7186_v42, %v5324_v45  ;;  %v7345_v42 = vld [vmem:[%s11158_s1 + $0x8ec] sm:$0xf]  ;;  %v5675_v45 = vor.u32 %v7273_v26, %v5672_v33  ;;  %v7336_v26 = vld [vmem:[%s11158_s1 + $0x8a4] sm:$0xf]  ;;  %v5924_v33 = vld [vmem:[%s11158_s1 + $0x8ac] sm:$0xf0] }
  0xcc   :  { %3598 = vmatpush.bf16.msra.mxu0 %v5267_v56  ;;  %v9031_v53 = vadd.f32 %v3384_v49, %v3372_v48  ;;  %v5423_v56 = vor.u32 %v7210_v46, %v5420_v47  ;;  %v7270_v48 = vld [vmem:[%s11158_s1 + $0x694] sm:$0xf]  ;;  %v5660_v49 = vld [vmem:[%s11158_s1 + $0x69c] sm:$0xf0]  ;;  %v5963_v51 = vor.u32 %v7345_v42, %v5960_v43  ;;  %v7285_v42 = vld [vmem:[%s11158_s1 + $0x70c] sm:$0xf] }
  0xcd   :  { %3611 = vmatpush.bf16.msra.mxu1 %v5363_v58  ;;  %v5216_v58 = vld [vmem:[%s11158_s1 + $0x324] sm:$0xf0]  ;;  %v3360_v60 = vpop.f32.mrf.mxu1  ;;  %v7318_v54 = vld [vmem:[%s11158_s1 + $0x814] sm:$0xf] }
  0xce   :  { %3624 = vmatpush.bf16.msra.mxu2 %v5459_v59  ;;  %v7183_v59 = vld [vmem:[%s11158_s1 + $0x3dc] sm:$0xf]  ;;  %v5219_v8 = vor.u32 %v7159_v57, %v5216_v58  ;;  %v5948_v57 = vld [vmem:[%s11158_s1 + $0x8dc] sm:$0xf0]  ;;  %v5663_v58 = vor.u32 %v7270_v48, %v5660_v49  ;;  %v5912_v48 = vld [vmem:[%s11158_s1 + $0x894] sm:$0xf0] }
  0xcf   :  { %3637 = vmatpush.bf16.msra.mxu3 %v5555_v3  ;;  %v7207_v3 = vld [vmem:[%s11158_s1 + $0x49c] sm:$0xf]  ;;  %v5315_v11 = vor.u32 %v7183_v59, %v5312_v63  ;;  %v5648_v63 = vld [vmem:[%s11158_s1 + $0x684] sm:$0xf0] }
  0xd0   :  { %3599 = vmatpush.bf16.msra.mxu0 %v5255_v10  ;;  %v5204_v10 = vld [vmem:[%s11158_s1 + $0x30c] sm:$0xf0]  ;;  %v3373_v19 = vpop.f32.mrf.mxu2 }
  0xd1   :  { %3612 = vmatpush.bf16.msra.mxu1 %v5351_v14  ;;  %v5411_v14 = vor.u32 %v7207_v3, %v5408_v4  ;;  %v5207_v36 = vor.u32 %v7156_v9, %v5204_v10  ;;  %v7291_v3 = vld [vmem:[%s11158_s1 + $0x73c] sm:$0xf]  ;;  %v5936_v10 = vld [vmem:[%s11158_s1 + $0x8c4] sm:$0xf0]  ;;  %v7288_v19 = vld [vmem:[%s11158_s1 + $0x724] sm:$0xf] }
  0xd2   :  { %3625 = vmatpush.bf16.msra.mxu2 %v5447_v15  ;;  %v7180_v15 = vld [vmem:[%s11158_s1 + $0x3c4] sm:$0xf]  ;;  %v7339_v9 = vld [vmem:[%s11158_s1 + $0x8bc] sm:$0xf] }
  0xd3   :  { %3638 = vmatpush.bf16.msra.mxu3 %v5543_v22  ;;  %v7228_v22 = vld [vmem:[%s11158_s1 + $0x544] sm:$0xf]  ;;  %v3386_v25 = vpop.f32.mrf.mxu3  ;;  %v5303_v40 = vor.u32 %v7180_v15, %v5300_v16 }
  0xd4   :  { %3600 = vmatpush.bf16.msra.mxu0 %v5243_v37  ;;  %v5768_v37 = vld [vmem:[%s11158_s1 + $0x774] sm:$0xf0]  ;;  %v7264_v16 = vld [vmem:[%s11158_s1 + $0x664] sm:$0xf] }
  0xd5   :  { %3613 = vmatpush.bf16.msra.mxu1 %v5339_v38  ;;  %v7321_v38 = vld [vmem:[%s11158_s1 + $0x82c] sm:$0xf]  ;;  %v5771_v46 = vor.u32 %v7297_v35, %v5768_v37 }
  0xd6   :  { %3626 = vmatpush.bf16.msra.mxu2 %v5435_v39  ;;  %v5864_v39 = vld [vmem:[%s11158_s1 + $0x834] sm:$0xf0] }
  0xd7   :  { %3639 = vmatpush.bf16.msra.mxu3 %v5531_v44  ;;  %v5495_v44 = vor.u32 %v7228_v22, %v5492_v23  ;;  %v5867_v47 = vor.u32 %v7321_v38, %v5864_v39  ;;  %v7312_v22 = vld [vmem:[%s11158_s1 + $0x7e4] sm:$0xf]  ;;  %v5828_v23 = vld [vmem:[%s11158_s1 + $0x7ec] sm:$0xf0]  ;;  %v5735_v38 = vor.u32 %v7288_v19, %v5732_v21  ;;  %v5696_v19 = vld [vmem:[%s11158_s1 + $0x6e4] sm:$0xf0] }
  0xd8   :  { %3601 = vmatpush.bf16.msra.mxu0 %v5231_v52  ;;  %v5756_v52 = vld [vmem:[%s11158_s1 + $0x75c] sm:$0xf0]  ;;  %v5831_v39 = vor.u32 %v7312_v22, %v5828_v23  ;;  %v5792_v21 = vld [vmem:[%s11158_s1 + $0x7a4] sm:$0xf0]  ;;  %v7327_v22 = vld [vmem:[%s11158_s1 + $0x85c] sm:$0xf] }
  0xd9   :  { %3614 = vmatpush.bf16.msra.mxu1 %v5327_v55  ;;  %v5852_v55 = vld [vmem:[%s11158_s1 + $0x81c] sm:$0xf0]  ;;  %v5759_v59 = vor.u32 %v7294_v50, %v5756_v52  ;;  %v7258_v52 = vld [vmem:[%s11158_s1 + $0x634] sm:$0xf]  ;;  %v5888_v23 = vld [vmem:[%s11158_s1 + $0x864] sm:$0xf0] }
  0xda   :  { %3627 = vmatpush.bf16.msra.mxu2 %v5423_v56  ;;  %v7342_v56 = vld [vmem:[%s11158_s1 + $0x8d4] sm:$0xf]  ;;  %v5855_v60 = vor.u32 %v7318_v54, %v5852_v55  ;;  %v5612_v54 = vld [vmem:[%s11158_s1 + $0x63c] sm:$0xf0] }
  0xdb   :  { %3640 = vmatpush.bf16.msra.mxu3 %v5519_v62  ;;  %v7267_v62 = vld [vmem:[%s11158_s1 + $0x67c] sm:$0xf]  ;;  %v5951_v4 = vor.u32 %v7342_v56, %v5948_v57  ;;  %v7282_v55 = vld [vmem:[%s11158_s1 + $0x6f4] sm:$0xf] }
  0xdc   :  { %3602 = vmatpush.bf16.msra.mxu0 %v5219_v8  ;;  %v5840_v8 = vld [vmem:[%s11158_s1 + $0x804] sm:$0xf0] }
  0xdd   :  { %3615 = vmatpush.bf16.msra.mxu1 %v5315_v11  ;;  %v5651_v11 = vor.u32 %v7267_v62, %v5648_v63  ;;  %v5843_v15 = vor.u32 %v7315_v6, %v5840_v8  ;;  %v5615_v6 = vor.u32 %v7258_v52, %v5612_v54 }
  0xde   :  { %3628 = vmatpush.bf16.msra.mxu2 %v5411_v14  ;;  %v5747_v14 = vor.u32 %v7291_v3, %v5744_v5  ;;  %v7330_v3 = vld [vmem:[%s11158_s1 + $0x874] sm:$0xf] }
  0xdf   :  { %3641 = vmatpush.bf16.msra.mxu3 %v5507_v20  ;;  %v5939_v20 = vor.u32 %v7339_v9, %v5936_v10 }
  0xe0   :  { %3603 = vmatpush.bf16.msra.mxu0 %v5207_v36  ;;  %v3397_v25 = vpop.f32.mrf.mxu0  ;;  %v5639_v36 = vor.u32 %v7264_v16, %v5636_v18  ;;  %v7279_v16 = vld [vmem:[%s11158_s1 + $0x6dc] sm:$0xf] }
  0xe1   :  { %3616 = vmatpush.bf16.msra.mxu1 %v5303_v40  ;;  %v3398_v35 = vadd.f32 %v3397_v25, %v9031_v53  ;;  %v3410_v37 = vpop.f32.mrf.mxu1  ;;  %v7261_v40 = vld [vmem:[%s11158_s1 + $0x64c] sm:$0xf]  ;;  %v5927_v53 = vor.u32 %v7336_v26, %v5924_v33  ;;  %v7252_v26 = vld [vmem:[%s11158_s1 + $0x604] sm:$0xf]  ;;  %v5588_v33 = vld [vmem:[%s11158_s1 + $0x60c] sm:$0xf0] }
  0xe2   :  { %3629 = vmatpush.bf16.msra.mxu2 %v5399_v41  ;;  %v5624_v41 = vld [vmem:[%s11158_s1 + $0x654] sm:$0xf0] }
  0xe3   :  { %3642 = vmatpush.bf16.msra.mxu3 %v5495_v44  ;;  %3604 = vmatmul.bf16.vlgmr.msra.gmra.mxu0 %v8069_v0  ;;  %v3411_v43 = vadd.f32 %v3410_v37, %v3398_v35  ;;  %v5720_v44 = vld [vmem:[%s11158_s1 + $0x714] sm:$0xf0]  ;;  %v5627_v49 = vor.u32 %v7261_v40, %v5624_v41  ;;  %v5699_v35 = vor.u32 %v7279_v16, %v5696_v19  ;;  %v7276_v37 = vld [vmem:[%s11158_s1 + $0x6c4] sm:$0xf]  ;;  %v5780_v41 = vld [vmem:[%s11158_s1 + $0x78c] sm:$0xf0] }
  0xe4   :  { %3648 = vmatpush.bf16.msrb.mxu0 %v5675_v45  ;;  %3617 = vmatmul.bf16.vlgmr.msra.gmra.mxu1 %v8073_v2  ;;  %v7309_v45 = vld [vmem:[%s11158_s1 + $0x7cc] sm:$0xf]  ;;  %v5723_v50 = vor.u32 %v7285_v42, %v5720_v44  ;;  %v5891_v40 = vor.u32 %v7327_v22, %v5888_v23  ;;  %v7324_v42 = vld [vmem:[%s11158_s1 + $0x844] sm:$0xf]  ;;  %v6032_v19 = vld [vmem:[%s11158_s1 + $0x984] sm:$0xf0] }
  0xe5   :  { %3661 = vmatpush.bf16.msrb.mxu1 %v5771_v46  ;;  %3630 = vmatmul.bf16.vlgmr.msra.gmra.mxu2 %v8067_v61  ;;  %v5816_v46 = vld [vmem:[%s11158_s1 + $0x7d4] sm:$0xf0]  ;;  %v7369_v44 = vld [vmem:[%s11158_s1 + $0x9ac] sm:$0xf]  ;;  %v6128_v22 = vld [vmem:[%s11158_s1 + $0xa44] sm:$0xf0] }
  0xe6   :  { %3674 = vmatpush.bf16.msrb.mxu2 %v5867_v47  ;;  %3643 = vmatmul.bf16.vlgmr.msra.gmra.mxu3 %v8071_v1  ;;  %v7333_v47 = vld [vmem:[%s11158_s1 + $0x88c] sm:$0xf]  ;;  %v7411_v23 = vld [vmem:[%s11158_s1 + $0xafc] sm:$0xf] }
  0xe7   :  { %3687 = vmatpush.bf16.msrb.mxu3 %v5963_v51  ;;  %v5819_v51 = vor.u32 %v7309_v45, %v5816_v46  ;;  %v5915_v56 = vor.u32 %v7333_v47, %v5912_v48  ;;  %v6056_v45 = vld [vmem:[%s11158_s1 + $0x9b4] sm:$0xf0]  ;;  %v7393_v46 = vld [vmem:[%s11158_s1 + $0xa6c] sm:$0xf]  ;;  %v5591_v48 = vor.u32 %v7252_v26, %v5588_v33  ;;  %v7435_v26 = vld [vmem:[%s11158_s1 + $0xbbc] sm:$0xf] }
  0xe8   :  { %3649 = vmatpush.bf16.msrb.mxu0 %v5663_v58  ;;  %v3423_v57 = vpop.f32.mrf.mxu2  ;;  %v5708_v58 = vld [vmem:[%s11158_s1 + $0x6fc] sm:$0xf0]  ;;  %v3399_v5 = vpop.f32.mrf.mxu0  ;;  %v6320_v33 = vld [vmem:[%s11158_s1 + $0xbc4] sm:$0xf0] }
  0xe9   :  { %3662 = vmatpush.bf16.msrb.mxu1 %v5759_v59  ;;  %v7306_v59 = vld [vmem:[%s11158_s1 + $0x7b4] sm:$0xf]  ;;  %v3424_v62 = vadd.f32 %v3423_v57, %v3411_v43  ;;  %v3436_v63 = vpop.f32.mrf.mxu3  ;;  %v3412_v8 = vpop.f32.mrf.mxu1  ;;  %v5711_v10 = vor.u32 %v7282_v55, %v5708_v58  ;;  %v7441_v55 = vld [vmem:[%s11158_s1 + $0xbec] sm:$0xf]  ;;  %v6059_v58 = vor.u32 %v7369_v44, %v6056_v45  ;;  %v6140_v5 = vld [vmem:[%s11158_s1 + $0xa5c] sm:$0xf0] }
  0xea   :  { %3675 = vmatpush.bf16.msrb.mxu2 %v5855_v60  ;;  %v5804_v60 = vld [vmem:[%s11158_s1 + $0x7bc] sm:$0xf0]  ;;  %v7432_v45 = vld [vmem:[%s11158_s1 + $0xba4] sm:$0xf] }
  0xeb   :  { %3688 = vmatpush.bf16.msrb.mxu3 %v5951_v4  ;;  %v5900_v4 = vld [vmem:[%s11158_s1 + $0x87c] sm:$0xf0]  ;;  %v9230_v9 = vadd.f32 %v3436_v63, %v3424_v62  ;;  %v7366_v62 = vld [vmem:[%s11158_s1 + $0x994] sm:$0xf] }
  0xec   :  { %3650 = vmatpush.bf16.msrb.mxu0 %v5651_v11  ;;  %v5807_v11 = vor.u32 %v7306_v59, %v5804_v60  ;;  %v5903_v18 = vor.u32 %v7330_v3, %v5900_v4  ;;  %v6044_v63 = vld [vmem:[%s11158_s1 + $0x99c] sm:$0xf0]  ;;  %v7390_v3 = vld [vmem:[%s11158_s1 + $0xa54] sm:$0xf] }
  0xed   :  { %3663 = vmatpush.bf16.msrb.mxu1 %v5747_v14  ;;  %v7255_v14 = vld [vmem:[%s11158_s1 + $0x61c] sm:$0xf]  ;;  %v6236_v8 = vld [vmem:[%s11158_s1 + $0xb1c] sm:$0xf0] }
  0xee   :  { %3676 = vmatpush.bf16.msrb.mxu2 %v5843_v15  ;;  %v5600_v15 = vld [vmem:[%s11158_s1 + $0x624] sm:$0xf0] }
  0xef   :  { %3689 = vmatpush.bf16.msrb.mxu3 %v5939_v20  ;;  %v7303_v20 = vld [vmem:[%s11158_s1 + $0x79c] sm:$0xf]  ;;  %v5603_v25 = vor.u32 %v7255_v14, %v5600_v15  ;;  %v6047_v14 = vor.u32 %v7366_v62, %v6044_v63  ;;  %v6143_v15 = vor.u32 %v7390_v3, %v6140_v5  ;;  %v6296_v62 = vld [vmem:[%s11158_s1 + $0xb94] sm:$0xf0]  ;;  %v7354_v5 = vld [vmem:[%s11158_s1 + $0x934] sm:$0xf] }
  0xf0   :  { %3651 = vmatpush.bf16.msrb.mxu0 %v5639_v36  ;;  %v5795_v36 = vor.u32 %v7303_v20, %v5792_v21  ;;  %v3425_v43 = vpop.f32.mrf.mxu2  ;;  %v7387_v20 = vld [vmem:[%s11158_s1 + $0xa3c] sm:$0xf] }
  0xf1   :  { %3664 = vmatpush.bf16.msrb.mxu1 %v5735_v38  ;;  %v5684_v38 = vld [vmem:[%s11158_s1 + $0x6cc] sm:$0xf0]  ;;  %v3438_v47 = vpop.f32.mrf.mxu3 }
  0xf2   :  { %3677 = vmatpush.bf16.msrb.mxu2 %v5831_v39  ;;  %v7300_v39 = vld [vmem:[%s11158_s1 + $0x784] sm:$0xf]  ;;  %v5687_v52 = vor.u32 %v7276_v37, %v5684_v38  ;;  %v6212_v43 = vld [vmem:[%s11158_s1 + $0xaec] sm:$0xf0] }
  0xf3   :  { %3690 = vmatpush.bf16.msrb.mxu3 %v5927_v53  ;;  %v5876_v53 = vld [vmem:[%s11158_s1 + $0x84c] sm:$0xf0]  ;;  %v5783_v54 = vor.u32 %v7300_v39, %v5780_v41  ;;  %v7360_v38 = vld [vmem:[%s11158_s1 + $0x964] sm:$0xf]  ;;  %v6323_v41 = vor.u32 %v7435_v26, %v6320_v33 }
  0xf4   :  { %3652 = vmatpush.bf16.msrb.mxu0 %v5627_v49  ;;  %v6152_v49 = vld [vmem:[%s11158_s1 + $0xa74] sm:$0xf0]  ;;  %v5879_v57 = vor.u32 %v7324_v42, %v5876_v53  ;;  %v6020_v39 = vld [vmem:[%s11158_s1 + $0x96c] sm:$0xf0]  ;;  %v7408_v53 = vld [vmem:[%s11158_s1 + $0xae4] sm:$0xf] }
  0xf5   :  { %3665 = vmatpush.bf16.msrb.mxu1 %v5723_v50  ;;  %v7417_v50 = vld [vmem:[%s11158_s1 + $0xb2c] sm:$0xf]  ;;  %v6155_v59 = vor.u32 %v7393_v46, %v6152_v49  ;;  %v6116_v42 = vld [vmem:[%s11158_s1 + $0xa2c] sm:$0xf0] }
  0xf6   :  { %3678 = vmatpush.bf16.msrb.mxu2 %v5819_v51  ;;  %v6248_v51 = vld [vmem:[%s11158_s1 + $0xb34] sm:$0xf0]  ;;  %v6308_v46 = vld [vmem:[%s11158_s1 + $0xbac] sm:$0xf0] }
  0xf7   :  { %3691 = vmatpush.bf16.msrb.mxu3 %v5915_v56  ;;  %v6344_v56 = vld [vmem:[%s11158_s1 + $0xbf4] sm:$0xf0]  ;;  %v6251_v60 = vor.u32 %v7417_v50, %v6248_v51  ;;  %v6215_v51 = vor.u32 %v7408_v53, %v6212_v43  ;;  %v7423_v53 = vld [vmem:[%s11158_s1 + $0xb5c] sm:$0xf]  ;;  %v6272_v43 = vld [vmem:[%s11158_s1 + $0xb64] sm:$0xf0] }
  0xf8   :  { %3653 = vmatpush.bf16.msrb.mxu0 %v5615_v6  ;;  %v6347_v4 = vor.u32 %v7441_v55, %v6344_v56  ;;  %v7414_v6 = vld [vmem:[%s11158_s1 + $0xb14] sm:$0xf]  ;;  %v7381_v55 = vld [vmem:[%s11158_s1 + $0xa0c] sm:$0xf] }
  0xf9   :  { %3666 = vmatpush.bf16.msrb.mxu1 %v5711_v10  ;;  %v7438_v10 = vld [vmem:[%s11158_s1 + $0xbd4] sm:$0xf]  ;;  %v6239_v16 = vor.u32 %v7414_v6, %v6236_v8  ;;  %v5996_v6 = vld [vmem:[%s11158_s1 + $0x93c] sm:$0xf0] }
  0xfa   :  { %3679 = vmatpush.bf16.msrb.mxu2 %v5807_v11  ;;  %v6332_v11 = vld [vmem:[%s11158_s1 + $0xbdc] sm:$0xf0]  ;;  %v7378_v8 = vld [vmem:[%s11158_s1 + $0x9f4] sm:$0xf] }
  0xfb   :  { %3692 = vmatpush.bf16.msrb.mxu3 %v5903_v18  ;;  %v7363_v18 = vld [vmem:[%s11158_s1 + $0x97c] sm:$0xf]  ;;  %v6335_v21 = vor.u32 %v7438_v10, %v6332_v11 }
  0xfc   :  { %3654 = vmatpush.bf16.msrb.mxu0 %v5603_v25  ;;  %v6224_v25 = vld [vmem:[%s11158_s1 + $0xb04] sm:$0xf0] }
  0xfd   :  { %3667 = vmatpush.bf16.msrb.mxu1 %v5699_v35  ;;  %v6035_v35 = vor.u32 %v7363_v18, %v6032_v19  ;;  %v6227_v37 = vor.u32 %v7411_v23, %v6224_v25  ;;  %v5999_v23 = vor.u32 %v7354_v5, %v5996_v6 }
  0xfe   :  { %3680 = vmatpush.bf16.msrb.mxu2 %v5795_v36  ;;  %v6131_v36 = vor.u32 %v7387_v20, %v6128_v22  ;;  %v7426_v20 = vld [vmem:[%s11158_s1 + $0xb74] sm:$0xf] }
  0xff   :  { %3693 = vmatpush.bf16.msrb.mxu3 %v5891_v40  ;;  %v7384_v40 = vld [vmem:[%s11158_s1 + $0xa24] sm:$0xf] }
 0x100   :  { %3655 = vmatpush.bf16.msrb.mxu0 %v5591_v48  ;;  %v3449_v44 = vpop.f32.mrf.mxu0  ;;  %v6023_v48 = vor.u32 %v7360_v38, %v6020_v39  ;;  %v6119_v50 = vor.u32 %v7384_v40, %v6116_v42  ;;  %v7375_v38 = vld [vmem:[%s11158_s1 + $0x9dc] sm:$0xf]  ;;  %v6080_v40 = vld [vmem:[%s11158_s1 + $0x9e4] sm:$0xf0] }
 0x101   :  { %3668 = vmatpush.bf16.msrb.mxu1 %v5687_v52  ;;  %v3450_v47 = vadd.f32 %v3449_v44, %v9230_v9  ;;  %v3462_v49 = vpop.f32.mrf.mxu1  ;;  %v7357_v52 = vld [vmem:[%s11158_s1 + $0x94c] sm:$0xf]  ;;  %v6311_v9 = vor.u32 %v7432_v45, %v6308_v46  ;;  %v6176_v42 = vld [vmem:[%s11158_s1 + $0xaa4] sm:$0xf0]  ;;  %v7348_v45 = vld [vmem:[%s11158_s1 + $0x904] sm:$0xf] }
 0x102   :  { %3681 = vmatpush.bf16.msrb.mxu2 %v5783_v54  ;;  %v6008_v54 = vld [vmem:[%s11158_s1 + $0x954] sm:$0xf0]  ;;  %v5972_v46 = vld [vmem:[%s11158_s1 + $0x90c] sm:$0xf0] }
 0x103   :  { %3694 = vmatpush.bf16.msrb.mxu3 %v5879_v57  ;;  %3656 = vmatmul.bf16.vlgmr.msrb.gmra.mxu0 %v8307_v7  ;;  %v3463_v56 = vadd.f32 %v3462_v49, %v3450_v47  ;;  %v6104_v57 = vld [vmem:[%s11158_s1 + $0xa14] sm:$0xf0]  ;;  %v6011_v63 = vor.u32 %v7357_v52, %v6008_v54  ;;  %v6083_v47 = vor.u32 %v7375_v38, %v6080_v40  ;;  %v7372_v49 = vld [vmem:[%s11158_s1 + $0x9c4] sm:$0xf]  ;;  %v6164_v54 = vld [vmem:[%s11158_s1 + $0xa8c] sm:$0xf0] }
 0x104   :  { %3700 = vmatpush.bf16.msra.mxu0 %v6059_v58  ;;  %3669 = vmatmul.bf16.vlgmr.msrb.gmra.mxu1 %v8320_v13  ;;  %v7405_v58 = vld [vmem:[%s11158_s1 + $0xacc] sm:$0xf]  ;;  %v6107_v3 = vor.u32 %v7381_v55, %v6104_v57  ;;  %v6275_v52 = vor.u32 %v7423_v53, %v6272_v43  ;;  %v7420_v55 = vld [vmem:[%s11158_s1 + $0xb44] sm:$0xf]  ;;  %v6416_v40 = vld [vmem:[%s11158_s1 + $0xc84] sm:$0xf0] }
 0x105   :  { %3713 = vmatpush.bf16.msra.mxu1 %v6155_v59  ;;  %3682 = vmatmul.bf16.vlgmr.msrb.gmra.mxu2 %v8318_v12  ;;  %v6200_v59 = vld [vmem:[%s11158_s1 + $0xad4] sm:$0xf0]  ;;  %v7465_v57 = vld [vmem:[%s11158_s1 + $0xcac] sm:$0xf]  ;;  %v6512_v53 = vld [vmem:[%s11158_s1 + $0xd44] sm:$0xf0] }
 0x106   :  { %3726 = vmatpush.bf16.msra.mxu2 %v6251_v60  ;;  %3695 = vmatmul.bf16.vlgmr.msrb.gmra.mxu3 %v8331_v17  ;;  %v7429_v60 = vld [vmem:[%s11158_s1 + $0xb8c] sm:$0xf]  ;;  %v7507_v43 = vld [vmem:[%s11158_s1 + $0xdfc] sm:$0xf] }
 0x107   :  { %3739 = vmatpush.bf16.msra.mxu3 %v6347_v4  ;;  %v6203_v4 = vor.u32 %v7405_v58, %v6200_v59  ;;  %v6299_v10 = vor.u32 %v7429_v60, %v6296_v62  ;;  %v6440_v58 = vld [vmem:[%s11158_s1 + $0xcb4] sm:$0xf0]  ;;  %v7489_v59 = vld [vmem:[%s11158_s1 + $0xd6c] sm:$0xf]  ;;  %v5975_v62 = vor.u32 %v7348_v45, %v5972_v46  ;;  %v7531_v45 = vld [vmem:[%s11158_s1 + $0xebc] sm:$0xf] }
 0x108   :  { %3701 = vmatpush.bf16.msra.mxu0 %v6047_v14  ;;  %v3475_v11 = vpop.f32.mrf.mxu2  ;;  %v6092_v14 = vld [vmem:[%s11158_s1 + $0x9fc] sm:$0xf0]  ;;  %v3451_v22 = vpop.f32.mrf.mxu0  ;;  %v6704_v46 = vld [vmem:[%s11158_s1 + $0xec4] sm:$0xf0] }
 0x109   :  { %3714 = vmatpush.bf16.msra.mxu1 %v6143_v15  ;;  %v7402_v15 = vld [vmem:[%s11158_s1 + $0xab4] sm:$0xf]  ;;  %v3476_v18 = vadd.f32 %v3475_v11, %v3463_v56  ;;  %v3488_v19 = vpop.f32.mrf.mxu3  ;;  %v3464_v25 = vpop.f32.mrf.mxu1  ;;  %v6095_v33 = vor.u32 %v7378_v8, %v6092_v14  ;;  %v7537_v8 = vld [vmem:[%s11158_s1 + $0xeec] sm:$0xf]  ;;  %v6443_v14 = vor.u32 %v7465_v57, %v6440_v58  ;;  %v6524_v22 = vld [vmem:[%s11158_s1 + $0xd5c] sm:$0xf0] }
 0x10a   :  { %3727 = vmatpush.bf16.msra.mxu2 %v6239_v16  ;;  %v6188_v16 = vld [vmem:[%s11158_s1 + $0xabc] sm:$0xf0]  ;;  %v7528_v58 = vld [vmem:[%s11158_s1 + $0xea4] sm:$0xf] }
 0x10b   :  { %3740 = vmatpush.bf16.msra.mxu3 %v6335_v21  ;;  %v6284_v21 = vld [vmem:[%s11158_s1 + $0xb7c] sm:$0xf0]  ;;  %v9429_v26 = vadd.f32 %v3488_v19, %v3476_v18  ;;  %v7462_v18 = vld [vmem:[%s11158_s1 + $0xc94] sm:$0xf] }
 0x10c   :  { %3702 = vmatpush.bf16.msra.mxu0 %v6035_v35  ;;  %v6191_v35 = vor.u32 %v7402_v15, %v6188_v16  ;;  %v6287_v39 = vor.u32 %v7426_v20, %v6284_v21  ;;  %v6428_v19 = vld [vmem:[%s11158_s1 + $0xc9c] sm:$0xf0]  ;;  %v7486_v20 = vld [vmem:[%s11158_s1 + $0xd54] sm:$0xf] }
 0x10d   :  { %3715 = vmatpush.bf16.msra.mxu1 %v6131_v36  ;;  %v7351_v36 = vld [vmem:[%s11158_s1 + $0x91c] sm:$0xf]  ;;  %v6620_v25 = vld [vmem:[%s11158_s1 + $0xe1c] sm:$0xf0] }
 0x10e   :  { %3728 = vmatpush.bf16.msra.mxu2 %v6227_v37  ;;  %v5984_v37 = vld [vmem:[%s11158_s1 + $0x924] sm:$0xf0] }
 0x10f   :  { %3741 = vmatpush.bf16.msra.mxu3 %v6323_v41  ;;  %v7399_v41 = vld [vmem:[%s11158_s1 + $0xa9c] sm:$0xf]  ;;  %v5987_v44 = vor.u32 %v7351_v36, %v5984_v37  ;;  %v6431_v36 = vor.u32 %v7462_v18, %v6428_v19  ;;  %v6527_v37 = vor.u32 %v7486_v20, %v6524_v22  ;;  %v6680_v18 = vld [vmem:[%s11158_s1 + $0xe94] sm:$0xf0]  ;;  %v7450_v22 = vld [vmem:[%s11158_s1 + $0xc34] sm:$0xf] }
 0x110   :  { %3703 = vmatpush.bf16.msra.mxu0 %v6023_v48  ;;  %v6179_v48 = vor.u32 %v7399_v41, %v6176_v42  ;;  %v3477_v56 = vpop.f32.mrf.mxu2  ;;  %v7483_v41 = vld [vmem:[%s11158_s1 + $0xd3c] sm:$0xf] }
 0x111   :  { %3716 = vmatpush.bf16.msra.mxu1 %v6119_v50  ;;  %v6068_v50 = vld [vmem:[%s11158_s1 + $0x9cc] sm:$0xf0]  ;;  %v3490_v60 = vpop.f32.mrf.mxu3 }
 0x112   :  { %3729 = vmatpush.bf16.msra.mxu2 %v6215_v51  ;;  %v7396_v51 = vld [vmem:[%s11158_s1 + $0xa84] sm:$0xf]  ;;  %v6071_v5 = vor.u32 %v7372_v49, %v6068_v50  ;;  %v6596_v56 = vld [vmem:[%s11158_s1 + $0xdec] sm:$0xf0] }
 0x113   :  { %3742 = vmatpush.bf16.msra.mxu3 %v6311_v9  ;;  %v6260_v9 = vld [vmem:[%s11158_s1 + $0xb4c] sm:$0xf0]  ;;  %v6167_v6 = vor.u32 %v7396_v51, %v6164_v54  ;;  %v7456_v50 = vld [vmem:[%s11158_s1 + $0xc64] sm:$0xf]  ;;  %v6707_v54 = vor.u32 %v7531_v45, %v6704_v46 }
 0x114   :  { %3704 = vmatpush.bf16.msra.mxu0 %v6011_v63  ;;  %v6536_v63 = vld [vmem:[%s11158_s1 + $0xd74] sm:$0xf0]  ;;  %v6263_v11 = vor.u32 %v7420_v55, %v6260_v9  ;;  %v6404_v51 = vld [vmem:[%s11158_s1 + $0xc6c] sm:$0xf0]  ;;  %v7504_v9 = vld [vmem:[%s11158_s1 + $0xde4] sm:$0xf] }
 0x115   :  { %3717 = vmatpush.bf16.msra.mxu1 %v6107_v3  ;;  %v7513_v3 = vld [vmem:[%s11158_s1 + $0xe2c] sm:$0xf]  ;;  %v6539_v15 = vor.u32 %v7489_v59, %v6536_v63  ;;  %v6500_v55 = vld [vmem:[%s11158_s1 + $0xd2c] sm:$0xf0] }
 0x116   :  { %3730 = vmatpush.bf16.msra.mxu2 %v6203_v4  ;;  %v6632_v4 = vld [vmem:[%s11158_s1 + $0xe34] sm:$0xf0]  ;;  %v6692_v59 = vld [vmem:[%s11158_s1 + $0xeac] sm:$0xf0] }
 0x117   :  { %3743 = vmatpush.bf16.msra.mxu3 %v6299_v10  ;;  %v6728_v10 = vld [vmem:[%s11158_s1 + $0xef4] sm:$0xf0]  ;;  %v6635_v16 = vor.u32 %v7513_v3, %v6632_v4  ;;  %v6599_v4 = vor.u32 %v7504_v9, %v6596_v56  ;;  %v7519_v9 = vld [vmem:[%s11158_s1 + $0xe5c] sm:$0xf]  ;;  %v6656_v56 = vld [vmem:[%s11158_s1 + $0xe64] sm:$0xf0] }
 0x118   :  { %3705 = vmatpush.bf16.msra.mxu0 %v5999_v23  ;;  %v6731_v21 = vor.u32 %v7537_v8, %v6728_v10  ;;  %v7510_v23 = vld [vmem:[%s11158_s1 + $0xe14] sm:$0xf]  ;;  %v7477_v8 = vld [vmem:[%s11158_s1 + $0xd0c] sm:$0xf] }
 0x119   :  { %3718 = vmatpush.bf16.msra.mxu1 %v6095_v33  ;;  %v7534_v33 = vld [vmem:[%s11158_s1 + $0xed4] sm:$0xf]  ;;  %v6623_v38 = vor.u32 %v7510_v23, %v6620_v25  ;;  %v6380_v23 = vld [vmem:[%s11158_s1 + $0xc3c] sm:$0xf0] }
 0x11a   :  { %3731 = vmatpush.bf16.msra.mxu2 %v6191_v35  ;;  %v6716_v35 = vld [vmem:[%s11158_s1 + $0xedc] sm:$0xf0]  ;;  %v7474_v25 = vld [vmem:[%s11158_s1 + $0xcf4] sm:$0xf] }
 0x11b   :  { %3744 = vmatpush.bf16.msra.mxu3 %v6287_v39  ;;  %v7459_v39 = vld [vmem:[%s11158_s1 + $0xc7c] sm:$0xf]  ;;  %v6719_v42 = vor.u32 %v7534_v33, %v6716_v35 }
 0x11c   :  { %3706 = vmatpush.bf16.msra.mxu0 %v5987_v44  ;;  %v6608_v44 = vld [vmem:[%s11158_s1 + $0xe04] sm:$0xf0] }
 0x11d   :  { %3719 = vmatpush.bf16.msra.mxu1 %v6083_v47  ;;  %v6419_v47 = vor.u32 %v7459_v39, %v6416_v40  ;;  %v6611_v49 = vor.u32 %v7507_v43, %v6608_v44  ;;  %v6383_v43 = vor.u32 %v7450_v22, %v6380_v23 }
 0x11e   :  { %3732 = vmatpush.bf16.msra.mxu2 %v6179_v48  ;;  %v6515_v48 = vor.u32 %v7483_v41, %v6512_v53  ;;  %v7522_v41 = vld [vmem:[%s11158_s1 + $0xe74] sm:$0xf] }
 0x11f   :  { %3745 = vmatpush.bf16.msra.mxu3 %v6275_v52  ;;  %v7480_v52 = vld [vmem:[%s11158_s1 + $0xd24] sm:$0xf] }
 0x120   :  { %3707 = vmatpush.bf16.msra.mxu0 %v5975_v62  ;;  %v3501_v57 = vpop.f32.mrf.mxu0  ;;  %v6407_v62 = vor.u32 %v7456_v50, %v6404_v51  ;;  %v6503_v3 = vor.u32 %v7480_v52, %v6500_v55  ;;  %v7471_v50 = vld [vmem:[%s11158_s1 + $0xcdc] sm:$0xf]  ;;  %v6464_v52 = vld [vmem:[%s11158_s1 + $0xce4] sm:$0xf0] }
 0x121   :  { %3720 = vmatpush.bf16.msra.mxu1 %v6071_v5  ;;  %v3502_v60 = vadd.f32 %v3501_v57, %v9429_v26  ;;  %v3514_v63 = vpop.f32.mrf.mxu1  ;;  %v7453_v5 = vld [vmem:[%s11158_s1 + $0xc4c] sm:$0xf]  ;;  %v6695_v26 = vor.u32 %v7528_v58, %v6692_v59  ;;  %v6560_v55 = vld [vmem:[%s11158_s1 + $0xda4] sm:$0xf0]  ;;  %v7444_v58 = vld [vmem:[%s11158_s1 + $0xc04] sm:$0xf] }
 0x122   :  { %3733 = vmatpush.bf16.msra.mxu2 %v6167_v6  ;;  %v6392_v6 = vld [vmem:[%s11158_s1 + $0xc54] sm:$0xf0]  ;;  %v6356_v59 = vld [vmem:[%s11158_s1 + $0xc0c] sm:$0xf0] }
 0x123   :  { %3746 = vmatpush.bf16.msra.mxu3 %v6263_v11  ;;  %3708 = vmatmul.bf16.vlgmr.msra.gmra.mxu0 %v8348_v24  ;;  %v3515_v10 = vadd.f32 %v3514_v63, %v3502_v60  ;;  %v6488_v11 = vld [vmem:[%s11158_s1 + $0xd14] sm:$0xf0]  ;;  %v6395_v19 = vor.u32 %v7453_v5, %v6392_v6  ;;  %v6467_v60 = vor.u32 %v7471_v50, %v6464_v52  ;;  %v7468_v63 = vld [vmem:[%s11158_s1 + $0xcc4] sm:$0xf]  ;;  %v6548_v6 = vld [vmem:[%s11158_s1 + $0xd8c] sm:$0xf0] }
 0x124   :  { %3752 = vmatpush.bf16.msrb.mxu0 %v6443_v14  ;;  %3721 = vmatmul.bf16.vlgmr.msra.gmra.mxu1 %v8352_v31  ;;  %v7501_v14 = vld [vmem:[%s11158_s1 + $0xdcc] sm:$0xf]  ;;  %v6491_v20 = vor.u32 %v7477_v8, %v6488_v11  ;;  %v6659_v5 = vor.u32 %v7519_v9, %v6656_v56  ;;  %v7516_v8 = vld [vmem:[%s11158_s1 + $0xe44] sm:$0xf]  ;;  %v4910_v11 = vld [vmem:[%s11158_s1 + $0xb0] sm:$0xf] }
 0x125   :  { %3765 = vmatpush.bf16.msrb.mxu1 %v6539_v15  ;;  %3734 = vmatmul.bf16.vlgmr.msra.gmra.mxu2 %v8350_v30  ;;  %v6584_v15 = vld [vmem:[%s11158_s1 + $0xdd4] sm:$0xf0]  ;;  %v7077_v52 = vld [vmem:[%s11158_s1 + $0x88] sm:$0xf0] }
 0x126   :  { %3778 = vmatpush.bf16.msrb.mxu2 %v6635_v16  ;;  %3747 = vmatmul.bf16.vlgmr.msra.gmra.mxu3 %v8354_v32  ;;  %v7525_v16 = vld [vmem:[%s11158_s1 + $0xe8c] sm:$0xf] }
 0x127   :  { %3791 = vmatpush.bf16.msrb.mxu3 %v6731_v21  ;;  %v6587_v21 = vor.u32 %v7501_v14, %v6584_v15  ;;  %v6683_v33 = vor.u32 %v7525_v16, %v6680_v18  ;;  %v7083_v14 = vld [vmem:[%s11158_s1 + $0xb8] sm:$0xf0]  ;;  %v5006_v15 = vld [vmem:[%s11158_s1 + $0x170] sm:$0xf]  ;;  %v6359_v18 = vor.u32 %v7444_v58, %v6356_v59  ;;  %v7101_v56 = vld [vmem:[%s11158_s1 + $0x148] sm:$0xf0] }
 0x128   :  { %3753 = vmatpush.bf16.msrb.mxu0 %v6431_v36  ;;  %v3527_v35 = vpop.f32.mrf.mxu2  ;;  %v6476_v36 = vld [vmem:[%s11158_s1 + $0xcfc] sm:$0xf0]  ;;  %v3503_v53 = vpop.f32.mrf.mxu0  ;;  %v7125_v58 = vld [vmem:[%s11158_s1 + $0x208] sm:$0xf0]  ;;  %v7622_v59 = vld [vmem:[#allocation1 + $0x12] sm:$0xff] }
 0x129   :  { %3766 = vmatpush.bf16.msrb.mxu1 %v6527_v37  ;;  %v7498_v37 = vld [vmem:[%s11158_s1 + $0xdb4] sm:$0xf]  ;;  %v3528_v39 = vadd.f32 %v3527_v35, %v3515_v10  ;;  %v3540_v40 = vpop.f32.mrf.mxu3  ;;  %v3516_v44 = vpop.f32.mrf.mxu1  ;;  %v6479_v46 = vor.u32 %v7474_v25, %v6476_v36  ;;  %v5198_v25 = vld [vmem:[%s11158_s1 + $0x2f0] sm:$0xf]  ;;  %v4911_v36 = vor.u32 %v7083_v14, %v4910_v11  ;;  %v7104_v53 = vld [vmem:[%s11158_s1 + $0x160] sm:$0xf0] }
 0x12a   :  { %3779 = vmatpush.bf16.msrb.mxu2 %v6623_v38  ;;  %v6572_v38 = vld [vmem:[%s11158_s1 + $0xdbc] sm:$0xf0]  ;;  %v7128_v44 = vld [vmem:[%s11158_s1 + $0x220] sm:$0xf0] }
 0x12b   :  { %3792 = vmatpush.bf16.msrb.mxu3 %v6719_v42  ;;  %v6668_v42 = vld [vmem:[%s11158_s1 + $0xe7c] sm:$0xf0]  ;;  %v9628_v45 = vadd.f32 %v3540_v40, %v3528_v39  ;;  %v4898_v39 = vld [vmem:[%s11158_s1 + $0x98] sm:$0xf]  ;;  %v7080_v40 = vld [vmem:[%s11158_s1 + $0xa0] sm:$0xf0] }
 0x12c   :  { %3754 = vmatpush.bf16.msrb.mxu0 %v6419_v47  ;;  %v6575_v47 = vor.u32 %v7498_v37, %v6572_v38  ;;  %v6671_v51 = vor.u32 %v7522_v41, %v6668_v42  ;;  %v4994_v41 = vld [vmem:[%s11158_s1 + $0x158] sm:$0xf]  ;;  %v7625_v11 = vld [vmem:[%s11160_s2] sm:$0x7] }
 0x12d   :  { %3767 = vmatpush.bf16.msrb.mxu1 %v6515_v48  ;;  %v7447_v48 = vld [vmem:[%s11158_s1 + $0xc1c] sm:$0xf]  ;;  %v673_v14 = vperm.slane %v7625_v11, 1 }
 0x12e   :  { %3780 = vmatpush.bf16.msrb.mxu2 %v6611_v49  ;;  %v6368_v49 = vld [vmem:[%s11158_s1 + $0xc24] sm:$0xf0] }
 0x12f   :  { %3793 = vmatpush.bf16.msrb.mxu3 %v6707_v54  ;;  %v7495_v54 = vld [vmem:[%s11158_s1 + $0xd9c] sm:$0xf]  ;;  %v6371_v57 = vor.u32 %v7447_v48, %v6368_v49  ;;  %v4899_v48 = vor.u32 %v7080_v40, %v4898_v39  ;;  %v4995_v49 = vor.u32 %v7104_v53, %v4994_v41 }
 0x130   :  { %3755 = vmatpush.bf16.msrb.mxu0 %v6407_v62  ;;  %v6563_v62 = vor.u32 %v7495_v54, %v6560_v55  ;;  %v3529_v10 = vpop.f32.mrf.mxu2  ;;  %v4982_v54 = vld [vmem:[%s11158_s1 + $0x140] sm:$0xf]  ;;  %v7095_v41 = vld [vmem:[%s11158_s1 + $0x118] sm:$0xf0] }
 0x131   :  { %3768 = vmatpush.bf16.msrb.mxu1 %v6503_v3  ;;  %v6452_v3 = vld [vmem:[%s11158_s1 + $0xccc] sm:$0xf0]  ;;  %v3542_v16 = vpop.f32.mrf.mxu3  ;;  %v7621_v55 = vld [vmem:[#allocation1] sm:$0xff]  ;;  %v4970_v10 = vld [vmem:[%s11158_s1 + $0x128] sm:$0xf] }
 0x132   :  { %3781 = vmatpush.bf16.msrb.mxu2 %v6599_v4  ;;  %v7492_v4 = vld [vmem:[%s11158_s1 + $0xd84] sm:$0xf]  ;;  %v6455_v22 = vor.u32 %v7468_v63, %v6452_v3  ;;  %v7149_v63 = vld [vmem:[%s11158_s1 + $0x2c8] sm:$0xf0]  ;;  %v7624_v3 = vld [vmem:[#allocation1 + $0x1b] sm:$0xff] }
 0x133   :  { %3794 = vmatpush.bf16.msrb.mxu3 %v6695_v26  ;;  %v6644_v26 = vld [vmem:[%s11158_s1 + $0xe4c] sm:$0xf0]  ;;  %v6551_v23 = vor.u32 %v7492_v4, %v6548_v6  ;;  %v4983_v6 = vor.u32 %v7101_v56, %v4982_v54  ;;  %v7098_v16 = vld [vmem:[%s11158_s1 + $0x130] sm:$0xf0]  ;;  %v7119_v53 = vld [vmem:[%s11158_s1 + $0x1d8] sm:$0xf0] }
 0x134   :  { %3756 = vmatpush.bf16.msrb.mxu0 %v6395_v19  ;;  %v7107_v19 = vld [vmem:[%s11158_s1 + $0x178] sm:$0xf0]  ;;  %v6647_v35 = vor.u32 %v7516_v8, %v6644_v26  ;;  %v7074_v26 = vld [vmem:[%s11158_s1 + $0x70] sm:$0xf0]  ;;  %v5042_v56 = vld [vmem:[%s11158_s1 + $0x1b8] sm:$0xf] }
 0x135   :  { %3769 = vmatpush.bf16.msrb.mxu1 %v6491_v20  ;;  %v5102_v20 = vld [vmem:[%s11158_s1 + $0x230] sm:$0xf]  ;;  %v5007_v37 = vor.u32 %v7107_v19, %v5006_v15  ;;  %v7122_v19 = vld [vmem:[%s11158_s1 + $0x1f0] sm:$0xf0] }
 0x136   :  { %3782 = vmatpush.bf16.msrb.mxu2 %v6587_v21  ;;  %v7131_v21 = vld [vmem:[%s11158_s1 + $0x238] sm:$0xf0] }
 0x137   :  { %3795 = vmatpush.bf16.msrb.mxu3 %v6683_v33  ;;  %v7155_v33 = vld [vmem:[%s11158_s1 + $0x2f8] sm:$0xf0]  ;;  %v5103_v38 = vor.u32 %v7131_v21, %v5102_v20  ;;  %v5162_v20 = vld [vmem:[%s11158_s1 + $0x2a8] sm:$0xf]  ;;  %v7146_v21 = vld [vmem:[%s11158_s1 + $0x2b0] sm:$0xf0] }
 0x138   :  { %3757 = vmatpush.bf16.msrb.mxu0 %v6383_v43  ;;  %v5199_v42 = vor.u32 %v7155_v33, %v5198_v25  ;;  %v5090_v43 = vld [vmem:[%s11158_s1 + $0x218] sm:$0xf]  ;;  %v4971_v25 = vor.u32 %v7098_v16, %v4970_v10  ;;  %v5163_v40 = vor.u32 %v7146_v21, %v5162_v20  ;;  %v4934_v10 = vld [vmem:[%s11158_s1 + $0xe0] sm:$0xf]  ;;  %v7137_v20 = vld [vmem:[%s11158_s1 + $0x268] sm:$0xf0] }
 0x139   :  { %3770 = vmatpush.bf16.msrb.mxu1 %v6479_v46  ;;  %v5186_v46 = vld [vmem:[%s11158_s1 + $0x2d8] sm:$0xf]  ;;  %v5091_v50 = vor.u32 %v7128_v44, %v5090_v43  ;;  %v5150_v43 = vld [vmem:[%s11158_s1 + $0x290] sm:$0xf]  ;;  %v7143_v44 = vld [vmem:[%s11158_s1 + $0x298] sm:$0xf0] }
 0x13a   :  { %3783 = vmatpush.bf16.msrb.mxu2 %v6575_v47  ;;  %v7152_v47 = vld [vmem:[%s11158_s1 + $0x2e0] sm:$0xf0]  ;;  %v5030_v16 = vld [vmem:[%s11158_s1 + $0x1a0] sm:$0xf] }
 0x13b   :  { %3796 = vmatpush.bf16.msrb.mxu3 %v6671_v51  ;;  %v4886_v51 = vld [vmem:[%s11158_s1 + $0x80] sm:$0xf]  ;;  %v5187_v9 = vor.u32 %v7152_v47, %v5186_v46 }
 0x13c   :  { %3758 = vmatpush.bf16.msrb.mxu0 %v6371_v57  ;;  %v5078_v57 = vld [vmem:[%s11158_s1 + $0x200] sm:$0xf]  ;;  %v4887_v4 = vor.u32 %v7077_v52, %v4886_v51  ;;  %v7068_v51 = vld [vmem:[%s11158_s1 + $0x40] sm:$0xf0]  ;;  %v4946_v52 = vld [vmem:[%s11158_s1 + $0xf8] sm:$0xf] }
 0x13d   :  { %3771 = vmatpush.bf16.msrb.mxu1 %v6467_v60  ;;  %v7623_v60 = vld [vmem:[#allocation1 + $0x9] sm:$0xff]  ;;  %v5079_v8 = vor.u32 %v7125_v58, %v5078_v57  ;;  %v7116_v57 = vld [vmem:[%s11158_s1 + $0x1c0] sm:$0xf0] }
 0x13e   :  { %3784 = vmatpush.bf16.msrb.mxu2 %v6563_v62  ;;  %v5174_v62 = vld [vmem:[%s11158_s1 + $0x2c0] sm:$0xf] }
 0x13f   :  { %3797 = vmatpush.bf16.msrb.mxu3 %v6659_v5  ;;  %v4874_v5 = vld [vmem:[%s11158_s1 + $0x68] sm:$0xf]  ;;  %v5175_v15 = vor.u32 %v7149_v63, %v5174_v62  ;;  %v7140_v62 = vld [vmem:[%s11158_s1 + $0x280] sm:$0xf0] }
 0x140   :  { %3759 = vmatpush.bf16.msrb.mxu0 %v6359_v18  ;;  %v5066_v18 = vld [vmem:[%s11158_s1 + $0x1e8] sm:$0xf] }
 0x141   :  { %3772 = vmatpush.bf16.msrb.mxu1 %v6455_v22  ;;  %v4875_v22 = vor.u32 %v7074_v26, %v4874_v5  ;;  %v5067_v33 = vor.u32 %v7122_v19, %v5066_v18  ;;  %v3566_v39 = vpop.f32.mrf.mxu1  ;;  %v7065_v26 = vld [vmem:[%s11158_s1 + $0x28] sm:$0xf0]  ;;  %v5126_v19 = vld [vmem:[%s11158_s1 + $0x260] sm:$0xf] }
 0x142   :  { %3785 = vmatpush.bf16.msrb.mxu2 %v6551_v23  ;;  %v3553_v23 = vpop.f32.mrf.mxu0  ;;  %v7113_v18 = vld [vmem:[%s11158_s1 + $0x1a8] sm:$0xf0] }
 0x143   :  { %3798 = vmatpush.bf16.msrb.mxu3 %v6647_v35  ;;  %3760 = vmatmul.bf16.vlgmr.msrb.gmra.mxu0 %v7621_v55  ;;  %v4862_v35 = vld [vmem:[%s11158_s1 + $0x50] sm:$0xf]  ;;  %v5151_v55 = vor.u32 %v7143_v44, %v5150_v43  ;;  %v7179_v44 = vld [vmem:[%s11158_s1 + $0x3b8] sm:$0xf0] }
 0x144   :  { %3804 = vmatpush.bf16.msra.mxu0 %v4911_v36  ;;  %3773 = vmatmul.bf16.vlgmr.msrb.gmra.mxu1 %v7623_v60  ;;  %v7071_v36 = vld [vmem:[%s11158_s1 + $0x58] sm:$0xf0]  ;;  %v5138_v60 = vld [vmem:[%s11158_s1 + $0x278] sm:$0xf]  ;;  %v5294_v43 = vld [vmem:[%s11158_s1 + $0x3b0] sm:$0xf] }
 0x145   :  { %3817 = vmatpush.bf16.msra.mxu1 %v5007_v37  ;;  %3786 = vmatmul.bf16.vlgmr.msrb.gmra.mxu2 %v7622_v59  ;;  %v4958_v37 = vld [vmem:[%s11158_s1 + $0x110] sm:$0xf]  ;;  %v4863_v47 = vor.u32 %v7071_v36, %v4862_v35  ;;  %v4922_v35 = vld [vmem:[%s11158_s1 + $0xc8] sm:$0xf]  ;;  %v7086_v36 = vld [vmem:[%s11158_s1 + $0xd0] sm:$0xf0] }
 0x146   :  { %3830 = vmatpush.bf16.msra.mxu2 %v5103_v38  ;;  %3799 = vmatmul.bf16.vlgmr.msrb.gmra.mxu3 %v7624_v3  ;;  %v3554_v38 = vadd.f32 %v3553_v23, %v673_v14  ;;  %v5139_v14 = vor.u32 %v7140_v62, %v5138_v60  ;;  %v7062_v23 = vld [vmem:[%s11158_s1 + $0x10] sm:$0xf0]  ;;  %v7176_v60 = vld [vmem:[%s11158_s1 + $0x3a0] sm:$0xf0]  ;;  %v5378_v62 = vld [vmem:[%s11158_s1 + $0x458] sm:$0xf] }
 0x147   :  { %3843 = vmatpush.bf16.msra.mxu3 %v5199_v42  ;;  %v5054_v42 = vld [vmem:[%s11158_s1 + $0x1d0] sm:$0xf] }
 0x148   :  { %3805 = vmatpush.bf16.msra.mxu0 %v4899_v48  ;;  %v3567_v46 = vadd.f32 %v3566_v39, %v3554_v38  ;;  %v4959_v48 = vor.u32 %v7095_v41, %v4958_v37  ;;  %v3579_v54 = vpop.f32.mrf.mxu2  ;;  %v5018_v37 = vld [vmem:[%s11158_s1 + $0x188] sm:$0xf]  ;;  %v5127_v39 = vor.u32 %v7137_v20, %v5126_v19  ;;  %v7197_v20 = vld [vmem:[%s11158_s1 + $0x448] sm:$0xf0] }
 0x149   :  { %3818 = vmatpush.bf16.msra.mxu1 %v4995_v49  ;;  %v5055_v49 = vor.u32 %v7119_v53, %v5054_v42  ;;  %v3592_v59 = vpop.f32.mrf.mxu3  ;;  %v3568_v11 = vpop.f32.mrf.mxu1  ;;  %v5114_v41 = vld [vmem:[%s11158_s1 + $0x248] sm:$0xf]  ;;  %v7134_v42 = vld [vmem:[%s11158_s1 + $0x250] sm:$0xf0] }
 0x14a   :  { %3831 = vmatpush.bf16.msra.mxu2 %v5091_v50  ;;  %v4850_v50 = vld [vmem:[%s11158_s1 + $0x38] sm:$0xf]  ;;  %v3580_v58 = vadd.f32 %v3579_v54, %v3567_v46  ;;  %v5390_v46 = vld [vmem:[%s11158_s1 + $0x470] sm:$0xf] }
 0x14b   :  { %3844 = vmatpush.bf16.msra.mxu3 %v5187_v9  ;;  %v7092_v9 = vld [vmem:[%s11158_s1 + $0x100] sm:$0xf0]  ;;  %v4851_v63 = vor.u32 %v7068_v51, %v4850_v50  ;;  %v7227_v50 = vld [vmem:[%s11158_s1 + $0x538] sm:$0xf0]  ;;  %v4923_v51 = vor.u32 %v7086_v36, %v4922_v35  ;;  %v5582_v54 = vld [vmem:[%s11158_s1 + $0x5f0] sm:$0xf] }
 0x14c   :  { %3806 = vmatpush.bf16.msra.mxu0 %v4887_v4  ;;  %v9825_v3 = vadd.f32 %v3592_v59, %v3580_v58  ;;  %v3555_v4 = vpop.f32.mrf.mxu0  ;;  %v4947_v5 = vor.u32 %v7092_v9, %v4946_v52  ;;  %v5115_v9 = vor.u32 %v7134_v42, %v5114_v41  ;;  %v5282_v59 = vld [vmem:[%s11158_s1 + $0x398] sm:$0xf]  ;;  %v5258_v36 = vld [vmem:[%s11158_s1 + $0x368] sm:$0xf]  ;;  %v7242_v41 = vld [vmem:[%s11158_s1 + $0x5b0] sm:$0xf0] }
 0x14d   :  { %3819 = vmatpush.bf16.msra.mxu1 %v4983_v6  ;;  %v5043_v6 = vor.u32 %v7116_v57, %v5042_v56  ;;  %v5295_v56 = vor.u32 %v7179_v44, %v5294_v43  ;;  %v7200_v4 = vld [vmem:[%s11158_s1 + $0x460] sm:$0xf0] }
 0x14e   :  { %3832 = vmatpush.bf16.msra.mxu2 %v5079_v8  ;;  %v4838_v8 = vld [vmem:[%s11158_s1 + $0x20] sm:$0xf]  ;;  %v5379_v11 = vor.u32 %v7200_v4, %v5378_v62  ;;  %v7164_v62 = vld [vmem:[%s11158_s1 + $0x340] sm:$0xf0] }
 0x14f   :  { %3845 = vmatpush.bf16.msra.mxu3 %v5175_v15  ;;  %v7089_v15 = vld [vmem:[%s11158_s1 + $0xe8] sm:$0xf0]  ;;  %v4839_v21 = vor.u32 %v7065_v26, %v4838_v8  ;;  %v5570_v8 = vld [vmem:[%s11158_s1 + $0x5d8] sm:$0xf]  ;;  %v7248_v26 = vld [vmem:[%s11158_s1 + $0x5e0] sm:$0xf0] }
 0x150   :  { %3807 = vmatpush.bf16.msra.mxu0 %v4875_v22  ;;  %v4826_v22 = vld [vmem:[%s11158_s1 + $0x8] sm:$0xf]  ;;  %v3581_v38 = vpop.f32.mrf.mxu2  ;;  %v5571_v19 = vor.u32 %v7248_v26, %v5570_v8  ;;  %v5426_v8 = vld [vmem:[%s11158_s1 + $0x4b8] sm:$0xf]  ;;  %v7212_v26 = vld [vmem:[%s11158_s1 + $0x4c0] sm:$0xf0] }
 0x151   :  { %3820 = vmatpush.bf16.msra.mxu1 %v4971_v25  ;;  %v4935_v25 = vor.u32 %v7089_v15, %v4934_v10  ;;  %v3594_v53 = vpop.f32.mrf.mxu3  ;;  %v5283_v10 = vor.u32 %v7176_v60, %v5282_v59  ;;  %v5270_v15 = vld [vmem:[%s11158_s1 + $0x380] sm:$0xf]  ;;  %v5450_v38 = vld [vmem:[%s11158_s1 + $0x4e8] sm:$0xf]  ;;  %v5234_v60 = vld [vmem:[%s11158_s1 + $0x338] sm:$0xf] }
 0x152   :  { %3833 = vmatpush.bf16.msra.mxu2 %v5067_v33  ;;  %v5031_v33 = vor.u32 %v7113_v18, %v5030_v16  ;;  %v7173_v16 = vld [vmem:[%s11158_s1 + $0x388] sm:$0xf0]  ;;  %v5366_v18 = vld [vmem:[%s11158_s1 + $0x440] sm:$0xf] }
 0x153   :  { %3846 = vmatpush.bf16.msra.mxu3 %v5163_v40  ;;  %v7110_v40 = vld [vmem:[%s11158_s1 + $0x190] sm:$0xf0]  ;;  %v5367_v35 = vor.u32 %v7197_v20, %v5366_v18 }
 0x154   :  { %3808 = vmatpush.bf16.msra.mxu0 %v4863_v47  ;;  %v4827_v47 = vor.u32 %v7062_v23, %v4826_v22  ;;  %v5019_v52 = vor.u32 %v7110_v40, %v5018_v37  ;;  %v7221_v22 = vld [vmem:[%s11158_s1 + $0x508] sm:$0xf0]  ;;  %v5558_v23 = vld [vmem:[%s11158_s1 + $0x5c0] sm:$0xf]  ;;  %v7170_v37 = vld [vmem:[%s11158_s1 + $0x370] sm:$0xf0] }
 0x155   :  { %3821 = vmatpush.bf16.msra.mxu1 %v4959_v48  ;;  %v7203_v48 = vld [vmem:[%s11158_s1 + $0x478] sm:$0xf0]  ;;  %v5546_v40 = vld [vmem:[%s11158_s1 + $0x5a8] sm:$0xf]  ;;  %v5259_v42 = vor.u32 %v7170_v37, %v5258_v36  ;;  %v5414_v36 = vld [vmem:[%s11158_s1 + $0x4a0] sm:$0xf] }
 0x156   :  { %3834 = vmatpush.bf16.msra.mxu2 %v5055_v49  ;;  %v5486_v49 = vld [vmem:[%s11158_s1 + $0x530] sm:$0xf]  ;;  %v5391_v57 = vor.u32 %v7203_v48, %v5390_v46  ;;  %v7209_v37 = vld [vmem:[%s11158_s1 + $0x4a8] sm:$0xf0] }
 0x157   :  { %3847 = vmatpush.bf16.msra.mxu3 %v5151_v55  ;;  %v7251_v55 = vld [vmem:[%s11158_s1 + $0x5f8] sm:$0xf0]  ;;  %v5487_v58 = vor.u32 %v7227_v50, %v5486_v49  ;;  %v5246_v46 = vld [vmem:[%s11158_s1 + $0x350] sm:$0xf] }
 0x158   :  { %3809 = vmatpush.bf16.msra.mxu0 %v4851_v63  ;;  %v5583_v63 = vor.u32 %v7251_v55, %v5582_v54  ;;  %v5342_v48 = vld [vmem:[%s11158_s1 + $0x410] sm:$0xf]  ;;  %v7215_v55 = vld [vmem:[%s11158_s1 + $0x4d8] sm:$0xf0] }
 0x159   :  { %3822 = vmatpush.bf16.msra.mxu1 %v4947_v5  ;;  %v5474_v5 = vld [vmem:[%s11158_s1 + $0x518] sm:$0xf]  ;;  %v5438_v54 = vld [vmem:[%s11158_s1 + $0x4d0] sm:$0xf] }
 0x15a   :  { %3835 = vmatpush.bf16.msra.mxu2 %v5043_v6  ;;  %v7224_v6 = vld [vmem:[%s11158_s1 + $0x520] sm:$0xf0]  ;;  %v5439_v59 = vor.u32 %v7215_v55, %v5438_v54  ;;  %v5774_v54 = vld [vmem:[%s11158_s1 + $0x770] sm:$0xf] }
 0x15b   :  { %3848 = vmatpush.bf16.msra.mxu3 %v5139_v14  ;;  %v5475_v14 = vor.u32 %v7224_v6, %v5474_v5  ;;  %v7188_v6 = vld [vmem:[%s11158_s1 + $0x400] sm:$0xf0] }
 0x15c   :  { %3810 = vmatpush.bf16.msra.mxu0 %v4839_v21  ;;  %v5462_v21 = vld [vmem:[%s11158_s1 + $0x500] sm:$0xf] }
 0x15d   :  { %3823 = vmatpush.bf16.msra.mxu1 %v4935_v25  ;;  %v7245_v25 = vld [vmem:[%s11158_s1 + $0x5c8] sm:$0xf0] }
 0x15e   :  { %3836 = vmatpush.bf16.msra.mxu2 %v5031_v33  ;;  %v5271_v33 = vor.u32 %v7173_v16, %v5270_v15  ;;  %v7236_v15 = vld [vmem:[%s11158_s1 + $0x580] sm:$0xf0]  ;;  %v5235_v16 = vor.u32 %v7164_v62, %v5234_v60  ;;  %v7347_v60 = vld [vmem:[%s11158_s1 + $0x8f8] sm:$0xf0] }
 0x15f   :  { %3849 = vmatpush.bf16.msra.mxu3 %v5127_v39  ;;  %v7218_v39 = vld [vmem:[%s11158_s1 + $0x4f0] sm:$0xf0] }
 0x160   :  { %3811 = vmatpush.bf16.msra.mxu0 %v4827_v47  ;;  %v3605_v53 = vpop.f32.mrf.mxu0  ;;  %v5451_v44 = vor.u32 %v7218_v39, %v5450_v38  ;;  %v7167_v47 = vld [vmem:[%s11158_s1 + $0x358] sm:$0xf0]  ;;  %v5210_v38 = vld [vmem:[%s11158_s1 + $0x308] sm:$0xf]  ;;  %v7158_v39 = vld [vmem:[%s11158_s1 + $0x310] sm:$0xf0] }
 0x161   :  { %3824 = vmatpush.bf16.msra.mxu1 %v4923_v51  ;;  %v3606_v49 = vadd.f32 %v3605_v53, %v9825_v3  ;;  %v3618_v50 = vpop.f32.mrf.mxu1  ;;  %v5547_v51 = vor.u32 %v7242_v41, %v5546_v40  ;;  %v7239_v3 = vld [vmem:[%s11158_s1 + $0x598] sm:$0xf0]  ;;  %v5415_v41 = vor.u32 %v7209_v37, %v5414_v36  ;;  %v7182_v53 = vld [vmem:[%s11158_s1 + $0x3d0] sm:$0xf0]  ;;  %v5211_v55 = vor.u32 %v7158_v39, %v5210_v38  ;;  %v5846_v36 = vld [vmem:[%s11158_s1 + $0x800] sm:$0xf] }
 0x162   :  { %3837 = vmatpush.bf16.msra.mxu2 %v5019_v52  ;;  %v7191_v52 = vld [vmem:[%s11158_s1 + $0x418] sm:$0xf0]  ;;  %v7317_v37 = vld [vmem:[%s11158_s1 + $0x808] sm:$0xf0]  ;;  %v5642_v39 = vld [vmem:[%s11158_s1 + $0x668] sm:$0xf] }
 0x163   :  { %3850 = vmatpush.bf16.msra.mxu3 %v5115_v9  ;;  %3812 = vmatmul.bf16.vlgmr.msra.gmra.mxu0 %v7991_v28  ;;  %v5354_v28 = vld [vmem:[%s11158_s1 + $0x428] sm:$0xf]  ;;  %v5534_v9 = vld [vmem:[%s11158_s1 + $0x590] sm:$0xf]  ;;  %v5847_v38 = vor.u32 %v7317_v37, %v5846_v36  ;;  %v5702_v36 = vld [vmem:[%s11158_s1 + $0x6e0] sm:$0xf] }
 0x164   :  { %3856 = vmatpush.bf16.msrb.mxu0 %v5295_v56  ;;  %3825 = vmatmul.bf16.vlgmr.msra.gmra.mxu1 %v8001_v34  ;;  %v7194_v34 = vld [vmem:[%s11158_s1 + $0x430] sm:$0xf0]  ;;  %v3619_v56 = vadd.f32 %v3618_v50, %v3606_v49  ;;  %v5535_v5 = vor.u32 %v7239_v3, %v5534_v9  ;;  %v7299_v9 = vld [vmem:[%s11158_s1 + $0x778] sm:$0xf0]  ;;  %v5870_v3 = vld [vmem:[%s11158_s1 + $0x830] sm:$0xf] }
 0x165   :  { %3869 = vmatpush.bf16.msrb.mxu1 %v5391_v57  ;;  %3838 = vmatmul.bf16.vlgmr.msra.gmra.mxu2 %v7989_v27  ;;  %v5463_v27 = vor.u32 %v7221_v22, %v5462_v21  ;;  %v5355_v43 = vor.u32 %v7194_v34, %v5354_v28  ;;  %v5247_v57 = vor.u32 %v7167_v47, %v5246_v46  ;;  %v5222_v22 = vld [vmem:[%s11158_s1 + $0x320] sm:$0xf]  ;;  %v7206_v47 = vld [vmem:[%s11158_s1 + $0x490] sm:$0xf0] }
 0x166   :  { %3882 = vmatpush.bf16.msrb.mxu2 %v5487_v58  ;;  %3851 = vmatmul.bf16.vlgmr.msra.gmra.mxu3 %v7993_v29  ;;  %v5559_v29 = vor.u32 %v7245_v25, %v5558_v23  ;;  %v5343_v58 = vor.u32 %v7191_v52, %v5342_v48  ;;  %v5427_v21 = vor.u32 %v7212_v26, %v5426_v8  ;;  %v7161_v23 = vld [vmem:[%s11158_s1 + $0x328] sm:$0xf0]  ;;  %v5318_v25 = vld [vmem:[%s11158_s1 + $0x3e0] sm:$0xf]  ;;  %v5498_v48 = vld [vmem:[%s11158_s1 + $0x548] sm:$0xf] }
 0x167   :  { %3895 = vmatpush.bf16.msrb.mxu3 %v5583_v63  ;;  %v5330_v63 = vld [vmem:[%s11158_s1 + $0x3f8] sm:$0xf]  ;;  %v5510_v28 = vld [vmem:[%s11158_s1 + $0x560] sm:$0xf]  ;;  %v5223_v34 = vor.u32 %v7161_v23, %v5222_v22  ;;  %v7230_v49 = vld [vmem:[%s11158_s1 + $0x550] sm:$0xf0] }
 0x168   :  { %3857 = vmatpush.bf16.msrb.mxu0 %v5283_v10  ;;  %v3631_v4 = vpop.f32.mrf.mxu2  ;;  %v5331_v20 = vor.u32 %v7188_v6, %v5330_v63  ;;  %v7275_v52 = vld [vmem:[%s11158_s1 + $0x6b8] sm:$0xf0]  ;;  %v5499_v62 = vor.u32 %v7230_v49, %v5498_v48  ;;  %v5666_v6 = vld [vmem:[%s11158_s1 + $0x698] sm:$0xf]  ;;  %v7272_v8 = vld [vmem:[%s11158_s1 + $0x6a0] sm:$0xf0] }
 0x169   :  { %3870 = vmatpush.bf16.msrb.mxu1 %v5379_v11  ;;  %v3632_v10 = vadd.f32 %v3631_v4, %v3619_v56  ;;  %v3644_v11 = vpop.f32.mrf.mxu3  ;;  %v7323_v56 = vld [vmem:[%s11158_s1 + $0x838] sm:$0xf0]  ;;  %v5775_v4 = vor.u32 %v7299_v9, %v5774_v54  ;;  %v5762_v26 = vld [vmem:[%s11158_s1 + $0x758] sm:$0xf]  ;;  %v5654_v23 = vld [vmem:[%s11158_s1 + $0x680] sm:$0xf] }
 0x16a   :  { %3883 = vmatpush.bf16.msrb.mxu2 %v5475_v14  ;;  %v5522_v14 = vld [vmem:[%s11158_s1 + $0x578] sm:$0xf]  ;;  %v5726_v54 = vld [vmem:[%s11158_s1 + $0x710] sm:$0xf]  ;;  %v7287_v9 = vld [vmem:[%s11158_s1 + $0x718] sm:$0xf0] }
 0x16b   :  { %3896 = vmatpush.bf16.msrb.mxu3 %v5571_v19  ;;  %v10024_v18 = vadd.f32 %v3644_v11, %v3632_v10  ;;  %v3607_v19 = vpop.f32.mrf.mxu0  ;;  %v7296_v11 = vld [vmem:[%s11158_s1 + $0x760] sm:$0xf0] }
 0x16c   :  { %3858 = vmatpush.bf16.msrb.mxu0 %v5271_v33  ;;  %v3620_v33 = vpop.f32.mrf.mxu1  ;;  %v7344_v19 = vld [vmem:[%s11158_s1 + $0x8e0] sm:$0xf0] }
 0x16d   :  { %3871 = vmatpush.bf16.msrb.mxu1 %v5367_v35  ;;  %v5523_v35 = vor.u32 %v7236_v15, %v5522_v14  ;;  %v5858_v14 = vld [vmem:[%s11158_s1 + $0x818] sm:$0xf]  ;;  %v7320_v15 = vld [vmem:[%s11158_s1 + $0x820] sm:$0xf0]  ;;  %v5750_v33 = vld [vmem:[%s11158_s1 + $0x740] sm:$0xf] }
 0x16e   :  { %3884 = vmatpush.bf16.msrb.mxu2 %v5463_v27  ;;  %v7185_v27 = vld [vmem:[%s11158_s1 + $0x3e8] sm:$0xf0]  ;;  %v5859_v22 = vor.u32 %v7320_v15, %v5858_v14 }
 0x16f   :  { %3897 = vmatpush.bf16.msrb.mxu3 %v5559_v29  ;;  %v7233_v29 = vld [vmem:[%s11158_s1 + $0x568] sm:$0xf0]  ;;  %v5319_v40 = vor.u32 %v7185_v27, %v5318_v25 }
 0x170   :  { %3859 = vmatpush.bf16.msrb.mxu0 %v5259_v42  ;;  %v5306_v42 = vld [vmem:[%s11158_s1 + $0x3c8] sm:$0xf]  ;;  %v5511_v46 = vor.u32 %v7233_v29, %v5510_v28  ;;  %v7269_v25 = vld [vmem:[%s11158_s1 + $0x688] sm:$0xf0]  ;;  %v5942_v28 = vld [vmem:[%s11158_s1 + $0x8c0] sm:$0xf] }
 0x171   :  { %3872 = vmatpush.bf16.msrb.mxu1 %v5355_v43  ;;  %v5402_v43 = vld [vmem:[%s11158_s1 + $0x488] sm:$0xf]  ;;  %v3646_v50 = vpop.f32.mrf.mxu3  ;;  %v7293_v27 = vld [vmem:[%s11158_s1 + $0x748] sm:$0xf0]  ;;  %v5655_v29 = vor.u32 %v7269_v25, %v5654_v23 }
 0x172   :  { %3885 = vmatpush.bf16.msrb.mxu2 %v5451_v44  ;;  %v3633_v44 = vpop.f32.mrf.mxu2 }
 0x173   :  { %3898 = vmatpush.bf16.msrb.mxu3 %v5547_v51  ;;  %v5678_v51 = vld [vmem:[%s11158_s1 + $0x6b0] sm:$0xf]  ;;  %v7338_v44 = vld [vmem:[%s11158_s1 + $0x8b0] sm:$0xf0] }
 0x174   :  { %3860 = vmatpush.bf16.msrb.mxu0 %v5247_v57  ;;  %v5307_v57 = vor.u32 %v7182_v53, %v5306_v42  ;;  %v5679_v63 = vor.u32 %v7275_v52, %v5678_v51  ;;  %v7314_v42 = vld [vmem:[%s11158_s1 + $0x7f0] sm:$0xf0]  ;;  %v5630_v51 = vld [vmem:[%s11158_s1 + $0x650] sm:$0xf]  ;;  %v7263_v52 = vld [vmem:[%s11158_s1 + $0x658] sm:$0xf0] }
 0x175   :  { %3873 = vmatpush.bf16.msrb.mxu1 %v5343_v58  ;;  %v5403_v58 = vor.u32 %v7206_v47, %v5402_v43  ;;  %v5930_v43 = vld [vmem:[%s11158_s1 + $0x8a8] sm:$0xf] }
 0x176   :  { %3886 = vmatpush.bf16.msrb.mxu2 %v5439_v59  ;;  %v5966_v59 = vld [vmem:[%s11158_s1 + $0x8f0] sm:$0xf] }
 0x177   :  { %3899 = vmatpush.bf16.msrb.mxu3 %v5535_v5  ;;  %v5871_v5 = vor.u32 %v7323_v56, %v5870_v3  ;;  %v5967_v10 = vor.u32 %v7347_v60, %v5966_v59  ;;  %v5822_v3 = vld [vmem:[%s11158_s1 + $0x7d0] sm:$0xf]  ;;  %v7311_v56 = vld [vmem:[%s11158_s1 + $0x7d8] sm:$0xf0]  ;;  %v5631_v59 = vor.u32 %v7263_v52, %v5630_v51  ;;  %v5727_v60 = vor.u32 %v7287_v9, %v5726_v54 }
 0x178   :  { %3861 = vmatpush.bf16.msrb.mxu0 %v5235_v16  ;;  %v5954_v16 = vld [vmem:[%s11158_s1 + $0x8d8] sm:$0xf]  ;;  %v6158_v51 = vld [vmem:[%s11158_s1 + $0xa70] sm:$0xf]  ;;  %v7419_v9 = vld [vmem:[%s11158_s1 + $0xb38] sm:$0xf0] }
 0x179   :  { %3874 = vmatpush.bf16.msrb.mxu1 %v5331_v20  ;;  %v5667_v20 = vor.u32 %v7272_v8, %v5666_v6 }
 0x17a   :  { %3887 = vmatpush.bf16.msrb.mxu2 %v5427_v21  ;;  %v5763_v21 = vor.u32 %v7296_v11, %v5762_v26  ;;  %v7284_v26 = vld [vmem:[%s11158_s1 + $0x700] sm:$0xf0] }
 0x17b   :  { %3900 = vmatpush.bf16.msrb.mxu3 %v5523_v35  ;;  %v5955_v35 = vor.u32 %v7344_v19, %v5954_v16  ;;  %v7308_v11 = vld [vmem:[%s11158_s1 + $0x7c0] sm:$0xf0]  ;;  %v5906_v16 = vld [vmem:[%s11158_s1 + $0x878] sm:$0xf] }
 0x17c   :  { %3862 = vmatpush.bf16.msrb.mxu0 %v5223_v34  ;;  %v5751_v34 = vor.u32 %v7293_v27, %v5750_v33  ;;  %v7332_v19 = vld [vmem:[%s11158_s1 + $0x880] sm:$0xf0]  ;;  %v7257_v27 = vld [vmem:[%s11158_s1 + $0x628] sm:$0xf0] }
 0x17d   :  { %3875 = vmatpush.bf16.msrb.mxu1 %v5319_v40  ;;  %v7266_v40 = vld [vmem:[%s11158_s1 + $0x670] sm:$0xf0]  ;;  %v5907_v37 = vor.u32 %v7332_v19, %v5906_v16 }
 0x17e   :  { %3888 = vmatpush.bf16.msrb.mxu2 %v5415_v41  ;;  %v5834_v41 = vld [vmem:[%s11158_s1 + $0x7e8] sm:$0xf]  ;;  %v5643_v47 = vor.u32 %v7266_v40, %v5642_v39 }
 0x17f   :  { %3901 = vmatpush.bf16.msrb.mxu3 %v5511_v46  ;;  %v5835_v50 = vor.u32 %v7314_v42, %v5834_v41  ;;  %v5594_v40 = vld [vmem:[%s11158_s1 + $0x608] sm:$0xf]  ;;  %v7278_v42 = vld [vmem:[%s11158_s1 + $0x6d0] sm:$0xf0] }
 0x180   :  { %3863 = vmatpush.bf16.msrb.mxu0 %v5211_v55  ;;  %v3657_v53 = vpop.f32.mrf.mxu0  ;;  %v5690_v41 = vld [vmem:[%s11158_s1 + $0x6c8] sm:$0xf] }
 0x181   :  { %3876 = vmatpush.bf16.msrb.mxu1 %v5307_v57  ;;  %v3658_v46 = vadd.f32 %v3657_v53, %v10024_v18  ;;  %v3670_v48 = vpop.f32.mrf.mxu1  ;;  %v5931_v18 = vor.u32 %v7338_v44, %v5930_v43  ;;  %v5918_v57 = vld [vmem:[%s11158_s1 + $0x890] sm:$0xf]  ;;  %v5786_v53 = vld [vmem:[%s11158_s1 + $0x788] sm:$0xf]  ;;  %v7302_v44 = vld [vmem:[%s11158_s1 + $0x790] sm:$0xf0] }
 0x182   :  { %3889 = vmatpush.bf16.msrb.mxu2 %v5403_v58  ;;  %v7335_v58 = vld [vmem:[%s11158_s1 + $0x898] sm:$0xf0] }
 0x183   :  { %3902 = vmatpush.bf16.msrb.mxu3 %v5499_v62  ;;  %3864 = vmatmul.bf16.vlgmr.msrb.gmra.mxu0 %v8069_v0  ;;  %v5738_v0 = vld [vmem:[%s11158_s1 + $0x728] sm:$0xf]  ;;  %v3671_v55 = vadd.f32 %v3670_v48, %v3658_v46  ;;  %v5823_v62 = vor.u32 %v7311_v56, %v5822_v3  ;;  %v5919_v6 = vor.u32 %v7335_v58, %v5918_v57  ;;  %v6350_v57 = vld [vmem:[%s11158_s1 + $0xbf0] sm:$0xf]  ;;  %v7443_v58 = vld [vmem:[%s11158_s1 + $0xbf8] sm:$0xf0] }
 0x184   :  { %3908 = vmatpush.bf16.msra.mxu0 %v5679_v63  ;;  %3877 = vmatmul.bf16.vlgmr.msrb.gmra.mxu1 %v8073_v2  ;;  %v7290_v2 = vld [vmem:[%s11158_s1 + $0x730] sm:$0xf0]  ;;  %v5618_v63 = vld [vmem:[%s11158_s1 + $0x638] sm:$0xf]  ;;  %v5882_v46 = vld [vmem:[%s11158_s1 + $0x848] sm:$0xf]  ;;  %v5691_v3 = vor.u32 %v7278_v42, %v5690_v41  ;;  %v5787_v56 = vor.u32 %v7302_v44, %v5786_v53 }
 0x185   :  { %3921 = vmatpush.bf16.msra.mxu1 %v5775_v4  ;;  %3890 = vmatmul.bf16.vlgmr.msrb.gmra.mxu2 %v8067_v61  ;;  %v7341_v61 = vld [vmem:[%s11158_s1 + $0x8c8] sm:$0xf0]  ;;  %v5739_v49 = vor.u32 %v7290_v2, %v5738_v0  ;;  %v7260_v4 = vld [vmem:[%s11158_s1 + $0x640] sm:$0xf0]  ;;  %v7254_v0 = vld [vmem:[%s11158_s1 + $0x610] sm:$0xf0] }
 0x186   :  { %3934 = vmatpush.bf16.msra.mxu2 %v5871_v5  ;;  %3903 = vmatmul.bf16.vlgmr.msrb.gmra.mxu3 %v8071_v1  ;;  %v5943_v1 = vor.u32 %v7341_v61, %v5942_v28  ;;  %v5714_v5 = vld [vmem:[%s11158_s1 + $0x6f8] sm:$0xf]  ;;  %v7281_v28 = vld [vmem:[%s11158_s1 + $0x6e8] sm:$0xf0]  ;;  %v5798_v61 = vld [vmem:[%s11158_s1 + $0x7a0] sm:$0xf]  ;;  %v5595_v54 = vor.u32 %v7254_v0, %v5594_v40 }
 0x187   :  { %3947 = vmatpush.bf16.msra.mxu3 %v5967_v10  ;;  %v5810_v10 = vld [vmem:[%s11158_s1 + $0x7b8] sm:$0xf]  ;;  %v5715_v25 = vor.u32 %v7284_v26, %v5714_v5  ;;  %v7368_v5 = vld [vmem:[%s11158_s1 + $0x9a0] sm:$0xf0]  ;;  %v7410_v40 = vld [vmem:[%s11158_s1 + $0xaf0] sm:$0xf0] }
 0x188   :  { %3909 = vmatpush.bf16.msra.mxu0 %v5667_v20  ;;  %v3683_v8 = vpop.f32.mrf.mxu2  ;;  %v3659_v20 = vpop.f32.mrf.mxu0  ;;  %v5811_v33 = vor.u32 %v7308_v11, %v5810_v10  ;;  %v7392_v26 = vld [vmem:[%s11158_s1 + $0xa60] sm:$0xf0]  ;;  %v6242_v10 = vld [vmem:[%s11158_s1 + $0xb18] sm:$0xf] }
 0x189   :  { %3922 = vmatpush.bf16.msra.mxu1 %v5763_v21  ;;  %v3684_v14 = vadd.f32 %v3683_v8, %v3671_v55  ;;  %v3696_v15 = vpop.f32.mrf.mxu3  ;;  %v5619_v21 = vor.u32 %v7260_v4, %v5618_v63  ;;  %v6254_v55 = vld [vmem:[%s11158_s1 + $0xb30] sm:$0xf]  ;;  %v6050_v4 = vld [vmem:[%s11158_s1 + $0x998] sm:$0xf]  ;;  %v6351_v8 = vor.u32 %v7443_v58, %v6350_v57  ;;  %v7416_v11 = vld [vmem:[%s11158_s1 + $0xb20] sm:$0xf0] }
 0x18a   :  { %3935 = vmatpush.bf16.msra.mxu2 %v5859_v22  ;;  %v3672_v22 = vpop.f32.mrf.mxu1  ;;  %v6255_v63 = vor.u32 %v7419_v9, %v6254_v55  ;;  %v6051_v16 = vor.u32 %v7368_v5, %v6050_v4  ;;  %v6243_v20 = vor.u32 %v7416_v11, %v6242_v10  ;;  %v7356_v57 = vld [vmem:[%s11158_s1 + $0x940] sm:$0xf0]  ;;  %v6098_v58 = vld [vmem:[%s11158_s1 + $0x9f8] sm:$0xf] }
 0x18b   :  { %3948 = vmatpush.bf16.msra.mxu3 %v5955_v35  ;;  %v10223_v23 = vadd.f32 %v3696_v15, %v3684_v14  ;;  %v5606_v35 = vld [vmem:[%s11158_s1 + $0x620] sm:$0xf]  ;;  %v6338_v14 = vld [vmem:[%s11158_s1 + $0xbd8] sm:$0xf]  ;;  %v7440_v15 = vld [vmem:[%s11158_s1 + $0xbe0] sm:$0xf0] }
 0x18c   :  { %3910 = vmatpush.bf16.msra.mxu0 %v5655_v29  ;;  %v7305_v29 = vld [vmem:[%s11158_s1 + $0x7a8] sm:$0xf0]  ;;  %v5607_v39 = vor.u32 %v7257_v27, %v5606_v35  ;;  %v6230_v27 = vld [vmem:[%s11158_s1 + $0xb00] sm:$0xf]  ;;  %v7404_v4 = vld [vmem:[%s11158_s1 + $0xac0] sm:$0xf0] }
 0x18d   :  { %3923 = vmatpush.bf16.msra.mxu1 %v5751_v34  ;;  %v5894_v34 = vld [vmem:[%s11158_s1 + $0x860] sm:$0xf]  ;;  %v5799_v2 = vor.u32 %v7305_v29, %v5798_v61  ;;  %v7365_v22 = vld [vmem:[%s11158_s1 + $0x988] sm:$0xf0] }
 0x18e   :  { %3936 = vmatpush.bf16.msra.mxu2 %v5847_v38  ;;  %v7329_v38 = vld [vmem:[%s11158_s1 + $0x868] sm:$0xf0] }
 0x18f   :  { %3949 = vmatpush.bf16.msra.mxu3 %v5943_v1  ;;  %v5703_v1 = vor.u32 %v7281_v28, %v5702_v36  ;;  %v5895_v43 = vor.u32 %v7329_v38, %v5894_v34  ;;  %v7389_v35 = vld [vmem:[%s11158_s1 + $0xa48] sm:$0xf0]  ;;  %v6122_v34 = vld [vmem:[%s11158_s1 + $0xa28] sm:$0xf]  ;;  %v7386_v38 = vld [vmem:[%s11158_s1 + $0xa30] sm:$0xf0] }
 0x190   :  { %3911 = vmatpush.bf16.msra.mxu0 %v5643_v47  ;;  %v7326_v47 = vld [vmem:[%s11158_s1 + $0x850] sm:$0xf0]  ;;  %v3685_v48 = vpop.f32.mrf.mxu2  ;;  %v7413_v36 = vld [vmem:[%s11158_s1 + $0xb08] sm:$0xf0] }
 0x191   :  { %3924 = vmatpush.bf16.msra.mxu1 %v5739_v49  ;;  %v6062_v49 = vld [vmem:[%s11158_s1 + $0x9b0] sm:$0xf]  ;;  %v3698_v52 = vpop.f32.mrf.mxu3  ;;  %v6231_v29 = vor.u32 %v7413_v36, %v6230_v27  ;;  %v7425_v27 = vld [vmem:[%s11158_s1 + $0xb68] sm:$0xf0] }
 0x192   :  { %3937 = vmatpush.bf16.msra.mxu2 %v5835_v50  ;;  %v7371_v50 = vld [vmem:[%s11158_s1 + $0x9b8] sm:$0xf0]  ;;  %v6110_v48 = vld [vmem:[%s11158_s1 + $0xa10] sm:$0xf] }
 0x193   :  { %3950 = vmatpush.bf16.msra.mxu3 %v5931_v18  ;;  %v7395_v18 = vld [vmem:[%s11158_s1 + $0xa78] sm:$0xf0] }
 0x194   :  { %3912 = vmatpush.bf16.msra.mxu0 %v5631_v59  ;;  %v5883_v59 = vor.u32 %v7326_v47, %v5882_v46  ;;  %v6014_v46 = vld [vmem:[%s11158_s1 + $0x950] sm:$0xf]  ;;  %v7359_v47 = vld [vmem:[%s11158_s1 + $0x958] sm:$0xf0] }
 0x195   :  { %3925 = vmatpush.bf16.msra.mxu1 %v5727_v60  ;;  %v6063_v60 = vor.u32 %v7371_v50, %v6062_v49  ;;  %v7383_v50 = vld [vmem:[%s11158_s1 + $0xa18] sm:$0xf0]  ;;  %v6015_v55 = vor.u32 %v7359_v47, %v6014_v46 }
 0x196   :  { %3938 = vmatpush.bf16.msra.mxu2 %v5823_v62  ;;  %v6159_v62 = vor.u32 %v7395_v18, %v6158_v51  ;;  %v6206_v51 = vld [vmem:[%s11158_s1 + $0xad0] sm:$0xf]  ;;  %v7407_v52 = vld [vmem:[%s11158_s1 + $0xad8] sm:$0xf0]  ;;  %v6111_v9 = vor.u32 %v7383_v50, %v6110_v48 }
 0x197   :  { %3951 = vmatpush.bf16.msra.mxu3 %v5919_v6  ;;  %v6146_v6 = vld [vmem:[%s11158_s1 + $0xa58] sm:$0xf]  ;;  %v7431_v18 = vld [vmem:[%s11158_s1 + $0xb98] sm:$0xf0]  ;;  %v6734_v48 = vld [vmem:[%s11158_s1 + $0xef0] sm:$0xf] }
 0x198   :  { %3913 = vmatpush.bf16.msra.mxu0 %v5619_v21  ;;  %v6147_v19 = vor.u32 %v7392_v26, %v6146_v6  ;;  %v6038_v21 = vld [vmem:[%s11158_s1 + $0x980] sm:$0xf]  ;;  %v6290_v6 = vld [vmem:[%s11158_s1 + $0xb78] sm:$0xf] }
 0x199   :  { %3926 = vmatpush.bf16.msra.mxu1 %v5715_v25  ;;  %v6134_v25 = vld [vmem:[%s11158_s1 + $0xa40] sm:$0xf]  ;;  %v6039_v28 = vor.u32 %v7365_v22, %v6038_v21  ;;  %v7377_v22 = vld [vmem:[%s11158_s1 + $0x9e8] sm:$0xf0] }
 0x19a   :  { %3939 = vmatpush.bf16.msra.mxu2 %v5811_v33  ;;  %v6339_v33 = vor.u32 %v7440_v15, %v6338_v14  ;;  %v6135_v61 = vor.u32 %v7389_v35, %v6134_v25  ;;  %v6182_v25 = vld [vmem:[%s11158_s1 + $0xaa0] sm:$0xf] }
 0x19b   :  { %3952 = vmatpush.bf16.msra.mxu3 %v5907_v37  ;;  %v7437_v37 = vld [vmem:[%s11158_s1 + $0xbc8] sm:$0xf0]  ;;  %v6278_v35 = vld [vmem:[%s11158_s1 + $0xb60] sm:$0xf] }
 0x19c   :  { %3914 = vmatpush.bf16.msra.mxu0 %v5607_v39  ;;  %v6218_v39 = vld [vmem:[%s11158_s1 + $0xae8] sm:$0xf] }
 0x19d   :  { %3927 = vmatpush.bf16.msra.mxu1 %v5703_v1  ;;  %v6314_v1 = vld [vmem:[%s11158_s1 + $0xba8] sm:$0xf]  ;;  %v6219_v44 = vor.u32 %v7410_v40, %v6218_v39  ;;  %v7422_v39 = vld [vmem:[%s11158_s1 + $0xb50] sm:$0xf0] }
 0x19e   :  { %3940 = vmatpush.bf16.msra.mxu2 %v5799_v2  ;;  %v7434_v2 = vld [vmem:[%s11158_s1 + $0xbb0] sm:$0xf0] }
 0x19f   :  { %3953 = vmatpush.bf16.msra.mxu3 %v5895_v43  ;;  %v6123_v43 = vor.u32 %v7386_v38, %v6122_v34  ;;  %v6279_v34 = vor.u32 %v7425_v27, %v6278_v35  ;;  %v6266_v38 = vld [vmem:[%s11158_s1 + $0xb48] sm:$0xf]  ;;  %v7506_v27 = vld [vmem:[%s11158_s1 + $0xdf0] sm:$0xf0] }
 0x1a0   :  { %3915 = vmatpush.bf16.msra.mxu0 %v5595_v54  ;;  %v3709_v0 = vpop.f32.mrf.mxu0  ;;  %v6302_v54 = vld [vmem:[%s11158_s1 + $0xb90] sm:$0xf]  ;;  %v6267_v50 = vor.u32 %v7422_v39, %v6266_v38  ;;  %v6602_v35 = vld [vmem:[%s11158_s1 + $0xde8] sm:$0xf]  ;;  %v7479_v39 = vld [vmem:[%s11158_s1 + $0xd18] sm:$0xf0] }
 0x1a1   :  { %3928 = vmatpush.bf16.msra.mxu1 %v5691_v3  ;;  %v3710_v41 = vadd.f32 %v3709_v0, %v10223_v23  ;;  %v3722_v53 = vpop.f32.mrf.mxu1  ;;  %v6315_v23 = vor.u32 %v7434_v2, %v6314_v1  ;;  %v6207_v3 = vor.u32 %v7407_v52, %v6206_v51  ;;  %v6446_v0 = vld [vmem:[%s11158_s1 + $0xcb0] sm:$0xf]  ;;  %v7467_v1 = vld [vmem:[%s11158_s1 + $0xcb8] sm:$0xf0] }
 0x1a2   :  { %3941 = vmatpush.bf16.msra.mxu2 %v5787_v56  ;;  %v6002_v56 = vld [vmem:[%s11158_s1 + $0x938] sm:$0xf]  ;;  %v6542_v2 = vld [vmem:[%s11158_s1 + $0xd70] sm:$0xf]  ;;  %v6447_v51 = vor.u32 %v7467_v1, %v6446_v0  ;;  %v7503_v0 = vld [vmem:[%s11158_s1 + $0xdd8] sm:$0xf0] }
 0x1a3   :  { %3954 = vmatpush.bf16.msra.mxu3 %v5883_v59  ;;  %3916 = vmatmul.bf16.vlgmr.msra.gmra.mxu0 %v8307_v7  ;;  %v6326_v7 = vld [vmem:[%s11158_s1 + $0xbc0] sm:$0xf]  ;;  %v10383_v49 = vadd.f32 %v3722_v53, %v3710_v41  ;;  %v6303_v59 = vor.u32 %v7431_v18, %v6302_v54  ;;  %v6003_v10 = vor.u32 %v7356_v57, %v6002_v56  ;;  %v7491_v53 = vld [vmem:[%s11158_s1 + $0xd78] sm:$0xf0]  ;;  %v6434_v18 = vld [vmem:[%s11158_s1 + $0xc98] sm:$0xf] }
 0x1a4   :  { %3960 = vmatpush.bf16.msrb.mxu0 %v6063_v60  ;;  %3929 = vmatmul.bf16.vlgmr.msra.gmra.mxu1 %v8320_v13  ;;  %v7362_v13 = vld [vmem:[%s11158_s1 + $0x970] sm:$0xf0]  ;;  %v6543_v52 = vor.u32 %v7491_v53, %v6542_v2  ;;  %v7488_v56 = vld [vmem:[%s11158_s1 + $0xd60] sm:$0xf0]  ;;  %v6626_v57 = vld [vmem:[%s11158_s1 + $0xe18] sm:$0xf] }
 0x1a5   :  { %3973 = vmatpush.bf16.msrb.mxu1 %v6159_v62  ;;  %3942 = vmatmul.bf16.vlgmr.msra.gmra.mxu2 %v8318_v12  ;;  %v6026_v12 = vld [vmem:[%s11158_s1 + $0x968] sm:$0xf]  ;;  %v7380_v62 = vld [vmem:[%s11158_s1 + $0xa00] sm:$0xf0]  ;;  %v6686_v1 = vld [vmem:[%s11158_s1 + $0xe90] sm:$0xf] }
 0x1a6   :  { %3986 = vmatpush.bf16.msrb.mxu2 %v6255_v63  ;;  %3955 = vmatmul.bf16.vlgmr.msra.gmra.mxu3 %v8331_v17  ;;  %v6327_v17 = vor.u32 %v7437_v37, %v6326_v7  ;;  %v6027_v42 = vor.u32 %v7362_v13, %v6026_v12  ;;  %v6194_v63 = vld [vmem:[%s11158_s1 + $0xab8] sm:$0xf]  ;;  %v6099_v14 = vor.u32 %v7380_v62, %v6098_v58  ;;  %v5978_v7 = vld [vmem:[%s11158_s1 + $0x908] sm:$0xf]  ;;  %v7350_v37 = vld [vmem:[%s11158_s1 + $0x910] sm:$0xf0] }
 0x1a7   :  { %3999 = vmatpush.bf16.msrb.mxu3 %v6351_v8  ;;  %v7428_v8 = vld [vmem:[%s11158_s1 + $0xb80] sm:$0xf0]  ;;  %v6195_v15 = vor.u32 %v7404_v4, %v6194_v63  ;;  %v7374_v12 = vld [vmem:[%s11158_s1 + $0x9d0] sm:$0xf0]  ;;  %v6170_v13 = vld [vmem:[%s11158_s1 + $0xa88] sm:$0xf] }
 0x1a8   :  { %3961 = vmatpush.bf16.msrb.mxu0 %v6051_v16  ;;  %v10409_v60 = vpop.f32.mrf.mxu2  ;;  %v3711_v26 = vpop.f32.mrf.mxu0  ;;  %v5990_v16 = vld [vmem:[%s11158_s1 + $0x920] sm:$0xf]  ;;  %v6291_v21 = vor.u32 %v7428_v8, %v6290_v6  ;;  %v7512_v58 = vld [vmem:[%s11158_s1 + $0xe20] sm:$0xf0]  ;;  %v7527_v2 = vld [vmem:[%s11158_s1 + $0xe98] sm:$0xf0] }
 0x1a9   :  { %3974 = vmatpush.bf16.msrb.mxu1 %v6147_v19  ;;  %v10420_v5 = vpop.f32.mrf.mxu3  ;;  %v3724_v11 = vpop.f32.mrf.mxu1  ;;  %v7353_v19 = vld [vmem:[%s11158_s1 + $0x928] sm:$0xf0]  ;;  %v7536_v62 = vld [vmem:[%s11158_s1 + $0xee0] sm:$0xf0]  ;;  %v6627_v6 = vor.u32 %v7512_v58, %v6626_v57  ;;  %v6422_v8 = vld [vmem:[%s11158_s1 + $0xc80] sm:$0xf] }
 0x1aa   :  { %3987 = vmatpush.bf16.msrb.mxu2 %v6243_v20  ;;  %v6086_v20 = vld [vmem:[%s11158_s1 + $0x9e0] sm:$0xf]  ;;  %v5991_v36 = vor.u32 %v7353_v19, %v5990_v16  ;;  %v7461_v26 = vld [vmem:[%s11158_s1 + $0xc88] sm:$0xf0] }
 0x1ab   :  { %4000 = vmatpush.bf16.msrb.mxu3 %v6339_v33  ;;  %v7401_v33 = vld [vmem:[%s11158_s1 + $0xaa8] sm:$0xf0]  ;;  %v6374_v58 = vld [vmem:[%s11158_s1 + $0xc20] sm:$0xf] }
 0x1ac   :  { %3962 = vmatpush.bf16.msrb.mxu0 %v6039_v28  ;;  %v6087_v28 = vor.u32 %v7377_v22, %v6086_v20  ;;  %v7509_v16 = vld [vmem:[%s11158_s1 + $0xe08] sm:$0xf0]  ;;  %v6423_v20 = vor.u32 %v7461_v26, %v6422_v8  ;;  %v6662_v26 = vld [vmem:[%s11158_s1 + $0xe60] sm:$0xf] }
 0x1ad   :  { %3975 = vmatpush.bf16.msrb.mxu1 %v6135_v61  ;;  %v6183_v61 = vor.u32 %v7401_v33, %v6182_v25  ;;  %v7533_v19 = vld [vmem:[%s11158_s1 + $0xec8] sm:$0xf0]  ;;  %v6506_v25 = vld [vmem:[%s11158_s1 + $0xd28] sm:$0xf]  ;;  %v7482_v33 = vld [vmem:[%s11158_s1 + $0xd30] sm:$0xf0] }
 0x1ae   :  { %3988 = vmatpush.bf16.msrb.mxu2 %v6231_v29  ;;  %v6074_v29 = vld [vmem:[%s11158_s1 + $0x9c8] sm:$0xf]  ;;  %v7497_v8 = vld [vmem:[%s11158_s1 + $0xda8] sm:$0xf0] }
 0x1af   :  { %4001 = vmatpush.bf16.msrb.mxu3 %v6327_v17  ;;  %v7398_v17 = vld [vmem:[%s11158_s1 + $0xa90] sm:$0xf0]  ;;  %v6075_v46 = vor.u32 %v7374_v12, %v6074_v29  ;;  %v6507_v29 = vor.u32 %v7482_v33, %v6506_v25  ;;  %v6603_v12 = vor.u32 %v7506_v27, %v6602_v35  ;;  %v6822_v33 = vld [vmem:[%s11161_s3 + $0xa8] sm:$0xf] }
 0x1b0   :  { %3963 = vmatpush.bf16.msrb.mxu0 %v6027_v42  ;;  %v3737_v40 = vpop.f32.mrf.mxu2  ;;  %v5979_v42 = vor.u32 %v7350_v37, %v5978_v7  ;;  %v6171_v47 = vor.u32 %v7398_v17, %v6170_v13  ;;  %v6698_v7 = vld [vmem:[%s11158_s1 + $0xea8] sm:$0xf]  ;;  %v7530_v37 = vld [vmem:[%s11158_s1 + $0xeb0] sm:$0xf0]  ;;  %v6398_v13 = vld [vmem:[%s11158_s1 + $0xc50] sm:$0xf] }
 0x1b1   :  { %3976 = vmatpush.bf16.msrb.mxu1 %v6123_v43  ;;  %v3750_v41 = vpop.f32.mrf.mxu3  ;;  %v6638_v43 = vld [vmem:[%s11158_s1 + $0xe30] sm:$0xf]  ;;  %v6699_v38 = vor.u32 %v7530_v37, %v6698_v7  ;;  %v7518_v25 = vld [vmem:[%s11158_s1 + $0xe50] sm:$0xf0]  ;;  %v6918_v27 = vld [vmem:[%s11161_s3 + $0x168] sm:$0xf] }
 0x1b2   :  { %3989 = vmatpush.bf16.msrb.mxu2 %v6219_v44  ;;  %v7515_v44 = vld [vmem:[%s11158_s1 + $0xe38] sm:$0xf0]  ;;  %v6494_v17 = vld [vmem:[%s11158_s1 + $0xd10] sm:$0xf]  ;;  %v7562_v35 = vld [vmem:[%s11161_s3 + $0xb0] sm:$0xf0] }
 0x1b3   :  { %4002 = vmatpush.bf16.msrb.mxu3 %v6315_v23  ;;  %v7539_v23 = vld [vmem:[%s11158_s1 + $0xef8] sm:$0xf0]  ;;  %v6639_v54 = vor.u32 %v7515_v44, %v6638_v43  ;;  %v6590_v40 = vld [vmem:[%s11158_s1 + $0xdd0] sm:$0xf]  ;;  %v6386_v43 = vld [vmem:[%s11158_s1 + $0xc38] sm:$0xf] }
 0x1b4   :  { %3964 = vmatpush.bf16.msrb.mxu0 %v6015_v55  ;;  %v7464_v55 = vld [vmem:[%s11158_s1 + $0xca0] sm:$0xf0]  ;;  %v6591_v53 = vor.u32 %v7503_v0, %v6590_v40  ;;  %v6810_v0 = vld [vmem:[%s11161_s3 + $0x90] sm:$0xf] }
 0x1b5   :  { %3977 = vmatpush.bf16.msrb.mxu1 %v6111_v9  ;;  %v6530_v9 = vld [vmem:[%s11158_s1 + $0xd58] sm:$0xf]  ;;  %v6435_v63 = vor.u32 %v7464_v55, %v6434_v18  ;;  %v7452_v44 = vld [vmem:[%s11158_s1 + $0xc40] sm:$0xf0] }
 0x1b6   :  { %3990 = vmatpush.bf16.msrb.mxu2 %v6207_v3  ;;  %v6735_v3 = vor.u32 %v7539_v23, %v6734_v48  ;;  %v6531_v4 = vor.u32 %v7488_v56, %v6530_v9  ;;  %v7476_v23 = vld [vmem:[%s11158_s1 + $0xd00] sm:$0xf0]  ;;  %v6387_v9 = vor.u32 %v7452_v44, %v6386_v43 }
 0x1b7   :  { %4003 = vmatpush.bf16.msrb.mxu3 %v6303_v59  ;;  %v6722_v59 = vld [vmem:[%s11158_s1 + $0xed8] sm:$0xf]  ;;  %v7524_v18 = vld [vmem:[%s11158_s1 + $0xe80] sm:$0xf0] }
 0x1b8   :  { %3965 = vmatpush.bf16.msrb.mxu0 %v6003_v10  ;;  %v6518_v10 = vld [vmem:[%s11158_s1 + $0xd40] sm:$0xf]  ;;  %v6723_v11 = vor.u32 %v7536_v62, %v6722_v59  ;;  %v7449_v59 = vld [vmem:[%s11158_s1 + $0xc28] sm:$0xf0] }
 0x1b9   :  { %3978 = vmatpush.bf16.msrb.mxu1 %v6099_v14  ;;  %v7485_v14 = vld [vmem:[%s11158_s1 + $0xd48] sm:$0xf0]  ;;  %v6470_v62 = vld [vmem:[%s11158_s1 + $0xce0] sm:$0xf] }
 0x1ba   :  { %3991 = vmatpush.bf16.msrb.mxu2 %v6195_v15  ;;  %v6614_v15 = vld [vmem:[%s11158_s1 + $0xe00] sm:$0xf] }
 0x1bb   :  { %4004 = vmatpush.bf16.msrb.mxu3 %v6291_v21  ;;  %v6519_v21 = vor.u32 %v7485_v14, %v6518_v10  ;;  %v6615_v22 = vor.u32 %v7509_v16, %v6614_v15  ;;  %v7521_v10 = vld [vmem:[%s11158_s1 + $0xe68] sm:$0xf0]  ;;  %v6362_v14 = vld [vmem:[%s11158_s1 + $0xc08] sm:$0xf]  ;;  %v7446_v15 = vld [vmem:[%s11158_s1 + $0xc10] sm:$0xf0] }
 0x1bc   :  { %3966 = vmatpush.bf16.msrb.mxu0 %v5991_v36  ;;  %v6363_v37 = vor.u32 %v7446_v15, %v6362_v14  ;;  %v6788_v14 = vld [vmem:[%s11161_s3 + $0x6c] sm:$0xf0] }
 0x1bd   :  { %3979 = vmatpush.bf16.msrb.mxu1 %v6087_v28 }
 0x1be   :  { %3992 = vmatpush.bf16.msrb.mxu2 %v6183_v61 }
 0x1bf   :  { %4005 = vmatpush.bf16.msrb.mxu3 %v6279_v34  ;;  %v7455_v34 = vld [vmem:[%s11158_s1 + $0xc58] sm:$0xf0] }
 0x1c0   :  { %3967 = vmatpush.bf16.msrb.mxu0 %v5979_v42  ;;  %v10570_v36 = vpop.f32.mrf.mxu0  ;;  %v6399_v41 = vor.u32 %v7455_v34, %v6398_v13  ;;  %v6495_v42 = vor.u32 %v7479_v39, %v6494_v17 }
 0x1c1   :  { %3980 = vmatpush.bf16.msrb.mxu1 %v6075_v46  ;;  %v10578_v61 = vpop.f32.mrf.mxu1  ;;  %v6482_v46 = vld [vmem:[%s11158_s1 + $0xcf8] sm:$0xf] }
 0x1c2   :  { %3993 = vmatpush.bf16.msrb.mxu2 %v6171_v47  ;;  %v6687_v47 = vor.u32 %v7527_v2, %v6686_v1  ;;  %v6483_v56 = vor.u32 %v7476_v23, %v6482_v46  ;;  %v7559_v1 = vld [vmem:[%s11161_s3 + $0x98] sm:$0xf0]  ;;  %v6906_v2 = vld [vmem:[%s11161_s3 + $0x150] sm:$0xf]  ;;  %v7556_v23 = vld [vmem:[%s11161_s3 + $0x80] sm:$0xf0] }
 0x1c3   :  { %4006 = vmatpush.bf16.msrb.mxu3 %v6267_v50  ;;  %3968 = vmatmul.bf16.vlgmr.msrb.gmra.mxu0 %v8348_v24  ;;  %v6710_v24 = vld [vmem:[%s11158_s1 + $0xec0] sm:$0xf]  ;;  %v6578_v50 = vld [vmem:[%s11158_s1 + $0xdb8] sm:$0xf]  ;;  %v6811_v43 = vor.u32 %v7559_v1, %v6810_v0 }
 0x1c4   :  { %4012 = vmatpush.bf16.msra.mxu0 %v6447_v51  ;;  %3981 = vmatmul.bf16.vlgmr.msrb.gmra.mxu1 %v8352_v31  ;;  %v7458_v31 = vld [vmem:[%s11158_s1 + $0xc70] sm:$0xf0]  ;;  %v7500_v51 = vld [vmem:[%s11158_s1 + $0xdc0] sm:$0xf0] }
 0x1c5   :  { %4025 = vmatpush.bf16.msra.mxu1 %v6543_v52  ;;  %3994 = vmatmul.bf16.vlgmr.msrb.gmra.mxu2 %v8350_v30  ;;  %v6410_v30 = vld [vmem:[%s11158_s1 + $0xc68] sm:$0xf]  ;;  %v6579_v57 = vor.u32 %v7500_v51, %v6578_v50  ;;  %v6894_v50 = vld [vmem:[%s11161_s3 + $0x138] sm:$0xf]  ;;  %v7626_v51 = vld [vmem:[#allocation1] sm:$0xff] }
 0x1c6   :  { %4038 = vmatpush.bf16.msra.mxu2 %v6639_v54  ;;  %4007 = vmatmul.bf16.vlgmr.msrb.gmra.mxu3 %v8354_v32  ;;  %v6711_v32 = vor.u32 %v7533_v19, %v6710_v24  ;;  %v6411_v28 = vor.u32 %v7458_v31, %v6410_v30  ;;  %v6674_v54 = vld [vmem:[%s11158_s1 + $0xe78] sm:$0xf]  ;;  %v6458_v19 = vld [vmem:[%s11158_s1 + $0xcc8] sm:$0xf]  ;;  %v7494_v30 = vld [vmem:[%s11158_s1 + $0xd90] sm:$0xf0] }
 0x1c7   :  { %4051 = vmatpush.bf16.msra.mxu3 %v6735_v3  ;;  %v6650_v31 = vld [vmem:[%s11158_s1 + $0xe48] sm:$0xf] }
 0x1c8   :  { %4013 = vmatpush.bf16.msra.mxu0 %v6435_v63  ;;  %v10613_v48 = vpop.f32.mrf.mxu2  ;;  %v3763_v55 = vpop.f32.mrf.mxu0  ;;  %v6675_v63 = vor.u32 %v7524_v18, %v6674_v54  ;;  %v6651_v17 = vor.u32 %v7518_v25, %v6650_v31  ;;  %v7627_v54 = vld [vmem:[#allocation1 + $0x9] sm:$0xff]  ;;  %v7580_v18 = vld [vmem:[%s11161_s3 + $0x140] sm:$0xf0]  ;;  %v7574_v31 = vld [vmem:[%s11161_s3 + $0x110] sm:$0xf0] }
 0x1c9   :  { %4026 = vmatpush.bf16.msra.mxu1 %v6531_v4  ;;  %v10624_v52 = vpop.f32.mrf.mxu3  ;;  %v3776_v3 = vpop.f32.mrf.mxu1  ;;  %v7473_v4 = vld [vmem:[%s11158_s1 + $0xce8] sm:$0xf0]  ;;  %v7555_v55 = vld [vmem:[%s11161_s3 + $0x7c] sm:$0xf] }
 0x1ca   :  { %4039 = vmatpush.bf16.msra.mxu2 %v6627_v6  ;;  %v6566_v6 = vld [vmem:[%s11158_s1 + $0xda0] sm:$0xf]  ;;  %v6471_v16 = vor.u32 %v7473_v4, %v6470_v62  ;;  %v7628_v3 = vld [vmem:[#allocation1 + $0x12] sm:$0xff]  ;;  %v7549_v25 = vld [vmem:[%s11161_s3 + $0x4c] sm:$0xf] }
 0x1cb   :  { %4052 = vmatpush.bf16.msra.mxu3 %v6723_v11  ;;  %v6375_v11 = vor.u32 %v7449_v59, %v6374_v58  ;;  %v6567_v24 = vor.u32 %v7497_v8, %v6566_v6  ;;  %v6786_v58 = vld [vmem:[%s11161_s3 + $0x60] sm:$0xf]  ;;  %v6895_v59 = vor.u32 %v7580_v18, %v6894_v50  ;;  %v7541_v18 = vld [vmem:[%s11161_s3 + $0x8] sm:$0xf0] }
 0x1cc   :  { %4014 = vmatpush.bf16.msra.mxu0 %v6423_v20  ;;  %v7470_v20 = vld [vmem:[%s11158_s1 + $0xcd0] sm:$0xf0]  ;;  %v6882_v4 = vld [vmem:[%s11161_s3 + $0x120] sm:$0xf] }
 0x1cd   :  { %4027 = vmatpush.bf16.msra.mxu1 %v6519_v21  ;;  %v6554_v21 = vld [vmem:[%s11158_s1 + $0xd88] sm:$0xf]  ;;  %v6459_v13 = vor.u32 %v7470_v20, %v6458_v19  ;;  %v7630_v6 = vld [vmem:[%s11160_s2] sm:$0x7] }
 0x1ce   :  { %4040 = vmatpush.bf16.msra.mxu2 %v6615_v22  ;;  %v6663_v22 = vor.u32 %v7521_v10, %v6662_v26  ;;  %v6555_v34 = vor.u32 %v7494_v30, %v6554_v21  ;;  %v674_v8 = vperm.slane %v7630_v6, 2  ;;  %v3736_v26 = vadd.f32 %v10409_v60, %v10383_v49  ;;  %v7577_v10 = vld [vmem:[%s11161_s3 + $0x128] sm:$0xf0]  ;;  %v6774_v49 = vld [vmem:[%s11161_s3 + $0x48] sm:$0xf] }
 0x1cf   :  { %4053 = vmatpush.bf16.msra.mxu3 %v6711_v32  ;;  %v7550_v60 = vld [vmem:[%s11161_s3 + $0x50] sm:$0xf0]  ;;  %v6870_v20 = vld [vmem:[%s11161_s3 + $0x108] sm:$0xf] }
 0x1d0   :  { %4015 = vmatpush.bf16.msra.mxu0 %v6411_v28  ;;  %v3789_v32 = vpop.f32.mrf.mxu2  ;;  %v7586_v28 = vld [vmem:[%s11161_s3 + $0x170] sm:$0xf0]  ;;  %v3749_v30 = vadd.f32 %v10420_v5, %v3736_v26  ;;  %v6871_v5 = vor.u32 %v7574_v31, %v6870_v20  ;;  %v7551_v31 = vld [vmem:[%s11161_s3 + $0x58] sm:$0xf0] }
 0x1d1   :  { %4028 = vmatpush.bf16.msra.mxu1 %v6507_v29  ;;  %v3802_v7 = vpop.f32.mrf.mxu3  ;;  %v7561_v29 = vld [vmem:[%s11161_s3 + $0xac] sm:$0xf]  ;;  %v6919_v39 = vor.u32 %v7586_v28, %v6918_v27  ;;  %v6776_v32 = vld [vmem:[%s11161_s3 + $0x54] sm:$0xf0]  ;;  %v6775_v27 = vor.u32 %v7550_v60, %v6774_v49  ;;  %v7547_v28 = vld [vmem:[%s11161_s3 + $0x38] sm:$0xf0] }
 0x1d2   :  { %4041 = vmatpush.bf16.msra.mxu2 %v6603_v12  ;;  %v6824_v12 = vld [vmem:[%s11161_s3 + $0xb4] sm:$0xf0]  ;;  %v6779_v7 = vor.u32 %v7549_v25, %v6776_v32  ;;  %v6794_v60 = vld [vmem:[%s11161_s3 + $0x68] sm:$0xf]  ;;  %v7554_v20 = vld [vmem:[%s11161_s3 + $0x70] sm:$0xf0] }
 0x1d3   :  { %4054 = vmatpush.bf16.msra.mxu3 %v6699_v38  ;;  %v6823_v38 = vor.u32 %v7562_v35, %v6822_v33  ;;  %v6827_v40 = vor.u32 %v7561_v29, %v6824_v12  ;;  %v3762_v35 = vadd.f32 %v10570_v36, %v3749_v30  ;;  %v6858_v29 = vld [vmem:[%s11161_s3 + $0xf0] sm:$0xf]  ;;  %v7571_v36 = vld [vmem:[%s11161_s3 + $0xf8] sm:$0xf0] }
 0x1d4   :  { %4016 = vmatpush.bf16.msra.mxu0 %v6399_v41  ;;  %v7583_v41 = vld [vmem:[%s11161_s3 + $0x158] sm:$0xf0]  ;;  %v6782_v30 = vld [vmem:[%s11161_s3 + $0x50] sm:$0xf] }
 0x1d5   :  { %4029 = vmatpush.bf16.msra.mxu1 %v6495_v42  ;;  %v7558_v42 = vld [vmem:[%s11161_s3 + $0x94] sm:$0xf]  ;;  %v6907_v44 = vor.u32 %v7583_v41, %v6906_v2  ;;  %v6859_v2 = vor.u32 %v7571_v36, %v6858_v29 }
 0x1d6   :  { %4042 = vmatpush.bf16.msra.mxu2 %v6591_v53  ;;  %v6812_v53 = vld [vmem:[%s11161_s3 + $0x9c] sm:$0xf0] }
 0x1d7   :  { %4055 = vmatpush.bf16.msra.mxu3 %v6687_v47  ;;  %v6815_v46 = vor.u32 %v7558_v42, %v6812_v53  ;;  %v6798_v47 = vld [vmem:[%s11161_s3 + $0x78] sm:$0xf]  ;;  %v7544_v53 = vld [vmem:[%s11161_s3 + $0x20] sm:$0xf0] }
 0x1d8   :  { %4017 = vmatpush.bf16.msra.mxu0 %v6387_v9  ;;  %v6800_v9 = vld [vmem:[%s11161_s3 + $0x84] sm:$0xf0]  ;;  %v6750_v42 = vld [vmem:[%s11161_s3 + $0x18] sm:$0xf] }
 0x1d9   :  { %4030 = vmatpush.bf16.msra.mxu1 %v6483_v56  ;;  %v7629_v56 = vld [vmem:[#allocation1 + $0x1b] sm:$0xff]  ;;  %v6803_v62 = vor.u32 %v7555_v55, %v6800_v9  ;;  %v6751_v50 = vor.u32 %v7544_v53, %v6750_v42 }
 0x1da   :  { %4043 = vmatpush.bf16.msra.mxu2 %v6579_v57  ;;  %v6799_v57 = vor.u32 %v7556_v23, %v6798_v47  ;;  %v7543_v47 = vld [vmem:[%s11161_s3 + $0x1c] sm:$0xf]  ;;  %v6752_v23 = vld [vmem:[%s11161_s3 + $0x24] sm:$0xf0]  ;;  %v6834_v55 = vld [vmem:[%s11161_s3 + $0xc0] sm:$0xf] }
 0x1db   :  { %4056 = vmatpush.bf16.msra.mxu3 %v6675_v63  ;;  %v7553_v63 = vld [vmem:[%s11161_s3 + $0x68] sm:$0xf0] }
 0x1dc   :  { %4018 = vmatpush.bf16.msra.mxu0 %v6375_v11  ;;  %v7552_v11 = vld [vmem:[%s11161_s3 + $0x64] sm:$0xf]  ;;  %v6787_v15 = vor.u32 %v7553_v63, %v6786_v58  ;;  %v6740_v58 = vld [vmem:[%s11161_s3 + $0xc] sm:$0xf0] }
 0x1dd   :  { %4031 = vmatpush.bf16.msra.mxu1 %v6471_v16  ;;  %v6791_v19 = vor.u32 %v7552_v11, %v6788_v14  ;;  %v6818_v11 = vld [vmem:[%s11161_s3 + $0x98] sm:$0xf]  ;;  %v7560_v14 = vld [vmem:[%s11161_s3 + $0xa0] sm:$0xf0] }
 0x1de   :  { %4044 = vmatpush.bf16.msra.mxu2 %v6567_v24  ;;  %v6883_v24 = vor.u32 %v7577_v10, %v6882_v4  ;;  %v4064_v4 = vmax.f32 %v9628_v45, 0.0  ;;  %v6819_v45 = vor.u32 %v7560_v14, %v6818_v11  ;;  %v6932_v11 = vld [vmem:[%s11161_s3 + $0x18c] sm:$0xf0] }
 0x1df   :  { %4057 = vmatpush.bf16.msra.mxu3 %v6663_v22 }
 0x1e0   :  { %4019 = vmatpush.bf16.msra.mxu0 %v6363_v37  ;;  %v3813_v16 = vpop.f32.mrf.mxu0  ;;  %v6762_v37 = vld [vmem:[%s11161_s3 + $0x30] sm:$0xf] }
 0x1e1   :  { %4032 = vmatpush.bf16.msra.mxu1 %v6459_v13  ;;  %v3814_v21 = vadd.f32 %v3813_v16, %v674_v8  ;;  %v3826_v22 = vpop.f32.mrf.mxu1  ;;  %v7546_v13 = vld [vmem:[%s11161_s3 + $0x34] sm:$0xf] }
 0x1e2   :  { %4045 = vmatpush.bf16.msra.mxu2 %v6555_v34  ;;  %v6764_v34 = vld [vmem:[%s11161_s3 + $0x3c] sm:$0xf0] }
 0x1e3   :  { %4058 = vmatpush.bf16.msra.mxu3 %v6651_v17  ;;  %4020 = vmatmul.bf16.vlgmr.msra.gmra.mxu0 %v7626_v51  ;;  %v3827_v33 = vadd.f32 %v3826_v22, %v3814_v21  ;;  %v6767_v41 = vor.u32 %v7546_v13, %v6764_v34  ;;  %v6795_v21 = vor.u32 %v7554_v20, %v6794_v60  ;;  %v6758_v13 = vld [vmem:[%s11161_s3 + $0x20] sm:$0xf]  ;;  %v7545_v34 = vld [vmem:[%s11161_s3 + $0x28] sm:$0xf0]  ;;  %v7587_v60 = vld [vmem:[%s11161_s3 + $0x178] sm:$0xf0] }
 0x1e4   :  { %4482 = vmatpush.bf16.msrb.mxu0 %v6823_v38  ;;  %4033 = vmatmul.bf16.vlgmr.msra.gmra.mxu1 %v7627_v54  ;;  %v6755_v54 = vor.u32 %v7543_v47, %v6752_v23  ;;  %v7597_v47 = vld [vmem:[%s11161_s3 + $0x1cc] sm:$0xf]  ;;  %v6974_v20 = vld [vmem:[%s11161_s3 + $0x1d0] sm:$0xf] }
 0x1e5   :  { %4495 = vmatpush.bf16.msrb.mxu1 %v6919_v39  ;;  %4046 = vmatmul.bf16.vlgmr.msra.gmra.mxu2 %v7628_v3  ;;  %v3775_v39 = vadd.f32 %v10578_v61, %v3762_v35  ;;  %v6846_v61 = vld [vmem:[%s11161_s3 + $0xd8] sm:$0xf]  ;;  %v6783_v35 = vor.u32 %v7551_v31, %v6782_v30 }
 0x1e6   :  { %4059 = vmatmul.bf16.vlgmr.msra.gmra.mxu3 %v7629_v56  ;;  %v7565_v56 = vld [vmem:[%s11161_s3 + $0xc8] sm:$0xf0] }
 0x1e7   :  { %4521 = vmatpush.bf16.msrb.mxu3 %v6827_v40  ;;  %v6763_v40 = vor.u32 %v7547_v28, %v6762_v37  ;;  %v6835_v6 = vor.u32 %v7565_v56, %v6834_v55  ;;  %v7594_v55 = vld [vmem:[%s11161_s3 + $0x1b4] sm:$0xf]  ;;  %v6942_v56 = vld [vmem:[%s11161_s3 + $0x198] sm:$0xf] }
 0x1e8   :  { %4483 = vmatpush.bf16.msrb.mxu0 %v6811_v43  ;;  %v3839_v12 = vpop.f32.mrf.mxu2  ;;  %v3815_v1 = vpop.f32.mrf.mxu0 }
 0x1e9   :  { %4496 = vmatpush.bf16.msrb.mxu1 %v6907_v44  ;;  %v3840_v17 = vadd.f32 %v3839_v12, %v3827_v33  ;;  %v3852_v38 = vpop.f32.mrf.mxu3  ;;  %v3828_v43 = vpop.f32.mrf.mxu1  ;;  %v3788_v44 = vadd.f32 %v10613_v48, %v3775_v39  ;;  %v6738_v48 = vld [vmem:[%s11161_s3] sm:$0xf]  ;;  %v6746_v39 = vld [vmem:[%s11161_s3 + $0x8] sm:$0xf] }
 0x1ea   :  { %v6739_v63 = vor.u32 %v7541_v18, %v6738_v48  ;;  %v6954_v48 = vld [vmem:[%s11161_s3 + $0x1b0] sm:$0xf]  ;;  %v7595_v18 = vld [vmem:[%s11161_s3 + $0x1b8] sm:$0xf0] }
 0x1eb   :  { %4522 = vmatpush.bf16.msrb.mxu3 %v6815_v46  ;;  %v10796_v0 = vadd.f32 %v3852_v38, %v3840_v17  ;;  %v7568_v46 = vld [vmem:[%s11161_s3 + $0xe0] sm:$0xf0]  ;;  %v3801_v3 = vadd.f32 %v10624_v52, %v3788_v44  ;;  %v7563_v52 = vld [vmem:[%s11161_s3 + $0xb8] sm:$0xf0]  ;;  %v6759_v38 = vor.u32 %v7545_v34, %v6758_v13  ;;  %v6966_v44 = vld [vmem:[%s11161_s3 + $0x1c8] sm:$0xf] }
 0x1ec   :  { %4484 = vmatpush.bf16.msrb.mxu0 %v6799_v57  ;;  %v6847_v51 = vor.u32 %v7568_v46, %v6846_v61  ;;  %v7540_v57 = vld [vmem:[%s11161_s3 + $0x4] sm:$0xf]  ;;  %v7598_v46 = vld [vmem:[%s11161_s3 + $0x1d0] sm:$0xf0]  ;;  %v6896_v13 = vld [vmem:[%s11161_s3 + $0x144] sm:$0xf0] }
 0x1ed   :  { %4497 = vmatpush.bf16.msrb.mxu1 %v6895_v59  ;;  %v6743_v8 = vor.u32 %v7540_v57, %v6740_v58  ;;  %v4065_v26 = vmax.f32 %v3801_v3, 0.0  ;;  %v6956_v3 = vld [vmem:[%s11161_s3 + $0x1bc] sm:$0xf0]  ;;  %v7592_v57 = vld [vmem:[%s11161_s3 + $0x1a0] sm:$0xf0] }
 0x1ee   :  { %v6902_v34 = vld [vmem:[%s11161_s3 + $0x140] sm:$0xf] }
 0x1ef   :  { %4523 = vmatpush.bf16.msrb.mxu3 %v6803_v62  ;;  %v6830_v62 = vld [vmem:[%s11161_s3 + $0xb0] sm:$0xf]  ;;  %v10849_v16 = vpack.c.bf16 %v4065_v26, %v4065_v26  ;;  %v7589_v26 = vld [vmem:[%s11161_s3 + $0x188] sm:$0xf0] }
 0x1f0   :  { %4485 = vmatpush.bf16.msrb.mxu0 %v6787_v15  ;;  %v3841_v9 = vpop.f32.mrf.mxu2  ;;  %v6831_v10 = vor.u32 %v7563_v52, %v6830_v62  ;;  %v4067_v15 = vpack.c.bf16 %v4064_v4, %v4064_v4  ;;  %v7591_v62 = vld [vmem:[%s11161_s3 + $0x19c] sm:$0xf]  ;;  %v6944_v52 = vld [vmem:[%s11161_s3 + $0x1a4] sm:$0xf0]  ;;  %v6943_v4 = vor.u32 %v7592_v57, %v6942_v56  ;;  %v6872_v56 = vld [vmem:[%s11161_s3 + $0x114] sm:$0xf0] }
 0x1f1   :  { %4498 = vmatpush.bf16.msrb.mxu1 %v6883_v24  ;;  %v3854_v59 = vpop.f32.mrf.mxu3  ;;  %v6806_v24 = vld [vmem:[%s11161_s3 + $0x80] sm:$0xf]  ;;  %v6955_v9 = vor.u32 %v7595_v18, %v6954_v48  ;;  %v7590_v48 = vld [vmem:[%s11161_s3 + $0x190] sm:$0xf0] }
 0x1f2   :  { %v6959_v59 = vor.u32 %v7594_v55, %v6956_v3  ;;  %v7573_v3 = vld [vmem:[%s11161_s3 + $0x10c] sm:$0xf] }
 0x1f3   :  { %4524 = vmatpush.bf16.msrb.mxu3 %v6791_v19  ;;  %v7557_v19 = vld [vmem:[%s11161_s3 + $0x88] sm:$0xf0] }
 0x1f4   :  { %4486 = vmatpush.bf16.msrb.mxu0 %v6775_v27  ;;  %v6807_v49 = vor.u32 %v7557_v19, %v6806_v24  ;;  %v6770_v27 = vld [vmem:[%s11161_s3 + $0x38] sm:$0xf]  ;;  %v6926_v19 = vld [vmem:[%s11161_s3 + $0x170] sm:$0xf] }
 0x1f5   :  { %4499 = vmatpush.bf16.msrb.mxu1 %v6871_v5  ;;  %v7548_v5 = vld [vmem:[%s11161_s3 + $0x40] sm:$0xf0]  ;;  %v6920_v24 = vld [vmem:[%s11161_s3 + $0x174] sm:$0xf0] }
 0x1f6   :  { %v6771_v29 = vor.u32 %v7548_v5, %v6770_v27  ;;  %v7584_v5 = vld [vmem:[%s11161_s3 + $0x160] sm:$0xf0] }
 0x1f7   :  { %4525 = vmatpush.bf16.msrb.mxu3 %v6779_v7 }
 0x1f8   :  { %4487 = vmatpush.bf16.msrb.mxu0 %v6763_v40  ;;  %v7542_v40 = vld [vmem:[%s11161_s3 + $0x10] sm:$0xf0] }
 0x1f9   :  { %4500 = vmatpush.bf16.msrb.mxu1 %v6859_v2  ;;  %v6747_v2 = vor.u32 %v7542_v40, %v6746_v39  ;;  %v6950_v39 = vld [vmem:[%s11161_s3 + $0x1a0] sm:$0xf]  ;;  %v7593_v40 = vld [vmem:[%s11161_s3 + $0x1a8] sm:$0xf0] }
 0x1fb   :  { %4526 = vmatpush.bf16.msrb.mxu3 %v6767_v41 }
 0x1fc   :  { %4488 = vmatpush.bf16.msrb.mxu0 %v6751_v50  ;;  %v6967_v50 = vor.u32 %v7598_v46, %v6966_v44 }
 0x1fd   :  { %4501 = vmatpush.bf16.msrb.mxu1 %v6847_v51  ;;  %v6968_v51 = vld [vmem:[%s11161_s3 + $0x1d4] sm:$0xf0] }
 0x1fe   :  { %4512 = vmatpush.bf16.msrb.mxu2 %v6967_v50  ;;  %v6890_v50 = vld [vmem:[%s11161_s3 + $0x128] sm:$0xf] }
 0x1ff   :  { %4527 = vmatpush.bf16.msrb.mxu3 %v6755_v54  ;;  %v6971_v54 = vor.u32 %v7597_v47, %v6968_v51  ;;  %v7576_v47 = vld [vmem:[%s11161_s3 + $0x124] sm:$0xf] }
 0x200   :  { %4489 = vmatpush.bf16.msrb.mxu0 %v6739_v63  ;;  %v3865_v22 = vpop.f32.mrf.mxu0 }
 0x201   :  { %4502 = vmatpush.bf16.msrb.mxu1 %v6835_v6  ;;  %v3866_v25 = vadd.f32 %v3865_v22, %v10796_v0  ;;  %v3878_v32 = vpop.f32.mrf.mxu1  ;;  %v6947_v6 = vor.u32 %v7591_v62, %v6944_v52  ;;  %v6927_v22 = vor.u32 %v7587_v60, %v6926_v19 }
 0x202   :  { %4513 = vmatpush.bf16.msrb.mxu2 %v6955_v9 }
 0x203   :  { %4528 = vmatpush.bf16.msrb.mxu3 %v6743_v8  ;;  %4490 = vmatmul.bf16.vlgmr.msrb.gmra.mxu0 %v4067_v15  ;;  %v3879_v33 = vadd.f32 %v3878_v32, %v3866_v25  ;;  %v6930_v8 = vld [vmem:[%s11161_s3 + $0x180] sm:$0xf]  ;;  %v7582_v25 = vld [vmem:[%s11161_s3 + $0x154] sm:$0xf] }
 0x204   :  { %4503 = vmatmul.bf16.vlgmr.msrb.gmra.mxu1 %v10849_v16  ;;  %v6931_v14 = vor.u32 %v7589_v26, %v6930_v8  ;;  %v6908_v32 = vld [vmem:[%s11161_s3 + $0x15c] sm:$0xf0]  ;;  %v7572_v26 = vld [vmem:[%s11161_s3 + $0x100] sm:$0xf0] }
 0x205   :  { %4560 = vmatpush.bf16.msra.mxu1 %v6831_v10  ;;  %v7588_v10 = vld [vmem:[%s11161_s3 + $0x184] sm:$0xf]  ;;  %v6911_v27 = vor.u32 %v7582_v25, %v6908_v32 }
 0x206   :  { %4529 = vmatmul.bf16.vlgmr.msrb.gmra.mxu3 %v4067_v15  ;;  %4514 = vmatpush.bf16.msrb.mxu2 %v6943_v4  ;;  %v6860_v4 = vld [vmem:[%s11161_s3 + $0xfc] sm:$0xf0] }
 0x207   :  { %4551 = vmatpush.bf16.msra.mxu3 %v6971_v54 }
 0x208   :  { %v3891_v7 = vpop.f32.mrf.mxu2  ;;  %v3867_v36 = vpop.f32.mrf.mxu0 }
 0x209   :  { %4561 = vmatpush.bf16.msra.mxu1 %v6819_v45  ;;  %v3892_v37 = vadd.f32 %v3891_v7, %v3879_v33  ;;  %v3904_v28 = vpop.f32.mrf.mxu3  ;;  %v3880_v17 = vpop.f32.mrf.mxu1  ;;  %v7585_v45 = vld [vmem:[%s11161_s3 + $0x16c] sm:$0xf]  ;;  %v6914_v33 = vld [vmem:[%s11161_s3 + $0x158] sm:$0xf]  ;;  %v7579_v36 = vld [vmem:[%s11161_s3 + $0x13c] sm:$0xf] }
 0x20a   :  { %4515 = vmatpush.bf16.msrb.mxu2 %v6931_v14  ;;  %v6962_v7 = vld [vmem:[%s11161_s3 + $0x1b8] sm:$0xf]  ;;  %v6899_v17 = vor.u32 %v7579_v36, %v6896_v13  ;;  %v6848_v14 = vld [vmem:[%s11161_s3 + $0xe4] sm:$0xf0] }
 0x20b   :  { %v10877_v12 = vadd.f32 %v3904_v28, %v3892_v37  ;;  %4552 = vmatpush.bf16.msra.mxu3 %v6959_v59  ;;  %v7596_v37 = vld [vmem:[%s11161_s3 + $0x1c0] sm:$0xf0]  ;;  %v6915_v28 = vor.u32 %v7584_v5, %v6914_v33  ;;  %v6878_v59 = vld [vmem:[%s11161_s3 + $0x110] sm:$0xf] }
 0x20d   :  { %4562 = vmatpush.bf16.msra.mxu1 %v6807_v49  ;;  %v6923_v49 = vor.u32 %v7585_v45, %v6920_v24  ;;  %v6854_v45 = vld [vmem:[%s11161_s3 + $0xe0] sm:$0xf]  ;;  %v7569_v24 = vld [vmem:[%s11161_s3 + $0xe8] sm:$0xf0] }
 0x20e   :  { %v6855_v60 = vor.u32 %v7569_v24, %v6854_v45 }
 0x20f   :  { %4553 = vmatpush.bf16.msra.mxu3 %v6947_v6  ;;  %4534 = vmatpush.bf16.msra.mxu2 %v6923_v49 }
 0x210   :  { %v3893_v0 = vpop.f32.mrf.mxu2 }
 0x211   :  { %4563 = vmatpush.bf16.msra.mxu1 %v6795_v21  ;;  %v3906_v1 = vpop.f32.mrf.mxu3  ;;  %v7599_v21 = vld [vmem:[%s11161_s3 + $0x1d8] sm:$0xf0] }
 0x212   :  { %v6975_v30 = vor.u32 %v7599_v21, %v6974_v20  ;;  %v6951_v1 = vor.u32 %v7593_v40, %v6950_v39  ;;  %v7564_v20 = vld [vmem:[%s11161_s3 + $0xc4] sm:$0xf]  ;;  %v6842_v21 = vld [vmem:[%s11161_s3 + $0xc8] sm:$0xf] }
 0x213   :  { %4535 = vmatpush.bf16.msra.mxu2 %v6911_v27 }
 0x214   :  { %4590 = vmatpush.bf16.msra.mxu0 %v6975_v30 }
 0x215   :  { %4564 = vmatpush.bf16.msra.mxu1 %v6783_v35 }
 0x217   :  { %4536 = vmatpush.bf16.msra.mxu2 %v6899_v17 }
 0x219   :  { %4565 = vmatpush.bf16.msra.mxu1 %v6771_v29  ;;  %v6963_v29 = vor.u32 %v7596_v37, %v6962_v7 }
 0x21b   :  { %4591 = vmatpush.bf16.msra.mxu0 %v6963_v29 }
 0x21d   :  { %4566 = vmatpush.bf16.msra.mxu1 %v6759_v38  ;;  %v7581_v38 = vld [vmem:[%s11161_s3 + $0x148] sm:$0xf0] }
 0x21e   :  { %v6903_v0 = vor.u32 %v7581_v38, %v6902_v34 }
 0x21f   :  { %4592 = vmatpush.bf16.msra.mxu0 %v6951_v1 }
 0x220   :  { %v10891_v41 = vpop.f32.mrf.mxu0 }
 0x221   :  { %4567 = vmatpush.bf16.msra.mxu1 %v6747_v2  ;;  %v10893_v42 = vpop.f32.mrf.mxu1 }
 0x224   :  { %4568 = vmatmul.bf16.vlgmr.msra.gmra.mxu1 %v4067_v15  ;;  %v6935_v15 = vor.u32 %v7588_v10, %v6932_v11  ;;  %v7567_v11 = vld [vmem:[%s11161_s3 + $0xdc] sm:$0xf] }
 0x225   :  { %v6851_v49 = vor.u32 %v7567_v11, %v6848_v14 }
 0x226   :  { %4554 = vmatpush.bf16.msra.mxu3 %v6935_v15 }
 0x228   :  { %v10895_v53 = vpop.f32.mrf.mxu2  ;;  %v3919_v43 = vpop.f32.mrf.mxu0 }
 0x229   :  { %v10897_v61 = vpop.f32.mrf.mxu3  ;;  %v3932_v23 = vpop.f32.mrf.mxu1  ;;  %v3918_v43 = vadd.f32 %v10891_v41, %v10877_v12  ;;  %v7578_v12 = vld [vmem:[%s11161_s3 + $0x130] sm:$0xf0]  ;;  %v6938_v41 = vld [vmem:[%s11161_s3 + $0x188] sm:$0xf] }
 0x22a   :  { %4573 = vmatpush.bf16.msrb.mxu3 %v6927_v22  ;;  %v6884_v23 = vld [vmem:[%s11161_s3 + $0x12c] sm:$0xf0]  ;;  %v6891_v18 = vor.u32 %v7578_v12, %v6890_v50  ;;  %v6939_v55 = vor.u32 %v7590_v48, %v6938_v41  ;;  %v7566_v22 = vld [vmem:[%s11161_s3 + $0xd0] sm:$0xf0]  ;;  %v7605_v12 = vld [vmem:[%s11163_s5 + $0x28] sm:$0xff] }
 0x22b   :  { %v6887_v54 = vor.u32 %v7576_v47, %v6884_v23  ;;  %v3931_v9 = vadd.f32 %v10893_v42, %v3918_v43  ;;  %v7575_v42 = vld [vmem:[%s11161_s3 + $0x118] sm:$0xf0]  ;;  %v6843_v25 = vor.u32 %v7566_v22, %v6842_v21 }
 0x22c   :  { %4593 = vmatpush.bf16.msra.mxu0 %v6939_v55  ;;  %v6879_v52 = vor.u32 %v7575_v42, %v6878_v59  ;;  %v7607_v47 = vld [vmem:[%s11163_s5 + $0x38] sm:$0xff]  ;;  %v7600_v59 = vld [vmem:[%s11163_s5] sm:$0xff] }
 0x22d   :  { %4537 = vmatpush.bf16.msra.mxu2 %v6887_v54  ;;  %v3944_v57 = vadd.f32 %v10895_v53, %v3931_v9  ;;  %v6866_v53 = vld [vmem:[%s11161_s3 + $0xf8] sm:$0xf]  ;;  %v7612_v42 = vld [vmem:[%s11163_s5 + $0x60] sm:$0xff] }
 0x22e   :  { %4574 = vmatpush.bf16.msrb.mxu3 %v6915_v28  ;;  %v6867_v10 = vor.u32 %v7572_v26, %v6866_v53  ;;  %v7603_v48 = vld [vmem:[%s11163_s5 + $0x18] sm:$0xff]  ;;  %v7617_v53 = vld [vmem:[%s11163_s5 + $0x88] sm:$0xff]  ;;  %v7608_v26 = vld [vmem:[%s11163_s5 + $0x40] sm:$0xff] }
 0x22f   :  { %v3957_v15 = vadd.f32 %v10897_v61, %v3944_v57  ;;  %v6836_v61 = vld [vmem:[%s11161_s3 + $0xcc] sm:$0xf0]  ;;  %v7615_v9 = vld [vmem:[%s11163_s5 + $0x78] sm:$0xff]  ;;  %v7601_v57 = vld [vmem:[%s11163_s5 + $0x8] sm:$0xff] }
 0x230   :  { %v3945_v58 = vpop.f32.mrf.mxu2  ;;  %4785 = vmatpush.bf16.msrb.mxu0 %v7615_v9 }
 0x231   :  { %v3958_v63 = vpop.f32.mrf.mxu3  ;;  %v6875_v58 = vor.u32 %v7573_v3, %v6872_v56  ;;  %v7602_v3 = vld [vmem:[%s11163_s5 + $0x10] sm:$0xff] }
 0x232   :  { %4575 = vmatpush.bf16.msrb.mxu3 %v6903_v0  ;;  %v7570_v63 = vld [vmem:[%s11161_s3 + $0xf4] sm:$0xf]  ;;  %v11084_v0 = vld [vmem:[%s11162_s4] sm:$0x7] }
 0x233   :  { %4538 = vmatpush.bf16.msra.mxu2 %v6875_v58  ;;  %v6863_v8 = vor.u32 %v7570_v63, %v6860_v4  ;;  %v4152_v1 = vperm.slane %v11084_v0, 0  ;;  %v7614_v56 = vld [vmem:[%s11163_s5 + $0x70] sm:$0xff]  ;;  %v7613_v58 = vld [vmem:[%s11163_s5 + $0x68] sm:$0xff] }
 0x234   :  { %4786 = vmatpush.bf16.msrb.mxu0 %v7614_v56  ;;  %v7618_v63 = vld [vmem:[%s11163_s5 + $0x90] sm:$0xff] }
 0x235   :  { %v7610_v4 = vld [vmem:[%s11163_s5 + $0x50] sm:$0xff] }
 0x236   :  { %4576 = vmatpush.bf16.msrb.mxu3 %v6891_v18 }
 0x237   :  { %4539 = vmatpush.bf16.msra.mxu2 %v6863_v8  ;;  %v7616_v8 = vld [vmem:[%s11163_s5 + $0x80] sm:$0xff] }
 0x238   :  { %4787 = vmatpush.bf16.msrb.mxu0 %v7613_v58 }
 0x23a   :  { %4577 = vmatpush.bf16.msrb.mxu3 %v6879_v52  ;;  %v7611_v52 = vld [vmem:[%s11163_s5 + $0x58] sm:$0xff] }
 0x23b   :  { %4540 = vmatpush.bf16.msra.mxu2 %v6851_v49 }
 0x23c   :  { %4788 = vmatpush.bf16.msrb.mxu0 %v7612_v42 }
 0x23e   :  { %4578 = vmatpush.bf16.msrb.mxu3 %v6867_v10 }
 0x240   :  { %v10965_v31 = vpop.f32.mrf.mxu0  ;;  %4789 = vmatpush.bf16.msrb.mxu0 %v7611_v52 }
 0x241   :  { %v10976_v35 = vpop.f32.mrf.mxu1  ;;  %v3970_v19 = vadd.f32 %v10965_v31, %v3957_v15  ;;  %v6839_v31 = vor.u32 %v7564_v20, %v6836_v61  ;;  %v4153_v20 = vperm.slane %v11084_v0, 1  ;;  %v4154_v61 = vperm.slane %v11084_v0, 2 }
 0x242   :  { %4579 = vmatpush.bf16.msrb.mxu3 %v6855_v60 }
 0x243   :  { %v3983_v30 = vadd.f32 %v10976_v35, %v3970_v19  ;;  %4541 = vmatpush.bf16.msra.mxu2 %v6839_v31 }
 0x244   :  { %4790 = vmatpush.bf16.msrb.mxu0 %v7610_v4 }
 0x246   :  { %4580 = vmatpush.bf16.msrb.mxu3 %v6843_v25 }
 0x248   :  { %v3995_v2 = vpop.f32.mrf.mxu2  ;;  %v3971_v46 = vpop.f32.mrf.mxu0 }
 0x249   :  { %v4008_v44 = vpop.f32.mrf.mxu3  ;;  %v3984_v51 = vpop.f32.mrf.mxu1  ;;  %v3996_v32 = vadd.f32 %v3995_v2, %v3983_v30 }
 0x24a   :  { %v7606_v51 = vld [vmem:[%s11163_s5 + $0x30] sm:$0xff] }
 0x24b   :  { %v4009_v33 = vadd.f32 %v4008_v44, %v3996_v32 }
 0x250   :  { %v3997_v62 = vpop.f32.mrf.mxu2 }
 0x251   :  { %v4010_v6 = vpop.f32.mrf.mxu3  ;;  %v7619_v62 = vld [vmem:[%s11163_s5 + $0x98] sm:$0xff] }
 0x252   :  { %4802 = vmatpush.bf16.msrb.mxu1 %v7619_v62  ;;  %v7609_v6 = vld [vmem:[%s11163_s5 + $0x48] sm:$0xff] }
 0x253   :  { %4791 = vmatpush.bf16.msrb.mxu0 %v7609_v6 }
 0x256   :  { %4803 = vmatpush.bf16.msrb.mxu1 %v7618_v63 }
 0x257   :  { %4792 = vmatpush.bf16.msrb.mxu0 %v7608_v26 }
 0x25a   :  { %4804 = vmatpush.bf16.msrb.mxu1 %v7617_v53 }
 0x25e   :  { %4805 = vmatpush.bf16.msrb.mxu1 %v7616_v8 }
 0x260   :  { %v4021_v27 = vpop.f32.mrf.mxu0 }
 0x261   :  { %v4034_v5 = vpop.f32.mrf.mxu1  ;;  %v4022_v7 = vadd.f32 %v4021_v27, %v4009_v33 }
 0x263   :  { %v4035_v37 = vadd.f32 %v4034_v5, %v4022_v7 }
 0x268   :  { %v4047_v28 = vpop.f32.mrf.mxu2  ;;  %v4023_v13 = vpop.f32.mrf.mxu0 }
 0x269   :  { %v4060_v29 = vpop.f32.mrf.mxu3  ;;  %v4048_v36 = vadd.f32 %v4047_v28, %v4035_v37  ;;  %v4036_v34 = vpop.f32.mrf.mxu1 }
 0x26a   :  { %v7620_v34 = vld [vmem:[%s11164_s6] ss:$0 sm:$0xff] }
 0x26b   :  { %v4061_v17 = vadd.f32 %v4060_v29, %v4048_v36 }
 0x26d   :  { %v4066_v38 = vmax.f32 %v4061_v17, 0.0 }
 0x26f   :  { %v4069_v35 = vpack.c.bf16 %v4066_v38, %v4066_v38 }
 0x270   :  { %v4049_v39 = vpop.f32.mrf.mxu2 }
 0x271   :  { %v4062_v40 = vpop.f32.mrf.mxu3  ;;  %6976 = vmatmul.msk.bf16.vlgmr.msrb.gmra.mxu2 %vm4478_vm0, %v4069_v35  ;;  %6977 = vmatmul.msk.bf16.vlgmr.msra.gmra.mxu3 %vm4478_vm0, %v4069_v35 }
 0x272   :  { %6978 = vmatmul.msk.bf16.vlgmr.msra.gmra.mxu0 %vm4478_vm0, %v4069_v35  ;;  %4772 = vmatpush.bf16.msrb.mxu2 %v7607_v47 }
 0x276   :  { %4773 = vmatpush.bf16.msrb.mxu2 %v7606_v51 }
 0x27a   :  { %4774 = vmatpush.bf16.msrb.mxu2 %v7605_v12 }
 0x280   :  { %v4491_v2 = vpop.f32.mrf.mxu0 }
 0x281   :  { %v4492_v43 = vadd.f32 %v4491_v2, %v4152_v1  ;;  %v4504_v44 = vpop.f32.mrf.mxu1  ;;  %4542 = vmatmul.bf16.vlgmr.msra.gmra.mxu2 %v10849_v16  ;;  %4581 = vmatmul.bf16.vlgmr.msrb.gmra.mxu3 %v10849_v16  ;;  %v7604_v16 = vld [vmem:[%s11163_s5 + $0x20] sm:$0xff] }
 0x282   :  { %4775 = vmatpush.bf16.msrb.mxu2 %v7604_v16 }
 0x283   :  { %v4505_v46 = vadd.f32 %v4504_v44, %v4492_v43 }
 0x286   :  { %4776 = vmatpush.bf16.msrb.mxu2 %v7603_v48 }
 0x288   :  { %v4493_v50 = vpop.f32.mrf.mxu0 }
 0x289   :  { %v4530_v23 = vpop.f32.mrf.mxu3  ;;  %v4506_v54 = vpop.f32.mrf.mxu1 }
 0x28a   :  { %4777 = vmatpush.bf16.msrb.mxu2 %v7602_v3  ;;  %v4531_v21 = vadd.f32 %v4530_v23, %v4153_v20 }
 0x28e   :  { %4778 = vmatpush.bf16.msrb.mxu2 %v7601_v57 }
 0x291   :  { %v4532_v41 = vpop.f32.mrf.mxu3 }
 0x292   :  { %4779 = vmatpush.bf16.msrb.mxu2 %v7600_v59 }
 0x2a1   :  { %v4569_v18 = vpop.f32.mrf.mxu1 }
 0x2a2   :  { %v4570_v22 = vadd.f32 %v4569_v18, %v4154_v61 }
 0x2a9   :  { %v4571_v55 = vpop.f32.mrf.mxu1 }
 0x2ef   :  { %v4595_v10 = vpop.f32.mrf.mxu0 }
 0x2f4   :  { %v4517_v11 = vpop.f32.mrf.mxu2  ;;  %v4556_v14 = vpop.f32.mrf.mxu3 }
 0x2f5   :  { %v4518_v15 = vadd.f32 %v4517_v11, %v4505_v46 }
 0x2f7   :  { %v4599_v45 = vmax.f32 %v4518_v15, 0.0  ;;  %v4597_v24 = vpop.f32.mrf.mxu0 }
 0x2f9   :  { %v4602_v19 = vpack.c.bf16 %v4599_v45, %v4599_v45 }
 0x2fb   :  { %4780 = vmatmul.bf16.vlgmr.msrb.gmra.mxu2 %v4602_v19 }
 0x2fc   :  { %v4519_v49 = vpop.f32.mrf.mxu2  ;;  %v4558_v60 = vpop.f32.mrf.mxu3 }
 0x304   :  { %v4543_v30 = vpop.f32.mrf.mxu2  ;;  %v4582_v31 = vpop.f32.mrf.mxu3 }
 0x305   :  { %v4544_v25 = vadd.f32 %v4543_v30, %v4531_v21  ;;  %v4583_v32 = vadd.f32 %v4582_v31, %v4570_v22 }
 0x307   :  { %v4557_v33 = vadd.f32 %v4556_v14, %v4544_v25  ;;  %v4596_v27 = vadd.f32 %v4595_v10, %v4583_v32 }
 0x309   :  { %v4600_v5 = vmax.f32 %v4557_v33, 0.0  ;;  %v4601_v7 = vmax.f32 %v4596_v27, 0.0 }
 0x30b   :  { %v4603_v37 = vpack.c.bf16 %v4600_v5, %v4600_v5  ;;  %v4604_v28 = vpack.c.bf16 %v4601_v7, %v4601_v7 }
 0x30c   :  { %v4545_v29 = vpop.f32.mrf.mxu2  ;;  %v4584_v36 = vpop.f32.mrf.mxu3 }
 0x30d   :  { %4793 = vmatmul.bf16.vlgmr.msrb.gmra.mxu0 %v4603_v37  ;;  %7059 = vmatmul.msk.bf16.vlgmr.msrb.gmra.mxu1 %vm4478_vm0, %v4604_v28 }
 0x37e   :  { %v4781_v13 = vpop.f32.mrf.mxu2 }
 0x37f   :  { %v4782_v38 = vadd.f32 %v7620_v34, %v4781_v13 }
 0x386   :  { %v4783_v17 = vpop.f32.mrf.mxu2 }
 0x38a   :  { %v4794_v35 = vpop.f32.mrf.mxu0  ;;  %v4807_v39 = vpop.f32.mrf.mxu1 }
 0x38b   :  { %v4795_v40 = vadd.f32 %v4794_v35, %v4782_v38 }
 0x38d   :  { %v4808_v0 = vadd.f32 %v4807_v39, %v4795_v40 }
 0x38f   :  { %4811 = vst [vmem:[%s11165_s7] sm:$0x3] %v4808_v0 }
 0x392   :  { %v4796_v1 = vpop.f32.mrf.mxu0  ;;  %v4809_v2 = vpop.f32.mrf.mxu1 }

</bundles_post_ra>
